<compile_context>
chip_gen: v5e
topology: v5e:2x2
jax: 0.10.0
libtpu: 0.0.40
codegen_flags: <defaults>
</compile_context>

<pallas_src>
import functools

import numpy as np
import jax
import jax.numpy as jnp
from jax.experimental import pallas as pl
from jax.experimental.pallas import tpu as pltpu

EPS = 1e-5
_ROW_BLOCK_TARGET = 2 * 1024 * 1024  # target bytes of row data per grid step


# ----------------------------- small helpers --------------------------------

def _f32(v):
    return v.astype(jnp.float32)


def _bf16(v):
    return v.astype(jnp.bfloat16)


@functools.lru_cache(maxsize=None)
def _vmem_limit_bytes():
    """Chip-aware VMEM budget: ~half of physical VMEM, capped at 64 MiB."""
    cap = 128 * 1024 * 1024
    try:
        cap = int(pltpu.get_tpu_info().vmem_capacity_bytes)
    except Exception:
        pass
    return int(min(max(cap // 2, 16 * 1024 * 1024), 64 * 1024 * 1024))


def _compiler_params():
    return pltpu.CompilerParams(
        dimension_semantics=("parallel",),
        vmem_limit_bytes=_vmem_limit_bytes(),
    )


# ----------------------------- Pallas kernels -------------------------------

def _conv_kernel(x_ref, w_ref, s_ref, b_ref, o_ref, *, relu):
    """out = relu?((x @ W) * scale + shift)   (1x1 conv + folded BN)."""
    y = jnp.dot(_bf16(x_ref[...]), w_ref[...],
                preferred_element_type=jnp.float32)
    y = y * s_ref[...] + b_ref[...]
    if relu:
        y = jnp.maximum(y, 0.0)
    o_ref[...] = y.astype(o_ref.dtype)


def _pre_conv_kernel(x_ref, ps_ref, pb_ref, w_ref, *rest, relu, post_scale):
    """out = post(relu_pre(x*ps+pb) @ W); post = *s+b (folded BN) or +b."""
    h = jnp.maximum(_f32(x_ref[...]) * ps_ref[...] + pb_ref[...], 0.0)
    acc = jnp.dot(_bf16(h), w_ref[...], preferred_element_type=jnp.float32)
    if post_scale:
        s_ref, b_ref, o_ref = rest
        y = acc * s_ref[...] + b_ref[...]
    else:
        b_ref, o_ref = rest
        y = acc + b_ref[...]
    if relu:
        y = jnp.maximum(y, 0.0)
    o_ref[...] = y.astype(o_ref.dtype)


def _addpre_conv_kernel(a_ref, b2_ref, ps_ref, pb_ref, w_ref, s_ref, sh_ref,
                        o_ref, *, relu):
    """out = relu?((relu((a+b)*ps+pb) @ W) * s + sh)."""
    h = jnp.maximum((_f32(a_ref[...]) + _f32(b2_ref[...])) * ps_ref[...]
                    + pb_ref[...], 0.0)
    y = jnp.dot(_bf16(h), w_ref[...], preferred_element_type=jnp.float32)
    y = y * s_ref[...] + sh_ref[...]
    if relu:
        y = jnp.maximum(y, 0.0)
    o_ref[...] = y.astype(o_ref.dtype)


def _addpre_conv_res_kernel(a_ref, b2_ref, r_ref, ps_ref, pb_ref, w_ref,
                            s_ref, sh_ref, rs_ref, rb_ref, o_ref):
    """conv_out + PRM tail:
       y   = (relu((a+b)*ps+pb) @ W) * s + sh     (block_bn+relu, conv_out+out_bn)
       out = relu((y + r) * rs + rb)              (+ skip, final_bn, relu)."""
    h = jnp.maximum((_f32(a_ref[...]) + _f32(b2_ref[...])) * ps_ref[...]
                    + pb_ref[...], 0.0)
    y = jnp.dot(_bf16(h), w_ref[...], preferred_element_type=jnp.float32)
    y = y * s_ref[...] + sh_ref[...]
    y = jnp.maximum((y + _f32(r_ref[...])) * rs_ref[...] + rb_ref[...], 0.0)
    o_ref[...] = y.astype(o_ref.dtype)


def _matmul_kernel(a_ref, b_ref, o_ref):
    """Plain bf16 MXU matmul with f32 accumulation (resize W-axis step)."""
    o_ref[...] = jnp.dot(_bf16(a_ref[...]), b_ref[...],
                         preferred_element_type=jnp.float32).astype(o_ref.dtype)


def _hresize_kernel(z_ref, ah_ref, o_ref):
    """Per-batch H-axis interpolation: o = Ah @ z  (resize H-axis step)."""
    o_ref[0] = jnp.dot(ah_ref[...], _bf16(z_ref[0]),
                       preferred_element_type=jnp.float32).astype(o_ref.dtype)


def _conv3x3_kernel(x_ref, w_ref, s_ref, b_ref, o_ref, *, h, w, relu):
    """3x3 conv (stride 1, pad 1) + folded BN (+ReLU) as 9 shifted matmuls.

    x_ref : (1, pin, cin)  flattened zero-padded image, row stride = w+2
    w_ref : (9, cin, cout) bf16 taps (dh-major, dw-minor)
    o_ref : (1, h*(w+2), cout)  'wide' output; the 2 pad columns per row hold
            garbage and are dropped by the caller with a cheap XLA slice.
    """
    wp = w + 2
    L = h * wp
    cout = o_ref.shape[-1]
    acc = jnp.zeros((L, cout), jnp.float32)
    for dh in range(3):
        for dw in range(3):
            off = dh * wp + dw
            acc = acc + jnp.dot(x_ref[0, off:off + L, :], w_ref[dh * 3 + dw],
                                preferred_element_type=jnp.float32)
    y = acc * s_ref[...] + b_ref[...]
    if relu:
        y = jnp.maximum(y, 0.0)
    o_ref[0] = y.astype(o_ref.dtype)


# ----------------------------- launch helpers -------------------------------

def _pick_row_tile(m, bytes_per_row):
    """Byte-aware row tile: whole array if small, else a multiple-of-8 divisor
    of m targeting ~_ROW_BLOCK_TARGET bytes (no ragged tail)."""
    if m <= 8 or m * bytes_per_row <= _ROW_BLOCK_TARGET:
        return m
    cap = max(8, min(m, (_ROW_BLOCK_TARGET // max(bytes_per_row, 1)) // 8 * 8))
    for t in range(cap - cap % 8, 7, -8):
        if m % t == 0:
            return t
    return cap  # rare fallback: ragged tail handled by padding


def _run_rowwise(kernel, row_inputs, const_inputs, n_out,
                 out_dtype=jnp.bfloat16):
    """Run `kernel(rows..., consts..., out)` tiled over the shared row dim."""
    m = row_inputs[0].shape[0]
    bytes_per_row = sum(int(r.shape[1]) * r.dtype.itemsize for r in row_inputs)
    bytes_per_row += int(n_out) * jnp.dtype(out_dtype).itemsize
    tm = _pick_row_tile(m, bytes_per_row)
    pad = (-m) % tm
    if pad:
        row_inputs = [jnp.pad(r, ((0, pad), (0, 0))) for r in row_inputs]
    mp = m + pad

    in_specs = [pl.BlockSpec((tm, r.shape[1]), lambda i: (i, 0))
                for r in row_inputs]
    in_specs += [pl.BlockSpec(c.shape, lambda i, nd=c.ndim: (0,) * nd)
                 for c in const_inputs]

    out = pl.pallas_call(
        kernel,
        out_shape=jax.ShapeDtypeStruct((mp, n_out), out_dtype),
        grid_spec=pltpu.PrefetchScalarGridSpec(
            num_scalar_prefetch=0,
            grid=(mp // tm,),
            in_specs=in_specs,
            out_specs=pl.BlockSpec((tm, n_out), lambda i: (i, 0)),
        ),
        compiler_params=_compiler_params(),
    )(*row_inputs, *const_inputs)
    return out[:m] if pad else out


# ------------------------- layer-level helpers ------------------------------

def bn_fold(bn, conv_bias=None):
    """Fold inference-mode BatchNorm (+ optional conv bias) into scale/shift."""
    gamma, beta, mean, var = bn
    scale = gamma / jnp.sqrt(var + EPS)
    shift = beta - mean * scale
    if conv_bias is not None:
        shift = shift + conv_bias * scale
    return _f32(scale[None, :]), _f32(shift[None, :])


def conv1x1_bn(x2d, conv, bn, relu, out_dtype=jnp.bfloat16):
    """1x1 conv + folded BN (+ optional ReLU) on rows layout."""
    w, b = conv
    s, sh = bn_fold(bn, b)
    return _run_rowwise(functools.partial(_conv_kernel, relu=relu),
                        [x2d], [_bf16(w), s, sh], w.shape[1], out_dtype)


def conv3x3_bn(x, conv, bn, relu):
    """3x3 conv (stride 1, pad 1) + folded BN (+ReLU), 9 in-kernel matmuls.

    x: (n, h, w, cin) NHWC (bf16); returns (n, h, w, cout) bf16.
    TODO(synk): grid is over batch only; very large spatial extents would need
    halo-tiled row blocks to bound per-step VMEM.
    """
    n, h, w, cin = x.shape
    w4, b = conv
    cout = w4.shape[-1]
    wp = w + 2
    w9 = _bf16(w4.reshape(9, cin, cout))
    s, sh = bn_fold(bn, b)

    # Zero-pad: (1,1) spatial halo + one extra bottom row so every tap's
    # flattened slice stays in range; then flatten spatial dims.
    xp = jnp.pad(x, ((0, 0), (1, 2), (1, 1), (0, 0)))
    pin = (h + 3) * wp
    xp = xp.reshape(n, pin, cin)
    L = h * wp

    wide = pl.pallas_call(
        functools.partial(_conv3x3_kernel, h=h, w=w, relu=relu),
        out_shape=jax.ShapeDtypeStruct((n, L, cout), jnp.bfloat16),
        grid_spec=pltpu.PrefetchScalarGridSpec(
            num_scalar_prefetch=0,
            grid=(n,),
            in_specs=[pl.BlockSpec((1, pin, cin), lambda i: (i, 0, 0)),
                      pl.BlockSpec((9, cin, cout), lambda i: (0, 0, 0)),
                      pl.BlockSpec((1, cout), lambda i: (0, 0)),
                      pl.BlockSpec((1, cout), lambda i: (0, 0))],
            out_specs=pl.BlockSpec((1, L, cout), lambda i: (i, 0, 0)),
        ),
        compiler_params=_compiler_params(),
    )(xp, w9, s, sh)
    # Drop the 2 garbage pad columns per row.
    return wide.reshape(n, h, wp, cout)[:, :, :w, :]


def frac_max_pool(x, out_h, out_w, k=3):
    # TODO(synk): nn.FractionalMaxPool2d samples random region offsets per
    # forward; we use PyTorch's deterministic interval generator with u=0.
    # The (separable, 3+3 take) gather itself is left to XLA — tensors here
    # are small; a Pallas scalar-prefetch version is possible but lower value.
    n, h, w, c = x.shape

    def starts(inp, out):
        if out > 1:
            alpha = (inp - k) / (out - 1)
            s = [int(i * alpha) for i in range(out - 1)] + [inp - k]
        else:
            s = [inp - k]
        return np.asarray(s, np.int32)

    hs, ws = starts(h, out_h), starts(w, out_w)
    rows = None
    for di in range(k):
        r = jnp.take(x, hs + di, axis=1)               # (n, out_h, w, c)
        rows = r if rows is None else jnp.maximum(rows, r)
    out = None
    for dj in range(k):
        v = jnp.take(rows, ws + dj, axis=2)            # (n, out_h, out_w, c)
        out = v if out is None else jnp.maximum(out, v)
    return out


def _interp_matrix_np(out_size, in_size):
    """Bilinear (align_corners=True) interpolation matrix, (out, in)."""
    if in_size == 1:
        return np.ones((out_size, 1), np.float32)
    if out_size == 1:
        m = np.zeros((1, in_size), np.float32)
        m[0, 0] = 1.0
        return m
    src = np.arange(out_size, dtype=np.float64) * (in_size - 1) / (out_size - 1)
    i0 = np.clip(np.floor(src).astype(np.int64), 0, in_size - 1)
    i1 = np.minimum(i0 + 1, in_size - 1)
    w1 = (src - i0).astype(np.float32)
    w0 = 1.0 - w1
    m = np.zeros((out_size, in_size), np.float32)
    np.add.at(m, (np.arange(out_size), i0), w0)
    np.add.at(m, (np.arange(out_size), i1), w1)
    return m


def bilinear_resize_rows(y_rows, n, oh, ow, c, H, W):
    """Separable F.interpolate(..., 'bilinear', align_corners=True).

    y_rows: (n*oh*ow, c) -> (n*H*W, c).  Two tiny bf16 interpolation matrices
    (no kron), each applied as a plain 2D MXU matmul; contraction dims shorter
    than 8 are zero-padded to 8 for robust bf16 matmul lowering.
    """
    aw = _interp_matrix_np(W, ow)                    # (W, ow)
    ah = _interp_matrix_np(H, oh)                    # (H, oh)
    ow_p, oh_p = max(ow, 8), max(oh, 8)
    awt_np = np.zeros((ow_p, W), np.float32)
    awt_np[:ow, :] = aw.T
    ah_np = np.zeros((H, oh_p), np.float32)
    ah_np[:, :oh] = ah
    awt = jnp.asarray(awt_np, jnp.bfloat16)
    ahp = jnp.asarray(ah_np, jnp.bfloat16)

    # ---- W-axis interpolation (rows-tiled matmul) ----
    t = y_rows.reshape(n, oh, ow, c)
    t = jnp.transpose(t, (0, 1, 3, 2)).reshape(n * oh * c, ow)
    if ow_p != ow:
        t = jnp.pad(t, ((0, 0), (0, ow_p - ow)))
    u = _run_rowwise(_matmul_kernel, [t], [awt], W)          # (n*oh*c, W) bf16

    # ---- H-axis interpolation (per-batch matmul, grid over n) ----
    u = jnp.transpose(u.reshape(n, oh, c, W), (0, 1, 3, 2))  # (n, oh, W, c)
    Wc = W * c
    u = u.reshape(n, oh, Wc)
    if oh_p != oh:
        u = jnp.pad(u, ((0, 0), (0, oh_p - oh), (0, 0)))
    v = pl.pallas_call(
        _hresize_kernel,
        out_shape=jax.ShapeDtypeStruct((n, H, Wc), jnp.bfloat16),
        grid_spec=pltpu.PrefetchScalarGridSpec(
            num_scalar_prefetch=0,
            grid=(n,),
            in_specs=[pl.BlockSpec((1, oh_p, Wc), lambda i: (i, 0, 0)),
                      pl.BlockSpec((H, oh_p), lambda i: (0, 0))],
            out_specs=pl.BlockSpec((1, H, Wc), lambda i: (i, 0, 0)),
        ),
        compiler_params=_compiler_params(),
    )(u, ahp)
    return v.reshape(n * H * W, c)


# ----------------------------- parameters -----------------------------------

def init_prm_params(key, in_ch, out_ch, cardinality=4):
    mid = out_ch // 2
    keys = iter(jax.random.split(key, 256))

    def nrm(shape, std=0.1):
        return std * jax.random.normal(next(keys), shape, jnp.float32)

    def bn_params(c):
        return (1.0 + nrm((c,)), nrm((c,)), nrm((c,)), 1.0 + jnp.abs(nrm((c,))))

    def conv_params(cin, cout, k=1):
        w = nrm((cin, cout)) if k == 1 else nrm((k, k, cin, cout))
        return (w, nrm((cout,)))

    p = {}
    # SkipLayer
    p['bn_skip'] = bn_params(in_ch)
    p['skip_conv'] = conv_params(in_ch, out_ch)
    # ConvBlock main branch
    p['bn_pre'] = bn_params(in_ch)
    p['m_conv1'] = conv_params(in_ch, mid); p['m_bn1'] = bn_params(mid)
    p['m_conv2'] = conv_params(mid, mid, 3); p['m_bn2'] = bn_params(mid)
    p['m_conv3'] = conv_params(mid, mid); p['m_bn3'] = bn_params(mid)
    # conv_top
    p['top_conv'] = conv_params(in_ch, mid); p['top_bn'] = bn_params(mid)
    # pyramid (PryBottleNet x cardinality)
    for i in range(cardinality):
        p[f'pry{i}_conv1'] = conv_params(mid, mid, 3); p[f'pry{i}_bn1'] = bn_params(mid)
        p[f'pry{i}_conv2'] = conv_params(mid, mid); p[f'pry{i}_bn2'] = bn_params(mid)
    # ConvBlock tail (self.bn is reused twice in the PyTorch forward)
    p['block_bn'] = bn_params(mid)
    p['bot_conv'] = conv_params(mid, mid); p['bot_bn'] = bn_params(mid)
    p['out_conv'] = conv_params(mid, out_ch); p['out_bn'] = bn_params(out_ch)
    # PRM final BN
    p['final_bn'] = bn_params(out_ch)
    return p


# ------------------------------- forward ------------------------------------

def prm_forward(x_nchw, params, *, in_ch, out_ch, ori_shape,
                block_type='preact', cardinality=4):
    # BatchNorm layers are evaluated in inference mode (folded affine).
    x = jnp.transpose(x_nchw, (0, 2, 3, 1))                  # NCHW -> NHWC
    H, W = ori_shape
    n = x.shape[0]
    mid = out_ch // 2
    x2d = _bf16(x.reshape(-1, in_ch))                        # bf16 activations

    # --- SkipLayer: BN + ReLU + conv1x1 (no BN) fused in one kernel ---
    if in_ch == out_ch:
        out_skip2d = x2d
    else:
        ps, pb = bn_fold(params['bn_skip'])
        w_s, b_s = params['skip_conv']
        out_skip2d = _run_rowwise(
            functools.partial(_pre_conv_kernel, relu=False, post_scale=False),
            [x2d], [ps, pb, _bf16(w_s), _f32(b_s[None, :])], out_ch)

    # --- ConvBlock main branch ---
    w1, b1 = params['m_conv1']
    s1, sh1 = bn_fold(params['m_bn1'], b1)
    if block_type != 'no_preact':
        ps, pb = bn_fold(params['bn_pre'])
        h2d = _run_rowwise(
            functools.partial(_pre_conv_kernel, relu=True, post_scale=True),
            [x2d], [ps, pb, _bf16(w1), s1, sh1], mid)
    else:
        h2d = _run_rowwise(functools.partial(_conv_kernel, relu=True),
                           [x2d], [_bf16(w1), s1, sh1], mid)
    hmap = conv3x3_bn(h2d.reshape(n, H, W, mid), params['m_conv2'],
                      params['m_bn2'], relu=True)
    out_main2d = conv1x1_bn(hmap.reshape(-1, mid), params['m_conv3'],
                            params['m_bn3'], relu=False)

    # --- conv_top + pyramid branch ---
    top2d = conv1x1_bn(x2d, params['top_conv'], params['top_bn'], relu=False)
    top = top2d.reshape(n, H, W, mid)
    pyra = []
    for i in range(cardinality):
        ratio = 1.0 / (2 ** (i + 1))
        oh, ow = int(H * ratio), int(W * ratio)
        p = frac_max_pool(top, oh, ow, k=3)
        p = conv3x3_bn(p, params[f'pry{i}_conv1'], params[f'pry{i}_bn1'],
                       relu=True)
        p2d = conv1x1_bn(p.reshape(-1, mid), params[f'pry{i}_conv2'],
                         params[f'pry{i}_bn2'], relu=True)
        pyra.append(bilinear_resize_rows(p2d, n, oh, ow, mid, H, W))
        # NOTE: PyTorch leaves out_pry == pyraTable[-1] + pyraTable[0]; the
        # unused intermediate levels are dead code and get DCE'd by XLA.

    bs, bb = bn_fold(params['block_bn'])
    w_bot, b_bot = params['bot_conv']
    cs, cb = bn_fold(params['bot_bn'], b_bot)
    if cardinality > 1:
        bot2d = _run_rowwise(
            functools.partial(_addpre_conv_kernel, relu=False),
            [pyra[-1], pyra[0]], [bs, bb, _bf16(w_bot), cs, cb], mid)
    else:
        bot2d = _run_rowwise(
            functools.partial(_pre_conv_kernel, relu=False, post_scale=True),
            [pyra[0]], [bs, bb, _bf16(w_bot), cs, cb], mid)

    # (out_pry + out_main) -> block_bn (reused) -> ReLU -> conv_out -> out_bn,
    # then PRM tail (+ skip, final_bn, ReLU) — one fused kernel, f32 output.
    w_out, b_out = params['out_conv']
    os_, ob = bn_fold(params['out_bn'], b_out)
    fs, fb = bn_fold(params['final_bn'])
    out2d = _run_rowwise(
        _addpre_conv_res_kernel,
        [bot2d, out_main2d, out_skip2d],
        [bs, bb, _bf16(w_out), os_, ob, fs, fb], out_ch,
        out_dtype=jnp.float32)

    out = out2d.reshape(n, H, W, out_ch)
    return jnp.transpose(out, (0, 3, 1, 2))                  # NHWC -> NCHW


# --------------------------------- main --------------------------------------

if __name__ == "__main__":
    key = jax.random.PRNGKey(0)
    in_ch, out_ch = 8, 16
    N, H, W = 2, 16, 16
    kx, kp = jax.random.split(key)

    x = jax.random.normal(kx, (N, in_ch, H, W), jnp.float32)
    params = init_prm_params(kp, in_ch, out_ch, cardinality=4)

    fwd = jax.jit(functools.partial(
        prm_forward, in_ch=in_ch, out_ch=out_ch, ori_shape=(H, W),
        block_type='preact', cardinality=4))

    out = fwd(x, params)
    out = jax.block_until_ready(out)
    assert out.shape == (N, out_ch, H, W), out.shape
    assert bool(jnp.all(jnp.isfinite(out)))
    print("KERNEL_OK")
</pallas_src>

<mosaic_0001>
module attributes {stable_mosaic.version = 11 : i64} {
  func.func @_pre_conv_kernel(%arg0: i32, %arg1: memref<512x8xbf16, #tpu.memory_space<vmem>>, %arg2: memref<1x8xf32, #tpu.memory_space<vmem>>, %arg3: memref<1x8xf32, #tpu.memory_space<vmem>>, %arg4: memref<8x8xbf16, #tpu.memory_space<vmem>>, %arg5: memref<1x8xf32, #tpu.memory_space<vmem>>, %arg6: memref<1x8xf32, #tpu.memory_space<vmem>>, %arg7: memref<512x8xbf16, #tpu.memory_space<vmem>>) attributes {dimension_semantics = [#tpu.dimension_semantics<parallel>], iteration_bounds = array<i64: 1>, scalar_prefetch = 0 : i64, scratch_operands = 0 : i64, tpu.core_type = #tpu.core_type<tc>, window_params = [{transform_indices = @transform_0, window_bounds = array<i64: 512, 8>}, {pipeline_mode = #tpu.pipeline_mode<synchronous>, transform_indices = @transform_1, window_bounds = array<i64: 1, 8>}, {pipeline_mode = #tpu.pipeline_mode<synchronous>, transform_indices = @transform_2, window_bounds = array<i64: 1, 8>}, {pipeline_mode = #tpu.pipeline_mode<synchronous>, transform_indices = @transform_3, window_bounds = array<i64: 8, 8>}, {pipeline_mode = #tpu.pipeline_mode<synchronous>, transform_indices = @transform_4, window_bounds = array<i64: 1, 8>}, {pipeline_mode = #tpu.pipeline_mode<synchronous>, transform_indices = @transform_5, window_bounds = array<i64: 1, 8>}, {transform_indices = @transform_6, window_bounds = array<i64: 512, 8>}]} {
    %c0 = arith.constant 0 : index
    %c0_0 = arith.constant 0 : index
    %0 = vector.load %arg1[%c0, %c0_0] : memref<512x8xbf16, #tpu.memory_space<vmem>>, vector<512x8xbf16>
    %1 = arith.extf %0 : vector<512x8xbf16> to vector<512x8xf32>
    %c0_1 = arith.constant 0 : index
    %c0_2 = arith.constant 0 : index
    %2 = vector.load %arg2[%c0_1, %c0_2] : memref<1x8xf32, #tpu.memory_space<vmem>>, vector<1x8xf32>
    %3 = vector.broadcast %2 : vector<1x8xf32> to vector<512x8xf32>
    %4 = arith.mulf %1, %3 : vector<512x8xf32>
    %c0_3 = arith.constant 0 : index
    %c0_4 = arith.constant 0 : index
    %5 = vector.load %arg3[%c0_3, %c0_4] : memref<1x8xf32, #tpu.memory_space<vmem>>, vector<1x8xf32>
    %6 = vector.broadcast %5 : vector<1x8xf32> to vector<512x8xf32>
    %7 = arith.addf %4, %6 : vector<512x8xf32>
    %cst = arith.constant 0.000000e+00 : f32
    %8 = vector.broadcast %cst : f32 to vector<512x8xf32>
    %9 = arith.maximumf %7, %8 : vector<512x8xf32>
    %10 = arith.truncf %9 : vector<512x8xf32> to vector<512x8xbf16>
    %c0_5 = arith.constant 0 : index
    %c0_6 = arith.constant 0 : index
    %11 = vector.load %arg4[%c0_5, %c0_6] : memref<8x8xbf16, #tpu.memory_space<vmem>>, vector<8x8xbf16>
    %cst_7 = arith.constant dense<0.000000e+00> : vector<512x8xf32>
    %12 = tpu.matmul %10, %11, %cst_7 {dimension_numbers = #tpu.dot_dimension_numbers<[1], [0], [0], [1], [0, 0, 1, 1], [], []>} : vector<512x8xbf16>, vector<8x8xbf16>, vector<512x8xf32> -> vector<512x8xf32>
    %c0_8 = arith.constant 0 : index
    %c0_9 = arith.constant 0 : index
    %13 = vector.load %arg5[%c0_8, %c0_9] : memref<1x8xf32, #tpu.memory_space<vmem>>, vector<1x8xf32>
    %14 = vector.broadcast %13 : vector<1x8xf32> to vector<512x8xf32>
    %15 = arith.mulf %12, %14 : vector<512x8xf32>
    %c0_10 = arith.constant 0 : index
    %c0_11 = arith.constant 0 : index
    %16 = vector.load %arg6[%c0_10, %c0_11] : memref<1x8xf32, #tpu.memory_space<vmem>>, vector<1x8xf32>
    %17 = vector.broadcast %16 : vector<1x8xf32> to vector<512x8xf32>
    %18 = arith.addf %15, %17 : vector<512x8xf32>
    %cst_12 = arith.constant 0.000000e+00 : f32
    %19 = vector.broadcast %cst_12 : f32 to vector<512x8xf32>
    %20 = arith.maximumf %18, %19 : vector<512x8xf32>
    %21 = arith.truncf %20 : vector<512x8xf32> to vector<512x8xbf16>
    %c0_13 = arith.constant 0 : index
    %c0_14 = arith.constant 0 : index
    %22 = vector.load %arg7[%c0_13, %c0_14] : memref<512x8xbf16, #tpu.memory_space<vmem>>, vector<512x8xbf16>
    tpu.vector_store %arg7[%c0_13, %c0_14], %21 {strides = array<i32>} : memref<512x8xbf16, #tpu.memory_space<vmem>>, vector<512x8xbf16>,
    return
  }
  func.func @transform_0(%arg0: i32) -> (i32, i32) {
    %c0_i32 = arith.constant 0 : i32
    %c0_i32_0 = arith.constant 0 : i32
    return %arg0, %c0_i32 : i32, i32
  }
  func.func @transform_1(%arg0: i32) -> (i32, i32) {
    %c0_i32 = arith.constant 0 : i32
    %c0_i32_0 = arith.constant 0 : i32
    %c0_i32_1 = arith.constant 0 : i32
    return %c0_i32, %c0_i32_0 : i32, i32
  }
  func.func @transform_2(%arg0: i32) -> (i32, i32) {
    %c0_i32 = arith.constant 0 : i32
    %c0_i32_0 = arith.constant 0 : i32
    %c0_i32_1 = arith.constant 0 : i32
    return %c0_i32, %c0_i32_0 : i32, i32
  }
  func.func @transform_3(%arg0: i32) -> (i32, i32) {
    %c0_i32 = arith.constant 0 : i32
    %c0_i32_0 = arith.constant 0 : i32
    %c0_i32_1 = arith.constant 0 : i32
    return %c0_i32, %c0_i32_0 : i32, i32
  }
  func.func @transform_4(%arg0: i32) -> (i32, i32) {
    %c0_i32 = arith.constant 0 : i32
    %c0_i32_0 = arith.constant 0 : i32
    %c0_i32_1 = arith.constant 0 : i32
    return %c0_i32, %c0_i32_0 : i32, i32
  }
  func.func @transform_5(%arg0: i32) -> (i32, i32) {
    %c0_i32 = arith.constant 0 : i32
    %c0_i32_0 = arith.constant 0 : i32
    %c0_i32_1 = arith.constant 0 : i32
    return %c0_i32, %c0_i32_0 : i32, i32
  }
  func.func @transform_6(%arg0: i32) -> (i32, i32) {
    %c0_i32 = arith.constant 0 : i32
    %c0_i32_0 = arith.constant 0 : i32
    return %arg0, %c0_i32 : i32, i32
  }
}

module attributes {stable_mosaic.version = 11 : i64} {
  func.func @_pre_conv_kernel(%arg0: i32, %arg1: memref<512x8xbf16, #tpu.memory_space<vmem>>, %arg2: memref<1x8xf32, #tpu.memory_space<vmem>>, %arg3: memref<1x8xf32, #tpu.memory_space<vmem>>, %arg4: memref<8x16xbf16, #tpu.memory_space<vmem>>, %arg5: memref<1x16xf32, #tpu.memory_space<vmem>>, %arg6: memref<512x16xbf16, #tpu.memory_space<vmem>>) attributes {dimension_semantics = [#tpu.dimension_semantics<parallel>], iteration_bounds = array<i64: 1>, scalar_prefetch = 0 : i64, scratch_operands = 0 : i64, tpu.core_type = #tpu.core_type<tc>, window_params = [{transform_indices = @transform_0, window_bounds = array<i64: 512, 8>}, {pipeline_mode = #tpu.pipeline_mode<synchronous>, transform_indices = @transform_1, window_bounds = array<i64: 1, 8>}, {pipeline_mode = #tpu.pipeline_mode<synchronous>, transform_indices = @transform_2, window_bounds = array<i64: 1, 8>}, {pipeline_mode = #tpu.pipeline_mode<synchronous>, transform_indices = @transform_3, window_bounds = array<i64: 8, 16>}, {pipeline_mode = #tpu.pipeline_mode<synchronous>, transform_indices = @transform_4, window_bounds = array<i64: 1, 16>}, {transform_indices = @transform_5, window_bounds = array<i64: 512, 16>}]} {
    %c0 = arith.constant 0 : index
    %c0_0 = arith.constant 0 : index
    %0 = vector.load %arg1[%c0, %c0_0] : memref<512x8xbf16, #tpu.memory_space<vmem>>, vector<512x8xbf16>
    %1 = arith.extf %0 : vector<512x8xbf16> to vector<512x8xf32>
    %c0_1 = arith.constant 0 : index
    %c0_2 = arith.constant 0 : index
    %2 = vector.load %arg2[%c0_1, %c0_2] : memref<1x8xf32, #tpu.memory_space<vmem>>, vector<1x8xf32>
    %3 = vector.broadcast %2 : vector<1x8xf32> to vector<512x8xf32>
    %4 = arith.mulf %1, %3 : vector<512x8xf32>
    %c0_3 = arith.constant 0 : index
    %c0_4 = arith.constant 0 : index
    %5 = vector.load %arg3[%c0_3, %c0_4] : memref<1x8xf32, #tpu.memory_space<vmem>>, vector<1x8xf32>
    %6 = vector.broadcast %5 : vector<1x8xf32> to vector<512x8xf32>
    %7 = arith.addf %4, %6 : vector<512x8xf32>
    %cst = arith.constant 0.000000e+00 : f32
    %8 = vector.broadcast %cst : f32 to vector<512x8xf32>
    %9 = arith.maximumf %7, %8 : vector<512x8xf32>
    %10 = arith.truncf %9 : vector<512x8xf32> to vector<512x8xbf16>
    %c0_5 = arith.constant 0 : index
    %c0_6 = arith.constant 0 : index
    %11 = vector.load %arg4[%c0_5, %c0_6] : memref<8x16xbf16, #tpu.memory_space<vmem>>, vector<8x16xbf16>
    %cst_7 = arith.constant dense<0.000000e+00> : vector<512x16xf32>
    %12 = tpu.matmul %10, %11, %cst_7 {dimension_numbers = #tpu.dot_dimension_numbers<[1], [0], [0], [1], [0, 0, 1, 1], [], []>} : vector<512x8xbf16>, vector<8x16xbf16>, vector<512x16xf32> -> vector<512x16xf32>
    %c0_8 = arith.constant 0 : index
    %c0_9 = arith.constant 0 : index
    %13 = vector.load %arg5[%c0_8, %c0_9] : memref<1x16xf32, #tpu.memory_space<vmem>>, vector<1x16xf32>
    %14 = vector.broadcast %13 : vector<1x16xf32> to vector<512x16xf32>
    %15 = arith.addf %12, %14 : vector<512x16xf32>
    %16 = arith.truncf %15 : vector<512x16xf32> to vector<512x16xbf16>
    %c0_10 = arith.constant 0 : index
    %c0_11 = arith.constant 0 : index
    %17 = vector.load %arg6[%c0_10, %c0_11] : memref<512x16xbf16, #tpu.memory_space<vmem>>, vector<512x16xbf16>
    tpu.vector_store %arg6[%c0_10, %c0_11], %16 {strides = array<i32>} : memref<512x16xbf16, #tpu.memory_space<vmem>>, vector<512x16xbf16>,
    return
  }
  func.func @transform_0(%arg0: i32) -> (i32, i32) {
    %c0_i32 = arith.constant 0 : i32
    %c0_i32_0 = arith.constant 0 : i32
    return %arg0, %c0_i32 : i32, i32
  }
  func.func @transform_1(%arg0: i32) -> (i32, i32) {
    %c0_i32 = arith.constant 0 : i32
    %c0_i32_0 = arith.constant 0 : i32
    %c0_i32_1 = arith.constant 0 : i32
    return %c0_i32, %c0_i32_0 : i32, i32
  }
  func.func @transform_2(%arg0: i32) -> (i32, i32) {
    %c0_i32 = arith.constant 0 : i32
    %c0_i32_0 = arith.constant 0 : i32
    %c0_i32_1 = arith.constant 0 : i32
    return %c0_i32, %c0_i32_0 : i32, i32
  }
  func.func @transform_3(%arg0: i32) -> (i32, i32) {
    %c0_i32 = arith.constant 0 : i32
    %c0_i32_0 = arith.constant 0 : i32
    %c0_i32_1 = arith.constant 0 : i32
    return %c0_i32, %c0_i32_0 : i32, i32
  }
  func.func @transform_4(%arg0: i32) -> (i32, i32) {
    %c0_i32 = arith.constant 0 : i32
    %c0_i32_0 = arith.constant 0 : i32
    %c0_i32_1 = arith.constant 0 : i32
    return %c0_i32, %c0_i32_0 : i32, i32
  }
  func.func @transform_5(%arg0: i32) -> (i32, i32) {
    %c0_i32 = arith.constant 0 : i32
    %c0_i32_0 = arith.constant 0 : i32
    return %arg0, %c0_i32 : i32, i32
  }
}

module attributes {stable_mosaic.version = 11 : i64} {
  func.func @_conv_kernel(%arg0: i32, %arg1: memref<512x8xbf16, #tpu.memory_space<vmem>>, %arg2: memref<8x8xbf16, #tpu.memory_space<vmem>>, %arg3: memref<1x8xf32, #tpu.memory_space<vmem>>, %arg4: memref<1x8xf32, #tpu.memory_space<vmem>>, %arg5: memref<512x8xbf16, #tpu.memory_space<vmem>>) attributes {dimension_semantics = [#tpu.dimension_semantics<parallel>], iteration_bounds = array<i64: 1>, scalar_prefetch = 0 : i64, scratch_operands = 0 : i64, tpu.core_type = #tpu.core_type<tc>, window_params = [{transform_indices = @transform_0, window_bounds = array<i64: 512, 8>}, {pipeline_mode = #tpu.pipeline_mode<synchronous>, transform_indices = @transform_1, window_bounds = array<i64: 8, 8>}, {pipeline_mode = #tpu.pipeline_mode<synchronous>, transform_indices = @transform_2, window_bounds = array<i64: 1, 8>}, {pipeline_mode = #tpu.pipeline_mode<synchronous>, transform_indices = @transform_3, window_bounds = array<i64: 1, 8>}, {transform_indices = @transform_4, window_bounds = array<i64: 512, 8>}]} {
    %c0 = arith.constant 0 : index
    %c0_0 = arith.constant 0 : index
    %0 = vector.load %arg1[%c0, %c0_0] : memref<512x8xbf16, #tpu.memory_space<vmem>>, vector<512x8xbf16>
    %c0_1 = arith.constant 0 : index
    %c0_2 = arith.constant 0 : index
    %1 = vector.load %arg2[%c0_1, %c0_2] : memref<8x8xbf16, #tpu.memory_space<vmem>>, vector<8x8xbf16>
    %cst = arith.constant dense<0.000000e+00> : vector<512x8xf32>
    %2 = tpu.matmul %0, %1, %cst {dimension_numbers = #tpu.dot_dimension_numbers<[1], [0], [0], [1], [0, 0, 1, 1], [], []>} : vector<512x8xbf16>, vector<8x8xbf16>, vector<512x8xf32> -> vector<512x8xf32>
    %c0_3 = arith.constant 0 : index
    %c0_4 = arith.constant 0 : index
    %3 = vector.load %arg3[%c0_3, %c0_4] : memref<1x8xf32, #tpu.memory_space<vmem>>, vector<1x8xf32>
    %4 = vector.broadcast %3 : vector<1x8xf32> to vector<512x8xf32>
    %5 = arith.mulf %2, %4 : vector<512x8xf32>
    %c0_5 = arith.constant 0 : index
    %c0_6 = arith.constant 0 : index
    %6 = vector.load %arg4[%c0_5, %c0_6] : memref<1x8xf32, #tpu.memory_space<vmem>>, vector<1x8xf32>
    %7 = vector.broadcast %6 : vector<1x8xf32> to vector<512x8xf32>
    %8 = arith.addf %5, %7 : vector<512x8xf32>
    %9 = arith.truncf %8 : vector<512x8xf32> to vector<512x8xbf16>
    %c0_7 = arith.constant 0 : index
    %c0_8 = arith.constant 0 : index
    %10 = vector.load %arg5[%c0_7, %c0_8] : memref<512x8xbf16, #tpu.memory_space<vmem>>, vector<512x8xbf16>
    tpu.vector_store %arg5[%c0_7, %c0_8], %9 {strides = array<i32>} : memref<512x8xbf16, #tpu.memory_space<vmem>>, vector<512x8xbf16>,
    return
  }
  func.func @transform_0(%arg0: i32) -> (i32, i32) {
    %c0_i32 = arith.constant 0 : i32
    %c0_i32_0 = arith.constant 0 : i32
    return %arg0, %c0_i32 : i32, i32
  }
  func.func @transform_1(%arg0: i32) -> (i32, i32) {
    %c0_i32 = arith.constant 0 : i32
    %c0_i32_0 = arith.constant 0 : i32
    %c0_i32_1 = arith.constant 0 : i32
    return %c0_i32, %c0_i32_0 : i32, i32
  }
  func.func @transform_2(%arg0: i32) -> (i32, i32) {
    %c0_i32 = arith.constant 0 : i32
    %c0_i32_0 = arith.constant 0 : i32
    %c0_i32_1 = arith.constant 0 : i32
    return %c0_i32, %c0_i32_0 : i32, i32
  }
  func.func @transform_3(%arg0: i32) -> (i32, i32) {
    %c0_i32 = arith.constant 0 : i32
    %c0_i32_0 = arith.constant 0 : i32
    %c0_i32_1 = arith.constant 0 : i32
    return %c0_i32, %c0_i32_0 : i32, i32
  }
  func.func @transform_4(%arg0: i32) -> (i32, i32) {
    %c0_i32 = arith.constant 0 : i32
    %c0_i32_0 = arith.constant 0 : i32
    return %arg0, %c0_i32 : i32, i32
  }
}

module attributes {stable_mosaic.version = 11 : i64} {
  func.func @_conv3x3_kernel(%arg0: i32, %arg1: memref<1x12x8xbf16, #tpu.memory_space<vmem>>, %arg2: memref<9x8x8xbf16, #tpu.memory_space<vmem>>, %arg3: memref<1x8xf32, #tpu.memory_space<vmem>>, %arg4: memref<1x8xf32, #tpu.memory_space<vmem>>, %arg5: memref<1x3x8xbf16, #tpu.memory_space<vmem>>) attributes {dimension_semantics = [#tpu.dimension_semantics<parallel>], iteration_bounds = array<i64: 2>, scalar_prefetch = 0 : i64, scratch_operands = 0 : i64, tpu.core_type = #tpu.core_type<tc>, window_params = [{transform_indices = @transform_0, window_bounds = array<i64: 1, 12, 8>}, {pipeline_mode = #tpu.pipeline_mode<synchronous>, transform_indices = @transform_1, window_bounds = array<i64: 9, 8, 8>}, {pipeline_mode = #tpu.pipeline_mode<synchronous>, transform_indices = @transform_2, window_bounds = array<i64: 1, 8>}, {pipeline_mode = #tpu.pipeline_mode<synchronous>, transform_indices = @transform_3, window_bounds = array<i64: 1, 8>}, {transform_indices = @transform_4, window_bounds = array<i64: 1, 3, 8>}]} {
    %cst = arith.constant 0.000000e+00 : f32
    %0 = vector.broadcast %cst : f32 to vector<3x8xf32>
    %c0 = arith.constant 0 : index
    %c0_0 = arith.constant 0 : index
    %c0_1 = arith.constant 0 : index
    %1 = vector.load %arg1[%c0, %c0_0, %c0_1] : memref<1x12x8xbf16, #tpu.memory_space<vmem>>, vector<1x3x8xbf16>
    %2 = vector.shape_cast %1 : vector<1x3x8xbf16> to vector<3x8xbf16>
    %c0_2 = arith.constant 0 : index
    %c0_3 = arith.constant 0 : index
    %c0_4 = arith.constant 0 : index
    %3 = vector.load %arg2[%c0_2, %c0_3, %c0_4] : memref<9x8x8xbf16, #tpu.memory_space<vmem>>, vector<1x8x8xbf16>
    %4 = vector.shape_cast %3 : vector<1x8x8xbf16> to vector<8x8xbf16>
    %cst_5 = arith.constant dense<0.000000e+00> : vector<3x8xf32>
    %5 = tpu.matmul %2, %4, %cst_5 {dimension_numbers = #tpu.dot_dimension_numbers<[1], [0], [0], [1], [0, 0, 1, 1], [], []>} : vector<3x8xbf16>, vector<8x8xbf16>, vector<3x8xf32> -> vector<3x8xf32>
    %6 = arith.addf %0, %5 : vector<3x8xf32>
    %c0_6 = arith.constant 0 : index
    %c1 = arith.constant 1 : index
    %c0_7 = arith.constant 0 : index
    %7 = vector.load %arg1[%c0_6, %c1, %c0_7] : memref<1x12x8xbf16, #tpu.memory_space<vmem>>, vector<1x3x8xbf16>
    %8 = vector.shape_cast %7 : vector<1x3x8xbf16> to vector<3x8xbf16>
    %c1_8 = arith.constant 1 : index
    %c0_9 = arith.constant 0 : index
    %c0_10 = arith.constant 0 : index
    %9 = vector.load %arg2[%c1_8, %c0_9, %c0_10] : memref<9x8x8xbf16, #tpu.memory_space<vmem>>, vector<1x8x8xbf16>
    %10 = vector.shape_cast %9 : vector<1x8x8xbf16> to vector<8x8xbf16>
    %cst_11 = arith.constant dense<0.000000e+00> : vector<3x8xf32>
    %11 = tpu.matmul %8, %10, %cst_11 {dimension_numbers = #tpu.dot_dimension_numbers<[1], [0], [0], [1], [0, 0, 1, 1], [], []>} : vector<3x8xbf16>, vector<8x8xbf16>, vector<3x8xf32> -> vector<3x8xf32>
    %12 = arith.addf %6, %11 : vector<3x8xf32>
    %c0_12 = arith.constant 0 : index
    %c2 = arith.constant 2 : index
    %c0_13 = arith.constant 0 : index
    %13 = vector.load %arg1[%c0_12, %c2, %c0_13] : memref<1x12x8xbf16, #tpu.memory_space<vmem>>, vector<1x3x8xbf16>
    %14 = vector.shape_cast %13 : vector<1x3x8xbf16> to vector<3x8xbf16>
    %c2_14 = arith.constant 2 : index
    %c0_15 = arith.constant 0 : index
    %c0_16 = arith.constant 0 : index
    %15 = vector.load %arg2[%c2_14, %c0_15, %c0_16] : memref<9x8x8xbf16, #tpu.memory_space<vmem>>, vector<1x8x8xbf16>
    %16 = vector.shape_cast %15 : vector<1x8x8xbf16> to vector<8x8xbf16>
    %cst_17 = arith.constant dense<0.000000e+00> : vector<3x8xf32>
    %17 = tpu.matmul %14, %16, %cst_17 {dimension_numbers = #tpu.dot_dimension_numbers<[1], [0], [0], [1], [0, 0, 1, 1], [], []>} : vector<3x8xbf16>, vector<8x8xbf16>, vector<3x8xf32> -> vector<3x8xf32>
    %18 = arith.addf %12, %17 : vector<3x8xf32>
    %c0_18 = arith.constant 0 : index
    %c3 = arith.constant 3 : index
    %c0_19 = arith.constant 0 : index
    %19 = vector.load %arg1[%c0_18, %c3, %c0_19] : memref<1x12x8xbf16, #tpu.memory_space<vmem>>, vector<1x3x8xbf16>
    %20 = vector.shape_cast %19 : vector<1x3x8xbf16> to vector<3x8xbf16>
    %c3_20 = arith.constant 3 : index
    %c0_21 = arith.constant 0 : index
    %c0_22 = arith.constant 0 : index
    %21 = vector.load %arg2[%c3_20, %c0_21, %c0_22] : memref<9x8x8xbf16, #tpu.memory_space<vmem>>, vector<1x8x8xbf16>
    %22 = vector.shape_cast %21 : vector<1x8x8xbf16> to vector<8x8xbf16>
    %cst_23 = arith.constant dense<0.000000e+00> : vector<3x8xf32>
    %23 = tpu.matmul %20, %22, %cst_23 {dimension_numbers = #tpu.dot_dimension_numbers<[1], [0], [0], [1], [0, 0, 1, 1], [], []>} : vector<3x8xbf16>, vector<8x8xbf16>, vector<3x8xf32> -> vector<3x8xf32>
    %24 = arith.addf %18, %23 : vector<3x8xf32>
    %c0_24 = arith.constant 0 : index
    %c4 = arith.constant 4 : index
    %c0_25 = arith.constant 0 : index
    %25 = vector.load %arg1[%c0_24, %c4, %c0_25] : memref<1x12x8xbf16, #tpu.memory_space<vmem>>, vector<1x3x8xbf16>
    %26 = vector.shape_cast %25 : vector<1x3x8xbf16> to vector<3x8xbf16>
    %c4_26 = arith.constant 4 : index
    %c0_27 = arith.constant 0 : index
    %c0_28 = arith.constant 0 : index
    %27 = vector.load %arg2[%c4_26, %c0_27, %c0_28] : memref<9x8x8xbf16, #tpu.memory_space<vmem>>, vector<1x8x8xbf16>
    %28 = vector.shape_cast %27 : vector<1x8x8xbf16> to vector<8x8xbf16>
    %cst_29 = arith.constant dense<0.000000e+00> : vector<3x8xf32>
    %29 = tpu.matmul %26, %28, %cst_29 {dimension_numbers = #tpu.dot_dimension_numbers<[1], [0], [0], [1], [0, 0, 1, 1], [], []>} : vector<3x8xbf16>, vector<8x8xbf16>, vector<3x8xf32> -> vector<3x8xf32>
    %30 = arith.addf %24, %29 : vector<3x8xf32>
    %c0_30 = arith.constant 0 : index
    %c5 = arith.constant 5 : index
    %c0_31 = arith.constant 0 : index
    %31 = vector.load %arg1[%c0_30, %c5, %c0_31] : memref<1x12x8xbf16, #tpu.memory_space<vmem>>, vector<1x3x8xbf16>
    %32 = vector.shape_cast %31 : vector<1x3x8xbf16> to vector<3x8xbf16>
    %c5_32 = arith.constant 5 : index
    %c0_33 = arith.constant 0 : index
    %c0_34 = arith.constant 0 : index
    %33 = vector.load %arg2[%c5_32, %c0_33, %c0_34] : memref<9x8x8xbf16, #tpu.memory_space<vmem>>, vector<1x8x8xbf16>
    %34 = vector.shape_cast %33 : vector<1x8x8xbf16> to vector<8x8xbf16>
    %cst_35 = arith.constant dense<0.000000e+00> : vector<3x8xf32>
    %35 = tpu.matmul %32, %34, %cst_35 {dimension_numbers = #tpu.dot_dimension_numbers<[1], [0], [0], [1], [0, 0, 1, 1], [], []>} : vector<3x8xbf16>, vector<8x8xbf16>, vector<3x8xf32> -> vector<3x8xf32>
    %36 = arith.addf %30, %35 : vector<3x8xf32>
    %c0_36 = arith.constant 0 : index
    %c6 = arith.constant 6 : index
    %c0_37 = arith.constant 0 : index
    %37 = vector.load %arg1[%c0_36, %c6, %c0_37] : memref<1x12x8xbf16, #tpu.memory_space<vmem>>, vector<1x3x8xbf16>
    %38 = vector.shape_cast %37 : vector<1x3x8xbf16> to vector<3x8xbf16>
    %c6_38 = arith.constant 6 : index
    %c0_39 = arith.constant 0 : index
    %c0_40 = arith.constant 0 : index
    %39 = vector.load %arg2[%c6_38, %c0_39, %c0_40] : memref<9x8x8xbf16, #tpu.memory_space<vmem>>, vector<1x8x8xbf16>
    %40 = vector.shape_cast %39 : vector<1x8x8xbf16> to vector<8x8xbf16>
    %cst_41 = arith.constant dense<0.000000e+00> : vector<3x8xf32>
    %41 = tpu.matmul %38, %40, %cst_41 {dimension_numbers = #tpu.dot_dimension_numbers<[1], [0], [0], [1], [0, 0, 1, 1], [], []>} : vector<3x8xbf16>, vector<8x8xbf16>, vector<3x8xf32> -> vector<3x8xf32>
    %42 = arith.addf %36, %41 : vector<3x8xf32>
    %c0_42 = arith.constant 0 : index
    %c7 = arith.constant 7 : index
    %c0_43 = arith.constant 0 : index
    %43 = vector.load %arg1[%c0_42, %c7, %c0_43] : memref<1x12x8xbf16, #tpu.memory_space<vmem>>, vector<1x3x8xbf16>
    %44 = vector.shape_cast %43 : vector<1x3x8xbf16> to vector<3x8xbf16>
    %c7_44 = arith.constant 7 : index
    %c0_45 = arith.constant 0 : index
    %c0_46 = arith.constant 0 : index
    %45 = vector.load %arg2[%c7_44, %c0_45, %c0_46] : memref<9x8x8xbf16, #tpu.memory_space<vmem>>, vector<1x8x8xbf16>
    %46 = vector.shape_cast %45 : vector<1x8x8xbf16> to vector<8x8xbf16>
    %cst_47 = arith.constant dense<0.000000e+00> : vector<3x8xf32>
    %47 = tpu.matmul %44, %46, %cst_47 {dimension_numbers = #tpu.dot_dimension_numbers<[1], [0], [0], [1], [0, 0, 1, 1], [], []>} : vector<3x8xbf16>, vector<8x8xbf16>, vector<3x8xf32> -> vector<3x8xf32>
    %48 = arith.addf %42, %47 : vector<3x8xf32>
    %c0_48 = arith.constant 0 : index
    %c8 = arith.constant 8 : index
    %c0_49 = arith.constant 0 : index
    %49 = vector.load %arg1[%c0_48, %c8, %c0_49] : memref<1x12x8xbf16, #tpu.memory_space<vmem>>, vector<1x3x8xbf16>
    %50 = vector.shape_cast %49 : vector<1x3x8xbf16> to vector<3x8xbf16>
    %c8_50 = arith.constant 8 : index
    %c0_51 = arith.constant 0 : index
    %c0_52 = arith.constant 0 : index
    %51 = vector.load %arg2[%c8_50, %c0_51, %c0_52] : memref<9x8x8xbf16, #tpu.memory_space<vmem>>, vector<1x8x8xbf16>
    %52 = vector.shape_cast %51 : vector<1x8x8xbf16> to vector<8x8xbf16>
    %cst_53 = arith.constant dense<0.000000e+00> : vector<3x8xf32>
    %53 = tpu.matmul %50, %52, %cst_53 {dimension_numbers = #tpu.dot_dimension_numbers<[1], [0], [0], [1], [0, 0, 1, 1], [], []>} : vector<3x8xbf16>, vector<8x8xbf16>, vector<3x8xf32> -> vector<3x8xf32>
    %54 = arith.addf %48, %53 : vector<3x8xf32>
    %c0_54 = arith.constant 0 : index
    %c0_55 = arith.constant 0 : index
    %55 = vector.load %arg3[%c0_54, %c0_55] : memref<1x8xf32, #tpu.memory_space<vmem>>, vector<1x8xf32>
    %56 = vector.broadcast %55 : vector<1x8xf32> to vector<3x8xf32>
    %57 = arith.mulf %54, %56 : vector<3x8xf32>
    %c0_56 = arith.constant 0 : index
    %c0_57 = arith.constant 0 : index
    %58 = vector.load %arg4[%c0_56, %c0_57] : memref<1x8xf32, #tpu.memory_space<vmem>>, vector<1x8xf32>
    %59 = vector.broadcast %58 : vector<1x8xf32> to vector<3x8xf32>
    %60 = arith.addf %57, %59 : vector<3x8xf32>
    %cst_58 = arith.constant 0.000000e+00 : f32
    %61 = vector.broadcast %cst_58 : f32 to vector<3x8xf32>
    %62 = arith.maximumf %60, %61 : vector<3x8xf32>
    %63 = arith.truncf %62 : vector<3x8xf32> to vector<3x8xbf16>
    %c0_59 = arith.constant 0 : index
    %c0_60 = arith.constant 0 : index
    %c0_61 = arith.constant 0 : index
    %64 = vector.load %arg5[%c0_59, %c0_60, %c0_61] : memref<1x3x8xbf16, #tpu.memory_space<vmem>>, vector<1x3x8xbf16>
    %65 = vector.shape_cast %64 : vector<1x3x8xbf16> to vector<3x8xbf16>
    %66 = vector.shape_cast %63 : vector<3x8xbf16> to vector<1x3x8xbf16>
    tpu.vector_store %arg5[%c0_59, %c0_60, %c0_61], %66 {strides = array<i32>} : memref<1x3x8xbf16, #tpu.memory_space<vmem>>, vector<1x3x8xbf16>,
    return
  }
  func.func @transform_0(%arg0: i32) -> (i32, i32, i32) {
    %c0_i32 = arith.constant 0 : i32
    %c0_i32_0 = arith.constant 0 : i32
    %c0_i32_1 = arith.constant 0 : i32
    return %arg0, %c0_i32, %c0_i32_0 : i32, i32, i32
  }
  func.func @transform_1(%arg0: i32) -> (i32, i32, i32) {
    %c0_i32 = arith.constant 0 : i32
    %c0_i32_0 = arith.constant 0 : i32
    %c0_i32_1 = arith.constant 0 : i32
    %c0_i32_2 = arith.constant 0 : i32
    return %c0_i32, %c0_i32_0, %c0_i32_1 : i32, i32, i32
  }
  func.func @transform_2(%arg0: i32) -> (i32, i32) {
    %c0_i32 = arith.constant 0 : i32
    %c0_i32_0 = arith.constant 0 : i32
    %c0_i32_1 = arith.constant 0 : i32
    return %c0_i32, %c0_i32_0 : i32, i32
  }
  func.func @transform_3(%arg0: i32) -> (i32, i32) {
    %c0_i32 = arith.constant 0 : i32
    %c0_i32_0 = arith.constant 0 : i32
    %c0_i32_1 = arith.constant 0 : i32
    return %c0_i32, %c0_i32_0 : i32, i32
  }
  func.func @transform_4(%arg0: i32) -> (i32, i32, i32) {
    %c0_i32 = arith.constant 0 : i32
    %c0_i32_0 = arith.constant 0 : i32
    %c0_i32_1 = arith.constant 0 : i32
    return %arg0, %c0_i32, %c0_i32_0 : i32, i32, i32
  }
}

module attributes {stable_mosaic.version = 11 : i64} {
  func.func @_conv_kernel(%arg0: i32, %arg1: memref<2x8xbf16, #tpu.memory_space<vmem>>, %arg2: memref<8x8xbf16, #tpu.memory_space<vmem>>, %arg3: memref<1x8xf32, #tpu.memory_space<vmem>>, %arg4: memref<1x8xf32, #tpu.memory_space<vmem>>, %arg5: memref<2x8xbf16, #tpu.memory_space<vmem>>) attributes {dimension_semantics = [#tpu.dimension_semantics<parallel>], iteration_bounds = array<i64: 1>, scalar_prefetch = 0 : i64, scratch_operands = 0 : i64, tpu.core_type = #tpu.core_type<tc>, window_params = [{transform_indices = @transform_0, window_bounds = array<i64: 2, 8>}, {pipeline_mode = #tpu.pipeline_mode<synchronous>, transform_indices = @transform_1, window_bounds = array<i64: 8, 8>}, {pipeline_mode = #tpu.pipeline_mode<synchronous>, transform_indices = @transform_2, window_bounds = array<i64: 1, 8>}, {pipeline_mode = #tpu.pipeline_mode<synchronous>, transform_indices = @transform_3, window_bounds = array<i64: 1, 8>}, {transform_indices = @transform_4, window_bounds = array<i64: 2, 8>}]} {
    %c0 = arith.constant 0 : index
    %c0_0 = arith.constant 0 : index
    %0 = vector.load %arg1[%c0, %c0_0] : memref<2x8xbf16, #tpu.memory_space<vmem>>, vector<2x8xbf16>
    %c0_1 = arith.constant 0 : index
    %c0_2 = arith.constant 0 : index
    %1 = vector.load %arg2[%c0_1, %c0_2] : memref<8x8xbf16, #tpu.memory_space<vmem>>, vector<8x8xbf16>
    %cst = arith.constant dense<0.000000e+00> : vector<2x8xf32>
    %2 = tpu.matmul %0, %1, %cst {dimension_numbers = #tpu.dot_dimension_numbers<[1], [0], [0], [1], [0, 0, 1, 1], [], []>} : vector<2x8xbf16>, vector<8x8xbf16>, vector<2x8xf32> -> vector<2x8xf32>
    %c0_3 = arith.constant 0 : index
    %c0_4 = arith.constant 0 : index
    %3 = vector.load %arg3[%c0_3, %c0_4] : memref<1x8xf32, #tpu.memory_space<vmem>>, vector<1x8xf32>
    %4 = vector.broadcast %3 : vector<1x8xf32> to vector<2x8xf32>
    %5 = arith.mulf %2, %4 : vector<2x8xf32>
    %c0_5 = arith.constant 0 : index
    %c0_6 = arith.constant 0 : index
    %6 = vector.load %arg4[%c0_5, %c0_6] : memref<1x8xf32, #tpu.memory_space<vmem>>, vector<1x8xf32>
    %7 = vector.broadcast %6 : vector<1x8xf32> to vector<2x8xf32>
    %8 = arith.addf %5, %7 : vector<2x8xf32>
    %cst_7 = arith.constant 0.000000e+00 : f32
    %9 = vector.broadcast %cst_7 : f32 to vector<2x8xf32>
    %10 = arith.maximumf %8, %9 : vector<2x8xf32>
    %11 = arith.truncf %10 : vector<2x8xf32> to vector<2x8xbf16>
    %c0_8 = arith.constant 0 : index
    %c0_9 = arith.constant 0 : index
    %12 = vector.load %arg5[%c0_8, %c0_9] : memref<2x8xbf16, #tpu.memory_space<vmem>>, vector<2x8xbf16>
    tpu.vector_store %arg5[%c0_8, %c0_9], %11 {strides = array<i32>} : memref<2x8xbf16, #tpu.memory_space<vmem>>, vector<2x8xbf16>,
    return
  }
  func.func @transform_0(%arg0: i32) -> (i32, i32) {
    %c0_i32 = arith.constant 0 : i32
    %c0_i32_0 = arith.constant 0 : i32
    return %arg0, %c0_i32 : i32, i32
  }
  func.func @transform_1(%arg0: i32) -> (i32, i32) {
    %c0_i32 = arith.constant 0 : i32
    %c0_i32_0 = arith.constant 0 : i32
    %c0_i32_1 = arith.constant 0 : i32
    return %c0_i32, %c0_i32_0 : i32, i32
  }
  func.func @transform_2(%arg0: i32) -> (i32, i32) {
    %c0_i32 = arith.constant 0 : i32
    %c0_i32_0 = arith.constant 0 : i32
    %c0_i32_1 = arith.constant 0 : i32
    return %c0_i32, %c0_i32_0 : i32, i32
  }
  func.func @transform_3(%arg0: i32) -> (i32, i32) {
    %c0_i32 = arith.constant 0 : i32
    %c0_i32_0 = arith.constant 0 : i32
    %c0_i32_1 = arith.constant 0 : i32
    return %c0_i32, %c0_i32_0 : i32, i32
  }
  func.func @transform_4(%arg0: i32) -> (i32, i32) {
    %c0_i32 = arith.constant 0 : i32
    %c0_i32_0 = arith.constant 0 : i32
    return %arg0, %c0_i32 : i32, i32
  }
}

module attributes {stable_mosaic.version = 11 : i64} {
  func.func @_matmul_kernel(%arg0: i32, %arg1: memref<16x8xbf16, #tpu.memory_space<vmem>>, %arg2: memref<8x16xbf16, #tpu.memory_space<vmem>>, %arg3: memref<16x16xbf16, #tpu.memory_space<vmem>>) attributes {dimension_semantics = [#tpu.dimension_semantics<parallel>], iteration_bounds = array<i64: 1>, scalar_prefetch = 0 : i64, scratch_operands = 0 : i64, tpu.core_type = #tpu.core_type<tc>, window_params = [{transform_indices = @transform_0, window_bounds = array<i64: 16, 8>}, {pipeline_mode = #tpu.pipeline_mode<synchronous>, transform_indices = @transform_1, window_bounds = array<i64: 8, 16>}, {transform_indices = @transform_2, window_bounds = array<i64: 16, 16>}]} {
    %c0 = arith.constant 0 : index
    %c0_0 = arith.constant 0 : index
    %0 = vector.load %arg1[%c0, %c0_0] : memref<16x8xbf16, #tpu.memory_space<vmem>>, vector<16x8xbf16>
    %c0_1 = arith.constant 0 : index
    %c0_2 = arith.constant 0 : index
    %1 = vector.load %arg2[%c0_1, %c0_2] : memref<8x16xbf16, #tpu.memory_space<vmem>>, vector<8x16xbf16>
    %cst = arith.constant dense<0.000000e+00> : vector<16x16xf32>
    %2 = tpu.matmul %0, %1, %cst {dimension_numbers = #tpu.dot_dimension_numbers<[1], [0], [0], [1], [0, 0, 1, 1], [], []>} : vector<16x8xbf16>, vector<8x16xbf16>, vector<16x16xf32> -> vector<16x16xf32>
    %3 = arith.truncf %2 : vector<16x16xf32> to vector<16x16xbf16>
    %c0_3 = arith.constant 0 : index
    %c0_4 = arith.constant 0 : index
    %4 = vector.load %arg3[%c0_3, %c0_4] : memref<16x16xbf16, #tpu.memory_space<vmem>>, vector<16x16xbf16>
    tpu.vector_store %arg3[%c0_3, %c0_4], %3 {strides = array<i32>} : memref<16x16xbf16, #tpu.memory_space<vmem>>, vector<16x16xbf16>,
    return
  }
  func.func @transform_0(%arg0: i32) -> (i32, i32) {
    %c0_i32 = arith.constant 0 : i32
    %c0_i32_0 = arith.constant 0 : i32
    return %arg0, %c0_i32 : i32, i32
  }
  func.func @transform_1(%arg0: i32) -> (i32, i32) {
    %c0_i32 = arith.constant 0 : i32
    %c0_i32_0 = arith.constant 0 : i32
    %c0_i32_1 = arith.constant 0 : i32
    return %c0_i32, %c0_i32_0 : i32, i32
  }
  func.func @transform_2(%arg0: i32) -> (i32, i32) {
    %c0_i32 = arith.constant 0 : i32
    %c0_i32_0 = arith.constant 0 : i32
    return %arg0, %c0_i32 : i32, i32
  }
}

module attributes {stable_mosaic.version = 11 : i64} {
  func.func @_hresize_kernel(%arg0: i32, %arg1: memref<1x8x128xbf16, #tpu.memory_space<vmem>>, %arg2: memref<16x8xbf16, #tpu.memory_space<vmem>>, %arg3: memref<1x16x128xbf16, #tpu.memory_space<vmem>>) attributes {dimension_semantics = [#tpu.dimension_semantics<parallel>], iteration_bounds = array<i64: 2>, scalar_prefetch = 0 : i64, scratch_operands = 0 : i64, tpu.core_type = #tpu.core_type<tc>, window_params = [{transform_indices = @transform_0, window_bounds = array<i64: 1, 8, 128>}, {pipeline_mode = #tpu.pipeline_mode<synchronous>, transform_indices = @transform_1, window_bounds = array<i64: 16, 8>}, {transform_indices = @transform_2, window_bounds = array<i64: 1, 16, 128>}]} {
    %c0 = arith.constant 0 : index
    %c0_0 = arith.constant 0 : index
    %0 = vector.load %arg2[%c0, %c0_0] : memref<16x8xbf16, #tpu.memory_space<vmem>>, vector<16x8xbf16>
    %c0_1 = arith.constant 0 : index
    %c0_2 = arith.constant 0 : index
    %c0_3 = arith.constant 0 : index
    %1 = vector.load %arg1[%c0_1, %c0_2, %c0_3] : memref<1x8x128xbf16, #tpu.memory_space<vmem>>, vector<1x8x128xbf16>
    %2 = vector.shape_cast %1 : vector<1x8x128xbf16> to vector<8x128xbf16>
    %cst = arith.constant dense<0.000000e+00> : vector<16x128xf32>
    %3 = tpu.matmul %0, %2, %cst {dimension_numbers = #tpu.dot_dimension_numbers<[1], [0], [0], [1], [0, 0, 1, 1], [], []>} : vector<16x8xbf16>, vector<8x128xbf16>, vector<16x128xf32> -> vector<16x128xf32>
    %4 = arith.truncf %3 : vector<16x128xf32> to vector<16x128xbf16>
    %c0_4 = arith.constant 0 : index
    %c0_5 = arith.constant 0 : index
    %c0_6 = arith.constant 0 : index
    %5 = vector.load %arg3[%c0_4, %c0_5, %c0_6] : memref<1x16x128xbf16, #tpu.memory_space<vmem>>, vector<1x16x128xbf16>
    %6 = vector.shape_cast %5 : vector<1x16x128xbf16> to vector<16x128xbf16>
    %7 = vector.shape_cast %4 : vector<16x128xbf16> to vector<1x16x128xbf16>
    tpu.vector_store %arg3[%c0_4, %c0_5, %c0_6], %7 {strides = array<i32>} : memref<1x16x128xbf16, #tpu.memory_space<vmem>>, vector<1x16x128xbf16>,
    return
  }
  func.func @transform_0(%arg0: i32) -> (i32, i32, i32) {
    %c0_i32 = arith.constant 0 : i32
    %c0_i32_0 = arith.constant 0 : i32
    %c0_i32_1 = arith.constant 0 : i32
    return %arg0, %c0_i32, %c0_i32_0 : i32, i32, i32
  }
  func.func @transform_1(%arg0: i32) -> (i32, i32) {
    %c0_i32 = arith.constant 0 : i32
    %c0_i32_0 = arith.constant 0 : i32
    %c0_i32_1 = arith.constant 0 : i32
    return %c0_i32, %c0_i32_0 : i32, i32
  }
  func.func @transform_2(%arg0: i32) -> (i32, i32, i32) {
    %c0_i32 = arith.constant 0 : i32
    %c0_i32_0 = arith.constant 0 : i32
    %c0_i32_1 = arith.constant 0 : i32
    return %arg0, %c0_i32, %c0_i32_0 : i32, i32, i32
  }
}

module attributes {stable_mosaic.version = 11 : i64} {
  func.func @_conv3x3_kernel(%arg0: i32, %arg1: memref<1x110x8xbf16, #tpu.memory_space<vmem>>, %arg2: memref<9x8x8xbf16, #tpu.memory_space<vmem>>, %arg3: memref<1x8xf32, #tpu.memory_space<vmem>>, %arg4: memref<1x8xf32, #tpu.memory_space<vmem>>, %arg5: memref<1x80x8xbf16, #tpu.memory_space<vmem>>) attributes {dimension_semantics = [#tpu.dimension_semantics<parallel>], iteration_bounds = array<i64: 2>, scalar_prefetch = 0 : i64, scratch_operands = 0 : i64, tpu.core_type = #tpu.core_type<tc>, window_params = [{transform_indices = @transform_0, window_bounds = array<i64: 1, 110, 8>}, {pipeline_mode = #tpu.pipeline_mode<synchronous>, transform_indices = @transform_1, window_bounds = array<i64: 9, 8, 8>}, {pipeline_mode = #tpu.pipeline_mode<synchronous>, transform_indices = @transform_2, window_bounds = array<i64: 1, 8>}, {pipeline_mode = #tpu.pipeline_mode<synchronous>, transform_indices = @transform_3, window_bounds = array<i64: 1, 8>}, {transform_indices = @transform_4, window_bounds = array<i64: 1, 80, 8>}]} {
    %cst = arith.constant 0.000000e+00 : f32
    %0 = vector.broadcast %cst : f32 to vector<80x8xf32>
    %c0 = arith.constant 0 : index
    %c0_0 = arith.constant 0 : index
    %c0_1 = arith.constant 0 : index
    %1 = vector.load %arg1[%c0, %c0_0, %c0_1] : memref<1x110x8xbf16, #tpu.memory_space<vmem>>, vector<1x80x8xbf16>
    %2 = vector.shape_cast %1 : vector<1x80x8xbf16> to vector<80x8xbf16>
    %c0_2 = arith.constant 0 : index
    %c0_3 = arith.constant 0 : index
    %c0_4 = arith.constant 0 : index
    %3 = vector.load %arg2[%c0_2, %c0_3, %c0_4] : memref<9x8x8xbf16, #tpu.memory_space<vmem>>, vector<1x8x8xbf16>
    %4 = vector.shape_cast %3 : vector<1x8x8xbf16> to vector<8x8xbf16>
    %cst_5 = arith.constant dense<0.000000e+00> : vector<80x8xf32>
    %5 = tpu.matmul %2, %4, %cst_5 {dimension_numbers = #tpu.dot_dimension_numbers<[1], [0], [0], [1], [0, 0, 1, 1], [], []>} : vector<80x8xbf16>, vector<8x8xbf16>, vector<80x8xf32> -> vector<80x8xf32>
    %6 = arith.addf %0, %5 : vector<80x8xf32>
    %c0_6 = arith.constant 0 : index
    %c1 = arith.constant 1 : index
    %c0_7 = arith.constant 0 : index
    %7 = vector.load %arg1[%c0_6, %c1, %c0_7] : memref<1x110x8xbf16, #tpu.memory_space<vmem>>, vector<1x80x8xbf16>
    %8 = vector.shape_cast %7 : vector<1x80x8xbf16> to vector<80x8xbf16>
    %c1_8 = arith.constant 1 : index
    %c0_9 = arith.constant 0 : index
    %c0_10 = arith.constant 0 : index
    %9 = vector.load %arg2[%c1_8, %c0_9, %c0_10] : memref<9x8x8xbf16, #tpu.memory_space<vmem>>, vector<1x8x8xbf16>
    %10 = vector.shape_cast %9 : vector<1x8x8xbf16> to vector<8x8xbf16>
    %cst_11 = arith.constant dense<0.000000e+00> : vector<80x8xf32>
    %11 = tpu.matmul %8, %10, %cst_11 {dimension_numbers = #tpu.dot_dimension_numbers<[1], [0], [0], [1], [0, 0, 1, 1], [], []>} : vector<80x8xbf16>, vector<8x8xbf16>, vector<80x8xf32> -> vector<80x8xf32>
    %12 = arith.addf %6, %11 : vector<80x8xf32>
    %c0_12 = arith.constant 0 : index
    %c2 = arith.constant 2 : index
    %c0_13 = arith.constant 0 : index
    %13 = vector.load %arg1[%c0_12, %c2, %c0_13] : memref<1x110x8xbf16, #tpu.memory_space<vmem>>, vector<1x80x8xbf16>
    %14 = vector.shape_cast %13 : vector<1x80x8xbf16> to vector<80x8xbf16>
    %c2_14 = arith.constant 2 : index
    %c0_15 = arith.constant 0 : index
    %c0_16 = arith.constant 0 : index
    %15 = vector.load %arg2[%c2_14, %c0_15, %c0_16] : memref<9x8x8xbf16, #tpu.memory_space<vmem>>, vector<1x8x8xbf16>
    %16 = vector.shape_cast %15 : vector<1x8x8xbf16> to vector<8x8xbf16>
    %cst_17 = arith.constant dense<0.000000e+00> : vector<80x8xf32>
    %17 = tpu.matmul %14, %16, %cst_17 {dimension_numbers = #tpu.dot_dimension_numbers<[1], [0], [0], [1], [0, 0, 1, 1], [], []>} : vector<80x8xbf16>, vector<8x8xbf16>, vector<80x8xf32> -> vector<80x8xf32>
    %18 = arith.addf %12, %17 : vector<80x8xf32>
    %c0_18 = arith.constant 0 : index
    %c10 = arith.constant 10 : index
    %c0_19 = arith.constant 0 : index
    %19 = vector.load %arg1[%c0_18, %c10, %c0_19] : memref<1x110x8xbf16, #tpu.memory_space<vmem>>, vector<1x80x8xbf16>
    %20 = vector.shape_cast %19 : vector<1x80x8xbf16> to vector<80x8xbf16>
    %c3 = arith.constant 3 : index
    %c0_20 = arith.constant 0 : index
    %c0_21 = arith.constant 0 : index
    %21 = vector.load %arg2[%c3, %c0_20, %c0_21] : memref<9x8x8xbf16, #tpu.memory_space<vmem>>, vector<1x8x8xbf16>
    %22 = vector.shape_cast %21 : vector<1x8x8xbf16> to vector<8x8xbf16>
    %cst_22 = arith.constant dense<0.000000e+00> : vector<80x8xf32>
    %23 = tpu.matmul %20, %22, %cst_22 {dimension_numbers = #tpu.dot_dimension_numbers<[1], [0], [0], [1], [0, 0, 1, 1], [], []>} : vector<80x8xbf16>, vector<8x8xbf16>, vector<80x8xf32> -> vector<80x8xf32>
    %24 = arith.addf %18, %23 : vector<80x8xf32>
    %c0_23 = arith.constant 0 : index
    %c11 = arith.constant 11 : index
    %c0_24 = arith.constant 0 : index
    %25 = vector.load %arg1[%c0_23, %c11, %c0_24] : memref<1x110x8xbf16, #tpu.memory_space<vmem>>, vector<1x80x8xbf16>
    %26 = vector.shape_cast %25 : vector<1x80x8xbf16> to vector<80x8xbf16>
    %c4 = arith.constant 4 : index
    %c0_25 = arith.constant 0 : index
    %c0_26 = arith.constant 0 : index
    %27 = vector.load %arg2[%c4, %c0_25, %c0_26] : memref<9x8x8xbf16, #tpu.memory_space<vmem>>, vector<1x8x8xbf16>
    %28 = vector.shape_cast %27 : vector<1x8x8xbf16> to vector<8x8xbf16>
    %cst_27 = arith.constant dense<0.000000e+00> : vector<80x8xf32>
    %29 = tpu.matmul %26, %28, %cst_27 {dimension_numbers = #tpu.dot_dimension_numbers<[1], [0], [0], [1], [0, 0, 1, 1], [], []>} : vector<80x8xbf16>, vector<8x8xbf16>, vector<80x8xf32> -> vector<80x8xf32>
    %30 = arith.addf %24, %29 : vector<80x8xf32>
    %c0_28 = arith.constant 0 : index
    %c12 = arith.constant 12 : index
    %c0_29 = arith.constant 0 : index
    %31 = vector.load %arg1[%c0_28, %c12, %c0_29] : memref<1x110x8xbf16, #tpu.memory_space<vmem>>, vector<1x80x8xbf16>
    %32 = vector.shape_cast %31 : vector<1x80x8xbf16> to vector<80x8xbf16>
    %c5 = arith.constant 5 : index
    %c0_30 = arith.constant 0 : index
    %c0_31 = arith.constant 0 : index
    %33 = vector.load %arg2[%c5, %c0_30, %c0_31] : memref<9x8x8xbf16, #tpu.memory_space<vmem>>, vector<1x8x8xbf16>
    %34 = vector.shape_cast %33 : vector<1x8x8xbf16> to vector<8x8xbf16>
    %cst_32 = arith.constant dense<0.000000e+00> : vector<80x8xf32>
    %35 = tpu.matmul %32, %34, %cst_32 {dimension_numbers = #tpu.dot_dimension_numbers<[1], [0], [0], [1], [0, 0, 1, 1], [], []>} : vector<80x8xbf16>, vector<8x8xbf16>, vector<80x8xf32> -> vector<80x8xf32>
    %36 = arith.addf %30, %35 : vector<80x8xf32>
    %c0_33 = arith.constant 0 : index
    %c20 = arith.constant 20 : index
    %c0_34 = arith.constant 0 : index
    %37 = vector.load %arg1[%c0_33, %c20, %c0_34] : memref<1x110x8xbf16, #tpu.memory_space<vmem>>, vector<1x80x8xbf16>
    %38 = vector.shape_cast %37 : vector<1x80x8xbf16> to vector<80x8xbf16>
    %c6 = arith.constant 6 : index
    %c0_35 = arith.constant 0 : index
    %c0_36 = arith.constant 0 : index
    %39 = vector.load %arg2[%c6, %c0_35, %c0_36] : memref<9x8x8xbf16, #tpu.memory_space<vmem>>, vector<1x8x8xbf16>
    %40 = vector.shape_cast %39 : vector<1x8x8xbf16> to vector<8x8xbf16>
    %cst_37 = arith.constant dense<0.000000e+00> : vector<80x8xf32>
    %41 = tpu.matmul %38, %40, %cst_37 {dimension_numbers = #tpu.dot_dimension_numbers<[1], [0], [0], [1], [0, 0, 1, 1], [], []>} : vector<80x8xbf16>, vector<8x8xbf16>, vector<80x8xf32> -> vector<80x8xf32>
    %42 = arith.addf %36, %41 : vector<80x8xf32>
    %c0_38 = arith.constant 0 : index
    %c21 = arith.constant 21 : index
    %c0_39 = arith.constant 0 : index
    %43 = vector.load %arg1[%c0_38, %c21, %c0_39] : memref<1x110x8xbf16, #tpu.memory_space<vmem>>, vector<1x80x8xbf16>
    %44 = vector.shape_cast %43 : vector<1x80x8xbf16> to vector<80x8xbf16>
    %c7 = arith.constant 7 : index
    %c0_40 = arith.constant 0 : index
    %c0_41 = arith.constant 0 : index
    %45 = vector.load %arg2[%c7, %c0_40, %c0_41] : memref<9x8x8xbf16, #tpu.memory_space<vmem>>, vector<1x8x8xbf16>
    %46 = vector.shape_cast %45 : vector<1x8x8xbf16> to vector<8x8xbf16>
    %cst_42 = arith.constant dense<0.000000e+00> : vector<80x8xf32>
    %47 = tpu.matmul %44, %46, %cst_42 {dimension_numbers = #tpu.dot_dimension_numbers<[1], [0], [0], [1], [0, 0, 1, 1], [], []>} : vector<80x8xbf16>, vector<8x8xbf16>, vector<80x8xf32> -> vector<80x8xf32>
    %48 = arith.addf %42, %47 : vector<80x8xf32>
    %c0_43 = arith.constant 0 : index
    %c22 = arith.constant 22 : index
    %c0_44 = arith.constant 0 : index
    %49 = vector.load %arg1[%c0_43, %c22, %c0_44] : memref<1x110x8xbf16, #tpu.memory_space<vmem>>, vector<1x80x8xbf16>
    %50 = vector.shape_cast %49 : vector<1x80x8xbf16> to vector<80x8xbf16>
    %c8 = arith.constant 8 : index
    %c0_45 = arith.constant 0 : index
    %c0_46 = arith.constant 0 : index
    %51 = vector.load %arg2[%c8, %c0_45, %c0_46] : memref<9x8x8xbf16, #tpu.memory_space<vmem>>, vector<1x8x8xbf16>
    %52 = vector.shape_cast %51 : vector<1x8x8xbf16> to vector<8x8xbf16>
    %cst_47 = arith.constant dense<0.000000e+00> : vector<80x8xf32>
    %53 = tpu.matmul %50, %52, %cst_47 {dimension_numbers = #tpu.dot_dimension_numbers<[1], [0], [0], [1], [0, 0, 1, 1], [], []>} : vector<80x8xbf16>, vector<8x8xbf16>, vector<80x8xf32> -> vector<80x8xf32>
    %54 = arith.addf %48, %53 : vector<80x8xf32>
    %c0_48 = arith.constant 0 : index
    %c0_49 = arith.constant 0 : index
    %55 = vector.load %arg3[%c0_48, %c0_49] : memref<1x8xf32, #tpu.memory_space<vmem>>, vector<1x8xf32>
    %56 = vector.broadcast %55 : vector<1x8xf32> to vector<80x8xf32>
    %57 = arith.mulf %54, %56 : vector<80x8xf32>
    %c0_50 = arith.constant 0 : index
    %c0_51 = arith.constant 0 : index
    %58 = vector.load %arg4[%c0_50, %c0_51] : memref<1x8xf32, #tpu.memory_space<vmem>>, vector<1x8xf32>
    %59 = vector.broadcast %58 : vector<1x8xf32> to vector<80x8xf32>
    %60 = arith.addf %57, %59 : vector<80x8xf32>
    %cst_52 = arith.constant 0.000000e+00 : f32
    %61 = vector.broadcast %cst_52 : f32 to vector<80x8xf32>
    %62 = arith.maximumf %60, %61 : vector<80x8xf32>
    %63 = arith.truncf %62 : vector<80x8xf32> to vector<80x8xbf16>
    %c0_53 = arith.constant 0 : index
    %c0_54 = arith.constant 0 : index
    %c0_55 = arith.constant 0 : index
    %64 = vector.load %arg5[%c0_53, %c0_54, %c0_55] : memref<1x80x8xbf16, #tpu.memory_space<vmem>>, vector<1x80x8xbf16>
    %65 = vector.shape_cast %64 : vector<1x80x8xbf16> to vector<80x8xbf16>
    %66 = vector.shape_cast %63 : vector<80x8xbf16> to vector<1x80x8xbf16>
    tpu.vector_store %arg5[%c0_53, %c0_54, %c0_55], %66 {strides = array<i32>} : memref<1x80x8xbf16, #tpu.memory_space<vmem>>, vector<1x80x8xbf16>,
    return
  }
  func.func @transform_0(%arg0: i32) -> (i32, i32, i32) {
    %c0_i32 = arith.constant 0 : i32
    %c0_i32_0 = arith.constant 0 : i32
    %c0_i32_1 = arith.constant 0 : i32
    return %arg0, %c0_i32, %c0_i32_0 : i32, i32, i32
  }
  func.func @transform_1(%arg0: i32) -> (i32, i32, i32) {
    %c0_i32 = arith.constant 0 : i32
    %c0_i32_0 = arith.constant 0 : i32
    %c0_i32_1 = arith.constant 0 : i32
    %c0_i32_2 = arith.constant 0 : i32
    return %c0_i32, %c0_i32_0, %c0_i32_1 : i32, i32, i32
  }
  func.func @transform_2(%arg0: i32) -> (i32, i32) {
    %c0_i32 = arith.constant 0 : i32
    %c0_i32_0 = arith.constant 0 : i32
    %c0_i32_1 = arith.constant 0 : i32
    return %c0_i32, %c0_i32_0 : i32, i32
  }
  func.func @transform_3(%arg0: i32) -> (i32, i32) {
    %c0_i32 = arith.constant 0 : i32
    %c0_i32_0 = arith.constant 0 : i32
    %c0_i32_1 = arith.constant 0 : i32
    return %c0_i32, %c0_i32_0 : i32, i32
  }
  func.func @transform_4(%arg0: i32) -> (i32, i32, i32) {
    %c0_i32 = arith.constant 0 : i32
    %c0_i32_0 = arith.constant 0 : i32
    %c0_i32_1 = arith.constant 0 : i32
    return %arg0, %c0_i32, %c0_i32_0 : i32, i32, i32
  }
}

module attributes {stable_mosaic.version = 11 : i64} {
  func.func @_conv_kernel(%arg0: i32, %arg1: memref<128x8xbf16, #tpu.memory_space<vmem>>, %arg2: memref<8x8xbf16, #tpu.memory_space<vmem>>, %arg3: memref<1x8xf32, #tpu.memory_space<vmem>>, %arg4: memref<1x8xf32, #tpu.memory_space<vmem>>, %arg5: memref<128x8xbf16, #tpu.memory_space<vmem>>) attributes {dimension_semantics = [#tpu.dimension_semantics<parallel>], iteration_bounds = array<i64: 1>, scalar_prefetch = 0 : i64, scratch_operands = 0 : i64, tpu.core_type = #tpu.core_type<tc>, window_params = [{transform_indices = @transform_0, window_bounds = array<i64: 128, 8>}, {pipeline_mode = #tpu.pipeline_mode<synchronous>, transform_indices = @transform_1, window_bounds = array<i64: 8, 8>}, {pipeline_mode = #tpu.pipeline_mode<synchronous>, transform_indices = @transform_2, window_bounds = array<i64: 1, 8>}, {pipeline_mode = #tpu.pipeline_mode<synchronous>, transform_indices = @transform_3, window_bounds = array<i64: 1, 8>}, {transform_indices = @transform_4, window_bounds = array<i64: 128, 8>}]} {
    %c0 = arith.constant 0 : index
    %c0_0 = arith.constant 0 : index
    %0 = vector.load %arg1[%c0, %c0_0] : memref<128x8xbf16, #tpu.memory_space<vmem>>, vector<128x8xbf16>
    %c0_1 = arith.constant 0 : index
    %c0_2 = arith.constant 0 : index
    %1 = vector.load %arg2[%c0_1, %c0_2] : memref<8x8xbf16, #tpu.memory_space<vmem>>, vector<8x8xbf16>
    %cst = arith.constant dense<0.000000e+00> : vector<128x8xf32>
    %2 = tpu.matmul %0, %1, %cst {dimension_numbers = #tpu.dot_dimension_numbers<[1], [0], [0], [1], [0, 0, 1, 1], [], []>} : vector<128x8xbf16>, vector<8x8xbf16>, vector<128x8xf32> -> vector<128x8xf32>
    %c0_3 = arith.constant 0 : index
    %c0_4 = arith.constant 0 : index
    %3 = vector.load %arg3[%c0_3, %c0_4] : memref<1x8xf32, #tpu.memory_space<vmem>>, vector<1x8xf32>
    %4 = vector.broadcast %3 : vector<1x8xf32> to vector<128x8xf32>
    %5 = arith.mulf %2, %4 : vector<128x8xf32>
    %c0_5 = arith.constant 0 : index
    %c0_6 = arith.constant 0 : index
    %6 = vector.load %arg4[%c0_5, %c0_6] : memref<1x8xf32, #tpu.memory_space<vmem>>, vector<1x8xf32>
    %7 = vector.broadcast %6 : vector<1x8xf32> to vector<128x8xf32>
    %8 = arith.addf %5, %7 : vector<128x8xf32>
    %cst_7 = arith.constant 0.000000e+00 : f32
    %9 = vector.broadcast %cst_7 : f32 to vector<128x8xf32>
    %10 = arith.maximumf %8, %9 : vector<128x8xf32>
    %11 = arith.truncf %10 : vector<128x8xf32> to vector<128x8xbf16>
    %c0_8 = arith.constant 0 : index
    %c0_9 = arith.constant 0 : index
    %12 = vector.load %arg5[%c0_8, %c0_9] : memref<128x8xbf16, #tpu.memory_space<vmem>>, vector<128x8xbf16>
    tpu.vector_store %arg5[%c0_8, %c0_9], %11 {strides = array<i32>} : memref<128x8xbf16, #tpu.memory_space<vmem>>, vector<128x8xbf16>,
    return
  }
  func.func @transform_0(%arg0: i32) -> (i32, i32) {
    %c0_i32 = arith.constant 0 : i32
    %c0_i32_0 = arith.constant 0 : i32
    return %arg0, %c0_i32 : i32, i32
  }
  func.func @transform_1(%arg0: i32) -> (i32, i32) {
    %c0_i32 = arith.constant 0 : i32
    %c0_i32_0 = arith.constant 0 : i32
    %c0_i32_1 = arith.constant 0 : i32
    return %c0_i32, %c0_i32_0 : i32, i32
  }
  func.func @transform_2(%arg0: i32) -> (i32, i32) {
    %c0_i32 = arith.constant 0 : i32
    %c0_i32_0 = arith.constant 0 : i32
    %c0_i32_1 = arith.constant 0 : i32
    return %c0_i32, %c0_i32_0 : i32, i32
  }
  func.func @transform_3(%arg0: i32) -> (i32, i32) {
    %c0_i32 = arith.constant 0 : i32
    %c0_i32_0 = arith.constant 0 : i32
    %c0_i32_1 = arith.constant 0 : i32
    return %c0_i32, %c0_i32_0 : i32, i32
  }
  func.func @transform_4(%arg0: i32) -> (i32, i32) {
    %c0_i32 = arith.constant 0 : i32
    %c0_i32_0 = arith.constant 0 : i32
    return %arg0, %c0_i32 : i32, i32
  }
}

module attributes {stable_mosaic.version = 11 : i64} {
  func.func @_matmul_kernel(%arg0: i32, %arg1: memref<128x8xbf16, #tpu.memory_space<vmem>>, %arg2: memref<8x16xbf16, #tpu.memory_space<vmem>>, %arg3: memref<128x16xbf16, #tpu.memory_space<vmem>>) attributes {dimension_semantics = [#tpu.dimension_semantics<parallel>], iteration_bounds = array<i64: 1>, scalar_prefetch = 0 : i64, scratch_operands = 0 : i64, tpu.core_type = #tpu.core_type<tc>, window_params = [{transform_indices = @transform_0, window_bounds = array<i64: 128, 8>}, {pipeline_mode = #tpu.pipeline_mode<synchronous>, transform_indices = @transform_1, window_bounds = array<i64: 8, 16>}, {transform_indices = @transform_2, window_bounds = array<i64: 128, 16>}]} {
    %c0 = arith.constant 0 : index
    %c0_0 = arith.constant 0 : index
    %0 = vector.load %arg1[%c0, %c0_0] : memref<128x8xbf16, #tpu.memory_space<vmem>>, vector<128x8xbf16>
    %c0_1 = arith.constant 0 : index
    %c0_2 = arith.constant 0 : index
    %1 = vector.load %arg2[%c0_1, %c0_2] : memref<8x16xbf16, #tpu.memory_space<vmem>>, vector<8x16xbf16>
    %cst = arith.constant dense<0.000000e+00> : vector<128x16xf32>
    %2 = tpu.matmul %0, %1, %cst {dimension_numbers = #tpu.dot_dimension_numbers<[1], [0], [0], [1], [0, 0, 1, 1], [], []>} : vector<128x8xbf16>, vector<8x16xbf16>, vector<128x16xf32> -> vector<128x16xf32>
    %3 = arith.truncf %2 : vector<128x16xf32> to vector<128x16xbf16>
    %c0_3 = arith.constant 0 : index
    %c0_4 = arith.constant 0 : index
    %4 = vector.load %arg3[%c0_3, %c0_4] : memref<128x16xbf16, #tpu.memory_space<vmem>>, vector<128x16xbf16>
    tpu.vector_store %arg3[%c0_3, %c0_4], %3 {strides = array<i32>} : memref<128x16xbf16, #tpu.memory_space<vmem>>, vector<128x16xbf16>,
    return
  }
  func.func @transform_0(%arg0: i32) -> (i32, i32) {
    %c0_i32 = arith.constant 0 : i32
    %c0_i32_0 = arith.constant 0 : i32
    return %arg0, %c0_i32 : i32, i32
  }
  func.func @transform_1(%arg0: i32) -> (i32, i32) {
    %c0_i32 = arith.constant 0 : i32
    %c0_i32_0 = arith.constant 0 : i32
    %c0_i32_1 = arith.constant 0 : i32
    return %c0_i32, %c0_i32_0 : i32, i32
  }
  func.func @transform_2(%arg0: i32) -> (i32, i32) {
    %c0_i32 = arith.constant 0 : i32
    %c0_i32_0 = arith.constant 0 : i32
    return %arg0, %c0_i32 : i32, i32
  }
}

module attributes {stable_mosaic.version = 11 : i64} {
  func.func @_addpre_conv_kernel(%arg0: i32, %arg1: memref<512x8xbf16, #tpu.memory_space<vmem>>, %arg2: memref<512x8xbf16, #tpu.memory_space<vmem>>, %arg3: memref<1x8xf32, #tpu.memory_space<vmem>>, %arg4: memref<1x8xf32, #tpu.memory_space<vmem>>, %arg5: memref<8x8xbf16, #tpu.memory_space<vmem>>, %arg6: memref<1x8xf32, #tpu.memory_space<vmem>>, %arg7: memref<1x8xf32, #tpu.memory_space<vmem>>, %arg8: memref<512x8xbf16, #tpu.memory_space<vmem>>) attributes {dimension_semantics = [#tpu.dimension_semantics<parallel>], iteration_bounds = array<i64: 1>, scalar_prefetch = 0 : i64, scratch_operands = 0 : i64, tpu.core_type = #tpu.core_type<tc>, window_params = [{transform_indices = @transform_0, window_bounds = array<i64: 512, 8>}, {transform_indices = @transform_1, window_bounds = array<i64: 512, 8>}, {pipeline_mode = #tpu.pipeline_mode<synchronous>, transform_indices = @transform_2, window_bounds = array<i64: 1, 8>}, {pipeline_mode = #tpu.pipeline_mode<synchronous>, transform_indices = @transform_3, window_bounds = array<i64: 1, 8>}, {pipeline_mode = #tpu.pipeline_mode<synchronous>, transform_indices = @transform_4, window_bounds = array<i64: 8, 8>}, {pipeline_mode = #tpu.pipeline_mode<synchronous>, transform_indices = @transform_5, window_bounds = array<i64: 1, 8>}, {pipeline_mode = #tpu.pipeline_mode<synchronous>, transform_indices = @transform_6, window_bounds = array<i64: 1, 8>}, {transform_indices = @transform_7, window_bounds = array<i64: 512, 8>}]} {
    %c0 = arith.constant 0 : index
    %c0_0 = arith.constant 0 : index
    %0 = vector.load %arg1[%c0, %c0_0] : memref<512x8xbf16, #tpu.memory_space<vmem>>, vector<512x8xbf16>
    %1 = arith.extf %0 : vector<512x8xbf16> to vector<512x8xf32>
    %c0_1 = arith.constant 0 : index
    %c0_2 = arith.constant 0 : index
    %2 = vector.load %arg2[%c0_1, %c0_2] : memref<512x8xbf16, #tpu.memory_space<vmem>>, vector<512x8xbf16>
    %3 = arith.extf %2 : vector<512x8xbf16> to vector<512x8xf32>
    %4 = arith.addf %1, %3 : vector<512x8xf32>
    %c0_3 = arith.constant 0 : index
    %c0_4 = arith.constant 0 : index
    %5 = vector.load %arg3[%c0_3, %c0_4] : memref<1x8xf32, #tpu.memory_space<vmem>>, vector<1x8xf32>
    %6 = vector.broadcast %5 : vector<1x8xf32> to vector<512x8xf32>
    %7 = arith.mulf %4, %6 : vector<512x8xf32>
    %c0_5 = arith.constant 0 : index
    %c0_6 = arith.constant 0 : index
    %8 = vector.load %arg4[%c0_5, %c0_6] : memref<1x8xf32, #tpu.memory_space<vmem>>, vector<1x8xf32>
    %9 = vector.broadcast %8 : vector<1x8xf32> to vector<512x8xf32>
    %10 = arith.addf %7, %9 : vector<512x8xf32>
    %cst = arith.constant 0.000000e+00 : f32
    %11 = vector.broadcast %cst : f32 to vector<512x8xf32>
    %12 = arith.maximumf %10, %11 : vector<512x8xf32>
    %13 = arith.truncf %12 : vector<512x8xf32> to vector<512x8xbf16>
    %c0_7 = arith.constant 0 : index
    %c0_8 = arith.constant 0 : index
    %14 = vector.load %arg5[%c0_7, %c0_8] : memref<8x8xbf16, #tpu.memory_space<vmem>>, vector<8x8xbf16>
    %cst_9 = arith.constant dense<0.000000e+00> : vector<512x8xf32>
    %15 = tpu.matmul %13, %14, %cst_9 {dimension_numbers = #tpu.dot_dimension_numbers<[1], [0], [0], [1], [0, 0, 1, 1], [], []>} : vector<512x8xbf16>, vector<8x8xbf16>, vector<512x8xf32> -> vector<512x8xf32>
    %c0_10 = arith.constant 0 : index
    %c0_11 = arith.constant 0 : index
    %16 = vector.load %arg6[%c0_10, %c0_11] : memref<1x8xf32, #tpu.memory_space<vmem>>, vector<1x8xf32>
    %17 = vector.broadcast %16 : vector<1x8xf32> to vector<512x8xf32>
    %18 = arith.mulf %15, %17 : vector<512x8xf32>
    %c0_12 = arith.constant 0 : index
    %c0_13 = arith.constant 0 : index
    %19 = vector.load %arg7[%c0_12, %c0_13] : memref<1x8xf32, #tpu.memory_space<vmem>>, vector<1x8xf32>
    %20 = vector.broadcast %19 : vector<1x8xf32> to vector<512x8xf32>
    %21 = arith.addf %18, %20 : vector<512x8xf32>
    %22 = arith.truncf %21 : vector<512x8xf32> to vector<512x8xbf16>
    %c0_14 = arith.constant 0 : index
    %c0_15 = arith.constant 0 : index
    %23 = vector.load %arg8[%c0_14, %c0_15] : memref<512x8xbf16, #tpu.memory_space<vmem>>, vector<512x8xbf16>
    tpu.vector_store %arg8[%c0_14, %c0_15], %22 {strides = array<i32>} : memref<512x8xbf16, #tpu.memory_space<vmem>>, vector<512x8xbf16>,
    return
  }
  func.func @transform_0(%arg0: i32) -> (i32, i32) {
    %c0_i32 = arith.constant 0 : i32
    %c0_i32_0 = arith.constant 0 : i32
    return %arg0, %c0_i32 : i32, i32
  }
  func.func @transform_1(%arg0: i32) -> (i32, i32) {
    %c0_i32 = arith.constant 0 : i32
    %c0_i32_0 = arith.constant 0 : i32
    return %arg0, %c0_i32 : i32, i32
  }
  func.func @transform_2(%arg0: i32) -> (i32, i32) {
    %c0_i32 = arith.constant 0 : i32
    %c0_i32_0 = arith.constant 0 : i32
    %c0_i32_1 = arith.constant 0 : i32
    return %c0_i32, %c0_i32_0 : i32, i32
  }
  func.func @transform_3(%arg0: i32) -> (i32, i32) {
    %c0_i32 = arith.constant 0 : i32
    %c0_i32_0 = arith.constant 0 : i32
    %c0_i32_1 = arith.constant 0 : i32
    return %c0_i32, %c0_i32_0 : i32, i32
  }
  func.func @transform_4(%arg0: i32) -> (i32, i32) {
    %c0_i32 = arith.constant 0 : i32
    %c0_i32_0 = arith.constant 0 : i32
    %c0_i32_1 = arith.constant 0 : i32
    return %c0_i32, %c0_i32_0 : i32, i32
  }
  func.func @transform_5(%arg0: i32) -> (i32, i32) {
    %c0_i32 = arith.constant 0 : i32
    %c0_i32_0 = arith.constant 0 : i32
    %c0_i32_1 = arith.constant 0 : i32
    return %c0_i32, %c0_i32_0 : i32, i32
  }
  func.func @transform_6(%arg0: i32) -> (i32, i32) {
    %c0_i32 = arith.constant 0 : i32
    %c0_i32_0 = arith.constant 0 : i32
    %c0_i32_1 = arith.constant 0 : i32
    return %c0_i32, %c0_i32_0 : i32, i32
  }
  func.func @transform_7(%arg0: i32) -> (i32, i32) {
    %c0_i32 = arith.constant 0 : i32
    %c0_i32_0 = arith.constant 0 : i32
    return %arg0, %c0_i32 : i32, i32
  }
}

module attributes {stable_mosaic.version = 11 : i64} {
  func.func @_conv3x3_kernel(%arg0: i32, %arg1: memref<1x342x8xbf16, #tpu.memory_space<vmem>>, %arg2: memref<9x8x8xbf16, #tpu.memory_space<vmem>>, %arg3: memref<1x8xf32, #tpu.memory_space<vmem>>, %arg4: memref<1x8xf32, #tpu.memory_space<vmem>>, %arg5: memref<1x288x8xbf16, #tpu.memory_space<vmem>>) attributes {dimension_semantics = [#tpu.dimension_semantics<parallel>], iteration_bounds = array<i64: 2>, scalar_prefetch = 0 : i64, scratch_operands = 0 : i64, tpu.core_type = #tpu.core_type<tc>, window_params = [{transform_indices = @transform_0, window_bounds = array<i64: 1, 342, 8>}, {pipeline_mode = #tpu.pipeline_mode<synchronous>, transform_indices = @transform_1, window_bounds = array<i64: 9, 8, 8>}, {pipeline_mode = #tpu.pipeline_mode<synchronous>, transform_indices = @transform_2, window_bounds = array<i64: 1, 8>}, {pipeline_mode = #tpu.pipeline_mode<synchronous>, transform_indices = @transform_3, window_bounds = array<i64: 1, 8>}, {transform_indices = @transform_4, window_bounds = array<i64: 1, 288, 8>}]} {
    %cst = arith.constant 0.000000e+00 : f32
    %0 = vector.broadcast %cst : f32 to vector<288x8xf32>
    %c0 = arith.constant 0 : index
    %c0_0 = arith.constant 0 : index
    %c0_1 = arith.constant 0 : index
    %1 = vector.load %arg1[%c0, %c0_0, %c0_1] : memref<1x342x8xbf16, #tpu.memory_space<vmem>>, vector<1x288x8xbf16>
    %2 = vector.shape_cast %1 : vector<1x288x8xbf16> to vector<288x8xbf16>
    %c0_2 = arith.constant 0 : index
    %c0_3 = arith.constant 0 : index
    %c0_4 = arith.constant 0 : index
    %3 = vector.load %arg2[%c0_2, %c0_3, %c0_4] : memref<9x8x8xbf16, #tpu.memory_space<vmem>>, vector<1x8x8xbf16>
    %4 = vector.shape_cast %3 : vector<1x8x8xbf16> to vector<8x8xbf16>
    %cst_5 = arith.constant dense<0.000000e+00> : vector<288x8xf32>
    %5 = tpu.matmul %2, %4, %cst_5 {dimension_numbers = #tpu.dot_dimension_numbers<[1], [0], [0], [1], [0, 0, 1, 1], [], []>} : vector<288x8xbf16>, vector<8x8xbf16>, vector<288x8xf32> -> vector<288x8xf32>
    %6 = arith.addf %0, %5 : vector<288x8xf32>
    %c0_6 = arith.constant 0 : index
    %c1 = arith.constant 1 : index
    %c0_7 = arith.constant 0 : index
    %7 = vector.load %arg1[%c0_6, %c1, %c0_7] : memref<1x342x8xbf16, #tpu.memory_space<vmem>>, vector<1x288x8xbf16>
    %8 = vector.shape_cast %7 : vector<1x288x8xbf16> to vector<288x8xbf16>
    %c1_8 = arith.constant 1 : index
    %c0_9 = arith.constant 0 : index
    %c0_10 = arith.constant 0 : index
    %9 = vector.load %arg2[%c1_8, %c0_9, %c0_10] : memref<9x8x8xbf16, #tpu.memory_space<vmem>>, vector<1x8x8xbf16>
    %10 = vector.shape_cast %9 : vector<1x8x8xbf16> to vector<8x8xbf16>
    %cst_11 = arith.constant dense<0.000000e+00> : vector<288x8xf32>
    %11 = tpu.matmul %8, %10, %cst_11 {dimension_numbers = #tpu.dot_dimension_numbers<[1], [0], [0], [1], [0, 0, 1, 1], [], []>} : vector<288x8xbf16>, vector<8x8xbf16>, vector<288x8xf32> -> vector<288x8xf32>
    %12 = arith.addf %6, %11 : vector<288x8xf32>
    %c0_12 = arith.constant 0 : index
    %c2 = arith.constant 2 : index
    %c0_13 = arith.constant 0 : index
    %13 = vector.load %arg1[%c0_12, %c2, %c0_13] : memref<1x342x8xbf16, #tpu.memory_space<vmem>>, vector<1x288x8xbf16>
    %14 = vector.shape_cast %13 : vector<1x288x8xbf16> to vector<288x8xbf16>
    %c2_14 = arith.constant 2 : index
    %c0_15 = arith.constant 0 : index
    %c0_16 = arith.constant 0 : index
    %15 = vector.load %arg2[%c2_14, %c0_15, %c0_16] : memref<9x8x8xbf16, #tpu.memory_space<vmem>>, vector<1x8x8xbf16>
    %16 = vector.shape_cast %15 : vector<1x8x8xbf16> to vector<8x8xbf16>
    %cst_17 = arith.constant dense<0.000000e+00> : vector<288x8xf32>
    %17 = tpu.matmul %14, %16, %cst_17 {dimension_numbers = #tpu.dot_dimension_numbers<[1], [0], [0], [1], [0, 0, 1, 1], [], []>} : vector<288x8xbf16>, vector<8x8xbf16>, vector<288x8xf32> -> vector<288x8xf32>
    %18 = arith.addf %12, %17 : vector<288x8xf32>
    %c0_18 = arith.constant 0 : index
    %c18 = arith.constant 18 : index
    %c0_19 = arith.constant 0 : index
    %19 = vector.load %arg1[%c0_18, %c18, %c0_19] : memref<1x342x8xbf16, #tpu.memory_space<vmem>>, vector<1x288x8xbf16>
    %20 = vector.shape_cast %19 : vector<1x288x8xbf16> to vector<288x8xbf16>
    %c3 = arith.constant 3 : index
    %c0_20 = arith.constant 0 : index
    %c0_21 = arith.constant 0 : index
    %21 = vector.load %arg2[%c3, %c0_20, %c0_21] : memref<9x8x8xbf16, #tpu.memory_space<vmem>>, vector<1x8x8xbf16>
    %22 = vector.shape_cast %21 : vector<1x8x8xbf16> to vector<8x8xbf16>
    %cst_22 = arith.constant dense<0.000000e+00> : vector<288x8xf32>
    %23 = tpu.matmul %20, %22, %cst_22 {dimension_numbers = #tpu.dot_dimension_numbers<[1], [0], [0], [1], [0, 0, 1, 1], [], []>} : vector<288x8xbf16>, vector<8x8xbf16>, vector<288x8xf32> -> vector<288x8xf32>
    %24 = arith.addf %18, %23 : vector<288x8xf32>
    %c0_23 = arith.constant 0 : index
    %c19 = arith.constant 19 : index
    %c0_24 = arith.constant 0 : index
    %25 = vector.load %arg1[%c0_23, %c19, %c0_24] : memref<1x342x8xbf16, #tpu.memory_space<vmem>>, vector<1x288x8xbf16>
    %26 = vector.shape_cast %25 : vector<1x288x8xbf16> to vector<288x8xbf16>
    %c4 = arith.constant 4 : index
    %c0_25 = arith.constant 0 : index
    %c0_26 = arith.constant 0 : index
    %27 = vector.load %arg2[%c4, %c0_25, %c0_26] : memref<9x8x8xbf16, #tpu.memory_space<vmem>>, vector<1x8x8xbf16>
    %28 = vector.shape_cast %27 : vector<1x8x8xbf16> to vector<8x8xbf16>
    %cst_27 = arith.constant dense<0.000000e+00> : vector<288x8xf32>
    %29 = tpu.matmul %26, %28, %cst_27 {dimension_numbers = #tpu.dot_dimension_numbers<[1], [0], [0], [1], [0, 0, 1, 1], [], []>} : vector<288x8xbf16>, vector<8x8xbf16>, vector<288x8xf32> -> vector<288x8xf32>
    %30 = arith.addf %24, %29 : vector<288x8xf32>
    %c0_28 = arith.constant 0 : index
    %c20 = arith.constant 20 : index
    %c0_29 = arith.constant 0 : index
    %31 = vector.load %arg1[%c0_28, %c20, %c0_29] : memref<1x342x8xbf16, #tpu.memory_space<vmem>>, vector<1x288x8xbf16>
    %32 = vector.shape_cast %31 : vector<1x288x8xbf16> to vector<288x8xbf16>
    %c5 = arith.constant 5 : index
    %c0_30 = arith.constant 0 : index
    %c0_31 = arith.constant 0 : index
    %33 = vector.load %arg2[%c5, %c0_30, %c0_31] : memref<9x8x8xbf16, #tpu.memory_space<vmem>>, vector<1x8x8xbf16>
    %34 = vector.shape_cast %33 : vector<1x8x8xbf16> to vector<8x8xbf16>
    %cst_32 = arith.constant dense<0.000000e+00> : vector<288x8xf32>
    %35 = tpu.matmul %32, %34, %cst_32 {dimension_numbers = #tpu.dot_dimension_numbers<[1], [0], [0], [1], [0, 0, 1, 1], [], []>} : vector<288x8xbf16>, vector<8x8xbf16>, vector<288x8xf32> -> vector<288x8xf32>
    %36 = arith.addf %30, %35 : vector<288x8xf32>
    %c0_33 = arith.constant 0 : index
    %c36 = arith.constant 36 : index
    %c0_34 = arith.constant 0 : index
    %37 = vector.load %arg1[%c0_33, %c36, %c0_34] : memref<1x342x8xbf16, #tpu.memory_space<vmem>>, vector<1x288x8xbf16>
    %38 = vector.shape_cast %37 : vector<1x288x8xbf16> to vector<288x8xbf16>
    %c6 = arith.constant 6 : index
    %c0_35 = arith.constant 0 : index
    %c0_36 = arith.constant 0 : index
    %39 = vector.load %arg2[%c6, %c0_35, %c0_36] : memref<9x8x8xbf16, #tpu.memory_space<vmem>>, vector<1x8x8xbf16>
    %40 = vector.shape_cast %39 : vector<1x8x8xbf16> to vector<8x8xbf16>
    %cst_37 = arith.constant dense<0.000000e+00> : vector<288x8xf32>
    %41 = tpu.matmul %38, %40, %cst_37 {dimension_numbers = #tpu.dot_dimension_numbers<[1], [0], [0], [1], [0, 0, 1, 1], [], []>} : vector<288x8xbf16>, vector<8x8xbf16>, vector<288x8xf32> -> vector<288x8xf32>
    %42 = arith.addf %36, %41 : vector<288x8xf32>
    %c0_38 = arith.constant 0 : index
    %c37 = arith.constant 37 : index
    %c0_39 = arith.constant 0 : index
    %43 = vector.load %arg1[%c0_38, %c37, %c0_39] : memref<1x342x8xbf16, #tpu.memory_space<vmem>>, vector<1x288x8xbf16>
    %44 = vector.shape_cast %43 : vector<1x288x8xbf16> to vector<288x8xbf16>
    %c7 = arith.constant 7 : index
    %c0_40 = arith.constant 0 : index
    %c0_41 = arith.constant 0 : index
    %45 = vector.load %arg2[%c7, %c0_40, %c0_41] : memref<9x8x8xbf16, #tpu.memory_space<vmem>>, vector<1x8x8xbf16>
    %46 = vector.shape_cast %45 : vector<1x8x8xbf16> to vector<8x8xbf16>
    %cst_42 = arith.constant dense<0.000000e+00> : vector<288x8xf32>
    %47 = tpu.matmul %44, %46, %cst_42 {dimension_numbers = #tpu.dot_dimension_numbers<[1], [0], [0], [1], [0, 0, 1, 1], [], []>} : vector<288x8xbf16>, vector<8x8xbf16>, vector<288x8xf32> -> vector<288x8xf32>
    %48 = arith.addf %42, %47 : vector<288x8xf32>
    %c0_43 = arith.constant 0 : index
    %c38 = arith.constant 38 : index
    %c0_44 = arith.constant 0 : index
    %49 = vector.load %arg1[%c0_43, %c38, %c0_44] : memref<1x342x8xbf16, #tpu.memory_space<vmem>>, vector<1x288x8xbf16>
    %50 = vector.shape_cast %49 : vector<1x288x8xbf16> to vector<288x8xbf16>
    %c8 = arith.constant 8 : index
    %c0_45 = arith.constant 0 : index
    %c0_46 = arith.constant 0 : index
    %51 = vector.load %arg2[%c8, %c0_45, %c0_46] : memref<9x8x8xbf16, #tpu.memory_space<vmem>>, vector<1x8x8xbf16>
    %52 = vector.shape_cast %51 : vector<1x8x8xbf16> to vector<8x8xbf16>
    %cst_47 = arith.constant dense<0.000000e+00> : vector<288x8xf32>
    %53 = tpu.matmul %50, %52, %cst_47 {dimension_numbers = #tpu.dot_dimension_numbers<[1], [0], [0], [1], [0, 0, 1, 1], [], []>} : vector<288x8xbf16>, vector<8x8xbf16>, vector<288x8xf32> -> vector<288x8xf32>
    %54 = arith.addf %48, %53 : vector<288x8xf32>
    %c0_48 = arith.constant 0 : index
    %c0_49 = arith.constant 0 : index
    %55 = vector.load %arg3[%c0_48, %c0_49] : memref<1x8xf32, #tpu.memory_space<vmem>>, vector<1x8xf32>
    %56 = vector.broadcast %55 : vector<1x8xf32> to vector<288x8xf32>
    %57 = arith.mulf %54, %56 : vector<288x8xf32>
    %c0_50 = arith.constant 0 : index
    %c0_51 = arith.constant 0 : index
    %58 = vector.load %arg4[%c0_50, %c0_51] : memref<1x8xf32, #tpu.memory_space<vmem>>, vector<1x8xf32>
    %59 = vector.broadcast %58 : vector<1x8xf32> to vector<288x8xf32>
    %60 = arith.addf %57, %59 : vector<288x8xf32>
    %cst_52 = arith.constant 0.000000e+00 : f32
    %61 = vector.broadcast %cst_52 : f32 to vector<288x8xf32>
    %62 = arith.maximumf %60, %61 : vector<288x8xf32>
    %63 = arith.truncf %62 : vector<288x8xf32> to vector<288x8xbf16>
    %c0_53 = arith.constant 0 : index
    %c0_54 = arith.constant 0 : index
    %c0_55 = arith.constant 0 : index
    %64 = vector.load %arg5[%c0_53, %c0_54, %c0_55] : memref<1x288x8xbf16, #tpu.memory_space<vmem>>, vector<1x288x8xbf16>
    %65 = vector.shape_cast %64 : vector<1x288x8xbf16> to vector<288x8xbf16>
    %66 = vector.shape_cast %63 : vector<288x8xbf16> to vector<1x288x8xbf16>
    tpu.vector_store %arg5[%c0_53, %c0_54, %c0_55], %66 {strides = array<i32>} : memref<1x288x8xbf16, #tpu.memory_space<vmem>>, vector<1x288x8xbf16>,
    return
  }
  func.func @transform_0(%arg0: i32) -> (i32, i32, i32) {
    %c0_i32 = arith.constant 0 : i32
    %c0_i32_0 = arith.constant 0 : i32
    %c0_i32_1 = arith.constant 0 : i32
    return %arg0, %c0_i32, %c0_i32_0 : i32, i32, i32
  }
  func.func @transform_1(%arg0: i32) -> (i32, i32, i32) {
    %c0_i32 = arith.constant 0 : i32
    %c0_i32_0 = arith.constant 0 : i32
    %c0_i32_1 = arith.constant 0 : i32
    %c0_i32_2 = arith.constant 0 : i32
    return %c0_i32, %c0_i32_0, %c0_i32_1 : i32, i32, i32
  }
  func.func @transform_2(%arg0: i32) -> (i32, i32) {
    %c0_i32 = arith.constant 0 : i32
    %c0_i32_0 = arith.constant 0 : i32
    %c0_i32_1 = arith.constant 0 : i32
    return %c0_i32, %c0_i32_0 : i32, i32
  }
  func.func @transform_3(%arg0: i32) -> (i32, i32) {
    %c0_i32 = arith.constant 0 : i32
    %c0_i32_0 = arith.constant 0 : i32
    %c0_i32_1 = arith.constant 0 : i32
    return %c0_i32, %c0_i32_0 : i32, i32
  }
  func.func @transform_4(%arg0: i32) -> (i32, i32, i32) {
    %c0_i32 = arith.constant 0 : i32
    %c0_i32_0 = arith.constant 0 : i32
    %c0_i32_1 = arith.constant 0 : i32
    return %arg0, %c0_i32, %c0_i32_0 : i32, i32, i32
  }
}

module attributes {stable_mosaic.version = 11 : i64} {
  func.func @_addpre_conv_res_kernel(%arg0: i32, %arg1: memref<512x8xbf16, #tpu.memory_space<vmem>>, %arg2: memref<512x8xbf16, #tpu.memory_space<vmem>>, %arg3: memref<512x16xbf16, #tpu.memory_space<vmem>>, %arg4: memref<1x8xf32, #tpu.memory_space<vmem>>, %arg5: memref<1x8xf32, #tpu.memory_space<vmem>>, %arg6: memref<8x16xbf16, #tpu.memory_space<vmem>>, %arg7: memref<1x16xf32, #tpu.memory_space<vmem>>, %arg8: memref<1x16xf32, #tpu.memory_space<vmem>>, %arg9: memref<1x16xf32, #tpu.memory_space<vmem>>, %arg10: memref<1x16xf32, #tpu.memory_space<vmem>>, %arg11: memref<512x16xf32, #tpu.memory_space<vmem>>) attributes {dimension_semantics = [#tpu.dimension_semantics<parallel>], iteration_bounds = array<i64: 1>, scalar_prefetch = 0 : i64, scratch_operands = 0 : i64, tpu.core_type = #tpu.core_type<tc>, window_params = [{transform_indices = @transform_0, window_bounds = array<i64: 512, 8>}, {transform_indices = @transform_1, window_bounds = array<i64: 512, 8>}, {transform_indices = @transform_2, window_bounds = array<i64: 512, 16>}, {pipeline_mode = #tpu.pipeline_mode<synchronous>, transform_indices = @transform_3, window_bounds = array<i64: 1, 8>}, {pipeline_mode = #tpu.pipeline_mode<synchronous>, transform_indices = @transform_4, window_bounds = array<i64: 1, 8>}, {pipeline_mode = #tpu.pipeline_mode<synchronous>, transform_indices = @transform_5, window_bounds = array<i64: 8, 16>}, {pipeline_mode = #tpu.pipeline_mode<synchronous>, transform_indices = @transform_6, window_bounds = array<i64: 1, 16>}, {pipeline_mode = #tpu.pipeline_mode<synchronous>, transform_indices = @transform_7, window_bounds = array<i64: 1, 16>}, {pipeline_mode = #tpu.pipeline_mode<synchronous>, transform_indices = @transform_8, window_bounds = array<i64: 1, 16>}, {pipeline_mode = #tpu.pipeline_mode<synchronous>, transform_indices = @transform_9, window_bounds = array<i64: 1, 16>}, {transform_indices = @transform_10, window_bounds = array<i64: 512, 16>}]} {
    %c0 = arith.constant 0 : index
    %c0_0 = arith.constant 0 : index
    %0 = vector.load %arg1[%c0, %c0_0] : memref<512x8xbf16, #tpu.memory_space<vmem>>, vector<512x8xbf16>
    %1 = arith.extf %0 : vector<512x8xbf16> to vector<512x8xf32>
    %c0_1 = arith.constant 0 : index
    %c0_2 = arith.constant 0 : index
    %2 = vector.load %arg2[%c0_1, %c0_2] : memref<512x8xbf16, #tpu.memory_space<vmem>>, vector<512x8xbf16>
    %3 = arith.extf %2 : vector<512x8xbf16> to vector<512x8xf32>
    %4 = arith.addf %1, %3 : vector<512x8xf32>
    %c0_3 = arith.constant 0 : index
    %c0_4 = arith.constant 0 : index
    %5 = vector.load %arg4[%c0_3, %c0_4] : memref<1x8xf32, #tpu.memory_space<vmem>>, vector<1x8xf32>
    %6 = vector.broadcast %5 : vector<1x8xf32> to vector<512x8xf32>
    %7 = arith.mulf %4, %6 : vector<512x8xf32>
    %c0_5 = arith.constant 0 : index
    %c0_6 = arith.constant 0 : index
    %8 = vector.load %arg5[%c0_5, %c0_6] : memref<1x8xf32, #tpu.memory_space<vmem>>, vector<1x8xf32>
    %9 = vector.broadcast %8 : vector<1x8xf32> to vector<512x8xf32>
    %10 = arith.addf %7, %9 : vector<512x8xf32>
    %cst = arith.constant 0.000000e+00 : f32
    %11 = vector.broadcast %cst : f32 to vector<512x8xf32>
    %12 = arith.maximumf %10, %11 : vector<512x8xf32>
    %13 = arith.truncf %12 : vector<512x8xf32> to vector<512x8xbf16>
    %c0_7 = arith.constant 0 : index
    %c0_8 = arith.constant 0 : index
    %14 = vector.load %arg6[%c0_7, %c0_8] : memref<8x16xbf16, #tpu.memory_space<vmem>>, vector<8x16xbf16>
    %cst_9 = arith.constant dense<0.000000e+00> : vector<512x16xf32>
    %15 = tpu.matmul %13, %14, %cst_9 {dimension_numbers = #tpu.dot_dimension_numbers<[1], [0], [0], [1], [0, 0, 1, 1], [], []>} : vector<512x8xbf16>, vector<8x16xbf16>, vector<512x16xf32> -> vector<512x16xf32>
    %c0_10 = arith.constant 0 : index
    %c0_11 = arith.constant 0 : index
    %16 = vector.load %arg7[%c0_10, %c0_11] : memref<1x16xf32, #tpu.memory_space<vmem>>, vector<1x16xf32>
    %17 = vector.broadcast %16 : vector<1x16xf32> to vector<512x16xf32>
    %18 = arith.mulf %15, %17 : vector<512x16xf32>
    %c0_12 = arith.constant 0 : index
    %c0_13 = arith.constant 0 : index
    %19 = vector.load %arg8[%c0_12, %c0_13] : memref<1x16xf32, #tpu.memory_space<vmem>>, vector<1x16xf32>
    %20 = vector.broadcast %19 : vector<1x16xf32> to vector<512x16xf32>
    %21 = arith.addf %18, %20 : vector<512x16xf32>
    %c0_14 = arith.constant 0 : index
    %c0_15 = arith.constant 0 : index
    %22 = vector.load %arg3[%c0_14, %c0_15] : memref<512x16xbf16, #tpu.memory_space<vmem>>, vector<512x16xbf16>
    %23 = arith.extf %22 : vector<512x16xbf16> to vector<512x16xf32>
    %24 = arith.addf %21, %23 : vector<512x16xf32>
    %c0_16 = arith.constant 0 : index
    %c0_17 = arith.constant 0 : index
    %25 = vector.load %arg9[%c0_16, %c0_17] : memref<1x16xf32, #tpu.memory_space<vmem>>, vector<1x16xf32>
    %26 = vector.broadcast %25 : vector<1x16xf32> to vector<512x16xf32>
    %27 = arith.mulf %24, %26 : vector<512x16xf32>
    %c0_18 = arith.constant 0 : index
    %c0_19 = arith.constant 0 : index
    %28 = vector.load %arg10[%c0_18, %c0_19] : memref<1x16xf32, #tpu.memory_space<vmem>>, vector<1x16xf32>
    %29 = vector.broadcast %28 : vector<1x16xf32> to vector<512x16xf32>
    %30 = arith.addf %27, %29 : vector<512x16xf32>
    %cst_20 = arith.constant 0.000000e+00 : f32
    %31 = vector.broadcast %cst_20 : f32 to vector<512x16xf32>
    %32 = arith.maximumf %30, %31 : vector<512x16xf32>
    %c0_21 = arith.constant 0 : index
    %c0_22 = arith.constant 0 : index
    %33 = vector.load %arg11[%c0_21, %c0_22] : memref<512x16xf32, #tpu.memory_space<vmem>>, vector<512x16xf32>
    tpu.vector_store %arg11[%c0_21, %c0_22], %32 {strides = array<i32>} : memref<512x16xf32, #tpu.memory_space<vmem>>, vector<512x16xf32>,
    return
  }
  func.func @transform_0(%arg0: i32) -> (i32, i32) {
    %c0_i32 = arith.constant 0 : i32
    %c0_i32_0 = arith.constant 0 : i32
    return %arg0, %c0_i32 : i32, i32
  }
  func.func @transform_1(%arg0: i32) -> (i32, i32) {
    %c0_i32 = arith.constant 0 : i32
    %c0_i32_0 = arith.constant 0 : i32
    return %arg0, %c0_i32 : i32, i32
  }
  func.func @transform_2(%arg0: i32) -> (i32, i32) {
    %c0_i32 = arith.constant 0 : i32
    %c0_i32_0 = arith.constant 0 : i32
    return %arg0, %c0_i32 : i32, i32
  }
  func.func @transform_3(%arg0: i32) -> (i32, i32) {
    %c0_i32 = arith.constant 0 : i32
    %c0_i32_0 = arith.constant 0 : i32
    %c0_i32_1 = arith.constant 0 : i32
    return %c0_i32, %c0_i32_0 : i32, i32
  }
  func.func @transform_4(%arg0: i32) -> (i32, i32) {
    %c0_i32 = arith.constant 0 : i32
    %c0_i32_0 = arith.constant 0 : i32
    %c0_i32_1 = arith.constant 0 : i32
    return %c0_i32, %c0_i32_0 : i32, i32
  }
  func.func @transform_5(%arg0: i32) -> (i32, i32) {
    %c0_i32 = arith.constant 0 : i32
    %c0_i32_0 = arith.constant 0 : i32
    %c0_i32_1 = arith.constant 0 : i32
    return %c0_i32, %c0_i32_0 : i32, i32
  }
  func.func @transform_6(%arg0: i32) -> (i32, i32) {
    %c0_i32 = arith.constant 0 : i32
    %c0_i32_0 = arith.constant 0 : i32
    %c0_i32_1 = arith.constant 0 : i32
    return %c0_i32, %c0_i32_0 : i32, i32
  }
  func.func @transform_7(%arg0: i32) -> (i32, i32) {
    %c0_i32 = arith.constant 0 : i32
    %c0_i32_0 = arith.constant 0 : i32
    %c0_i32_1 = arith.constant 0 : i32
    return %c0_i32, %c0_i32_0 : i32, i32
  }
  func.func @transform_8(%arg0: i32) -> (i32, i32) {
    %c0_i32 = arith.constant 0 : i32
    %c0_i32_0 = arith.constant 0 : i32
    %c0_i32_1 = arith.constant 0 : i32
    return %c0_i32, %c0_i32_0 : i32, i32
  }
  func.func @transform_9(%arg0: i32) -> (i32, i32) {
    %c0_i32 = arith.constant 0 : i32
    %c0_i32_0 = arith.constant 0 : i32
    %c0_i32_1 = arith.constant 0 : i32
    return %c0_i32, %c0_i32_0 : i32, i32
  }
  func.func @transform_10(%arg0: i32) -> (i32, i32) {
    %c0_i32 = arith.constant 0 : i32
    %c0_i32_0 = arith.constant 0 : i32
    return %arg0, %c0_i32 : i32, i32
  }
}

</mosaic_0001>

<bundles_post_ra>
// kernel: prm_forward.16
= control target key start
LH: loop header
LB: loop body
LE: loop exit
PB: predicated region body
PF: predicated region fallthrough
CT: control target
= control target key end

     0   :  { %vm482_vm0 = vcmask 1043456   ;;  %vm385_vm1 = vcmask 64512   ;;  %vm919_vm2 = vcmask 60416   ;;  %s1884_s3 = inlined_call_operand.vmem [shape: bf16[8,8], index: 3, kind: input, shape index: {}]   ;;  %s1885_s0 = inlined_call_operand.vmem [shape: bf16[512,8], index: 0, kind: input, shape index: {}]   ;;  %s1886_s1 = inlined_call_operand.vmem [shape: f32[1,8], index: 1, kind: input, shape index: {}]   ;;  %s1887_s2 = inlined_call_operand.vmem [shape: f32[1,8], index: 2, kind: input, shape index: {}]   ;;  %s1888_s4 = inlined_call_operand.vmem [shape: f32[1,8], index: 4, kind: input, shape index: {}]   ;;  %s1889_s5 = inlined_call_operand.vmem [shape: f32[1,8], index: 5, kind: input, shape index: {}]   ;;  %s1890_s6 = inlined_call_operand.vmem [shape: bf16[512,8], index: 6, kind: output, shape index: {}]  }
   0x1   :  { %v384_v0 = vld [vmem:[%s1884_s3] sm:$0xf]  ;;  %v1148_v28 = vld [vmem:[%s1885_s0 + $0x8] sm:$0xff]  }
   0x2   :  { %v1021_v1 = vld [vmem:[%s1885_s0] sm:$0xff]   ;;  %v484_v2 = vsel %vm482_vm0, %v384_v0, 0  ;;  %v1156_v37 = vld [vmem:[%s1885_s0 + $0x48] sm:$0xff]   ;;  %v1026_v41 = vunpack.c.l.bf16 %v1148_v28  ;;  %v1027_v46 = vunpack.c.h.bf16 %v1148_v28 }
   0x3   :  { %v1022_v3 = vunpack.c.l.bf16 %v1021_v1  ;;  %v1023_v4 = vunpack.c.h.bf16 %v1021_v1  ;;  %v1230_v5 = vld [vmem:[%s1886_s1] ss:$0 sm:$0xff]  ;;  %493 = vmatpush.bf16.msra.mxu0 %v484_v2  ;;  %1179 = vmatpush.bf16.msra.mxu1 %v484_v2  ;;  %v1164_v42 = vld [vmem:[%s1885_s0 + $0x88] sm:$0xff]   ;;  %v1058_v50 = vunpack.c.l.bf16 %v1156_v37  ;;  %v1059_v51 = vunpack.c.h.bf16 %v1156_v37 }
   0x4   :  { %v1155_v6 = vld [vmem:[%s1885_s0 + $0x40] sm:$0xff]   ;;  %1180 = vmatpush.bf16.msra.mxu2 %v484_v2  ;;  %1181 = vmatpush.bf16.msra.mxu3 %v484_v2  ;;  %v1172_v47 = vld [vmem:[%s1885_s0 + $0xc8] sm:$0xff]   ;;  %v158_v49 = vmul.f32 %v1230_v5, %v1026_v41  ;;  %v159_v53 = vmul.f32 %v1230_v5, %v1027_v46  ;;  %v1090_v54 = vunpack.c.l.bf16 %v1164_v42  ;;  %v1091_v55 = vunpack.c.h.bf16 %v1164_v42 }
   0x5   :  { %v1238_v7 = vld [vmem:[%s1887_s2] ss:$0 sm:$0xff]  ;;  %v1054_v8 = vunpack.c.l.bf16 %v1155_v6  ;;  %v1055_v9 = vunpack.c.h.bf16 %v1155_v6  ;;  %v156_v12 = vmul.f32 %v1230_v5, %v1022_v3  ;;  %v157_v13 = vmul.f32 %v1230_v5, %v1023_v4 }
   0x6   :  { %v1163_v10 = vld [vmem:[%s1885_s0 + $0x80] sm:$0xff]   ;;  %v174_v56 = vmul.f32 %v1230_v5, %v1058_v50  ;;  %v175_v57 = vmul.f32 %v1230_v5, %v1059_v51  ;;  %v1122_v58 = vunpack.c.l.bf16 %v1172_v47  ;;  %v190_v59 = vmul.f32 %v1230_v5, %v1090_v54  ;;  %v1150_v54 = vld [vmem:[%s1885_s0 + $0x18] sm:$0xff]  }
   0x7   :  { %v1171_v11 = vld [vmem:[%s1885_s0 + $0xc0] sm:$0xff]   ;;  %v1086_v14 = vunpack.c.l.bf16 %v1163_v10  ;;  %v1087_v15 = vunpack.c.h.bf16 %v1163_v10  ;;  %v172_v16 = vmul.f32 %v1230_v5, %v1054_v8  ;;  %v173_v17 = vmul.f32 %v1230_v5, %v1055_v9 }
   0x8   :  { %v1118_v18 = vunpack.c.l.bf16 %v1171_v11  ;;  %v1119_v19 = vunpack.c.h.bf16 %v1171_v11  ;;  %v224_v20 = vadd.f32 %v1238_v7, %v156_v12  ;;  %v225_v21 = vadd.f32 %v1238_v7, %v157_v13 }
   0x9   :  { %v188_v22 = vmul.f32 %v1230_v5, %v1086_v14  ;;  %v189_v23 = vmul.f32 %v1230_v5, %v1087_v15  ;;  %v240_v24 = vadd.f32 %v1238_v7, %v172_v16  ;;  %v241_v25 = vadd.f32 %v1238_v7, %v173_v17  ;;  %v1149_v14 = vld [vmem:[%s1885_s0 + $0x10] sm:$0xff]  }
   0xa   :  { %v204_v26 = vmul.f32 %v1230_v5, %v1118_v18  ;;  %v205_v27 = vmul.f32 %v1230_v5, %v1119_v19  ;;  %v288_v29 = vmax.f32 %v224_v20, 0.0  ;;  %v289_v30 = vmax.f32 %v225_v21, 0.0  ;;  %v1157_v17 = vld [vmem:[%s1885_s0 + $0x50] sm:$0xff]  }
   0xb   :  { %v256_v31 = vadd.f32 %v1238_v7, %v188_v22  ;;  %v257_v32 = vadd.f32 %v1238_v7, %v189_v23  ;;  %v304_v33 = vmax.f32 %v240_v24, 0.0  ;;  %v305_v34 = vmax.f32 %v241_v25, 0.0  ;;  %v1165_v20 = vld [vmem:[%s1885_s0 + $0x90] sm:$0xff]  }
   0xc   :  { %v272_v35 = vadd.f32 %v1238_v7, %v204_v26  ;;  %v273_v36 = vadd.f32 %v1238_v7, %v205_v27  ;;  %v352_v38 = vpack.c.bf16 %v289_v30, %v288_v29  ;;  %v191_v60 = vmul.f32 %v1230_v5, %v1091_v55  ;;  %v1173_v24 = vld [vmem:[%s1885_s0 + $0xd0] sm:$0xff]  }
   0xd   :  { %v320_v39 = vmax.f32 %v256_v31, 0.0  ;;  %v321_v40 = vmax.f32 %v257_v32, 0.0  ;;  %v360_v43 = vpack.c.bf16 %v305_v34, %v304_v33  ;;  %v1123_v61 = vunpack.c.h.bf16 %v1172_v47 }
   0xe   :  { %v336_v44 = vmax.f32 %v272_v35, 0.0  ;;  %v337_v45 = vmax.f32 %v273_v36, 0.0  ;;  %988 = vmatmul.msk.bf16.vlgmr.msra.gmra.mxu0 %vm385_vm1, %v352_v38  ;;  %v226_v62 = vadd.f32 %v1238_v7, %v158_v49  ;;  %v227_v63 = vadd.f32 %v1238_v7, %v159_v53 }
   0xf   :  { %v368_v48 = vpack.c.bf16 %v321_v40, %v320_v39  ;;  %996 = vmatmul.msk.bf16.vlgmr.msra.gmra.mxu1 %vm385_vm1, %v360_v43  ;;  %v206_v0 = vmul.f32 %v1230_v5, %v1122_v58  ;;  %v242_v1 = vadd.f32 %v1238_v7, %v174_v56  ;;  %v243_v2 = vadd.f32 %v1238_v7, %v175_v57  ;;  %v1158_v57 = vld [vmem:[%s1885_s0 + $0x58] sm:$0xff]  }
  0x10   :  { %v376_v52 = vpack.c.bf16 %v337_v45, %v336_v44  ;;  %v207_v3 = vmul.f32 %v1230_v5, %v1123_v61  ;;  %v258_v4 = vadd.f32 %v1238_v7, %v190_v59  ;;  %v259_v6 = vadd.f32 %v1238_v7, %v191_v60  ;;  %v1166_v60 = vld [vmem:[%s1885_s0 + $0x98] sm:$0xff]  }
  0x11   :  { %1004 = vmatmul.msk.bf16.vlgmr.msra.gmra.mxu2 %vm385_vm1, %v368_v48  ;;  %v274_v8 = vadd.f32 %v1238_v7, %v206_v0  ;;  %v290_v10 = vmax.f32 %v226_v62, 0.0  ;;  %v291_v11 = vmax.f32 %v227_v63, 0.0  ;;  %v306_v12 = vmax.f32 %v242_v1, 0.0  ;;  %v1174_v0 = vld [vmem:[%s1885_s0 + $0xd8] sm:$0xff]  }
  0x12   :  { %1012 = vmatmul.msk.bf16.vlgmr.msra.gmra.mxu3 %vm385_vm1, %v376_v52  ;;  %v275_v9 = vadd.f32 %v1238_v7, %v207_v3  ;;  %v307_v13 = vmax.f32 %v243_v2, 0.0  ;;  %v322_v15 = vmax.f32 %v258_v4, 0.0  ;;  %v323_v16 = vmax.f32 %v259_v6, 0.0 }
  0x13   :  { %v338_v18 = vmax.f32 %v274_v8, 0.0  ;;  %v353_v21 = vpack.c.bf16 %v291_v11, %v290_v10  ;;  %v1030_v22 = vunpack.c.l.bf16 %v1149_v14  ;;  %v1031_v23 = vunpack.c.h.bf16 %v1149_v14 }
  0x14   :  { %v339_v19 = vmax.f32 %v275_v9, 0.0  ;;  %v361_v25 = vpack.c.bf16 %v307_v13, %v306_v12  ;;  %v1062_v26 = vunpack.c.l.bf16 %v1157_v17  ;;  %v1063_v27 = vunpack.c.h.bf16 %v1157_v17 }
  0x15   :  { %v369_v28 = vpack.c.bf16 %v323_v16, %v322_v15  ;;  %v1094_v29 = vunpack.c.l.bf16 %v1165_v20  ;;  %v1095_v30 = vunpack.c.h.bf16 %v1165_v20  ;;  %v1126_v32 = vunpack.c.l.bf16 %v1173_v24 }
  0x16   :  { %v377_v31 = vpack.c.bf16 %v339_v19, %v338_v18  ;;  %v1127_v33 = vunpack.c.h.bf16 %v1173_v24  ;;  %v160_v34 = vmul.f32 %v1230_v5, %v1030_v22  ;;  %v161_v35 = vmul.f32 %v1230_v5, %v1031_v23 }
  0x17   :  { %v176_v36 = vmul.f32 %v1230_v5, %v1062_v26  ;;  %v177_v37 = vmul.f32 %v1230_v5, %v1063_v27  ;;  %v192_v38 = vmul.f32 %v1230_v5, %v1094_v29  ;;  %v193_v39 = vmul.f32 %v1230_v5, %v1095_v30 }
  0x18   :  { %v208_v40 = vmul.f32 %v1230_v5, %v1126_v32  ;;  %v209_v41 = vmul.f32 %v1230_v5, %v1127_v33  ;;  %v228_v42 = vadd.f32 %v1238_v7, %v160_v34  ;;  %v229_v43 = vadd.f32 %v1238_v7, %v161_v35  ;;  %v1151_v32 = vld [vmem:[%s1885_s0 + $0x20] sm:$0xff]  }
  0x19   :  { %v244_v44 = vadd.f32 %v1238_v7, %v176_v36  ;;  %v245_v45 = vadd.f32 %v1238_v7, %v177_v37  ;;  %v260_v46 = vadd.f32 %v1238_v7, %v192_v38  ;;  %v261_v47 = vadd.f32 %v1238_v7, %v193_v39  ;;  %v1159_v35 = vld [vmem:[%s1885_s0 + $0x60] sm:$0xff]  }
  0x1a   :  { %v276_v48 = vadd.f32 %v1238_v7, %v208_v40  ;;  %v277_v49 = vadd.f32 %v1238_v7, %v209_v41  ;;  %v292_v50 = vmax.f32 %v228_v42, 0.0  ;;  %v293_v51 = vmax.f32 %v229_v43, 0.0  ;;  %v1167_v38 = vld [vmem:[%s1885_s0 + $0xa0] sm:$0xff]  }
  0x1b   :  { %v308_v52 = vmax.f32 %v244_v44, 0.0  ;;  %v309_v53 = vmax.f32 %v245_v45, 0.0  ;;  %v324_v55 = vmax.f32 %v260_v46, 0.0  ;;  %v325_v56 = vmax.f32 %v261_v47, 0.0  ;;  %v1175_v42 = vld [vmem:[%s1885_s0 + $0xe0] sm:$0xff]  }
  0x1c   :  { %v340_v58 = vmax.f32 %v276_v48, 0.0  ;;  %v341_v59 = vmax.f32 %v277_v49, 0.0  ;;  %v354_v61 = vpack.c.bf16 %v293_v51, %v292_v50  ;;  %v1034_v62 = vunpack.c.l.bf16 %v1150_v54 }
  0x1d   :  { %v1035_v63 = vunpack.c.h.bf16 %v1150_v54  ;;  %v362_v1 = vpack.c.bf16 %v309_v53, %v308_v52  ;;  %v1066_v2 = vunpack.c.l.bf16 %v1158_v57  ;;  %v1067_v3 = vunpack.c.h.bf16 %v1158_v57 }
  0x1e   :  { %989 = vmatmul.msk.bf16.gmra.mxu0 %vm385_vm1, %v353_v21  ;;  %v370_v4 = vpack.c.bf16 %v325_v56, %v324_v55  ;;  %v1098_v6 = vunpack.c.l.bf16 %v1166_v60  ;;  %v1099_v8 = vunpack.c.h.bf16 %v1166_v60  ;;  %v378_v9 = vpack.c.bf16 %v341_v59, %v340_v58 }
  0x1f   :  { %997 = vmatmul.msk.bf16.gmra.mxu1 %vm385_vm1, %v361_v25  ;;  %v1130_v10 = vunpack.c.l.bf16 %v1174_v0  ;;  %v1131_v11 = vunpack.c.h.bf16 %v1174_v0  ;;  %v162_v12 = vmul.f32 %v1230_v5, %v1034_v62  ;;  %v163_v13 = vmul.f32 %v1230_v5, %v1035_v63 }
  0x20   :  { %v178_v14 = vmul.f32 %v1230_v5, %v1066_v2  ;;  %v179_v15 = vmul.f32 %v1230_v5, %v1067_v3  ;;  %v194_v16 = vmul.f32 %v1230_v5, %v1098_v6  ;;  %v195_v17 = vmul.f32 %v1230_v5, %v1099_v8 }
  0x21   :  { %1005 = vmatmul.msk.bf16.gmra.mxu2 %vm385_vm1, %v369_v28  ;;  %v210_v18 = vmul.f32 %v1230_v5, %v1130_v10  ;;  %v211_v19 = vmul.f32 %v1230_v5, %v1131_v11  ;;  %v230_v20 = vadd.f32 %v1238_v7, %v162_v12  ;;  %v231_v21 = vadd.f32 %v1238_v7, %v163_v13  ;;  %v1152_v10 = vld [vmem:[%s1885_s0 + $0x28] sm:$0xff]  }
  0x22   :  { %1013 = vmatmul.msk.bf16.gmra.mxu3 %vm385_vm1, %v377_v31  ;;  %v246_v22 = vadd.f32 %v1238_v7, %v178_v14  ;;  %v247_v23 = vadd.f32 %v1238_v7, %v179_v15  ;;  %v262_v24 = vadd.f32 %v1238_v7, %v194_v16  ;;  %v263_v25 = vadd.f32 %v1238_v7, %v195_v17  ;;  %v1160_v13 = vld [vmem:[%s1885_s0 + $0x68] sm:$0xff]  }
  0x23   :  { %v278_v26 = vadd.f32 %v1238_v7, %v210_v18  ;;  %v279_v27 = vadd.f32 %v1238_v7, %v211_v19  ;;  %v294_v28 = vmax.f32 %v230_v20, 0.0  ;;  %v295_v29 = vmax.f32 %v231_v21, 0.0  ;;  %v1168_v16 = vld [vmem:[%s1885_s0 + $0xa8] sm:$0xff]  }
  0x24   :  { %v310_v30 = vmax.f32 %v246_v22, 0.0  ;;  %v311_v31 = vmax.f32 %v247_v23, 0.0  ;;  %v326_v33 = vmax.f32 %v262_v24, 0.0  ;;  %v327_v34 = vmax.f32 %v263_v25, 0.0  ;;  %v1176_v20 = vld [vmem:[%s1885_s0 + $0xe8] sm:$0xff]  }
  0x25   :  { %v342_v36 = vmax.f32 %v278_v26, 0.0  ;;  %v343_v37 = vmax.f32 %v279_v27, 0.0  ;;  %v355_v39 = vpack.c.bf16 %v295_v29, %v294_v28  ;;  %v1038_v40 = vunpack.c.l.bf16 %v1151_v32 }
  0x26   :  { %v1039_v41 = vunpack.c.h.bf16 %v1151_v32  ;;  %v363_v43 = vpack.c.bf16 %v311_v31, %v310_v30  ;;  %v1070_v44 = vunpack.c.l.bf16 %v1159_v35  ;;  %v1071_v45 = vunpack.c.h.bf16 %v1159_v35 }
  0x27   :  { %v371_v46 = vpack.c.bf16 %v327_v34, %v326_v33  ;;  %v1102_v47 = vunpack.c.l.bf16 %v1167_v38  ;;  %v1103_v48 = vunpack.c.h.bf16 %v1167_v38  ;;  %v379_v49 = vpack.c.bf16 %v343_v37, %v342_v36 }
  0x28   :  { %v1134_v50 = vunpack.c.l.bf16 %v1175_v42  ;;  %v1135_v51 = vunpack.c.h.bf16 %v1175_v42  ;;  %v164_v52 = vmul.f32 %v1230_v5, %v1038_v40  ;;  %v165_v53 = vmul.f32 %v1230_v5, %v1039_v41 }
  0x29   :  { %v180_v54 = vmul.f32 %v1230_v5, %v1070_v44  ;;  %v181_v55 = vmul.f32 %v1230_v5, %v1071_v45  ;;  %v196_v56 = vmul.f32 %v1230_v5, %v1102_v47  ;;  %v197_v57 = vmul.f32 %v1230_v5, %v1103_v48 }
  0x2a   :  { %v212_v58 = vmul.f32 %v1230_v5, %v1134_v50  ;;  %v213_v59 = vmul.f32 %v1230_v5, %v1135_v51  ;;  %v232_v60 = vadd.f32 %v1238_v7, %v164_v52  ;;  %v1042_v18 = vunpack.c.l.bf16 %v1152_v10  ;;  %v1153_v50 = vld [vmem:[%s1885_s0 + $0x30] sm:$0xff]  }
  0x2b   :  { %v248_v62 = vadd.f32 %v1238_v7, %v180_v54  ;;  %v249_v63 = vadd.f32 %v1238_v7, %v181_v55  ;;  %v264_v0 = vadd.f32 %v1238_v7, %v196_v56  ;;  %v1043_v19 = vunpack.c.h.bf16 %v1152_v10  ;;  %v1169_v56 = vld [vmem:[%s1885_s0 + $0xb0] sm:$0xff]  }
  0x2c   :  { %v280_v2 = vadd.f32 %v1238_v7, %v212_v58  ;;  %v281_v3 = vadd.f32 %v1238_v7, %v213_v59  ;;  %v1074_v22 = vunpack.c.l.bf16 %v1160_v13  ;;  %v1075_v23 = vunpack.c.h.bf16 %v1160_v13 }
  0x2d   :  { %v312_v8 = vmax.f32 %v248_v62, 0.0  ;;  %v328_v11 = vmax.f32 %v264_v0, 0.0  ;;  %v1106_v25 = vunpack.c.l.bf16 %v1168_v16  ;;  %v1107_v26 = vunpack.c.h.bf16 %v1168_v16 }
  0x2e   :  { %990 = vmatmul.msk.bf16.gmra.mxu0 %vm385_vm1, %v354_v61  ;;  %v233_v61 = vadd.f32 %v1238_v7, %v165_v53  ;;  %v344_v14 = vmax.f32 %v280_v2, 0.0  ;;  %v345_v15 = vmax.f32 %v281_v3, 0.0  ;;  %v1138_v28 = vunpack.c.l.bf16 %v1176_v20  ;;  %v1161_v53 = vld [vmem:[%s1885_s0 + $0x70] sm:$0xff]  }
  0x2f   :  { %998 = vmatmul.msk.bf16.gmra.mxu1 %vm385_vm1, %v362_v1  ;;  %v265_v1 = vadd.f32 %v1238_v7, %v197_v57  ;;  %v1139_v29 = vunpack.c.h.bf16 %v1176_v20  ;;  %v166_v30 = vmul.f32 %v1230_v5, %v1042_v18  ;;  %v167_v31 = vmul.f32 %v1230_v5, %v1043_v19 }
  0x30   :  { %v297_v6 = vmax.f32 %v233_v61, 0.0  ;;  %v380_v27 = vpack.c.bf16 %v345_v15, %v344_v14  ;;  %v182_v32 = vmul.f32 %v1230_v5, %v1074_v22  ;;  %v183_v33 = vmul.f32 %v1230_v5, %v1075_v23 }
  0x31   :  { %1006 = vmatmul.msk.bf16.gmra.mxu2 %vm385_vm1, %v370_v4  ;;  %v296_v4 = vmax.f32 %v232_v60, 0.0  ;;  %v329_v12 = vmax.f32 %v265_v1, 0.0  ;;  %v198_v34 = vmul.f32 %v1230_v5, %v1106_v25  ;;  %v199_v35 = vmul.f32 %v1230_v5, %v1107_v26  ;;  %v1177_v60 = vld [vmem:[%s1885_s0 + $0xf0] sm:$0xff]  }
  0x32   :  { %1014 = vmatmul.msk.bf16.gmra.mxu3 %vm385_vm1, %v378_v9  ;;  %v313_v9 = vmax.f32 %v249_v63, 0.0  ;;  %v214_v36 = vmul.f32 %v1230_v5, %v1138_v28  ;;  %v215_v37 = vmul.f32 %v1230_v5, %v1139_v29  ;;  %v234_v38 = vadd.f32 %v1238_v7, %v166_v30  ;;  %v1154_v28 = vld [vmem:[%s1885_s0 + $0x38] sm:$0xff]  }
  0x33   :  { %v356_v17 = vpack.c.bf16 %v297_v6, %v296_v4  ;;  %v372_v24 = vpack.c.bf16 %v329_v12, %v328_v11  ;;  %v250_v40 = vadd.f32 %v1238_v7, %v182_v32  ;;  %v251_v41 = vadd.f32 %v1238_v7, %v183_v33 }
  0x34   :  { %v364_v21 = vpack.c.bf16 %v313_v9, %v312_v8  ;;  %v266_v42 = vadd.f32 %v1238_v7, %v198_v34  ;;  %v282_v44 = vadd.f32 %v1238_v7, %v214_v36  ;;  %v283_v45 = vadd.f32 %v1238_v7, %v215_v37  ;;  %v1170_v34 = vld [vmem:[%s1885_s0 + $0xb8] sm:$0xff]  }
  0x35   :  { %v314_v48 = vmax.f32 %v250_v40, 0.0  ;;  %v1046_v58 = vunpack.c.l.bf16 %v1153_v50  ;;  %v1047_v59 = vunpack.c.h.bf16 %v1153_v50  ;;  %v1078_v62 = vunpack.c.l.bf16 %v1161_v53 }
  0x36   :  { %v330_v51 = vmax.f32 %v266_v42, 0.0  ;;  %v346_v54 = vmax.f32 %v282_v44, 0.0  ;;  %v347_v55 = vmax.f32 %v283_v45, 0.0  ;;  %v1079_v63 = vunpack.c.h.bf16 %v1161_v53 }
  0x37   :  { %v1110_v1 = vunpack.c.l.bf16 %v1169_v56  ;;  %v1111_v2 = vunpack.c.h.bf16 %v1169_v56  ;;  %v1142_v4 = vunpack.c.l.bf16 %v1177_v60  ;;  %v1143_v6 = vunpack.c.h.bf16 %v1177_v60 }
  0x38   :  { %v381_v3 = vpack.c.bf16 %v347_v55, %v346_v54  ;;  %v168_v8 = vmul.f32 %v1230_v5, %v1046_v58  ;;  %v169_v9 = vmul.f32 %v1230_v5, %v1047_v59  ;;  %v184_v10 = vmul.f32 %v1230_v5, %v1078_v62 }
  0x39   :  { %v185_v11 = vmul.f32 %v1230_v5, %v1079_v63  ;;  %v200_v12 = vmul.f32 %v1230_v5, %v1110_v1  ;;  %v201_v13 = vmul.f32 %v1230_v5, %v1111_v2  ;;  %v216_v14 = vmul.f32 %v1230_v5, %v1142_v4 }
  0x3a   :  { %v217_v15 = vmul.f32 %v1230_v5, %v1143_v6  ;;  %v236_v16 = vadd.f32 %v1238_v7, %v168_v8  ;;  %v252_v18 = vadd.f32 %v1238_v7, %v184_v10  ;;  %v1050_v36 = vunpack.c.l.bf16 %v1154_v28 }
  0x3b   :  { %v253_v19 = vadd.f32 %v1238_v7, %v185_v11  ;;  %v268_v20 = vadd.f32 %v1238_v7, %v200_v12  ;;  %v284_v22 = vadd.f32 %v1238_v7, %v216_v14  ;;  %v1051_v37 = vunpack.c.h.bf16 %v1154_v28 }
  0x3c   :  { %v285_v23 = vadd.f32 %v1238_v7, %v217_v15  ;;  %v316_v26 = vmax.f32 %v252_v18, 0.0  ;;  %v1115_v44 = vunpack.c.h.bf16 %v1170_v34 }
  0x3d   :  { %v332_v29 = vmax.f32 %v268_v20, 0.0  ;;  %v348_v32 = vmax.f32 %v284_v22, 0.0 }
  0x3e   :  { %991 = vmatmul.msk.bf16.gmra.mxu0 %vm385_vm1, %v355_v39  ;;  %v235_v39 = vadd.f32 %v1238_v7, %v167_v31  ;;  %v1162_v31 = vld [vmem:[%s1885_s0 + $0x78] sm:$0xff]   ;;  %v349_v33 = vmax.f32 %v285_v23, 0.0  ;;  %v203_v53 = vmul.f32 %v1230_v5, %v1115_v44 }
  0x3f   :  { %999 = vmatmul.msk.bf16.gmra.mxu1 %vm385_vm1, %v363_v43  ;;  %v267_v43 = vadd.f32 %v1238_v7, %v199_v35  ;;  %v1082_v40 = vunpack.c.l.bf16 %v1162_v31 }
  0x40   :  { %v299_v47 = vmax.f32 %v235_v39, 0.0  ;;  %v382_v45 = vpack.c.bf16 %v349_v33, %v348_v32 }
  0x41   :  { %1007 = vmatmul.msk.bf16.gmra.mxu2 %vm385_vm1, %v371_v46  ;;  %v298_v46 = vmax.f32 %v234_v38, 0.0  ;;  %v331_v52 = vmax.f32 %v267_v43, 0.0  ;;  %v1178_v38 = vld [vmem:[%s1885_s0 + $0xf8] sm:$0xff]   ;;  %v1114_v43 = vunpack.c.l.bf16 %v1170_v34  ;;  %v186_v50 = vmul.f32 %v1230_v5, %v1082_v40 }
  0x42   :  { %1015 = vmatmul.msk.bf16.gmra.mxu3 %vm385_vm1, %v379_v49  ;;  %v315_v49 = vmax.f32 %v251_v41, 0.0  ;;  %v1083_v41 = vunpack.c.h.bf16 %v1162_v31 }
  0x43   :  { %v357_v57 = vpack.c.bf16 %v299_v47, %v298_v46  ;;  %v373_v0 = vpack.c.bf16 %v331_v52, %v330_v51  ;;  %v1146_v46 = vunpack.c.l.bf16 %v1178_v38  ;;  %v1147_v47 = vunpack.c.h.bf16 %v1178_v38 }
  0x44   :  { %v365_v61 = vpack.c.bf16 %v315_v49, %v314_v48  ;;  %v170_v48 = vmul.f32 %v1230_v5, %v1050_v36  ;;  %v171_v49 = vmul.f32 %v1230_v5, %v1051_v37  ;;  %v187_v51 = vmul.f32 %v1230_v5, %v1083_v41 }
  0x45   :  { %v202_v52 = vmul.f32 %v1230_v5, %v1114_v43  ;;  %v218_v54 = vmul.f32 %v1230_v5, %v1146_v46  ;;  %v219_v55 = vmul.f32 %v1230_v5, %v1147_v47  ;;  %v254_v58 = vadd.f32 %v1238_v7, %v186_v50 }
  0x46   :  { %v238_v56 = vadd.f32 %v1238_v7, %v170_v48  ;;  %v255_v59 = vadd.f32 %v1238_v7, %v187_v51 }
  0x47   :  { %v270_v60 = vadd.f32 %v1238_v7, %v202_v52  ;;  %v286_v62 = vadd.f32 %v1238_v7, %v218_v54  ;;  %v287_v63 = vadd.f32 %v1238_v7, %v219_v55  ;;  %v318_v2 = vmax.f32 %v254_v58, 0.0 }
  0x48   :  { %v319_v5 = vmax.f32 %v255_v59, 0.0 }
  0x49   :  { %v350_v6 = vmax.f32 %v286_v62, 0.0  ;;  %v351_v8 = vmax.f32 %v287_v63, 0.0 }
  0x4a   :  { %v367_v10 = vpack.c.bf16 %v319_v5, %v318_v2 }
  0x4b   :  { %v383_v12 = vpack.c.bf16 %v351_v8, %v350_v6 }
  0x4e   :  { %992 = vmatmul.msk.bf16.gmra.mxu0 %vm385_vm1, %v356_v17  ;;  %v237_v17 = vadd.f32 %v1238_v7, %v169_v9 }
  0x4f   :  { %1000 = vmatmul.msk.bf16.gmra.mxu1 %vm385_vm1, %v364_v21  ;;  %v269_v21 = vadd.f32 %v1238_v7, %v201_v13  ;;  %v1498_v13 = vld [vmem:[%s1889_s5] ss:$0 sm:$0xff] }
  0x50   :  { %v301_v25 = vmax.f32 %v237_v17, 0.0 }
  0x51   :  { %1008 = vmatmul.msk.bf16.gmra.mxu2 %vm385_vm1, %v372_v24  ;;  %v300_v24 = vmax.f32 %v236_v16, 0.0  ;;  %v333_v30 = vmax.f32 %v269_v21, 0.0 }
  0x52   :  { %1016 = vmatmul.msk.bf16.gmra.mxu3 %vm385_vm1, %v380_v27  ;;  %v317_v27 = vmax.f32 %v253_v19, 0.0 }
  0x53   :  { %v358_v35 = vpack.c.bf16 %v301_v25, %v300_v24  ;;  %v374_v42 = vpack.c.bf16 %v333_v30, %v332_v29 }
  0x54   :  { %v366_v39 = vpack.c.bf16 %v317_v27, %v316_v26 }
  0x5e   :  { %993 = vmatmul.msk.bf16.gmra.mxu0 %vm385_vm1, %v357_v57  ;;  %v239_v57 = vadd.f32 %v1238_v7, %v171_v49 }
  0x5f   :  { %1001 = vmatmul.msk.bf16.gmra.mxu1 %vm385_vm1, %v365_v61  ;;  %v271_v61 = vadd.f32 %v1238_v7, %v203_v53  ;;  %v1493_v7 = vld [vmem:[%s1888_s4] ss:$0 sm:$0xff] }
  0x60   :  { %v303_v1 = vmax.f32 %v239_v57, 0.0 }
  0x61   :  { %1009 = vmatmul.msk.bf16.gmra.mxu2 %vm385_vm1, %v373_v0  ;;  %v302_v0 = vmax.f32 %v238_v56, 0.0  ;;  %v335_v4 = vmax.f32 %v271_v61, 0.0 }
  0x62   :  { %1017 = vmatmul.msk.bf16.gmra.mxu3 %vm385_vm1, %v381_v3  ;;  %v334_v3 = vmax.f32 %v270_v60, 0.0 }
  0x63   :  { %v359_v9 = vpack.c.bf16 %v303_v1, %v302_v0 }
  0x64   :  { %v375_v11 = vpack.c.bf16 %v335_v4, %v334_v3 }
  0x6e   :  { %994 = vmatmul.msk.bf16.gmra.mxu0 %vm385_vm1, %v358_v35 }
  0x6f   :  { %1002 = vmatmul.msk.bf16.gmra.mxu1 %vm385_vm1, %v366_v39 }
  0x71   :  { %1010 = vmatmul.msk.bf16.gmra.mxu2 %vm385_vm1, %v374_v42 }
  0x72   :  { %1018 = vmatmul.msk.bf16.gmra.mxu3 %vm385_vm1, %v382_v45 }
  0x7e   :  { %995 = vmatmul.msk.bf16.gmra.mxu0 %vm385_vm1, %v359_v9 }
  0x7f   :  { %1003 = vmatmul.msk.bf16.gmra.mxu1 %vm385_vm1, %v367_v10 }
  0x81   :  { %1011 = vmatmul.msk.bf16.gmra.mxu2 %vm385_vm1, %v375_v11 }
  0x82   :  { %1019 = vmatmul.msk.bf16.gmra.mxu3 %vm385_vm1, %v383_v12 }
  0x8b   :  { %v495_v14 = vpop.f32.mrf.mxu0 }
  0x8c   :  { %v659_v15 = vmul.f32 %v1493_v7, %v495_v14  ;;  %v535_v16 = vpop.f32.mrf.mxu1 }
  0x8d   :  { %v675_v17 = vmul.f32 %v1493_v7, %v535_v16 }
  0x8e   :  { %v727_v18 = vadd.f32 %v1498_v13, %v659_v15 }
  0x8f   :  { %v743_v19 = vadd.f32 %v1498_v13, %v675_v17 }
  0x90   :  { %v791_v20 = vmax.f32 %v727_v18, 0.0 }
  0x91   :  { %v807_v21 = vmax.f32 %v743_v19, 0.0 }
  0x92   :  { %v855_v22 = vpack.c.bf16 %v791_v20, %v791_v20 }
  0x93   :  { %v871_v23 = vpack.c.bf16 %v807_v21, %v807_v21  ;;  %v497_v25 = vpop.f32.mrf.mxu0 }
  0x94   :  { %v575_v24 = vpop.f32.mrf.mxu2  ;;  %920 = vst.msk [vmem:[%s1890_s6] sm:$0xf] %vm919_vm2, %v855_v22  ;;  %v660_v28 = vmul.f32 %v1493_v7, %v497_v25  ;;  %v537_v29 = vpop.f32.mrf.mxu1 }
  0x95   :  { %v691_v26 = vmul.f32 %v1493_v7, %v575_v24  ;;  %v615_v27 = vpop.f32.mrf.mxu3  ;;  %936 = vst.msk [vmem:[%s1890_s6 + $0x40] sm:$0xf] %vm919_vm2, %v871_v23  ;;  %v676_v31 = vmul.f32 %v1493_v7, %v537_v29 }
  0x96   :  { %v707_v30 = vmul.f32 %v1493_v7, %v615_v27  ;;  %v728_v33 = vadd.f32 %v1498_v13, %v660_v28 }
  0x97   :  { %v759_v32 = vadd.f32 %v1498_v13, %v691_v26  ;;  %v744_v35 = vadd.f32 %v1498_v13, %v676_v31 }
  0x98   :  { %v775_v34 = vadd.f32 %v1498_v13, %v707_v30  ;;  %v792_v37 = vmax.f32 %v728_v33, 0.0 }
  0x99   :  { %v823_v36 = vmax.f32 %v759_v32, 0.0  ;;  %v808_v39 = vmax.f32 %v744_v35, 0.0 }
  0x9a   :  { %v839_v38 = vmax.f32 %v775_v34, 0.0  ;;  %v856_v41 = vpack.c.bf16 %v792_v37, %v792_v37 }
  0x9b   :  { %v887_v40 = vpack.c.bf16 %v823_v36, %v823_v36  ;;  %v872_v43 = vpack.c.bf16 %v808_v39, %v808_v39  ;;  %v500_v45 = vpop.f32.mrf.mxu0 }
  0x9c   :  { %v903_v42 = vpack.c.bf16 %v839_v38, %v839_v38  ;;  %v577_v44 = vpop.f32.mrf.mxu2  ;;  %v661_v48 = vmul.f32 %v1493_v7, %v500_v45  ;;  %v540_v49 = vpop.f32.mrf.mxu1  ;;  %921 = vst.msk [vmem:[%s1890_s6 + $0x4] sm:$0xf] %vm919_vm2, %v856_v41 }
  0x9d   :  { %952 = vst.msk [vmem:[%s1890_s6 + $0x80] sm:$0xf] %vm919_vm2, %v887_v40  ;;  %v692_v46 = vmul.f32 %v1493_v7, %v577_v44  ;;  %v617_v47 = vpop.f32.mrf.mxu3  ;;  %v677_v51 = vmul.f32 %v1493_v7, %v540_v49 }
  0x9e   :  { %968 = vst.msk [vmem:[%s1890_s6 + $0xc0] sm:$0xf] %vm919_vm2, %v903_v42  ;;  %v708_v50 = vmul.f32 %v1493_v7, %v617_v47  ;;  %v729_v53 = vadd.f32 %v1498_v13, %v661_v48 }
  0x9f   :  { %v760_v52 = vadd.f32 %v1498_v13, %v692_v46  ;;  %937 = vst.msk [vmem:[%s1890_s6 + $0x44] sm:$0xf] %vm919_vm2, %v872_v43  ;;  %v745_v55 = vadd.f32 %v1498_v13, %v677_v51 }
  0xa0   :  { %v776_v54 = vadd.f32 %v1498_v13, %v708_v50  ;;  %v793_v57 = vmax.f32 %v729_v53, 0.0 }
  0xa1   :  { %v824_v56 = vmax.f32 %v760_v52, 0.0  ;;  %v809_v59 = vmax.f32 %v745_v55, 0.0 }
  0xa2   :  { %v840_v58 = vmax.f32 %v776_v54, 0.0  ;;  %v857_v61 = vpack.c.bf16 %v793_v57, %v793_v57 }
  0xa3   :  { %v888_v60 = vpack.c.bf16 %v824_v56, %v824_v56  ;;  %v873_v63 = vpack.c.bf16 %v809_v59, %v809_v59  ;;  %v502_v1 = vpop.f32.mrf.mxu0 }
  0xa4   :  { %v904_v62 = vpack.c.bf16 %v840_v58, %v840_v58  ;;  %v580_v0 = vpop.f32.mrf.mxu2  ;;  %v662_v3 = vmul.f32 %v1493_v7, %v502_v1  ;;  %v542_v4 = vpop.f32.mrf.mxu1  ;;  %922 = vst.msk [vmem:[%s1890_s6 + $0x8] sm:$0xf] %vm919_vm2, %v857_v61 }
  0xa5   :  { %953 = vst.msk [vmem:[%s1890_s6 + $0x84] sm:$0xf] %vm919_vm2, %v888_v60  ;;  %v693_v2 = vmul.f32 %v1493_v7, %v580_v0  ;;  %v620_v5 = vpop.f32.mrf.mxu3  ;;  %v678_v8 = vmul.f32 %v1493_v7, %v542_v4 }
  0xa6   :  { %969 = vst.msk [vmem:[%s1890_s6 + $0xc4] sm:$0xf] %vm919_vm2, %v904_v62  ;;  %v709_v6 = vmul.f32 %v1493_v7, %v620_v5  ;;  %v730_v10 = vadd.f32 %v1498_v13, %v662_v3 }
  0xa7   :  { %v761_v9 = vadd.f32 %v1498_v13, %v693_v2  ;;  %938 = vst.msk [vmem:[%s1890_s6 + $0x48] sm:$0xf] %vm919_vm2, %v873_v63  ;;  %v746_v12 = vadd.f32 %v1498_v13, %v678_v8 }
  0xa8   :  { %v777_v11 = vadd.f32 %v1498_v13, %v709_v6  ;;  %v794_v15 = vmax.f32 %v730_v10, 0.0 }
  0xa9   :  { %v825_v14 = vmax.f32 %v761_v9, 0.0  ;;  %v810_v17 = vmax.f32 %v746_v12, 0.0 }
  0xaa   :  { %v841_v16 = vmax.f32 %v777_v11, 0.0  ;;  %v858_v19 = vpack.c.bf16 %v794_v15, %v794_v15 }
  0xab   :  { %v889_v18 = vpack.c.bf16 %v825_v14, %v825_v14  ;;  %v874_v21 = vpack.c.bf16 %v810_v17, %v810_v17  ;;  %v505_v23 = vpop.f32.mrf.mxu0 }
  0xac   :  { %v905_v20 = vpack.c.bf16 %v841_v16, %v841_v16  ;;  %v582_v22 = vpop.f32.mrf.mxu2  ;;  %v663_v26 = vmul.f32 %v1493_v7, %v505_v23  ;;  %v545_v27 = vpop.f32.mrf.mxu1  ;;  %923 = vst.msk [vmem:[%s1890_s6 + $0xc] sm:$0xf] %vm919_vm2, %v858_v19 }
  0xad   :  { %954 = vst.msk [vmem:[%s1890_s6 + $0x88] sm:$0xf] %vm919_vm2, %v889_v18  ;;  %v694_v24 = vmul.f32 %v1493_v7, %v582_v22  ;;  %v622_v25 = vpop.f32.mrf.mxu3  ;;  %v679_v29 = vmul.f32 %v1493_v7, %v545_v27 }
  0xae   :  { %970 = vst.msk [vmem:[%s1890_s6 + $0xc8] sm:$0xf] %vm919_vm2, %v905_v20  ;;  %v710_v28 = vmul.f32 %v1493_v7, %v622_v25  ;;  %v731_v31 = vadd.f32 %v1498_v13, %v663_v26 }
  0xaf   :  { %v762_v30 = vadd.f32 %v1498_v13, %v694_v24  ;;  %939 = vst.msk [vmem:[%s1890_s6 + $0x4c] sm:$0xf] %vm919_vm2, %v874_v21  ;;  %v747_v33 = vadd.f32 %v1498_v13, %v679_v29 }
  0xb0   :  { %v778_v32 = vadd.f32 %v1498_v13, %v710_v28  ;;  %v795_v35 = vmax.f32 %v731_v31, 0.0 }
  0xb1   :  { %v826_v34 = vmax.f32 %v762_v30, 0.0  ;;  %v811_v37 = vmax.f32 %v747_v33, 0.0 }
  0xb2   :  { %v842_v36 = vmax.f32 %v778_v32, 0.0  ;;  %v859_v39 = vpack.c.bf16 %v795_v35, %v795_v35 }
  0xb3   :  { %v890_v38 = vpack.c.bf16 %v826_v34, %v826_v34  ;;  %v875_v41 = vpack.c.bf16 %v811_v37, %v811_v37  ;;  %v507_v43 = vpop.f32.mrf.mxu0 }
  0xb4   :  { %v906_v40 = vpack.c.bf16 %v842_v36, %v842_v36  ;;  %v585_v42 = vpop.f32.mrf.mxu2  ;;  %v664_v46 = vmul.f32 %v1493_v7, %v507_v43  ;;  %v547_v47 = vpop.f32.mrf.mxu1  ;;  %924 = vst.msk [vmem:[%s1890_s6 + $0x10] sm:$0xf] %vm919_vm2, %v859_v39 }
  0xb5   :  { %955 = vst.msk [vmem:[%s1890_s6 + $0x8c] sm:$0xf] %vm919_vm2, %v890_v38  ;;  %v695_v44 = vmul.f32 %v1493_v7, %v585_v42  ;;  %v625_v45 = vpop.f32.mrf.mxu3  ;;  %v680_v49 = vmul.f32 %v1493_v7, %v547_v47 }
  0xb6   :  { %971 = vst.msk [vmem:[%s1890_s6 + $0xcc] sm:$0xf] %vm919_vm2, %v906_v40  ;;  %v711_v48 = vmul.f32 %v1493_v7, %v625_v45  ;;  %v732_v51 = vadd.f32 %v1498_v13, %v664_v46 }
  0xb7   :  { %v763_v50 = vadd.f32 %v1498_v13, %v695_v44  ;;  %940 = vst.msk [vmem:[%s1890_s6 + $0x50] sm:$0xf] %vm919_vm2, %v875_v41  ;;  %v748_v53 = vadd.f32 %v1498_v13, %v680_v49 }
  0xb8   :  { %v779_v52 = vadd.f32 %v1498_v13, %v711_v48  ;;  %v796_v55 = vmax.f32 %v732_v51, 0.0 }
  0xb9   :  { %v827_v54 = vmax.f32 %v763_v50, 0.0  ;;  %v812_v57 = vmax.f32 %v748_v53, 0.0 }
  0xba   :  { %v843_v56 = vmax.f32 %v779_v52, 0.0  ;;  %v860_v59 = vpack.c.bf16 %v796_v55, %v796_v55 }
  0xbb   :  { %v891_v58 = vpack.c.bf16 %v827_v54, %v827_v54  ;;  %v876_v61 = vpack.c.bf16 %v812_v57, %v812_v57  ;;  %v510_v63 = vpop.f32.mrf.mxu0 }
  0xbc   :  { %v907_v60 = vpack.c.bf16 %v843_v56, %v843_v56  ;;  %v587_v62 = vpop.f32.mrf.mxu2  ;;  %v665_v2 = vmul.f32 %v1493_v7, %v510_v63  ;;  %v550_v5 = vpop.f32.mrf.mxu1  ;;  %925 = vst.msk [vmem:[%s1890_s6 + $0x14] sm:$0xf] %vm919_vm2, %v860_v59 }
  0xbd   :  { %956 = vst.msk [vmem:[%s1890_s6 + $0x90] sm:$0xf] %vm919_vm2, %v891_v58  ;;  %v696_v0 = vmul.f32 %v1493_v7, %v587_v62  ;;  %v627_v1 = vpop.f32.mrf.mxu3  ;;  %v681_v4 = vmul.f32 %v1493_v7, %v550_v5 }
  0xbe   :  { %972 = vst.msk [vmem:[%s1890_s6 + $0xd0] sm:$0xf] %vm919_vm2, %v907_v60  ;;  %v712_v3 = vmul.f32 %v1493_v7, %v627_v1  ;;  %v733_v8 = vadd.f32 %v1498_v13, %v665_v2 }
  0xbf   :  { %v764_v6 = vadd.f32 %v1498_v13, %v696_v0  ;;  %941 = vst.msk [vmem:[%s1890_s6 + $0x54] sm:$0xf] %vm919_vm2, %v876_v61  ;;  %v749_v10 = vadd.f32 %v1498_v13, %v681_v4 }
  0xc0   :  { %v780_v9 = vadd.f32 %v1498_v13, %v712_v3  ;;  %v797_v12 = vmax.f32 %v733_v8, 0.0 }
  0xc1   :  { %v828_v11 = vmax.f32 %v764_v6, 0.0  ;;  %v813_v15 = vmax.f32 %v749_v10, 0.0 }
  0xc2   :  { %v844_v14 = vmax.f32 %v780_v9, 0.0  ;;  %v861_v17 = vpack.c.bf16 %v797_v12, %v797_v12 }
  0xc3   :  { %v892_v16 = vpack.c.bf16 %v828_v11, %v828_v11  ;;  %v877_v19 = vpack.c.bf16 %v813_v15, %v813_v15  ;;  %v512_v21 = vpop.f32.mrf.mxu0 }
  0xc4   :  { %v908_v18 = vpack.c.bf16 %v844_v14, %v844_v14  ;;  %v590_v20 = vpop.f32.mrf.mxu2  ;;  %v666_v24 = vmul.f32 %v1493_v7, %v512_v21  ;;  %v552_v25 = vpop.f32.mrf.mxu1  ;;  %926 = vst.msk [vmem:[%s1890_s6 + $0x18] sm:$0xf] %vm919_vm2, %v861_v17 }
  0xc5   :  { %957 = vst.msk [vmem:[%s1890_s6 + $0x94] sm:$0xf] %vm919_vm2, %v892_v16  ;;  %v697_v22 = vmul.f32 %v1493_v7, %v590_v20  ;;  %v630_v23 = vpop.f32.mrf.mxu3  ;;  %v682_v27 = vmul.f32 %v1493_v7, %v552_v25 }
  0xc6   :  { %973 = vst.msk [vmem:[%s1890_s6 + $0xd4] sm:$0xf] %vm919_vm2, %v908_v18  ;;  %v713_v26 = vmul.f32 %v1493_v7, %v630_v23  ;;  %v734_v29 = vadd.f32 %v1498_v13, %v666_v24 }
  0xc7   :  { %v765_v28 = vadd.f32 %v1498_v13, %v697_v22  ;;  %942 = vst.msk [vmem:[%s1890_s6 + $0x58] sm:$0xf] %vm919_vm2, %v877_v19  ;;  %v750_v31 = vadd.f32 %v1498_v13, %v682_v27 }
  0xc8   :  { %v781_v30 = vadd.f32 %v1498_v13, %v713_v26  ;;  %v798_v33 = vmax.f32 %v734_v29, 0.0 }
  0xc9   :  { %v829_v32 = vmax.f32 %v765_v28, 0.0  ;;  %v814_v35 = vmax.f32 %v750_v31, 0.0 }
  0xca   :  { %v845_v34 = vmax.f32 %v781_v30, 0.0  ;;  %v862_v37 = vpack.c.bf16 %v798_v33, %v798_v33 }
  0xcb   :  { %v893_v36 = vpack.c.bf16 %v829_v32, %v829_v32  ;;  %v878_v39 = vpack.c.bf16 %v814_v35, %v814_v35  ;;  %v515_v41 = vpop.f32.mrf.mxu0 }
  0xcc   :  { %v909_v38 = vpack.c.bf16 %v845_v34, %v845_v34  ;;  %v592_v40 = vpop.f32.mrf.mxu2  ;;  %v667_v44 = vmul.f32 %v1493_v7, %v515_v41  ;;  %v555_v45 = vpop.f32.mrf.mxu1  ;;  %927 = vst.msk [vmem:[%s1890_s6 + $0x1c] sm:$0xf] %vm919_vm2, %v862_v37 }
  0xcd   :  { %958 = vst.msk [vmem:[%s1890_s6 + $0x98] sm:$0xf] %vm919_vm2, %v893_v36  ;;  %v698_v42 = vmul.f32 %v1493_v7, %v592_v40  ;;  %v632_v43 = vpop.f32.mrf.mxu3  ;;  %v683_v47 = vmul.f32 %v1493_v7, %v555_v45 }
  0xce   :  { %974 = vst.msk [vmem:[%s1890_s6 + $0xd8] sm:$0xf] %vm919_vm2, %v909_v38  ;;  %v714_v46 = vmul.f32 %v1493_v7, %v632_v43  ;;  %v735_v49 = vadd.f32 %v1498_v13, %v667_v44 }
  0xcf   :  { %v766_v48 = vadd.f32 %v1498_v13, %v698_v42  ;;  %943 = vst.msk [vmem:[%s1890_s6 + $0x5c] sm:$0xf] %vm919_vm2, %v878_v39  ;;  %v751_v51 = vadd.f32 %v1498_v13, %v683_v47 }
  0xd0   :  { %v782_v50 = vadd.f32 %v1498_v13, %v714_v46  ;;  %v799_v53 = vmax.f32 %v735_v49, 0.0 }
  0xd1   :  { %v830_v52 = vmax.f32 %v766_v48, 0.0  ;;  %v815_v55 = vmax.f32 %v751_v51, 0.0 }
  0xd2   :  { %v846_v54 = vmax.f32 %v782_v50, 0.0  ;;  %v863_v57 = vpack.c.bf16 %v799_v53, %v799_v53 }
  0xd3   :  { %v894_v56 = vpack.c.bf16 %v830_v52, %v830_v52  ;;  %v879_v59 = vpack.c.bf16 %v815_v55, %v815_v55  ;;  %v517_v61 = vpop.f32.mrf.mxu0 }
  0xd4   :  { %v910_v58 = vpack.c.bf16 %v846_v54, %v846_v54  ;;  %v595_v60 = vpop.f32.mrf.mxu2  ;;  %v668_v0 = vmul.f32 %v1493_v7, %v517_v61  ;;  %v557_v1 = vpop.f32.mrf.mxu1  ;;  %928 = vst.msk [vmem:[%s1890_s6 + $0x20] sm:$0xf] %vm919_vm2, %v863_v57 }
  0xd5   :  { %959 = vst.msk [vmem:[%s1890_s6 + $0x9c] sm:$0xf] %vm919_vm2, %v894_v56  ;;  %v699_v62 = vmul.f32 %v1493_v7, %v595_v60  ;;  %v635_v63 = vpop.f32.mrf.mxu3  ;;  %v684_v5 = vmul.f32 %v1493_v7, %v557_v1 }
  0xd6   :  { %975 = vst.msk [vmem:[%s1890_s6 + $0xdc] sm:$0xf] %vm919_vm2, %v910_v58  ;;  %v715_v2 = vmul.f32 %v1493_v7, %v635_v63  ;;  %v736_v4 = vadd.f32 %v1498_v13, %v668_v0 }
  0xd7   :  { %v767_v3 = vadd.f32 %v1498_v13, %v699_v62  ;;  %944 = vst.msk [vmem:[%s1890_s6 + $0x60] sm:$0xf] %vm919_vm2, %v879_v59  ;;  %v752_v8 = vadd.f32 %v1498_v13, %v684_v5 }
  0xd8   :  { %v783_v6 = vadd.f32 %v1498_v13, %v715_v2  ;;  %v800_v10 = vmax.f32 %v736_v4, 0.0 }
  0xd9   :  { %v831_v9 = vmax.f32 %v767_v3, 0.0  ;;  %v816_v12 = vmax.f32 %v752_v8, 0.0 }
  0xda   :  { %v847_v11 = vmax.f32 %v783_v6, 0.0  ;;  %v864_v15 = vpack.c.bf16 %v800_v10, %v800_v10 }
  0xdb   :  { %v895_v14 = vpack.c.bf16 %v831_v9, %v831_v9  ;;  %v880_v17 = vpack.c.bf16 %v816_v12, %v816_v12  ;;  %v520_v19 = vpop.f32.mrf.mxu0 }
  0xdc   :  { %v911_v16 = vpack.c.bf16 %v847_v11, %v847_v11  ;;  %v597_v18 = vpop.f32.mrf.mxu2  ;;  %v669_v22 = vmul.f32 %v1493_v7, %v520_v19  ;;  %v560_v23 = vpop.f32.mrf.mxu1  ;;  %929 = vst.msk [vmem:[%s1890_s6 + $0x24] sm:$0xf] %vm919_vm2, %v864_v15 }
  0xdd   :  { %960 = vst.msk [vmem:[%s1890_s6 + $0xa0] sm:$0xf] %vm919_vm2, %v895_v14  ;;  %v700_v20 = vmul.f32 %v1493_v7, %v597_v18  ;;  %v637_v21 = vpop.f32.mrf.mxu3  ;;  %v685_v25 = vmul.f32 %v1493_v7, %v560_v23 }
  0xde   :  { %976 = vst.msk [vmem:[%s1890_s6 + $0xe0] sm:$0xf] %vm919_vm2, %v911_v16  ;;  %v716_v24 = vmul.f32 %v1493_v7, %v637_v21  ;;  %v737_v27 = vadd.f32 %v1498_v13, %v669_v22 }
  0xdf   :  { %v768_v26 = vadd.f32 %v1498_v13, %v700_v20  ;;  %945 = vst.msk [vmem:[%s1890_s6 + $0x64] sm:$0xf] %vm919_vm2, %v880_v17  ;;  %v753_v29 = vadd.f32 %v1498_v13, %v685_v25 }
  0xe0   :  { %v784_v28 = vadd.f32 %v1498_v13, %v716_v24  ;;  %v801_v31 = vmax.f32 %v737_v27, 0.0 }
  0xe1   :  { %v832_v30 = vmax.f32 %v768_v26, 0.0  ;;  %v817_v33 = vmax.f32 %v753_v29, 0.0 }
  0xe2   :  { %v848_v32 = vmax.f32 %v784_v28, 0.0  ;;  %v865_v35 = vpack.c.bf16 %v801_v31, %v801_v31 }
  0xe3   :  { %v896_v34 = vpack.c.bf16 %v832_v30, %v832_v30  ;;  %v881_v37 = vpack.c.bf16 %v817_v33, %v817_v33  ;;  %v522_v39 = vpop.f32.mrf.mxu0 }
  0xe4   :  { %v912_v36 = vpack.c.bf16 %v848_v32, %v848_v32  ;;  %v600_v38 = vpop.f32.mrf.mxu2  ;;  %v670_v42 = vmul.f32 %v1493_v7, %v522_v39  ;;  %v562_v43 = vpop.f32.mrf.mxu1  ;;  %930 = vst.msk [vmem:[%s1890_s6 + $0x28] sm:$0xf] %vm919_vm2, %v865_v35 }
  0xe5   :  { %961 = vst.msk [vmem:[%s1890_s6 + $0xa4] sm:$0xf] %vm919_vm2, %v896_v34  ;;  %v701_v40 = vmul.f32 %v1493_v7, %v600_v38  ;;  %v640_v41 = vpop.f32.mrf.mxu3  ;;  %v686_v45 = vmul.f32 %v1493_v7, %v562_v43 }
  0xe6   :  { %977 = vst.msk [vmem:[%s1890_s6 + $0xe4] sm:$0xf] %vm919_vm2, %v912_v36  ;;  %v717_v44 = vmul.f32 %v1493_v7, %v640_v41  ;;  %v738_v47 = vadd.f32 %v1498_v13, %v670_v42 }
  0xe7   :  { %v769_v46 = vadd.f32 %v1498_v13, %v701_v40  ;;  %946 = vst.msk [vmem:[%s1890_s6 + $0x68] sm:$0xf] %vm919_vm2, %v881_v37  ;;  %v754_v49 = vadd.f32 %v1498_v13, %v686_v45 }
  0xe8   :  { %v785_v48 = vadd.f32 %v1498_v13, %v717_v44  ;;  %v802_v51 = vmax.f32 %v738_v47, 0.0 }
  0xe9   :  { %v833_v50 = vmax.f32 %v769_v46, 0.0  ;;  %v818_v53 = vmax.f32 %v754_v49, 0.0 }
  0xea   :  { %v849_v52 = vmax.f32 %v785_v48, 0.0  ;;  %v866_v55 = vpack.c.bf16 %v802_v51, %v802_v51 }
  0xeb   :  { %v897_v54 = vpack.c.bf16 %v833_v50, %v833_v50  ;;  %v882_v57 = vpack.c.bf16 %v818_v53, %v818_v53  ;;  %v525_v59 = vpop.f32.mrf.mxu0 }
  0xec   :  { %v913_v56 = vpack.c.bf16 %v849_v52, %v849_v52  ;;  %v602_v58 = vpop.f32.mrf.mxu2  ;;  %v671_v62 = vmul.f32 %v1493_v7, %v525_v59  ;;  %v565_v63 = vpop.f32.mrf.mxu1  ;;  %931 = vst.msk [vmem:[%s1890_s6 + $0x2c] sm:$0xf] %vm919_vm2, %v866_v55 }
  0xed   :  { %962 = vst.msk [vmem:[%s1890_s6 + $0xa8] sm:$0xf] %vm919_vm2, %v897_v54  ;;  %v702_v60 = vmul.f32 %v1493_v7, %v602_v58  ;;  %v642_v61 = vpop.f32.mrf.mxu3  ;;  %v687_v1 = vmul.f32 %v1493_v7, %v565_v63 }
  0xee   :  { %978 = vst.msk [vmem:[%s1890_s6 + $0xe8] sm:$0xf] %vm919_vm2, %v913_v56  ;;  %v718_v0 = vmul.f32 %v1493_v7, %v642_v61  ;;  %v739_v5 = vadd.f32 %v1498_v13, %v671_v62 }
  0xef   :  { %v770_v2 = vadd.f32 %v1498_v13, %v702_v60  ;;  %947 = vst.msk [vmem:[%s1890_s6 + $0x6c] sm:$0xf] %vm919_vm2, %v882_v57  ;;  %v755_v4 = vadd.f32 %v1498_v13, %v687_v1 }
  0xf0   :  { %v786_v3 = vadd.f32 %v1498_v13, %v718_v0  ;;  %v803_v8 = vmax.f32 %v739_v5, 0.0 }
  0xf1   :  { %v834_v6 = vmax.f32 %v770_v2, 0.0  ;;  %v819_v10 = vmax.f32 %v755_v4, 0.0 }
  0xf2   :  { %v850_v9 = vmax.f32 %v786_v3, 0.0  ;;  %v867_v12 = vpack.c.bf16 %v803_v8, %v803_v8 }
  0xf3   :  { %v898_v11 = vpack.c.bf16 %v834_v6, %v834_v6  ;;  %v883_v15 = vpack.c.bf16 %v819_v10, %v819_v10  ;;  %v527_v17 = vpop.f32.mrf.mxu0 }
  0xf4   :  { %v914_v14 = vpack.c.bf16 %v850_v9, %v850_v9  ;;  %v605_v16 = vpop.f32.mrf.mxu2  ;;  %v672_v20 = vmul.f32 %v1493_v7, %v527_v17  ;;  %v567_v21 = vpop.f32.mrf.mxu1  ;;  %932 = vst.msk [vmem:[%s1890_s6 + $0x30] sm:$0xf] %vm919_vm2, %v867_v12 }
  0xf5   :  { %963 = vst.msk [vmem:[%s1890_s6 + $0xac] sm:$0xf] %vm919_vm2, %v898_v11  ;;  %v703_v18 = vmul.f32 %v1493_v7, %v605_v16  ;;  %v645_v19 = vpop.f32.mrf.mxu3  ;;  %v688_v23 = vmul.f32 %v1493_v7, %v567_v21 }
  0xf6   :  { %979 = vst.msk [vmem:[%s1890_s6 + $0xec] sm:$0xf] %vm919_vm2, %v914_v14  ;;  %v719_v22 = vmul.f32 %v1493_v7, %v645_v19  ;;  %v740_v25 = vadd.f32 %v1498_v13, %v672_v20 }
  0xf7   :  { %v771_v24 = vadd.f32 %v1498_v13, %v703_v18  ;;  %948 = vst.msk [vmem:[%s1890_s6 + $0x70] sm:$0xf] %vm919_vm2, %v883_v15  ;;  %v756_v27 = vadd.f32 %v1498_v13, %v688_v23 }
  0xf8   :  { %v787_v26 = vadd.f32 %v1498_v13, %v719_v22  ;;  %v804_v29 = vmax.f32 %v740_v25, 0.0 }
  0xf9   :  { %v835_v28 = vmax.f32 %v771_v24, 0.0  ;;  %v820_v31 = vmax.f32 %v756_v27, 0.0 }
  0xfa   :  { %v851_v30 = vmax.f32 %v787_v26, 0.0  ;;  %v868_v33 = vpack.c.bf16 %v804_v29, %v804_v29 }
  0xfb   :  { %v899_v32 = vpack.c.bf16 %v835_v28, %v835_v28  ;;  %v884_v35 = vpack.c.bf16 %v820_v31, %v820_v31  ;;  %v530_v37 = vpop.f32.mrf.mxu0 }
  0xfc   :  { %v915_v34 = vpack.c.bf16 %v851_v30, %v851_v30  ;;  %v607_v36 = vpop.f32.mrf.mxu2  ;;  %v673_v40 = vmul.f32 %v1493_v7, %v530_v37  ;;  %v570_v41 = vpop.f32.mrf.mxu1  ;;  %933 = vst.msk [vmem:[%s1890_s6 + $0x34] sm:$0xf] %vm919_vm2, %v868_v33 }
  0xfd   :  { %964 = vst.msk [vmem:[%s1890_s6 + $0xb0] sm:$0xf] %vm919_vm2, %v899_v32  ;;  %v704_v38 = vmul.f32 %v1493_v7, %v607_v36  ;;  %v647_v39 = vpop.f32.mrf.mxu3  ;;  %v689_v43 = vmul.f32 %v1493_v7, %v570_v41 }
  0xfe   :  { %980 = vst.msk [vmem:[%s1890_s6 + $0xf0] sm:$0xf] %vm919_vm2, %v915_v34  ;;  %v720_v42 = vmul.f32 %v1493_v7, %v647_v39  ;;  %v741_v45 = vadd.f32 %v1498_v13, %v673_v40 }
  0xff   :  { %v772_v44 = vadd.f32 %v1498_v13, %v704_v38  ;;  %949 = vst.msk [vmem:[%s1890_s6 + $0x74] sm:$0xf] %vm919_vm2, %v884_v35  ;;  %v757_v47 = vadd.f32 %v1498_v13, %v689_v43 }
 0x100   :  { %v788_v46 = vadd.f32 %v1498_v13, %v720_v42  ;;  %v805_v49 = vmax.f32 %v741_v45, 0.0 }
 0x101   :  { %v836_v48 = vmax.f32 %v772_v44, 0.0  ;;  %v821_v51 = vmax.f32 %v757_v47, 0.0 }
 0x102   :  { %v852_v50 = vmax.f32 %v788_v46, 0.0  ;;  %v869_v53 = vpack.c.bf16 %v805_v49, %v805_v49 }
 0x103   :  { %v900_v52 = vpack.c.bf16 %v836_v48, %v836_v48  ;;  %v885_v55 = vpack.c.bf16 %v821_v51, %v821_v51  ;;  %v532_v57 = vpop.f32.mrf.mxu0 }
 0x104   :  { %v916_v54 = vpack.c.bf16 %v852_v50, %v852_v50  ;;  %v610_v56 = vpop.f32.mrf.mxu2  ;;  %v674_v60 = vmul.f32 %v1493_v7, %v532_v57  ;;  %v572_v61 = vpop.f32.mrf.mxu1  ;;  %934 = vst.msk [vmem:[%s1890_s6 + $0x38] sm:$0xf] %vm919_vm2, %v869_v53 }
 0x105   :  { %965 = vst.msk [vmem:[%s1890_s6 + $0xb4] sm:$0xf] %vm919_vm2, %v900_v52  ;;  %v705_v58 = vmul.f32 %v1493_v7, %v610_v56  ;;  %v650_v59 = vpop.f32.mrf.mxu3  ;;  %v690_v63 = vmul.f32 %v1493_v7, %v572_v61 }
 0x106   :  { %981 = vst.msk [vmem:[%s1890_s6 + $0xf4] sm:$0xf] %vm919_vm2, %v916_v54  ;;  %v721_v62 = vmul.f32 %v1493_v7, %v650_v59  ;;  %v742_v1 = vadd.f32 %v1498_v13, %v674_v60 }
 0x107   :  { %v773_v0 = vadd.f32 %v1498_v13, %v705_v58  ;;  %950 = vst.msk [vmem:[%s1890_s6 + $0x78] sm:$0xf] %vm919_vm2, %v885_v55  ;;  %v758_v5 = vadd.f32 %v1498_v13, %v690_v63 }
 0x108   :  { %v789_v2 = vadd.f32 %v1498_v13, %v721_v62  ;;  %v806_v4 = vmax.f32 %v742_v1, 0.0 }
 0x109   :  { %v837_v3 = vmax.f32 %v773_v0, 0.0  ;;  %v822_v8 = vmax.f32 %v758_v5, 0.0 }
 0x10a   :  { %v853_v6 = vmax.f32 %v789_v2, 0.0  ;;  %v870_v10 = vpack.c.bf16 %v806_v4, %v806_v4 }
 0x10b   :  { %v901_v9 = vpack.c.bf16 %v837_v3, %v837_v3  ;;  %v886_v12 = vpack.c.bf16 %v822_v8, %v822_v8 }
 0x10c   :  { %v917_v11 = vpack.c.bf16 %v853_v6, %v853_v6  ;;  %v612_v14 = vpop.f32.mrf.mxu2  ;;  %935 = vst.msk [vmem:[%s1890_s6 + $0x3c] sm:$0xf] %vm919_vm2, %v870_v10 }
 0x10d   :  { %966 = vst.msk [vmem:[%s1890_s6 + $0xb8] sm:$0xf] %vm919_vm2, %v901_v9  ;;  %v706_v15 = vmul.f32 %v1493_v7, %v612_v14  ;;  %v652_v16 = vpop.f32.mrf.mxu3 }
 0x10e   :  { %982 = vst.msk [vmem:[%s1890_s6 + $0xf8] sm:$0xf] %vm919_vm2, %v917_v11  ;;  %v722_v17 = vmul.f32 %v1493_v7, %v652_v16 }
 0x10f   :  { %v774_v18 = vadd.f32 %v1498_v13, %v706_v15  ;;  %951 = vst.msk [vmem:[%s1890_s6 + $0x7c] sm:$0xf] %vm919_vm2, %v886_v12 }
 0x110   :  { %v790_v19 = vadd.f32 %v1498_v13, %v722_v17 }
 0x111   :  { %v838_v20 = vmax.f32 %v774_v18, 0.0 }
 0x112   :  { %v854_v21 = vmax.f32 %v790_v19, 0.0 }
 0x113   :  { %v902_v22 = vpack.c.bf16 %v838_v20, %v838_v20 }
 0x114   :  { %v918_v23 = vpack.c.bf16 %v854_v21, %v854_v21 }
 0x115   :  { %967 = vst.msk [vmem:[%s1890_s6 + $0xbc] sm:$0xf] %vm919_vm2, %v902_v22 }
 0x116   :  { %983 = vst.msk [vmem:[%s1890_s6 + $0xfc] sm:$0xf] %vm919_vm2, %v918_v23 }

// kernel: prm_forward.15
= control target key start
LH: loop header
LB: loop body
LE: loop exit
PB: predicated region body
PF: predicated region fallthrough
CT: control target
= control target key end

     0   :  { %vm483_vm0 = vcmask 1043456   ;;  %vm386_vm1 = vcmask 64512   ;;  %vm720_vm2 = vcmask 125952   ;;  %s1610_s3 = inlined_call_operand.vmem [shape: bf16[8,16], index: 3, kind: input, shape index: {}]   ;;  %s1611_s0 = inlined_call_operand.vmem [shape: bf16[512,8], index: 0, kind: input, shape index: {}]   ;;  %s1612_s1 = inlined_call_operand.vmem [shape: f32[1,8], index: 1, kind: input, shape index: {}]   ;;  %s1613_s2 = inlined_call_operand.vmem [shape: f32[1,8], index: 2, kind: input, shape index: {}]   ;;  %s1614_s4 = inlined_call_operand.vmem [shape: f32[1,16], index: 4, kind: input, shape index: {}]   ;;  %s1615_s5 = inlined_call_operand.vmem [shape: bf16[512,16], index: 5, kind: output, shape index: {}]  }
   0x1   :  { %v381_v0 = vld [vmem:[%s1610_s3] sm:$0xf]  ;;  %v949_v28 = vld [vmem:[%s1611_s0 + $0x8] sm:$0xff]  }
   0x2   :  { %v822_v1 = vld [vmem:[%s1611_s0] sm:$0xff]   ;;  %v485_v2 = vsel %vm483_vm0, %v381_v0, 0  ;;  %v957_v37 = vld [vmem:[%s1611_s0 + $0x48] sm:$0xff]   ;;  %v827_v41 = vunpack.c.l.bf16 %v949_v28  ;;  %v828_v46 = vunpack.c.h.bf16 %v949_v28 }
   0x3   :  { %v823_v3 = vunpack.c.l.bf16 %v822_v1  ;;  %v824_v4 = vunpack.c.h.bf16 %v822_v1  ;;  %v1025_v5 = vld [vmem:[%s1612_s1] ss:$0 sm:$0xff]  ;;  %494 = vmatpush.bf16.msra.mxu0 %v485_v2  ;;  %980 = vmatpush.bf16.msra.mxu1 %v485_v2  ;;  %v965_v42 = vld [vmem:[%s1611_s0 + $0x88] sm:$0xff]   ;;  %v859_v50 = vunpack.c.l.bf16 %v957_v37  ;;  %v860_v51 = vunpack.c.h.bf16 %v957_v37 }
   0x4   :  { %v956_v6 = vld [vmem:[%s1611_s0 + $0x40] sm:$0xff]   ;;  %981 = vmatpush.bf16.msra.mxu2 %v485_v2  ;;  %982 = vmatpush.bf16.msra.mxu3 %v485_v2  ;;  %v973_v47 = vld [vmem:[%s1611_s0 + $0xc8] sm:$0xff]   ;;  %v155_v49 = vmul.f32 %v1025_v5, %v827_v41  ;;  %v156_v53 = vmul.f32 %v1025_v5, %v828_v46  ;;  %v891_v54 = vunpack.c.l.bf16 %v965_v42  ;;  %v892_v55 = vunpack.c.h.bf16 %v965_v42 }
   0x5   :  { %v1033_v7 = vld [vmem:[%s1613_s2] ss:$0 sm:$0xff]  ;;  %v855_v8 = vunpack.c.l.bf16 %v956_v6  ;;  %v856_v9 = vunpack.c.h.bf16 %v956_v6  ;;  %v153_v12 = vmul.f32 %v1025_v5, %v823_v3  ;;  %v154_v13 = vmul.f32 %v1025_v5, %v824_v4 }
   0x6   :  { %v964_v10 = vld [vmem:[%s1611_s0 + $0x80] sm:$0xff]   ;;  %v171_v56 = vmul.f32 %v1025_v5, %v859_v50  ;;  %v172_v57 = vmul.f32 %v1025_v5, %v860_v51  ;;  %v923_v58 = vunpack.c.l.bf16 %v973_v47  ;;  %v187_v59 = vmul.f32 %v1025_v5, %v891_v54  ;;  %v951_v54 = vld [vmem:[%s1611_s0 + $0x18] sm:$0xff]  }
   0x7   :  { %v972_v11 = vld [vmem:[%s1611_s0 + $0xc0] sm:$0xff]   ;;  %v887_v14 = vunpack.c.l.bf16 %v964_v10  ;;  %v888_v15 = vunpack.c.h.bf16 %v964_v10  ;;  %v169_v16 = vmul.f32 %v1025_v5, %v855_v8  ;;  %v170_v17 = vmul.f32 %v1025_v5, %v856_v9 }
   0x8   :  { %v919_v18 = vunpack.c.l.bf16 %v972_v11  ;;  %v920_v19 = vunpack.c.h.bf16 %v972_v11  ;;  %v221_v20 = vadd.f32 %v1033_v7, %v153_v12  ;;  %v222_v21 = vadd.f32 %v1033_v7, %v154_v13 }
   0x9   :  { %v185_v22 = vmul.f32 %v1025_v5, %v887_v14  ;;  %v186_v23 = vmul.f32 %v1025_v5, %v888_v15  ;;  %v237_v24 = vadd.f32 %v1033_v7, %v169_v16  ;;  %v238_v25 = vadd.f32 %v1033_v7, %v170_v17  ;;  %v950_v14 = vld [vmem:[%s1611_s0 + $0x10] sm:$0xff]  }
   0xa   :  { %v201_v26 = vmul.f32 %v1025_v5, %v919_v18  ;;  %v202_v27 = vmul.f32 %v1025_v5, %v920_v19  ;;  %v285_v29 = vmax.f32 %v221_v20, 0.0  ;;  %v286_v30 = vmax.f32 %v222_v21, 0.0  ;;  %v958_v17 = vld [vmem:[%s1611_s0 + $0x50] sm:$0xff]  }
   0xb   :  { %v253_v31 = vadd.f32 %v1033_v7, %v185_v22  ;;  %v254_v32 = vadd.f32 %v1033_v7, %v186_v23  ;;  %v301_v33 = vmax.f32 %v237_v24, 0.0  ;;  %v302_v34 = vmax.f32 %v238_v25, 0.0  ;;  %v966_v20 = vld [vmem:[%s1611_s0 + $0x90] sm:$0xff]  }
   0xc   :  { %v269_v35 = vadd.f32 %v1033_v7, %v201_v26  ;;  %v270_v36 = vadd.f32 %v1033_v7, %v202_v27  ;;  %v349_v38 = vpack.c.bf16 %v286_v30, %v285_v29  ;;  %v188_v60 = vmul.f32 %v1025_v5, %v892_v55  ;;  %v974_v24 = vld [vmem:[%s1611_s0 + $0xd0] sm:$0xff]  }
   0xd   :  { %v317_v39 = vmax.f32 %v253_v31, 0.0  ;;  %v318_v40 = vmax.f32 %v254_v32, 0.0  ;;  %v357_v43 = vpack.c.bf16 %v302_v34, %v301_v33  ;;  %v924_v61 = vunpack.c.h.bf16 %v973_v47 }
   0xe   :  { %v333_v44 = vmax.f32 %v269_v35, 0.0  ;;  %v334_v45 = vmax.f32 %v270_v36, 0.0  ;;  %789 = vmatmul.msk.bf16.vlgmr.msra.gmra.mxu0 %vm386_vm1, %v349_v38  ;;  %v223_v62 = vadd.f32 %v1033_v7, %v155_v49  ;;  %v224_v63 = vadd.f32 %v1033_v7, %v156_v53 }
   0xf   :  { %v365_v48 = vpack.c.bf16 %v318_v40, %v317_v39  ;;  %797 = vmatmul.msk.bf16.vlgmr.msra.gmra.mxu1 %vm386_vm1, %v357_v43  ;;  %v203_v0 = vmul.f32 %v1025_v5, %v923_v58  ;;  %v239_v1 = vadd.f32 %v1033_v7, %v171_v56  ;;  %v240_v2 = vadd.f32 %v1033_v7, %v172_v57  ;;  %v959_v57 = vld [vmem:[%s1611_s0 + $0x58] sm:$0xff]  }
  0x10   :  { %v373_v52 = vpack.c.bf16 %v334_v45, %v333_v44  ;;  %v204_v3 = vmul.f32 %v1025_v5, %v924_v61  ;;  %v255_v4 = vadd.f32 %v1033_v7, %v187_v59  ;;  %v256_v6 = vadd.f32 %v1033_v7, %v188_v60  ;;  %v967_v60 = vld [vmem:[%s1611_s0 + $0x98] sm:$0xff]  }
  0x11   :  { %805 = vmatmul.msk.bf16.vlgmr.msra.gmra.mxu2 %vm386_vm1, %v365_v48  ;;  %v271_v8 = vadd.f32 %v1033_v7, %v203_v0  ;;  %v287_v10 = vmax.f32 %v223_v62, 0.0  ;;  %v288_v11 = vmax.f32 %v224_v63, 0.0  ;;  %v303_v12 = vmax.f32 %v239_v1, 0.0  ;;  %v975_v0 = vld [vmem:[%s1611_s0 + $0xd8] sm:$0xff]  }
  0x12   :  { %813 = vmatmul.msk.bf16.vlgmr.msra.gmra.mxu3 %vm386_vm1, %v373_v52  ;;  %v272_v9 = vadd.f32 %v1033_v7, %v204_v3  ;;  %v304_v13 = vmax.f32 %v240_v2, 0.0  ;;  %v319_v15 = vmax.f32 %v255_v4, 0.0  ;;  %v320_v16 = vmax.f32 %v256_v6, 0.0 }
  0x13   :  { %v335_v18 = vmax.f32 %v271_v8, 0.0  ;;  %v350_v21 = vpack.c.bf16 %v288_v11, %v287_v10  ;;  %v831_v22 = vunpack.c.l.bf16 %v950_v14  ;;  %v832_v23 = vunpack.c.h.bf16 %v950_v14 }
  0x14   :  { %v336_v19 = vmax.f32 %v272_v9, 0.0  ;;  %v358_v25 = vpack.c.bf16 %v304_v13, %v303_v12  ;;  %v863_v26 = vunpack.c.l.bf16 %v958_v17  ;;  %v864_v27 = vunpack.c.h.bf16 %v958_v17 }
  0x15   :  { %v366_v28 = vpack.c.bf16 %v320_v16, %v319_v15  ;;  %v895_v29 = vunpack.c.l.bf16 %v966_v20  ;;  %v896_v30 = vunpack.c.h.bf16 %v966_v20  ;;  %v927_v32 = vunpack.c.l.bf16 %v974_v24 }
  0x16   :  { %v374_v31 = vpack.c.bf16 %v336_v19, %v335_v18  ;;  %v928_v33 = vunpack.c.h.bf16 %v974_v24  ;;  %v157_v34 = vmul.f32 %v1025_v5, %v831_v22  ;;  %v158_v35 = vmul.f32 %v1025_v5, %v832_v23 }
  0x17   :  { %v173_v36 = vmul.f32 %v1025_v5, %v863_v26  ;;  %v174_v37 = vmul.f32 %v1025_v5, %v864_v27  ;;  %v189_v38 = vmul.f32 %v1025_v5, %v895_v29  ;;  %v190_v39 = vmul.f32 %v1025_v5, %v896_v30 }
  0x18   :  { %v205_v40 = vmul.f32 %v1025_v5, %v927_v32  ;;  %v206_v41 = vmul.f32 %v1025_v5, %v928_v33  ;;  %v225_v42 = vadd.f32 %v1033_v7, %v157_v34  ;;  %v226_v43 = vadd.f32 %v1033_v7, %v158_v35  ;;  %v952_v32 = vld [vmem:[%s1611_s0 + $0x20] sm:$0xff]  }
  0x19   :  { %v241_v44 = vadd.f32 %v1033_v7, %v173_v36  ;;  %v242_v45 = vadd.f32 %v1033_v7, %v174_v37  ;;  %v257_v46 = vadd.f32 %v1033_v7, %v189_v38  ;;  %v258_v47 = vadd.f32 %v1033_v7, %v190_v39  ;;  %v960_v35 = vld [vmem:[%s1611_s0 + $0x60] sm:$0xff]  }
  0x1a   :  { %v273_v48 = vadd.f32 %v1033_v7, %v205_v40  ;;  %v274_v49 = vadd.f32 %v1033_v7, %v206_v41  ;;  %v289_v50 = vmax.f32 %v225_v42, 0.0  ;;  %v290_v51 = vmax.f32 %v226_v43, 0.0  ;;  %v968_v38 = vld [vmem:[%s1611_s0 + $0xa0] sm:$0xff]  }
  0x1b   :  { %v305_v52 = vmax.f32 %v241_v44, 0.0  ;;  %v306_v53 = vmax.f32 %v242_v45, 0.0  ;;  %v321_v55 = vmax.f32 %v257_v46, 0.0  ;;  %v322_v56 = vmax.f32 %v258_v47, 0.0  ;;  %v976_v42 = vld [vmem:[%s1611_s0 + $0xe0] sm:$0xff]  }
  0x1c   :  { %v337_v58 = vmax.f32 %v273_v48, 0.0  ;;  %v338_v59 = vmax.f32 %v274_v49, 0.0  ;;  %v351_v61 = vpack.c.bf16 %v290_v51, %v289_v50  ;;  %v835_v62 = vunpack.c.l.bf16 %v951_v54 }
  0x1d   :  { %v836_v63 = vunpack.c.h.bf16 %v951_v54  ;;  %v359_v1 = vpack.c.bf16 %v306_v53, %v305_v52  ;;  %v867_v2 = vunpack.c.l.bf16 %v959_v57  ;;  %v868_v3 = vunpack.c.h.bf16 %v959_v57 }
  0x1e   :  { %790 = vmatmul.msk.bf16.gmra.mxu0 %vm386_vm1, %v350_v21  ;;  %v367_v4 = vpack.c.bf16 %v322_v56, %v321_v55  ;;  %v899_v6 = vunpack.c.l.bf16 %v967_v60  ;;  %v900_v8 = vunpack.c.h.bf16 %v967_v60  ;;  %v375_v9 = vpack.c.bf16 %v338_v59, %v337_v58 }
  0x1f   :  { %798 = vmatmul.msk.bf16.gmra.mxu1 %vm386_vm1, %v358_v25  ;;  %v931_v10 = vunpack.c.l.bf16 %v975_v0  ;;  %v932_v11 = vunpack.c.h.bf16 %v975_v0  ;;  %v159_v12 = vmul.f32 %v1025_v5, %v835_v62  ;;  %v160_v13 = vmul.f32 %v1025_v5, %v836_v63 }
  0x20   :  { %v175_v14 = vmul.f32 %v1025_v5, %v867_v2  ;;  %v176_v15 = vmul.f32 %v1025_v5, %v868_v3  ;;  %v191_v16 = vmul.f32 %v1025_v5, %v899_v6  ;;  %v192_v17 = vmul.f32 %v1025_v5, %v900_v8 }
  0x21   :  { %806 = vmatmul.msk.bf16.gmra.mxu2 %vm386_vm1, %v366_v28  ;;  %v207_v18 = vmul.f32 %v1025_v5, %v931_v10  ;;  %v208_v19 = vmul.f32 %v1025_v5, %v932_v11  ;;  %v227_v20 = vadd.f32 %v1033_v7, %v159_v12  ;;  %v228_v21 = vadd.f32 %v1033_v7, %v160_v13  ;;  %v953_v10 = vld [vmem:[%s1611_s0 + $0x28] sm:$0xff]  }
  0x22   :  { %814 = vmatmul.msk.bf16.gmra.mxu3 %vm386_vm1, %v374_v31  ;;  %v243_v22 = vadd.f32 %v1033_v7, %v175_v14  ;;  %v244_v23 = vadd.f32 %v1033_v7, %v176_v15  ;;  %v259_v24 = vadd.f32 %v1033_v7, %v191_v16  ;;  %v260_v25 = vadd.f32 %v1033_v7, %v192_v17  ;;  %v961_v13 = vld [vmem:[%s1611_s0 + $0x68] sm:$0xff]  }
  0x23   :  { %v275_v26 = vadd.f32 %v1033_v7, %v207_v18  ;;  %v276_v27 = vadd.f32 %v1033_v7, %v208_v19  ;;  %v291_v28 = vmax.f32 %v227_v20, 0.0  ;;  %v292_v29 = vmax.f32 %v228_v21, 0.0  ;;  %v969_v16 = vld [vmem:[%s1611_s0 + $0xa8] sm:$0xff]  }
  0x24   :  { %v307_v30 = vmax.f32 %v243_v22, 0.0  ;;  %v308_v31 = vmax.f32 %v244_v23, 0.0  ;;  %v323_v33 = vmax.f32 %v259_v24, 0.0  ;;  %v324_v34 = vmax.f32 %v260_v25, 0.0  ;;  %v977_v20 = vld [vmem:[%s1611_s0 + $0xe8] sm:$0xff]  }
  0x25   :  { %v339_v36 = vmax.f32 %v275_v26, 0.0  ;;  %v340_v37 = vmax.f32 %v276_v27, 0.0  ;;  %v352_v39 = vpack.c.bf16 %v292_v29, %v291_v28  ;;  %v839_v40 = vunpack.c.l.bf16 %v952_v32 }
  0x26   :  { %v840_v41 = vunpack.c.h.bf16 %v952_v32  ;;  %v360_v43 = vpack.c.bf16 %v308_v31, %v307_v30  ;;  %v871_v44 = vunpack.c.l.bf16 %v960_v35  ;;  %v872_v45 = vunpack.c.h.bf16 %v960_v35 }
  0x27   :  { %v368_v46 = vpack.c.bf16 %v324_v34, %v323_v33  ;;  %v903_v47 = vunpack.c.l.bf16 %v968_v38  ;;  %v904_v48 = vunpack.c.h.bf16 %v968_v38  ;;  %v376_v49 = vpack.c.bf16 %v340_v37, %v339_v36 }
  0x28   :  { %v935_v50 = vunpack.c.l.bf16 %v976_v42  ;;  %v936_v51 = vunpack.c.h.bf16 %v976_v42  ;;  %v161_v52 = vmul.f32 %v1025_v5, %v839_v40  ;;  %v162_v53 = vmul.f32 %v1025_v5, %v840_v41 }
  0x29   :  { %v177_v54 = vmul.f32 %v1025_v5, %v871_v44  ;;  %v178_v55 = vmul.f32 %v1025_v5, %v872_v45  ;;  %v193_v56 = vmul.f32 %v1025_v5, %v903_v47  ;;  %v194_v57 = vmul.f32 %v1025_v5, %v904_v48 }
  0x2a   :  { %v209_v58 = vmul.f32 %v1025_v5, %v935_v50  ;;  %v210_v59 = vmul.f32 %v1025_v5, %v936_v51  ;;  %v229_v60 = vadd.f32 %v1033_v7, %v161_v52  ;;  %v843_v18 = vunpack.c.l.bf16 %v953_v10  ;;  %v954_v50 = vld [vmem:[%s1611_s0 + $0x30] sm:$0xff]  }
  0x2b   :  { %v245_v62 = vadd.f32 %v1033_v7, %v177_v54  ;;  %v246_v63 = vadd.f32 %v1033_v7, %v178_v55  ;;  %v261_v0 = vadd.f32 %v1033_v7, %v193_v56  ;;  %v844_v19 = vunpack.c.h.bf16 %v953_v10  ;;  %v970_v56 = vld [vmem:[%s1611_s0 + $0xb0] sm:$0xff]  }
  0x2c   :  { %v277_v2 = vadd.f32 %v1033_v7, %v209_v58  ;;  %v278_v3 = vadd.f32 %v1033_v7, %v210_v59  ;;  %v875_v22 = vunpack.c.l.bf16 %v961_v13  ;;  %v876_v23 = vunpack.c.h.bf16 %v961_v13 }
  0x2d   :  { %v309_v8 = vmax.f32 %v245_v62, 0.0  ;;  %v325_v11 = vmax.f32 %v261_v0, 0.0  ;;  %v907_v25 = vunpack.c.l.bf16 %v969_v16  ;;  %v908_v26 = vunpack.c.h.bf16 %v969_v16 }
  0x2e   :  { %791 = vmatmul.msk.bf16.gmra.mxu0 %vm386_vm1, %v351_v61  ;;  %v230_v61 = vadd.f32 %v1033_v7, %v162_v53  ;;  %v341_v14 = vmax.f32 %v277_v2, 0.0  ;;  %v342_v15 = vmax.f32 %v278_v3, 0.0  ;;  %v939_v28 = vunpack.c.l.bf16 %v977_v20  ;;  %v962_v53 = vld [vmem:[%s1611_s0 + $0x70] sm:$0xff]  }
  0x2f   :  { %799 = vmatmul.msk.bf16.gmra.mxu1 %vm386_vm1, %v359_v1  ;;  %v262_v1 = vadd.f32 %v1033_v7, %v194_v57  ;;  %v940_v29 = vunpack.c.h.bf16 %v977_v20  ;;  %v163_v30 = vmul.f32 %v1025_v5, %v843_v18  ;;  %v164_v31 = vmul.f32 %v1025_v5, %v844_v19 }
  0x30   :  { %v294_v6 = vmax.f32 %v230_v61, 0.0  ;;  %v377_v27 = vpack.c.bf16 %v342_v15, %v341_v14  ;;  %v179_v32 = vmul.f32 %v1025_v5, %v875_v22  ;;  %v180_v33 = vmul.f32 %v1025_v5, %v876_v23 }
  0x31   :  { %807 = vmatmul.msk.bf16.gmra.mxu2 %vm386_vm1, %v367_v4  ;;  %v293_v4 = vmax.f32 %v229_v60, 0.0  ;;  %v326_v12 = vmax.f32 %v262_v1, 0.0  ;;  %v195_v34 = vmul.f32 %v1025_v5, %v907_v25  ;;  %v196_v35 = vmul.f32 %v1025_v5, %v908_v26  ;;  %v978_v60 = vld [vmem:[%s1611_s0 + $0xf0] sm:$0xff]  }
  0x32   :  { %815 = vmatmul.msk.bf16.gmra.mxu3 %vm386_vm1, %v375_v9  ;;  %v310_v9 = vmax.f32 %v246_v63, 0.0  ;;  %v211_v36 = vmul.f32 %v1025_v5, %v939_v28  ;;  %v212_v37 = vmul.f32 %v1025_v5, %v940_v29  ;;  %v231_v38 = vadd.f32 %v1033_v7, %v163_v30  ;;  %v955_v28 = vld [vmem:[%s1611_s0 + $0x38] sm:$0xff]  }
  0x33   :  { %v353_v17 = vpack.c.bf16 %v294_v6, %v293_v4  ;;  %v369_v24 = vpack.c.bf16 %v326_v12, %v325_v11  ;;  %v247_v40 = vadd.f32 %v1033_v7, %v179_v32  ;;  %v248_v41 = vadd.f32 %v1033_v7, %v180_v33 }
  0x34   :  { %v361_v21 = vpack.c.bf16 %v310_v9, %v309_v8  ;;  %v263_v42 = vadd.f32 %v1033_v7, %v195_v34  ;;  %v279_v44 = vadd.f32 %v1033_v7, %v211_v36  ;;  %v280_v45 = vadd.f32 %v1033_v7, %v212_v37  ;;  %v971_v34 = vld [vmem:[%s1611_s0 + $0xb8] sm:$0xff]  }
  0x35   :  { %v311_v48 = vmax.f32 %v247_v40, 0.0  ;;  %v847_v58 = vunpack.c.l.bf16 %v954_v50  ;;  %v848_v59 = vunpack.c.h.bf16 %v954_v50  ;;  %v879_v62 = vunpack.c.l.bf16 %v962_v53 }
  0x36   :  { %v327_v51 = vmax.f32 %v263_v42, 0.0  ;;  %v343_v54 = vmax.f32 %v279_v44, 0.0  ;;  %v344_v55 = vmax.f32 %v280_v45, 0.0  ;;  %v880_v63 = vunpack.c.h.bf16 %v962_v53 }
  0x37   :  { %v911_v1 = vunpack.c.l.bf16 %v970_v56  ;;  %v912_v2 = vunpack.c.h.bf16 %v970_v56  ;;  %v943_v4 = vunpack.c.l.bf16 %v978_v60  ;;  %v944_v6 = vunpack.c.h.bf16 %v978_v60 }
  0x38   :  { %v378_v3 = vpack.c.bf16 %v344_v55, %v343_v54  ;;  %v165_v8 = vmul.f32 %v1025_v5, %v847_v58  ;;  %v166_v9 = vmul.f32 %v1025_v5, %v848_v59  ;;  %v181_v10 = vmul.f32 %v1025_v5, %v879_v62 }
  0x39   :  { %v182_v11 = vmul.f32 %v1025_v5, %v880_v63  ;;  %v197_v12 = vmul.f32 %v1025_v5, %v911_v1  ;;  %v198_v13 = vmul.f32 %v1025_v5, %v912_v2  ;;  %v213_v14 = vmul.f32 %v1025_v5, %v943_v4 }
  0x3a   :  { %v214_v15 = vmul.f32 %v1025_v5, %v944_v6  ;;  %v233_v16 = vadd.f32 %v1033_v7, %v165_v8  ;;  %v249_v18 = vadd.f32 %v1033_v7, %v181_v10  ;;  %v851_v36 = vunpack.c.l.bf16 %v955_v28 }
  0x3b   :  { %v250_v19 = vadd.f32 %v1033_v7, %v182_v11  ;;  %v265_v20 = vadd.f32 %v1033_v7, %v197_v12  ;;  %v281_v22 = vadd.f32 %v1033_v7, %v213_v14  ;;  %v852_v37 = vunpack.c.h.bf16 %v955_v28 }
  0x3c   :  { %v282_v23 = vadd.f32 %v1033_v7, %v214_v15  ;;  %v313_v26 = vmax.f32 %v249_v18, 0.0  ;;  %v916_v44 = vunpack.c.h.bf16 %v971_v34 }
  0x3d   :  { %v329_v29 = vmax.f32 %v265_v20, 0.0  ;;  %v345_v32 = vmax.f32 %v281_v22, 0.0 }
  0x3e   :  { %792 = vmatmul.msk.bf16.gmra.mxu0 %vm386_vm1, %v352_v39  ;;  %v232_v39 = vadd.f32 %v1033_v7, %v164_v31  ;;  %v963_v31 = vld [vmem:[%s1611_s0 + $0x78] sm:$0xff]   ;;  %v346_v33 = vmax.f32 %v282_v23, 0.0  ;;  %v200_v53 = vmul.f32 %v1025_v5, %v916_v44 }
  0x3f   :  { %800 = vmatmul.msk.bf16.gmra.mxu1 %vm386_vm1, %v360_v43  ;;  %v264_v43 = vadd.f32 %v1033_v7, %v196_v35  ;;  %v883_v40 = vunpack.c.l.bf16 %v963_v31 }
  0x40   :  { %v296_v47 = vmax.f32 %v232_v39, 0.0  ;;  %v379_v45 = vpack.c.bf16 %v346_v33, %v345_v32 }
  0x41   :  { %808 = vmatmul.msk.bf16.gmra.mxu2 %vm386_vm1, %v368_v46  ;;  %v295_v46 = vmax.f32 %v231_v38, 0.0  ;;  %v328_v52 = vmax.f32 %v264_v43, 0.0  ;;  %v979_v38 = vld [vmem:[%s1611_s0 + $0xf8] sm:$0xff]   ;;  %v915_v43 = vunpack.c.l.bf16 %v971_v34  ;;  %v183_v50 = vmul.f32 %v1025_v5, %v883_v40 }
  0x42   :  { %816 = vmatmul.msk.bf16.gmra.mxu3 %vm386_vm1, %v376_v49  ;;  %v312_v49 = vmax.f32 %v248_v41, 0.0  ;;  %v884_v41 = vunpack.c.h.bf16 %v963_v31 }
  0x43   :  { %v354_v57 = vpack.c.bf16 %v296_v47, %v295_v46  ;;  %v370_v0 = vpack.c.bf16 %v328_v52, %v327_v51  ;;  %v947_v46 = vunpack.c.l.bf16 %v979_v38  ;;  %v948_v47 = vunpack.c.h.bf16 %v979_v38 }
  0x44   :  { %v362_v61 = vpack.c.bf16 %v312_v49, %v311_v48  ;;  %v167_v48 = vmul.f32 %v1025_v5, %v851_v36  ;;  %v168_v49 = vmul.f32 %v1025_v5, %v852_v37  ;;  %v184_v51 = vmul.f32 %v1025_v5, %v884_v41 }
  0x45   :  { %v199_v52 = vmul.f32 %v1025_v5, %v915_v43  ;;  %v215_v54 = vmul.f32 %v1025_v5, %v947_v46  ;;  %v216_v55 = vmul.f32 %v1025_v5, %v948_v47  ;;  %v251_v58 = vadd.f32 %v1033_v7, %v183_v50 }
  0x46   :  { %v235_v56 = vadd.f32 %v1033_v7, %v167_v48  ;;  %v252_v59 = vadd.f32 %v1033_v7, %v184_v51 }
  0x47   :  { %v267_v60 = vadd.f32 %v1033_v7, %v199_v52  ;;  %v283_v62 = vadd.f32 %v1033_v7, %v215_v54  ;;  %v284_v63 = vadd.f32 %v1033_v7, %v216_v55  ;;  %v315_v2 = vmax.f32 %v251_v58, 0.0 }
  0x48   :  { %v316_v5 = vmax.f32 %v252_v59, 0.0 }
  0x49   :  { %v347_v6 = vmax.f32 %v283_v62, 0.0  ;;  %v348_v8 = vmax.f32 %v284_v63, 0.0 }
  0x4a   :  { %v364_v10 = vpack.c.bf16 %v316_v5, %v315_v2 }
  0x4b   :  { %v380_v12 = vpack.c.bf16 %v348_v8, %v347_v6 }
  0x4e   :  { %793 = vmatmul.msk.bf16.gmra.mxu0 %vm386_vm1, %v353_v17  ;;  %v234_v17 = vadd.f32 %v1033_v7, %v166_v9 }
  0x4f   :  { %801 = vmatmul.msk.bf16.gmra.mxu1 %vm386_vm1, %v361_v21  ;;  %v266_v21 = vadd.f32 %v1033_v7, %v198_v13 }
  0x50   :  { %v298_v25 = vmax.f32 %v234_v17, 0.0 }
  0x51   :  { %809 = vmatmul.msk.bf16.gmra.mxu2 %vm386_vm1, %v369_v24  ;;  %v297_v24 = vmax.f32 %v233_v16, 0.0  ;;  %v330_v30 = vmax.f32 %v266_v21, 0.0 }
  0x52   :  { %817 = vmatmul.msk.bf16.gmra.mxu3 %vm386_vm1, %v377_v27  ;;  %v314_v27 = vmax.f32 %v250_v19, 0.0 }
  0x53   :  { %v355_v35 = vpack.c.bf16 %v298_v25, %v297_v24  ;;  %v371_v42 = vpack.c.bf16 %v330_v30, %v329_v29 }
  0x54   :  { %v363_v39 = vpack.c.bf16 %v314_v27, %v313_v26 }
  0x5e   :  { %794 = vmatmul.msk.bf16.gmra.mxu0 %vm386_vm1, %v354_v57  ;;  %v236_v57 = vadd.f32 %v1033_v7, %v168_v49 }
  0x5f   :  { %802 = vmatmul.msk.bf16.gmra.mxu1 %vm386_vm1, %v362_v61  ;;  %v268_v61 = vadd.f32 %v1033_v7, %v200_v53  ;;  %v1288_v7 = vld [vmem:[%s1614_s4] ss:$0 sm:$0xff] }
  0x60   :  { %v300_v1 = vmax.f32 %v236_v57, 0.0 }
  0x61   :  { %810 = vmatmul.msk.bf16.gmra.mxu2 %vm386_vm1, %v370_v0  ;;  %v299_v0 = vmax.f32 %v235_v56, 0.0  ;;  %v332_v4 = vmax.f32 %v268_v61, 0.0 }
  0x62   :  { %818 = vmatmul.msk.bf16.gmra.mxu3 %vm386_vm1, %v378_v3  ;;  %v331_v3 = vmax.f32 %v267_v60, 0.0 }
  0x63   :  { %v356_v9 = vpack.c.bf16 %v300_v1, %v299_v0 }
  0x64   :  { %v372_v11 = vpack.c.bf16 %v332_v4, %v331_v3 }
  0x6e   :  { %795 = vmatmul.msk.bf16.gmra.mxu0 %vm386_vm1, %v355_v35 }
  0x6f   :  { %803 = vmatmul.msk.bf16.gmra.mxu1 %vm386_vm1, %v363_v39 }
  0x71   :  { %811 = vmatmul.msk.bf16.gmra.mxu2 %vm386_vm1, %v371_v42 }
  0x72   :  { %819 = vmatmul.msk.bf16.gmra.mxu3 %vm386_vm1, %v379_v45 }
  0x7e   :  { %796 = vmatmul.msk.bf16.gmra.mxu0 %vm386_vm1, %v356_v9 }
  0x7f   :  { %804 = vmatmul.msk.bf16.gmra.mxu1 %vm386_vm1, %v364_v10 }
  0x81   :  { %812 = vmatmul.msk.bf16.gmra.mxu2 %vm386_vm1, %v372_v11 }
  0x82   :  { %820 = vmatmul.msk.bf16.gmra.mxu3 %vm386_vm1, %v380_v12 }
  0x8b   :  { %v496_v13 = vpop.f32.mrf.mxu0 }
  0x8c   :  { %v497_v14 = vadd.f32 %v1288_v7, %v496_v13  ;;  %v536_v15 = vpop.f32.mrf.mxu1 }
  0x8d   :  { %v537_v16 = vadd.f32 %v1288_v7, %v536_v15 }
  0x8e   :  { %v656_v17 = vpack.c.bf16 %v497_v14, %v497_v14 }
  0x8f   :  { %v672_v18 = vpack.c.bf16 %v537_v16, %v537_v16 }
  0x90   :  { %721 = vst.msk [vmem:[%s1615_s5] sm:$0xf] %vm720_vm2, %v656_v17 }
  0x91   :  { %737 = vst.msk [vmem:[%s1615_s5 + $0x40] sm:$0xf] %vm720_vm2, %v672_v18 }
  0x93   :  { %v498_v20 = vpop.f32.mrf.mxu0 }
  0x94   :  { %v576_v19 = vpop.f32.mrf.mxu2  ;;  %v499_v23 = vadd.f32 %v1288_v7, %v498_v20  ;;  %v538_v24 = vpop.f32.mrf.mxu1 }
  0x95   :  { %v577_v21 = vadd.f32 %v1288_v7, %v576_v19  ;;  %v616_v22 = vpop.f32.mrf.mxu3  ;;  %v539_v26 = vadd.f32 %v1288_v7, %v538_v24 }
  0x96   :  { %v617_v25 = vadd.f32 %v1288_v7, %v616_v22  ;;  %v657_v28 = vpack.c.bf16 %v499_v23, %v499_v23 }
  0x97   :  { %v688_v27 = vpack.c.bf16 %v577_v21, %v577_v21  ;;  %v673_v30 = vpack.c.bf16 %v539_v26, %v539_v26 }
  0x98   :  { %v704_v29 = vpack.c.bf16 %v617_v25, %v617_v25  ;;  %722 = vst.msk [vmem:[%s1615_s5 + $0x4] sm:$0xf] %vm720_vm2, %v657_v28 }
  0x99   :  { %753 = vst.msk [vmem:[%s1615_s5 + $0x80] sm:$0xf] %vm720_vm2, %v688_v27 }
  0x9a   :  { %769 = vst.msk [vmem:[%s1615_s5 + $0xc0] sm:$0xf] %vm720_vm2, %v704_v29 }
  0x9b   :  { %738 = vst.msk [vmem:[%s1615_s5 + $0x44] sm:$0xf] %vm720_vm2, %v673_v30  ;;  %v501_v32 = vpop.f32.mrf.mxu0 }
  0x9c   :  { %v578_v31 = vpop.f32.mrf.mxu2  ;;  %v502_v35 = vadd.f32 %v1288_v7, %v501_v32  ;;  %v541_v36 = vpop.f32.mrf.mxu1 }
  0x9d   :  { %v579_v33 = vadd.f32 %v1288_v7, %v578_v31  ;;  %v618_v34 = vpop.f32.mrf.mxu3  ;;  %v542_v38 = vadd.f32 %v1288_v7, %v541_v36 }
  0x9e   :  { %v619_v37 = vadd.f32 %v1288_v7, %v618_v34  ;;  %v658_v40 = vpack.c.bf16 %v502_v35, %v502_v35 }
  0x9f   :  { %v689_v39 = vpack.c.bf16 %v579_v33, %v579_v33  ;;  %v674_v42 = vpack.c.bf16 %v542_v38, %v542_v38 }
  0xa0   :  { %v705_v41 = vpack.c.bf16 %v619_v37, %v619_v37  ;;  %723 = vst.msk [vmem:[%s1615_s5 + $0x8] sm:$0xf] %vm720_vm2, %v658_v40 }
  0xa1   :  { %754 = vst.msk [vmem:[%s1615_s5 + $0x84] sm:$0xf] %vm720_vm2, %v689_v39 }
  0xa2   :  { %770 = vst.msk [vmem:[%s1615_s5 + $0xc4] sm:$0xf] %vm720_vm2, %v705_v41 }
  0xa3   :  { %739 = vst.msk [vmem:[%s1615_s5 + $0x48] sm:$0xf] %vm720_vm2, %v674_v42  ;;  %v503_v44 = vpop.f32.mrf.mxu0 }
  0xa4   :  { %v581_v43 = vpop.f32.mrf.mxu2  ;;  %v504_v47 = vadd.f32 %v1288_v7, %v503_v44  ;;  %v543_v48 = vpop.f32.mrf.mxu1 }
  0xa5   :  { %v582_v45 = vadd.f32 %v1288_v7, %v581_v43  ;;  %v621_v46 = vpop.f32.mrf.mxu3  ;;  %v544_v50 = vadd.f32 %v1288_v7, %v543_v48 }
  0xa6   :  { %v622_v49 = vadd.f32 %v1288_v7, %v621_v46  ;;  %v659_v52 = vpack.c.bf16 %v504_v47, %v504_v47 }
  0xa7   :  { %v690_v51 = vpack.c.bf16 %v582_v45, %v582_v45  ;;  %v675_v54 = vpack.c.bf16 %v544_v50, %v544_v50 }
  0xa8   :  { %v706_v53 = vpack.c.bf16 %v622_v49, %v622_v49  ;;  %724 = vst.msk [vmem:[%s1615_s5 + $0xc] sm:$0xf] %vm720_vm2, %v659_v52 }
  0xa9   :  { %755 = vst.msk [vmem:[%s1615_s5 + $0x88] sm:$0xf] %vm720_vm2, %v690_v51 }
  0xaa   :  { %771 = vst.msk [vmem:[%s1615_s5 + $0xc8] sm:$0xf] %vm720_vm2, %v706_v53 }
  0xab   :  { %740 = vst.msk [vmem:[%s1615_s5 + $0x4c] sm:$0xf] %vm720_vm2, %v675_v54  ;;  %v506_v56 = vpop.f32.mrf.mxu0 }
  0xac   :  { %v583_v55 = vpop.f32.mrf.mxu2  ;;  %v507_v59 = vadd.f32 %v1288_v7, %v506_v56  ;;  %v546_v60 = vpop.f32.mrf.mxu1 }
  0xad   :  { %v584_v57 = vadd.f32 %v1288_v7, %v583_v55  ;;  %v623_v58 = vpop.f32.mrf.mxu3  ;;  %v547_v62 = vadd.f32 %v1288_v7, %v546_v60 }
  0xae   :  { %v624_v61 = vadd.f32 %v1288_v7, %v623_v58  ;;  %v660_v0 = vpack.c.bf16 %v507_v59, %v507_v59 }
  0xaf   :  { %v691_v63 = vpack.c.bf16 %v584_v57, %v584_v57  ;;  %v676_v2 = vpack.c.bf16 %v547_v62, %v547_v62 }
  0xb0   :  { %v707_v1 = vpack.c.bf16 %v624_v61, %v624_v61  ;;  %725 = vst.msk [vmem:[%s1615_s5 + $0x10] sm:$0xf] %vm720_vm2, %v660_v0 }
  0xb1   :  { %756 = vst.msk [vmem:[%s1615_s5 + $0x8c] sm:$0xf] %vm720_vm2, %v691_v63 }
  0xb2   :  { %772 = vst.msk [vmem:[%s1615_s5 + $0xcc] sm:$0xf] %vm720_vm2, %v707_v1 }
  0xb3   :  { %741 = vst.msk [vmem:[%s1615_s5 + $0x50] sm:$0xf] %vm720_vm2, %v676_v2  ;;  %v508_v3 = vpop.f32.mrf.mxu0 }
  0xb4   :  { %v586_v5 = vpop.f32.mrf.mxu2  ;;  %v509_v8 = vadd.f32 %v1288_v7, %v508_v3  ;;  %v548_v9 = vpop.f32.mrf.mxu1 }
  0xb5   :  { %v587_v4 = vadd.f32 %v1288_v7, %v586_v5  ;;  %v626_v6 = vpop.f32.mrf.mxu3  ;;  %v549_v11 = vadd.f32 %v1288_v7, %v548_v9 }
  0xb6   :  { %v627_v10 = vadd.f32 %v1288_v7, %v626_v6  ;;  %v661_v13 = vpack.c.bf16 %v509_v8, %v509_v8 }
  0xb7   :  { %v692_v12 = vpack.c.bf16 %v587_v4, %v587_v4  ;;  %v677_v15 = vpack.c.bf16 %v549_v11, %v549_v11 }
  0xb8   :  { %v708_v14 = vpack.c.bf16 %v627_v10, %v627_v10  ;;  %726 = vst.msk [vmem:[%s1615_s5 + $0x14] sm:$0xf] %vm720_vm2, %v661_v13 }
  0xb9   :  { %757 = vst.msk [vmem:[%s1615_s5 + $0x90] sm:$0xf] %vm720_vm2, %v692_v12 }
  0xba   :  { %773 = vst.msk [vmem:[%s1615_s5 + $0xd0] sm:$0xf] %vm720_vm2, %v708_v14 }
  0xbb   :  { %742 = vst.msk [vmem:[%s1615_s5 + $0x54] sm:$0xf] %vm720_vm2, %v677_v15  ;;  %v511_v17 = vpop.f32.mrf.mxu0 }
  0xbc   :  { %v588_v16 = vpop.f32.mrf.mxu2  ;;  %v512_v20 = vadd.f32 %v1288_v7, %v511_v17  ;;  %v551_v21 = vpop.f32.mrf.mxu1 }
  0xbd   :  { %v589_v18 = vadd.f32 %v1288_v7, %v588_v16  ;;  %v628_v19 = vpop.f32.mrf.mxu3  ;;  %v552_v23 = vadd.f32 %v1288_v7, %v551_v21 }
  0xbe   :  { %v629_v22 = vadd.f32 %v1288_v7, %v628_v19  ;;  %v662_v25 = vpack.c.bf16 %v512_v20, %v512_v20 }
  0xbf   :  { %v693_v24 = vpack.c.bf16 %v589_v18, %v589_v18  ;;  %v678_v27 = vpack.c.bf16 %v552_v23, %v552_v23 }
  0xc0   :  { %v709_v26 = vpack.c.bf16 %v629_v22, %v629_v22  ;;  %727 = vst.msk [vmem:[%s1615_s5 + $0x18] sm:$0xf] %vm720_vm2, %v662_v25 }
  0xc1   :  { %758 = vst.msk [vmem:[%s1615_s5 + $0x94] sm:$0xf] %vm720_vm2, %v693_v24 }
  0xc2   :  { %774 = vst.msk [vmem:[%s1615_s5 + $0xd4] sm:$0xf] %vm720_vm2, %v709_v26 }
  0xc3   :  { %743 = vst.msk [vmem:[%s1615_s5 + $0x58] sm:$0xf] %vm720_vm2, %v678_v27  ;;  %v513_v29 = vpop.f32.mrf.mxu0 }
  0xc4   :  { %v591_v28 = vpop.f32.mrf.mxu2  ;;  %v514_v32 = vadd.f32 %v1288_v7, %v513_v29  ;;  %v553_v33 = vpop.f32.mrf.mxu1 }
  0xc5   :  { %v592_v30 = vadd.f32 %v1288_v7, %v591_v28  ;;  %v631_v31 = vpop.f32.mrf.mxu3  ;;  %v554_v35 = vadd.f32 %v1288_v7, %v553_v33 }
  0xc6   :  { %v632_v34 = vadd.f32 %v1288_v7, %v631_v31  ;;  %v663_v37 = vpack.c.bf16 %v514_v32, %v514_v32 }
  0xc7   :  { %v694_v36 = vpack.c.bf16 %v592_v30, %v592_v30  ;;  %v679_v39 = vpack.c.bf16 %v554_v35, %v554_v35 }
  0xc8   :  { %v710_v38 = vpack.c.bf16 %v632_v34, %v632_v34  ;;  %728 = vst.msk [vmem:[%s1615_s5 + $0x1c] sm:$0xf] %vm720_vm2, %v663_v37 }
  0xc9   :  { %759 = vst.msk [vmem:[%s1615_s5 + $0x98] sm:$0xf] %vm720_vm2, %v694_v36 }
  0xca   :  { %775 = vst.msk [vmem:[%s1615_s5 + $0xd8] sm:$0xf] %vm720_vm2, %v710_v38 }
  0xcb   :  { %744 = vst.msk [vmem:[%s1615_s5 + $0x5c] sm:$0xf] %vm720_vm2, %v679_v39  ;;  %v516_v41 = vpop.f32.mrf.mxu0 }
  0xcc   :  { %v593_v40 = vpop.f32.mrf.mxu2  ;;  %v517_v44 = vadd.f32 %v1288_v7, %v516_v41  ;;  %v556_v45 = vpop.f32.mrf.mxu1 }
  0xcd   :  { %v594_v42 = vadd.f32 %v1288_v7, %v593_v40  ;;  %v633_v43 = vpop.f32.mrf.mxu3  ;;  %v557_v47 = vadd.f32 %v1288_v7, %v556_v45 }
  0xce   :  { %v634_v46 = vadd.f32 %v1288_v7, %v633_v43  ;;  %v664_v49 = vpack.c.bf16 %v517_v44, %v517_v44 }
  0xcf   :  { %v695_v48 = vpack.c.bf16 %v594_v42, %v594_v42  ;;  %v680_v51 = vpack.c.bf16 %v557_v47, %v557_v47 }
  0xd0   :  { %v711_v50 = vpack.c.bf16 %v634_v46, %v634_v46  ;;  %729 = vst.msk [vmem:[%s1615_s5 + $0x20] sm:$0xf] %vm720_vm2, %v664_v49 }
  0xd1   :  { %760 = vst.msk [vmem:[%s1615_s5 + $0x9c] sm:$0xf] %vm720_vm2, %v695_v48 }
  0xd2   :  { %776 = vst.msk [vmem:[%s1615_s5 + $0xdc] sm:$0xf] %vm720_vm2, %v711_v50 }
  0xd3   :  { %745 = vst.msk [vmem:[%s1615_s5 + $0x60] sm:$0xf] %vm720_vm2, %v680_v51  ;;  %v518_v53 = vpop.f32.mrf.mxu0 }
  0xd4   :  { %v596_v52 = vpop.f32.mrf.mxu2  ;;  %v519_v56 = vadd.f32 %v1288_v7, %v518_v53  ;;  %v558_v57 = vpop.f32.mrf.mxu1 }
  0xd5   :  { %v597_v54 = vadd.f32 %v1288_v7, %v596_v52  ;;  %v636_v55 = vpop.f32.mrf.mxu3  ;;  %v559_v59 = vadd.f32 %v1288_v7, %v558_v57 }
  0xd6   :  { %v637_v58 = vadd.f32 %v1288_v7, %v636_v55  ;;  %v665_v61 = vpack.c.bf16 %v519_v56, %v519_v56 }
  0xd7   :  { %v696_v60 = vpack.c.bf16 %v597_v54, %v597_v54  ;;  %v681_v63 = vpack.c.bf16 %v559_v59, %v559_v59 }
  0xd8   :  { %v712_v62 = vpack.c.bf16 %v637_v58, %v637_v58  ;;  %730 = vst.msk [vmem:[%s1615_s5 + $0x24] sm:$0xf] %vm720_vm2, %v665_v61 }
  0xd9   :  { %761 = vst.msk [vmem:[%s1615_s5 + $0xa0] sm:$0xf] %vm720_vm2, %v696_v60 }
  0xda   :  { %777 = vst.msk [vmem:[%s1615_s5 + $0xe0] sm:$0xf] %vm720_vm2, %v712_v62 }
  0xdb   :  { %746 = vst.msk [vmem:[%s1615_s5 + $0x64] sm:$0xf] %vm720_vm2, %v681_v63  ;;  %v521_v1 = vpop.f32.mrf.mxu0 }
  0xdc   :  { %v598_v0 = vpop.f32.mrf.mxu2  ;;  %v522_v3 = vadd.f32 %v1288_v7, %v521_v1  ;;  %v561_v4 = vpop.f32.mrf.mxu1 }
  0xdd   :  { %v599_v2 = vadd.f32 %v1288_v7, %v598_v0  ;;  %v638_v5 = vpop.f32.mrf.mxu3  ;;  %v562_v8 = vadd.f32 %v1288_v7, %v561_v4 }
  0xde   :  { %v639_v6 = vadd.f32 %v1288_v7, %v638_v5  ;;  %v666_v10 = vpack.c.bf16 %v522_v3, %v522_v3 }
  0xdf   :  { %v697_v9 = vpack.c.bf16 %v599_v2, %v599_v2  ;;  %v682_v12 = vpack.c.bf16 %v562_v8, %v562_v8 }
  0xe0   :  { %v713_v11 = vpack.c.bf16 %v639_v6, %v639_v6  ;;  %731 = vst.msk [vmem:[%s1615_s5 + $0x28] sm:$0xf] %vm720_vm2, %v666_v10 }
  0xe1   :  { %762 = vst.msk [vmem:[%s1615_s5 + $0xa4] sm:$0xf] %vm720_vm2, %v697_v9 }
  0xe2   :  { %778 = vst.msk [vmem:[%s1615_s5 + $0xe4] sm:$0xf] %vm720_vm2, %v713_v11 }
  0xe3   :  { %747 = vst.msk [vmem:[%s1615_s5 + $0x68] sm:$0xf] %vm720_vm2, %v682_v12  ;;  %v523_v14 = vpop.f32.mrf.mxu0 }
  0xe4   :  { %v601_v13 = vpop.f32.mrf.mxu2  ;;  %v524_v17 = vadd.f32 %v1288_v7, %v523_v14  ;;  %v563_v18 = vpop.f32.mrf.mxu1 }
  0xe5   :  { %v602_v15 = vadd.f32 %v1288_v7, %v601_v13  ;;  %v641_v16 = vpop.f32.mrf.mxu3  ;;  %v564_v20 = vadd.f32 %v1288_v7, %v563_v18 }
  0xe6   :  { %v642_v19 = vadd.f32 %v1288_v7, %v641_v16  ;;  %v667_v22 = vpack.c.bf16 %v524_v17, %v524_v17 }
  0xe7   :  { %v698_v21 = vpack.c.bf16 %v602_v15, %v602_v15  ;;  %v683_v24 = vpack.c.bf16 %v564_v20, %v564_v20 }
  0xe8   :  { %v714_v23 = vpack.c.bf16 %v642_v19, %v642_v19  ;;  %732 = vst.msk [vmem:[%s1615_s5 + $0x2c] sm:$0xf] %vm720_vm2, %v667_v22 }
  0xe9   :  { %763 = vst.msk [vmem:[%s1615_s5 + $0xa8] sm:$0xf] %vm720_vm2, %v698_v21 }
  0xea   :  { %779 = vst.msk [vmem:[%s1615_s5 + $0xe8] sm:$0xf] %vm720_vm2, %v714_v23 }
  0xeb   :  { %748 = vst.msk [vmem:[%s1615_s5 + $0x6c] sm:$0xf] %vm720_vm2, %v683_v24  ;;  %v526_v26 = vpop.f32.mrf.mxu0 }
  0xec   :  { %v603_v25 = vpop.f32.mrf.mxu2  ;;  %v527_v29 = vadd.f32 %v1288_v7, %v526_v26  ;;  %v566_v30 = vpop.f32.mrf.mxu1 }
  0xed   :  { %v604_v27 = vadd.f32 %v1288_v7, %v603_v25  ;;  %v643_v28 = vpop.f32.mrf.mxu3  ;;  %v567_v32 = vadd.f32 %v1288_v7, %v566_v30 }
  0xee   :  { %v644_v31 = vadd.f32 %v1288_v7, %v643_v28  ;;  %v668_v34 = vpack.c.bf16 %v527_v29, %v527_v29 }
  0xef   :  { %v699_v33 = vpack.c.bf16 %v604_v27, %v604_v27  ;;  %v684_v36 = vpack.c.bf16 %v567_v32, %v567_v32 }
  0xf0   :  { %v715_v35 = vpack.c.bf16 %v644_v31, %v644_v31  ;;  %733 = vst.msk [vmem:[%s1615_s5 + $0x30] sm:$0xf] %vm720_vm2, %v668_v34 }
  0xf1   :  { %764 = vst.msk [vmem:[%s1615_s5 + $0xac] sm:$0xf] %vm720_vm2, %v699_v33 }
  0xf2   :  { %780 = vst.msk [vmem:[%s1615_s5 + $0xec] sm:$0xf] %vm720_vm2, %v715_v35 }
  0xf3   :  { %749 = vst.msk [vmem:[%s1615_s5 + $0x70] sm:$0xf] %vm720_vm2, %v684_v36  ;;  %v528_v38 = vpop.f32.mrf.mxu0 }
  0xf4   :  { %v606_v37 = vpop.f32.mrf.mxu2  ;;  %v529_v41 = vadd.f32 %v1288_v7, %v528_v38  ;;  %v568_v42 = vpop.f32.mrf.mxu1 }
  0xf5   :  { %v607_v39 = vadd.f32 %v1288_v7, %v606_v37  ;;  %v646_v40 = vpop.f32.mrf.mxu3  ;;  %v569_v44 = vadd.f32 %v1288_v7, %v568_v42 }
  0xf6   :  { %v647_v43 = vadd.f32 %v1288_v7, %v646_v40  ;;  %v669_v46 = vpack.c.bf16 %v529_v41, %v529_v41 }
  0xf7   :  { %v700_v45 = vpack.c.bf16 %v607_v39, %v607_v39  ;;  %v685_v48 = vpack.c.bf16 %v569_v44, %v569_v44 }
  0xf8   :  { %v716_v47 = vpack.c.bf16 %v647_v43, %v647_v43  ;;  %734 = vst.msk [vmem:[%s1615_s5 + $0x34] sm:$0xf] %vm720_vm2, %v669_v46 }
  0xf9   :  { %765 = vst.msk [vmem:[%s1615_s5 + $0xb0] sm:$0xf] %vm720_vm2, %v700_v45 }
  0xfa   :  { %781 = vst.msk [vmem:[%s1615_s5 + $0xf0] sm:$0xf] %vm720_vm2, %v716_v47 }
  0xfb   :  { %750 = vst.msk [vmem:[%s1615_s5 + $0x74] sm:$0xf] %vm720_vm2, %v685_v48  ;;  %v531_v50 = vpop.f32.mrf.mxu0 }
  0xfc   :  { %v608_v49 = vpop.f32.mrf.mxu2  ;;  %v532_v53 = vadd.f32 %v1288_v7, %v531_v50  ;;  %v571_v54 = vpop.f32.mrf.mxu1 }
  0xfd   :  { %v609_v51 = vadd.f32 %v1288_v7, %v608_v49  ;;  %v648_v52 = vpop.f32.mrf.mxu3  ;;  %v572_v56 = vadd.f32 %v1288_v7, %v571_v54 }
  0xfe   :  { %v649_v55 = vadd.f32 %v1288_v7, %v648_v52  ;;  %v670_v58 = vpack.c.bf16 %v532_v53, %v532_v53 }
  0xff   :  { %v701_v57 = vpack.c.bf16 %v609_v51, %v609_v51  ;;  %v686_v60 = vpack.c.bf16 %v572_v56, %v572_v56 }
 0x100   :  { %v717_v59 = vpack.c.bf16 %v649_v55, %v649_v55  ;;  %735 = vst.msk [vmem:[%s1615_s5 + $0x38] sm:$0xf] %vm720_vm2, %v670_v58 }
 0x101   :  { %766 = vst.msk [vmem:[%s1615_s5 + $0xb4] sm:$0xf] %vm720_vm2, %v701_v57 }
 0x102   :  { %782 = vst.msk [vmem:[%s1615_s5 + $0xf4] sm:$0xf] %vm720_vm2, %v717_v59 }
 0x103   :  { %751 = vst.msk [vmem:[%s1615_s5 + $0x78] sm:$0xf] %vm720_vm2, %v686_v60  ;;  %v533_v62 = vpop.f32.mrf.mxu0 }
 0x104   :  { %v611_v61 = vpop.f32.mrf.mxu2  ;;  %v534_v1 = vadd.f32 %v1288_v7, %v533_v62  ;;  %v573_v2 = vpop.f32.mrf.mxu1 }
 0x105   :  { %v612_v63 = vadd.f32 %v1288_v7, %v611_v61  ;;  %v651_v0 = vpop.f32.mrf.mxu3  ;;  %v574_v3 = vadd.f32 %v1288_v7, %v573_v2 }
 0x106   :  { %v652_v5 = vadd.f32 %v1288_v7, %v651_v0  ;;  %v671_v6 = vpack.c.bf16 %v534_v1, %v534_v1 }
 0x107   :  { %v702_v4 = vpack.c.bf16 %v612_v63, %v612_v63  ;;  %v687_v9 = vpack.c.bf16 %v574_v3, %v574_v3 }
 0x108   :  { %v718_v8 = vpack.c.bf16 %v652_v5, %v652_v5  ;;  %736 = vst.msk [vmem:[%s1615_s5 + $0x3c] sm:$0xf] %vm720_vm2, %v671_v6 }
 0x109   :  { %767 = vst.msk [vmem:[%s1615_s5 + $0xb8] sm:$0xf] %vm720_vm2, %v702_v4 }
 0x10a   :  { %783 = vst.msk [vmem:[%s1615_s5 + $0xf8] sm:$0xf] %vm720_vm2, %v718_v8 }
 0x10b   :  { %752 = vst.msk [vmem:[%s1615_s5 + $0x7c] sm:$0xf] %vm720_vm2, %v687_v9 }
 0x10c   :  { %v613_v10 = vpop.f32.mrf.mxu2 }
 0x10d   :  { %v614_v11 = vadd.f32 %v1288_v7, %v613_v10  ;;  %v653_v12 = vpop.f32.mrf.mxu3 }
 0x10e   :  { %v654_v13 = vadd.f32 %v1288_v7, %v653_v12 }
 0x10f   :  { %v703_v14 = vpack.c.bf16 %v614_v11, %v614_v11 }
 0x110   :  { %v719_v15 = vpack.c.bf16 %v654_v13, %v654_v13 }
 0x111   :  { %768 = vst.msk [vmem:[%s1615_s5 + $0xbc] sm:$0xf] %vm720_vm2, %v703_v14 }
 0x112   :  { %784 = vst.msk [vmem:[%s1615_s5 + $0xfc] sm:$0xf] %vm720_vm2, %v719_v15 }

// kernel: prm_forward.19
= control target key start
LH: loop header
LB: loop body
LE: loop exit
PB: predicated region body
PF: predicated region fallthrough
CT: control target
= control target key end

     0   :  { %vm340_vm0 = vcmask 1043456   ;;  %vm243_vm1 = vcmask 64512   ;;  %vm713_vm2 = vcmask 60416   ;;  %s1529_s1 = inlined_call_operand.vmem [shape: bf16[8,8], index: 1, kind: input, shape index: {}]   ;;  %s1530_s0 = inlined_call_operand.vmem [shape: bf16[512,8], index: 0, kind: input, shape index: {}]   ;;  %s1531_s2 = inlined_call_operand.vmem [shape: f32[1,8], index: 2, kind: input, shape index: {}]   ;;  %s1532_s3 = inlined_call_operand.vmem [shape: f32[1,8], index: 3, kind: input, shape index: {}]   ;;  %s1533_s4 = inlined_call_operand.vmem [shape: bf16[512,8], index: 4, kind: output, shape index: {}]  }
   0x1   :  { %v82_v0 = vld [vmem:[%s1529_s1] sm:$0xf]  ;;  %v943_v6 = vld [vmem:[%s1530_s0 + $0x8] sm:$0xff]  ;;  %v944_v10 = vld [vmem:[%s1530_s0 + $0x10] sm:$0xff] }
   0x2   :  { %v342_v1 = vsel %vm340_vm0, %v82_v0, 0  ;;  %v942_v2 = vld [vmem:[%s1530_s0] sm:$0xff]  ;;  %v951_v7 = vld [vmem:[%s1530_s0 + $0x48] sm:$0xff]  ;;  %v952_v11 = vld [vmem:[%s1530_s0 + $0x50] sm:$0xff] }
   0x3   :  { %v950_v3 = vld [vmem:[%s1530_s0 + $0x40] sm:$0xff]  ;;  %351 = vmatpush.bf16.msra.mxu0 %v342_v1  ;;  %974 = vmatpush.bf16.msra.mxu1 %v342_v1  ;;  %v959_v8 = vld [vmem:[%s1530_s0 + $0x88] sm:$0xff]  ;;  %v960_v12 = vld [vmem:[%s1530_s0 + $0x90] sm:$0xff] }
   0x4   :  { %v958_v4 = vld [vmem:[%s1530_s0 + $0x80] sm:$0xff]  ;;  %975 = vmatpush.bf16.msra.mxu2 %v342_v1  ;;  %976 = vmatpush.bf16.msra.mxu3 %v342_v1  ;;  %v967_v9 = vld [vmem:[%s1530_s0 + $0xc8] sm:$0xff]  ;;  %v968_v13 = vld [vmem:[%s1530_s0 + $0xd0] sm:$0xff] }
   0x5   :  { %v966_v5 = vld [vmem:[%s1530_s0 + $0xc0] sm:$0xff]  ;;  %v945_v14 = vld [vmem:[%s1530_s0 + $0x18] sm:$0xff]  ;;  %v947_v22 = vld [vmem:[%s1530_s0 + $0x28] sm:$0xff] }
   0x6   :  { %910 = vmatmul.msk.bf16.vlgmr.msra.gmra.mxu0 %vm243_vm1, %v942_v2  ;;  %918 = vmatmul.msk.bf16.vlgmr.msra.gmra.mxu1 %vm243_vm1, %v950_v3  ;;  %v953_v15 = vld [vmem:[%s1530_s0 + $0x58] sm:$0xff]  ;;  %v946_v18 = vld [vmem:[%s1530_s0 + $0x20] sm:$0xff]  ;;  %v955_v23 = vld [vmem:[%s1530_s0 + $0x68] sm:$0xff] }
   0x7   :  { %926 = vmatmul.msk.bf16.vlgmr.msra.gmra.mxu2 %vm243_vm1, %v958_v4  ;;  %934 = vmatmul.msk.bf16.vlgmr.msra.gmra.mxu3 %vm243_vm1, %v966_v5  ;;  %v961_v16 = vld [vmem:[%s1530_s0 + $0x98] sm:$0xff]  ;;  %v954_v19 = vld [vmem:[%s1530_s0 + $0x60] sm:$0xff]  ;;  %v963_v24 = vld [vmem:[%s1530_s0 + $0xa8] sm:$0xff] }
   0x8   :  { %v969_v17 = vld [vmem:[%s1530_s0 + $0xd8] sm:$0xff]  ;;  %v962_v20 = vld [vmem:[%s1530_s0 + $0xa0] sm:$0xff]  ;;  %v971_v25 = vld [vmem:[%s1530_s0 + $0xe8] sm:$0xff] }
   0x9   :  { %v970_v21 = vld [vmem:[%s1530_s0 + $0xe0] sm:$0xff]  ;;  %v948_v26 = vld [vmem:[%s1530_s0 + $0x30] sm:$0xff]  ;;  %v949_v30 = vld [vmem:[%s1530_s0 + $0x38] sm:$0xff] }
   0xa   :  { %v956_v27 = vld [vmem:[%s1530_s0 + $0x70] sm:$0xff]  ;;  %v957_v31 = vld [vmem:[%s1530_s0 + $0x78] sm:$0xff]  ;;  %v1138_v34 = vld [vmem:[%s1531_s2] ss:$0 sm:$0xff] }
   0xb   :  { %v964_v28 = vld [vmem:[%s1530_s0 + $0xb0] sm:$0xff]  ;;  %v965_v32 = vld [vmem:[%s1530_s0 + $0xb8] sm:$0xff]  ;;  %v1143_v35 = vld [vmem:[%s1532_s3] ss:$0 sm:$0xff] }
   0xc   :  { %v972_v29 = vld [vmem:[%s1530_s0 + $0xf0] sm:$0xff]  ;;  %v973_v33 = vld [vmem:[%s1530_s0 + $0xf8] sm:$0xff] }
  0x16   :  { %911 = vmatmul.msk.bf16.gmra.mxu0 %vm243_vm1, %v943_v6  ;;  %919 = vmatmul.msk.bf16.gmra.mxu1 %vm243_vm1, %v951_v7 }
  0x17   :  { %927 = vmatmul.msk.bf16.gmra.mxu2 %vm243_vm1, %v959_v8  ;;  %935 = vmatmul.msk.bf16.gmra.mxu3 %vm243_vm1, %v967_v9 }
  0x26   :  { %912 = vmatmul.msk.bf16.gmra.mxu0 %vm243_vm1, %v944_v10  ;;  %920 = vmatmul.msk.bf16.gmra.mxu1 %vm243_vm1, %v952_v11 }
  0x27   :  { %928 = vmatmul.msk.bf16.gmra.mxu2 %vm243_vm1, %v960_v12  ;;  %936 = vmatmul.msk.bf16.gmra.mxu3 %vm243_vm1, %v968_v13 }
  0x36   :  { %913 = vmatmul.msk.bf16.gmra.mxu0 %vm243_vm1, %v945_v14  ;;  %921 = vmatmul.msk.bf16.gmra.mxu1 %vm243_vm1, %v953_v15 }
  0x37   :  { %929 = vmatmul.msk.bf16.gmra.mxu2 %vm243_vm1, %v961_v16  ;;  %937 = vmatmul.msk.bf16.gmra.mxu3 %vm243_vm1, %v969_v17 }
  0x46   :  { %914 = vmatmul.msk.bf16.gmra.mxu0 %vm243_vm1, %v946_v18  ;;  %922 = vmatmul.msk.bf16.gmra.mxu1 %vm243_vm1, %v954_v19 }
  0x47   :  { %930 = vmatmul.msk.bf16.gmra.mxu2 %vm243_vm1, %v962_v20  ;;  %938 = vmatmul.msk.bf16.gmra.mxu3 %vm243_vm1, %v970_v21 }
  0x56   :  { %915 = vmatmul.msk.bf16.gmra.mxu0 %vm243_vm1, %v947_v22  ;;  %923 = vmatmul.msk.bf16.gmra.mxu1 %vm243_vm1, %v955_v23 }
  0x57   :  { %931 = vmatmul.msk.bf16.gmra.mxu2 %vm243_vm1, %v963_v24  ;;  %939 = vmatmul.msk.bf16.gmra.mxu3 %vm243_vm1, %v971_v25 }
  0x66   :  { %916 = vmatmul.msk.bf16.gmra.mxu0 %vm243_vm1, %v948_v26  ;;  %924 = vmatmul.msk.bf16.gmra.mxu1 %vm243_vm1, %v956_v27 }
  0x67   :  { %932 = vmatmul.msk.bf16.gmra.mxu2 %vm243_vm1, %v964_v28  ;;  %940 = vmatmul.msk.bf16.gmra.mxu3 %vm243_vm1, %v972_v29 }
  0x76   :  { %917 = vmatmul.msk.bf16.gmra.mxu0 %vm243_vm1, %v949_v30  ;;  %925 = vmatmul.msk.bf16.gmra.mxu1 %vm243_vm1, %v957_v31 }
  0x77   :  { %933 = vmatmul.msk.bf16.gmra.mxu2 %vm243_vm1, %v965_v32  ;;  %941 = vmatmul.msk.bf16.gmra.mxu3 %vm243_vm1, %v973_v33 }
  0x83   :  { %v353_v36 = vpop.f32.mrf.mxu0  ;;  %v393_v37 = vpop.f32.mrf.mxu1 }
  0x84   :  { %v517_v38 = vmul.f32 %v1138_v34, %v353_v36  ;;  %v533_v39 = vmul.f32 %v1138_v34, %v393_v37 }
  0x86   :  { %v585_v40 = vadd.f32 %v1143_v35, %v517_v38  ;;  %v601_v41 = vadd.f32 %v1143_v35, %v533_v39 }
  0x88   :  { %v649_v42 = vpack.c.bf16 %v585_v40, %v585_v40  ;;  %v665_v43 = vpack.c.bf16 %v601_v41, %v601_v41 }
  0x8a   :  { %714 = vst.msk [vmem:[%s1533_s4] sm:$0xf] %vm713_vm2, %v649_v42  ;;  %v433_v44 = vpop.f32.mrf.mxu2  ;;  %v473_v45 = vpop.f32.mrf.mxu3 }
  0x8b   :  { %730 = vst.msk [vmem:[%s1533_s4 + $0x40] sm:$0xf] %vm713_vm2, %v665_v43  ;;  %v549_v46 = vmul.f32 %v1138_v34, %v433_v44  ;;  %v565_v47 = vmul.f32 %v1138_v34, %v473_v45  ;;  %v355_v48 = vpop.f32.mrf.mxu0  ;;  %v395_v49 = vpop.f32.mrf.mxu1 }
  0x8c   :  { %v518_v50 = vmul.f32 %v1138_v34, %v355_v48  ;;  %v534_v51 = vmul.f32 %v1138_v34, %v395_v49 }
  0x8d   :  { %v617_v52 = vadd.f32 %v1143_v35, %v549_v46  ;;  %v633_v53 = vadd.f32 %v1143_v35, %v565_v47 }
  0x8e   :  { %v586_v54 = vadd.f32 %v1143_v35, %v518_v50  ;;  %v602_v55 = vadd.f32 %v1143_v35, %v534_v51 }
  0x8f   :  { %v681_v56 = vpack.c.bf16 %v617_v52, %v617_v52  ;;  %v697_v57 = vpack.c.bf16 %v633_v53, %v633_v53 }
  0x90   :  { %v650_v58 = vpack.c.bf16 %v586_v54, %v586_v54  ;;  %v666_v59 = vpack.c.bf16 %v602_v55, %v602_v55 }
  0x91   :  { %746 = vst.msk [vmem:[%s1533_s4 + $0x80] sm:$0xf] %vm713_vm2, %v681_v56 }
  0x92   :  { %762 = vst.msk [vmem:[%s1533_s4 + $0xc0] sm:$0xf] %vm713_vm2, %v697_v57  ;;  %v435_v60 = vpop.f32.mrf.mxu2  ;;  %v475_v61 = vpop.f32.mrf.mxu3 }
  0x93   :  { %715 = vst.msk [vmem:[%s1533_s4 + $0x4] sm:$0xf] %vm713_vm2, %v650_v58  ;;  %v550_v62 = vmul.f32 %v1138_v34, %v435_v60  ;;  %v566_v63 = vmul.f32 %v1138_v34, %v475_v61  ;;  %v358_v0 = vpop.f32.mrf.mxu0  ;;  %v398_v1 = vpop.f32.mrf.mxu1 }
  0x94   :  { %731 = vst.msk [vmem:[%s1533_s4 + $0x44] sm:$0xf] %vm713_vm2, %v666_v59  ;;  %v519_v2 = vmul.f32 %v1138_v34, %v358_v0  ;;  %v535_v3 = vmul.f32 %v1138_v34, %v398_v1 }
  0x95   :  { %v618_v4 = vadd.f32 %v1143_v35, %v550_v62  ;;  %v634_v5 = vadd.f32 %v1143_v35, %v566_v63 }
  0x96   :  { %v587_v6 = vadd.f32 %v1143_v35, %v519_v2  ;;  %v603_v7 = vadd.f32 %v1143_v35, %v535_v3 }
  0x97   :  { %v682_v8 = vpack.c.bf16 %v618_v4, %v618_v4  ;;  %v698_v9 = vpack.c.bf16 %v634_v5, %v634_v5 }
  0x98   :  { %v651_v10 = vpack.c.bf16 %v587_v6, %v587_v6  ;;  %v667_v11 = vpack.c.bf16 %v603_v7, %v603_v7 }
  0x99   :  { %747 = vst.msk [vmem:[%s1533_s4 + $0x84] sm:$0xf] %vm713_vm2, %v682_v8 }
  0x9a   :  { %763 = vst.msk [vmem:[%s1533_s4 + $0xc4] sm:$0xf] %vm713_vm2, %v698_v9  ;;  %v438_v12 = vpop.f32.mrf.mxu2  ;;  %v478_v13 = vpop.f32.mrf.mxu3 }
  0x9b   :  { %716 = vst.msk [vmem:[%s1533_s4 + $0x8] sm:$0xf] %vm713_vm2, %v651_v10  ;;  %v551_v14 = vmul.f32 %v1138_v34, %v438_v12  ;;  %v567_v15 = vmul.f32 %v1138_v34, %v478_v13  ;;  %v360_v16 = vpop.f32.mrf.mxu0  ;;  %v400_v17 = vpop.f32.mrf.mxu1 }
  0x9c   :  { %732 = vst.msk [vmem:[%s1533_s4 + $0x48] sm:$0xf] %vm713_vm2, %v667_v11  ;;  %v520_v18 = vmul.f32 %v1138_v34, %v360_v16  ;;  %v536_v19 = vmul.f32 %v1138_v34, %v400_v17 }
  0x9d   :  { %v619_v20 = vadd.f32 %v1143_v35, %v551_v14  ;;  %v635_v21 = vadd.f32 %v1143_v35, %v567_v15 }
  0x9e   :  { %v588_v22 = vadd.f32 %v1143_v35, %v520_v18  ;;  %v604_v23 = vadd.f32 %v1143_v35, %v536_v19 }
  0x9f   :  { %v683_v24 = vpack.c.bf16 %v619_v20, %v619_v20  ;;  %v699_v25 = vpack.c.bf16 %v635_v21, %v635_v21 }
  0xa0   :  { %v652_v26 = vpack.c.bf16 %v588_v22, %v588_v22  ;;  %v668_v27 = vpack.c.bf16 %v604_v23, %v604_v23 }
  0xa1   :  { %748 = vst.msk [vmem:[%s1533_s4 + $0x88] sm:$0xf] %vm713_vm2, %v683_v24 }
  0xa2   :  { %764 = vst.msk [vmem:[%s1533_s4 + $0xc8] sm:$0xf] %vm713_vm2, %v699_v25  ;;  %v440_v28 = vpop.f32.mrf.mxu2  ;;  %v480_v29 = vpop.f32.mrf.mxu3 }
  0xa3   :  { %717 = vst.msk [vmem:[%s1533_s4 + $0xc] sm:$0xf] %vm713_vm2, %v652_v26  ;;  %v552_v30 = vmul.f32 %v1138_v34, %v440_v28  ;;  %v568_v31 = vmul.f32 %v1138_v34, %v480_v29  ;;  %v363_v32 = vpop.f32.mrf.mxu0  ;;  %v403_v33 = vpop.f32.mrf.mxu1 }
  0xa4   :  { %733 = vst.msk [vmem:[%s1533_s4 + $0x4c] sm:$0xf] %vm713_vm2, %v668_v27  ;;  %v521_v36 = vmul.f32 %v1138_v34, %v363_v32  ;;  %v537_v37 = vmul.f32 %v1138_v34, %v403_v33 }
  0xa5   :  { %v620_v38 = vadd.f32 %v1143_v35, %v552_v30  ;;  %v636_v39 = vadd.f32 %v1143_v35, %v568_v31 }
  0xa6   :  { %v589_v40 = vadd.f32 %v1143_v35, %v521_v36  ;;  %v605_v41 = vadd.f32 %v1143_v35, %v537_v37 }
  0xa7   :  { %v684_v42 = vpack.c.bf16 %v620_v38, %v620_v38  ;;  %v700_v43 = vpack.c.bf16 %v636_v39, %v636_v39 }
  0xa8   :  { %v653_v44 = vpack.c.bf16 %v589_v40, %v589_v40  ;;  %v669_v45 = vpack.c.bf16 %v605_v41, %v605_v41 }
  0xa9   :  { %749 = vst.msk [vmem:[%s1533_s4 + $0x8c] sm:$0xf] %vm713_vm2, %v684_v42 }
  0xaa   :  { %765 = vst.msk [vmem:[%s1533_s4 + $0xcc] sm:$0xf] %vm713_vm2, %v700_v43  ;;  %v443_v46 = vpop.f32.mrf.mxu2  ;;  %v483_v47 = vpop.f32.mrf.mxu3 }
  0xab   :  { %718 = vst.msk [vmem:[%s1533_s4 + $0x10] sm:$0xf] %vm713_vm2, %v653_v44  ;;  %v553_v48 = vmul.f32 %v1138_v34, %v443_v46  ;;  %v569_v49 = vmul.f32 %v1138_v34, %v483_v47  ;;  %v365_v50 = vpop.f32.mrf.mxu0  ;;  %v405_v51 = vpop.f32.mrf.mxu1 }
  0xac   :  { %734 = vst.msk [vmem:[%s1533_s4 + $0x50] sm:$0xf] %vm713_vm2, %v669_v45  ;;  %v522_v52 = vmul.f32 %v1138_v34, %v365_v50  ;;  %v538_v53 = vmul.f32 %v1138_v34, %v405_v51 }
  0xad   :  { %v621_v54 = vadd.f32 %v1143_v35, %v553_v48  ;;  %v637_v55 = vadd.f32 %v1143_v35, %v569_v49 }
  0xae   :  { %v590_v56 = vadd.f32 %v1143_v35, %v522_v52  ;;  %v606_v57 = vadd.f32 %v1143_v35, %v538_v53 }
  0xaf   :  { %v685_v58 = vpack.c.bf16 %v621_v54, %v621_v54  ;;  %v701_v59 = vpack.c.bf16 %v637_v55, %v637_v55 }
  0xb0   :  { %v654_v60 = vpack.c.bf16 %v590_v56, %v590_v56  ;;  %v670_v61 = vpack.c.bf16 %v606_v57, %v606_v57 }
  0xb1   :  { %750 = vst.msk [vmem:[%s1533_s4 + $0x90] sm:$0xf] %vm713_vm2, %v685_v58 }
  0xb2   :  { %766 = vst.msk [vmem:[%s1533_s4 + $0xd0] sm:$0xf] %vm713_vm2, %v701_v59  ;;  %v445_v62 = vpop.f32.mrf.mxu2  ;;  %v485_v63 = vpop.f32.mrf.mxu3 }
  0xb3   :  { %719 = vst.msk [vmem:[%s1533_s4 + $0x14] sm:$0xf] %vm713_vm2, %v654_v60  ;;  %v554_v0 = vmul.f32 %v1138_v34, %v445_v62  ;;  %v570_v1 = vmul.f32 %v1138_v34, %v485_v63  ;;  %v368_v2 = vpop.f32.mrf.mxu0  ;;  %v408_v3 = vpop.f32.mrf.mxu1 }
  0xb4   :  { %735 = vst.msk [vmem:[%s1533_s4 + $0x54] sm:$0xf] %vm713_vm2, %v670_v61  ;;  %v523_v4 = vmul.f32 %v1138_v34, %v368_v2  ;;  %v539_v5 = vmul.f32 %v1138_v34, %v408_v3 }
  0xb5   :  { %v622_v6 = vadd.f32 %v1143_v35, %v554_v0  ;;  %v638_v7 = vadd.f32 %v1143_v35, %v570_v1 }
  0xb6   :  { %v591_v8 = vadd.f32 %v1143_v35, %v523_v4  ;;  %v607_v9 = vadd.f32 %v1143_v35, %v539_v5 }
  0xb7   :  { %v686_v10 = vpack.c.bf16 %v622_v6, %v622_v6  ;;  %v702_v11 = vpack.c.bf16 %v638_v7, %v638_v7 }
  0xb8   :  { %v655_v12 = vpack.c.bf16 %v591_v8, %v591_v8  ;;  %v671_v13 = vpack.c.bf16 %v607_v9, %v607_v9 }
  0xb9   :  { %751 = vst.msk [vmem:[%s1533_s4 + $0x94] sm:$0xf] %vm713_vm2, %v686_v10 }
  0xba   :  { %767 = vst.msk [vmem:[%s1533_s4 + $0xd4] sm:$0xf] %vm713_vm2, %v702_v11  ;;  %v448_v14 = vpop.f32.mrf.mxu2  ;;  %v488_v15 = vpop.f32.mrf.mxu3 }
  0xbb   :  { %720 = vst.msk [vmem:[%s1533_s4 + $0x18] sm:$0xf] %vm713_vm2, %v655_v12  ;;  %v555_v16 = vmul.f32 %v1138_v34, %v448_v14  ;;  %v571_v17 = vmul.f32 %v1138_v34, %v488_v15  ;;  %v370_v18 = vpop.f32.mrf.mxu0  ;;  %v410_v19 = vpop.f32.mrf.mxu1 }
  0xbc   :  { %736 = vst.msk [vmem:[%s1533_s4 + $0x58] sm:$0xf] %vm713_vm2, %v671_v13  ;;  %v524_v20 = vmul.f32 %v1138_v34, %v370_v18  ;;  %v540_v21 = vmul.f32 %v1138_v34, %v410_v19 }
  0xbd   :  { %v623_v22 = vadd.f32 %v1143_v35, %v555_v16  ;;  %v639_v23 = vadd.f32 %v1143_v35, %v571_v17 }
  0xbe   :  { %v592_v24 = vadd.f32 %v1143_v35, %v524_v20  ;;  %v608_v25 = vadd.f32 %v1143_v35, %v540_v21 }
  0xbf   :  { %v687_v26 = vpack.c.bf16 %v623_v22, %v623_v22  ;;  %v703_v27 = vpack.c.bf16 %v639_v23, %v639_v23 }
  0xc0   :  { %v656_v28 = vpack.c.bf16 %v592_v24, %v592_v24  ;;  %v672_v29 = vpack.c.bf16 %v608_v25, %v608_v25 }
  0xc1   :  { %752 = vst.msk [vmem:[%s1533_s4 + $0x98] sm:$0xf] %vm713_vm2, %v687_v26 }
  0xc2   :  { %768 = vst.msk [vmem:[%s1533_s4 + $0xd8] sm:$0xf] %vm713_vm2, %v703_v27  ;;  %v450_v30 = vpop.f32.mrf.mxu2  ;;  %v490_v31 = vpop.f32.mrf.mxu3 }
  0xc3   :  { %721 = vst.msk [vmem:[%s1533_s4 + $0x1c] sm:$0xf] %vm713_vm2, %v656_v28  ;;  %v556_v32 = vmul.f32 %v1138_v34, %v450_v30  ;;  %v572_v33 = vmul.f32 %v1138_v34, %v490_v31  ;;  %v373_v36 = vpop.f32.mrf.mxu0  ;;  %v413_v37 = vpop.f32.mrf.mxu1 }
  0xc4   :  { %737 = vst.msk [vmem:[%s1533_s4 + $0x5c] sm:$0xf] %vm713_vm2, %v672_v29  ;;  %v525_v38 = vmul.f32 %v1138_v34, %v373_v36  ;;  %v541_v39 = vmul.f32 %v1138_v34, %v413_v37 }
  0xc5   :  { %v624_v40 = vadd.f32 %v1143_v35, %v556_v32  ;;  %v640_v41 = vadd.f32 %v1143_v35, %v572_v33 }
  0xc6   :  { %v593_v42 = vadd.f32 %v1143_v35, %v525_v38  ;;  %v609_v43 = vadd.f32 %v1143_v35, %v541_v39 }
  0xc7   :  { %v688_v44 = vpack.c.bf16 %v624_v40, %v624_v40  ;;  %v704_v45 = vpack.c.bf16 %v640_v41, %v640_v41 }
  0xc8   :  { %v657_v46 = vpack.c.bf16 %v593_v42, %v593_v42  ;;  %v673_v47 = vpack.c.bf16 %v609_v43, %v609_v43 }
  0xc9   :  { %753 = vst.msk [vmem:[%s1533_s4 + $0x9c] sm:$0xf] %vm713_vm2, %v688_v44 }
  0xca   :  { %769 = vst.msk [vmem:[%s1533_s4 + $0xdc] sm:$0xf] %vm713_vm2, %v704_v45  ;;  %v453_v48 = vpop.f32.mrf.mxu2  ;;  %v493_v49 = vpop.f32.mrf.mxu3 }
  0xcb   :  { %722 = vst.msk [vmem:[%s1533_s4 + $0x20] sm:$0xf] %vm713_vm2, %v657_v46  ;;  %v557_v50 = vmul.f32 %v1138_v34, %v453_v48  ;;  %v573_v51 = vmul.f32 %v1138_v34, %v493_v49  ;;  %v375_v52 = vpop.f32.mrf.mxu0  ;;  %v415_v53 = vpop.f32.mrf.mxu1 }
  0xcc   :  { %738 = vst.msk [vmem:[%s1533_s4 + $0x60] sm:$0xf] %vm713_vm2, %v673_v47  ;;  %v526_v54 = vmul.f32 %v1138_v34, %v375_v52  ;;  %v542_v55 = vmul.f32 %v1138_v34, %v415_v53 }
  0xcd   :  { %v625_v56 = vadd.f32 %v1143_v35, %v557_v50  ;;  %v641_v57 = vadd.f32 %v1143_v35, %v573_v51 }
  0xce   :  { %v594_v58 = vadd.f32 %v1143_v35, %v526_v54  ;;  %v610_v59 = vadd.f32 %v1143_v35, %v542_v55 }
  0xcf   :  { %v689_v60 = vpack.c.bf16 %v625_v56, %v625_v56  ;;  %v705_v61 = vpack.c.bf16 %v641_v57, %v641_v57 }
  0xd0   :  { %v658_v62 = vpack.c.bf16 %v594_v58, %v594_v58  ;;  %v674_v63 = vpack.c.bf16 %v610_v59, %v610_v59 }
  0xd1   :  { %754 = vst.msk [vmem:[%s1533_s4 + $0xa0] sm:$0xf] %vm713_vm2, %v689_v60 }
  0xd2   :  { %770 = vst.msk [vmem:[%s1533_s4 + $0xe0] sm:$0xf] %vm713_vm2, %v705_v61  ;;  %v455_v0 = vpop.f32.mrf.mxu2  ;;  %v495_v1 = vpop.f32.mrf.mxu3 }
  0xd3   :  { %723 = vst.msk [vmem:[%s1533_s4 + $0x24] sm:$0xf] %vm713_vm2, %v658_v62  ;;  %v558_v2 = vmul.f32 %v1138_v34, %v455_v0  ;;  %v574_v3 = vmul.f32 %v1138_v34, %v495_v1  ;;  %v378_v4 = vpop.f32.mrf.mxu0  ;;  %v418_v5 = vpop.f32.mrf.mxu1 }
  0xd4   :  { %739 = vst.msk [vmem:[%s1533_s4 + $0x64] sm:$0xf] %vm713_vm2, %v674_v63  ;;  %v527_v6 = vmul.f32 %v1138_v34, %v378_v4  ;;  %v543_v7 = vmul.f32 %v1138_v34, %v418_v5 }
  0xd5   :  { %v626_v8 = vadd.f32 %v1143_v35, %v558_v2  ;;  %v642_v9 = vadd.f32 %v1143_v35, %v574_v3 }
  0xd6   :  { %v595_v10 = vadd.f32 %v1143_v35, %v527_v6  ;;  %v611_v11 = vadd.f32 %v1143_v35, %v543_v7 }
  0xd7   :  { %v690_v12 = vpack.c.bf16 %v626_v8, %v626_v8  ;;  %v706_v13 = vpack.c.bf16 %v642_v9, %v642_v9 }
  0xd8   :  { %v659_v14 = vpack.c.bf16 %v595_v10, %v595_v10  ;;  %v675_v15 = vpack.c.bf16 %v611_v11, %v611_v11 }
  0xd9   :  { %755 = vst.msk [vmem:[%s1533_s4 + $0xa4] sm:$0xf] %vm713_vm2, %v690_v12 }
  0xda   :  { %771 = vst.msk [vmem:[%s1533_s4 + $0xe4] sm:$0xf] %vm713_vm2, %v706_v13  ;;  %v458_v16 = vpop.f32.mrf.mxu2  ;;  %v498_v17 = vpop.f32.mrf.mxu3 }
  0xdb   :  { %724 = vst.msk [vmem:[%s1533_s4 + $0x28] sm:$0xf] %vm713_vm2, %v659_v14  ;;  %v559_v18 = vmul.f32 %v1138_v34, %v458_v16  ;;  %v575_v19 = vmul.f32 %v1138_v34, %v498_v17  ;;  %v380_v20 = vpop.f32.mrf.mxu0  ;;  %v420_v21 = vpop.f32.mrf.mxu1 }
  0xdc   :  { %740 = vst.msk [vmem:[%s1533_s4 + $0x68] sm:$0xf] %vm713_vm2, %v675_v15  ;;  %v528_v22 = vmul.f32 %v1138_v34, %v380_v20  ;;  %v544_v23 = vmul.f32 %v1138_v34, %v420_v21 }
  0xdd   :  { %v627_v24 = vadd.f32 %v1143_v35, %v559_v18  ;;  %v643_v25 = vadd.f32 %v1143_v35, %v575_v19 }
  0xde   :  { %v596_v26 = vadd.f32 %v1143_v35, %v528_v22  ;;  %v612_v27 = vadd.f32 %v1143_v35, %v544_v23 }
  0xdf   :  { %v691_v28 = vpack.c.bf16 %v627_v24, %v627_v24  ;;  %v707_v29 = vpack.c.bf16 %v643_v25, %v643_v25 }
  0xe0   :  { %v660_v30 = vpack.c.bf16 %v596_v26, %v596_v26  ;;  %v676_v31 = vpack.c.bf16 %v612_v27, %v612_v27 }
  0xe1   :  { %756 = vst.msk [vmem:[%s1533_s4 + $0xa8] sm:$0xf] %vm713_vm2, %v691_v28 }
  0xe2   :  { %772 = vst.msk [vmem:[%s1533_s4 + $0xe8] sm:$0xf] %vm713_vm2, %v707_v29  ;;  %v460_v32 = vpop.f32.mrf.mxu2  ;;  %v500_v33 = vpop.f32.mrf.mxu3 }
  0xe3   :  { %725 = vst.msk [vmem:[%s1533_s4 + $0x2c] sm:$0xf] %vm713_vm2, %v660_v30  ;;  %v560_v36 = vmul.f32 %v1138_v34, %v460_v32  ;;  %v576_v37 = vmul.f32 %v1138_v34, %v500_v33  ;;  %v383_v38 = vpop.f32.mrf.mxu0  ;;  %v423_v39 = vpop.f32.mrf.mxu1 }
  0xe4   :  { %741 = vst.msk [vmem:[%s1533_s4 + $0x6c] sm:$0xf] %vm713_vm2, %v676_v31  ;;  %v529_v40 = vmul.f32 %v1138_v34, %v383_v38  ;;  %v545_v41 = vmul.f32 %v1138_v34, %v423_v39 }
  0xe5   :  { %v628_v42 = vadd.f32 %v1143_v35, %v560_v36  ;;  %v644_v43 = vadd.f32 %v1143_v35, %v576_v37 }
  0xe6   :  { %v597_v44 = vadd.f32 %v1143_v35, %v529_v40  ;;  %v613_v45 = vadd.f32 %v1143_v35, %v545_v41 }
  0xe7   :  { %v692_v46 = vpack.c.bf16 %v628_v42, %v628_v42  ;;  %v708_v47 = vpack.c.bf16 %v644_v43, %v644_v43 }
  0xe8   :  { %v661_v48 = vpack.c.bf16 %v597_v44, %v597_v44  ;;  %v677_v49 = vpack.c.bf16 %v613_v45, %v613_v45 }
  0xe9   :  { %757 = vst.msk [vmem:[%s1533_s4 + $0xac] sm:$0xf] %vm713_vm2, %v692_v46 }
  0xea   :  { %773 = vst.msk [vmem:[%s1533_s4 + $0xec] sm:$0xf] %vm713_vm2, %v708_v47  ;;  %v463_v50 = vpop.f32.mrf.mxu2  ;;  %v503_v51 = vpop.f32.mrf.mxu3 }
  0xeb   :  { %726 = vst.msk [vmem:[%s1533_s4 + $0x30] sm:$0xf] %vm713_vm2, %v661_v48  ;;  %v561_v52 = vmul.f32 %v1138_v34, %v463_v50  ;;  %v577_v53 = vmul.f32 %v1138_v34, %v503_v51  ;;  %v385_v54 = vpop.f32.mrf.mxu0  ;;  %v425_v55 = vpop.f32.mrf.mxu1 }
  0xec   :  { %742 = vst.msk [vmem:[%s1533_s4 + $0x70] sm:$0xf] %vm713_vm2, %v677_v49  ;;  %v530_v56 = vmul.f32 %v1138_v34, %v385_v54  ;;  %v546_v57 = vmul.f32 %v1138_v34, %v425_v55 }
  0xed   :  { %v629_v58 = vadd.f32 %v1143_v35, %v561_v52  ;;  %v645_v59 = vadd.f32 %v1143_v35, %v577_v53 }
  0xee   :  { %v598_v60 = vadd.f32 %v1143_v35, %v530_v56  ;;  %v614_v61 = vadd.f32 %v1143_v35, %v546_v57 }
  0xef   :  { %v693_v62 = vpack.c.bf16 %v629_v58, %v629_v58  ;;  %v709_v63 = vpack.c.bf16 %v645_v59, %v645_v59 }
  0xf0   :  { %v662_v0 = vpack.c.bf16 %v598_v60, %v598_v60  ;;  %v678_v1 = vpack.c.bf16 %v614_v61, %v614_v61 }
  0xf1   :  { %758 = vst.msk [vmem:[%s1533_s4 + $0xb0] sm:$0xf] %vm713_vm2, %v693_v62 }
  0xf2   :  { %774 = vst.msk [vmem:[%s1533_s4 + $0xf0] sm:$0xf] %vm713_vm2, %v709_v63  ;;  %v465_v2 = vpop.f32.mrf.mxu2  ;;  %v505_v3 = vpop.f32.mrf.mxu3 }
  0xf3   :  { %727 = vst.msk [vmem:[%s1533_s4 + $0x34] sm:$0xf] %vm713_vm2, %v662_v0  ;;  %v562_v4 = vmul.f32 %v1138_v34, %v465_v2  ;;  %v578_v5 = vmul.f32 %v1138_v34, %v505_v3  ;;  %v388_v6 = vpop.f32.mrf.mxu0  ;;  %v428_v7 = vpop.f32.mrf.mxu1 }
  0xf4   :  { %743 = vst.msk [vmem:[%s1533_s4 + $0x74] sm:$0xf] %vm713_vm2, %v678_v1  ;;  %v531_v8 = vmul.f32 %v1138_v34, %v388_v6  ;;  %v547_v9 = vmul.f32 %v1138_v34, %v428_v7 }
  0xf5   :  { %v630_v10 = vadd.f32 %v1143_v35, %v562_v4  ;;  %v646_v11 = vadd.f32 %v1143_v35, %v578_v5 }
  0xf6   :  { %v599_v12 = vadd.f32 %v1143_v35, %v531_v8  ;;  %v615_v13 = vadd.f32 %v1143_v35, %v547_v9 }
  0xf7   :  { %v694_v14 = vpack.c.bf16 %v630_v10, %v630_v10  ;;  %v710_v15 = vpack.c.bf16 %v646_v11, %v646_v11 }
  0xf8   :  { %v663_v16 = vpack.c.bf16 %v599_v12, %v599_v12  ;;  %v679_v17 = vpack.c.bf16 %v615_v13, %v615_v13 }
  0xf9   :  { %759 = vst.msk [vmem:[%s1533_s4 + $0xb4] sm:$0xf] %vm713_vm2, %v694_v14 }
  0xfa   :  { %775 = vst.msk [vmem:[%s1533_s4 + $0xf4] sm:$0xf] %vm713_vm2, %v710_v15  ;;  %v468_v18 = vpop.f32.mrf.mxu2  ;;  %v508_v19 = vpop.f32.mrf.mxu3 }
  0xfb   :  { %728 = vst.msk [vmem:[%s1533_s4 + $0x38] sm:$0xf] %vm713_vm2, %v663_v16  ;;  %v563_v20 = vmul.f32 %v1138_v34, %v468_v18  ;;  %v579_v21 = vmul.f32 %v1138_v34, %v508_v19  ;;  %v390_v22 = vpop.f32.mrf.mxu0  ;;  %v430_v23 = vpop.f32.mrf.mxu1 }
  0xfc   :  { %744 = vst.msk [vmem:[%s1533_s4 + $0x78] sm:$0xf] %vm713_vm2, %v679_v17  ;;  %v532_v24 = vmul.f32 %v1138_v34, %v390_v22  ;;  %v548_v25 = vmul.f32 %v1138_v34, %v430_v23 }
  0xfd   :  { %v631_v26 = vadd.f32 %v1143_v35, %v563_v20  ;;  %v647_v27 = vadd.f32 %v1143_v35, %v579_v21 }
  0xfe   :  { %v600_v28 = vadd.f32 %v1143_v35, %v532_v24  ;;  %v616_v29 = vadd.f32 %v1143_v35, %v548_v25 }
  0xff   :  { %v695_v30 = vpack.c.bf16 %v631_v26, %v631_v26  ;;  %v711_v31 = vpack.c.bf16 %v647_v27, %v647_v27 }
 0x100   :  { %v664_v32 = vpack.c.bf16 %v600_v28, %v600_v28  ;;  %v680_v33 = vpack.c.bf16 %v616_v29, %v616_v29 }
 0x101   :  { %760 = vst.msk [vmem:[%s1533_s4 + $0xb8] sm:$0xf] %vm713_vm2, %v695_v30 }
 0x102   :  { %776 = vst.msk [vmem:[%s1533_s4 + $0xf8] sm:$0xf] %vm713_vm2, %v711_v31  ;;  %v470_v36 = vpop.f32.mrf.mxu2  ;;  %v510_v37 = vpop.f32.mrf.mxu3 }
 0x103   :  { %729 = vst.msk [vmem:[%s1533_s4 + $0x3c] sm:$0xf] %vm713_vm2, %v664_v32  ;;  %v564_v38 = vmul.f32 %v1138_v34, %v470_v36  ;;  %v580_v39 = vmul.f32 %v1138_v34, %v510_v37 }
 0x104   :  { %745 = vst.msk [vmem:[%s1533_s4 + $0x7c] sm:$0xf] %vm713_vm2, %v680_v33 }
 0x105   :  { %v632_v40 = vadd.f32 %v1143_v35, %v564_v38  ;;  %v648_v41 = vadd.f32 %v1143_v35, %v580_v39 }
 0x107   :  { %v696_v42 = vpack.c.bf16 %v632_v40, %v632_v40  ;;  %v712_v43 = vpack.c.bf16 %v648_v41, %v648_v41 }
 0x109   :  { %761 = vst.msk [vmem:[%s1533_s4 + $0xbc] sm:$0xf] %vm713_vm2, %v696_v42 }
 0x10a   :  { %777 = vst.msk [vmem:[%s1533_s4 + $0xfc] sm:$0xf] %vm713_vm2, %v712_v43 }

// kernel: prm_forward.25
= control target key start
LH: loop header
LB: loop body
LE: loop exit
PB: predicated region body
PF: predicated region fallthrough
CT: control target
= control target key end

     0   :  { %vm24_vm0 = vcmask 1043456   ;;  %vm20_vm1 = vcmask 64512   ;;  %vm53_vm2 = vcmask 57344   ;;  %s102_s1 = inlined_call_operand.vmem [shape: bf16[8,8], index: 1, kind: input, shape index: {}]   ;;  %s103_s0 = inlined_call_operand.vmem [shape: bf16[2,8], index: 0, kind: input, shape index: {}]   ;;  %s104_s2 = inlined_call_operand.vmem [shape: f32[1,8], index: 2, kind: input, shape index: {}]   ;;  %s105_s3 = inlined_call_operand.vmem [shape: f32[1,8], index: 3, kind: input, shape index: {}]   ;;  %s106_s4 = inlined_call_operand.vmem [shape: bf16[2,8], index: 4, kind: output, shape index: {}]  }
   0x1   :  { %v19_v0 = vld [vmem:[%s102_s1] sm:$0xf] }
   0x2   :  { %v26_v1 = vsel %vm24_vm0, %v19_v0, 0  ;;  %v18_v2 = vld [vmem:[%s103_s0] sm:$0x1] }
   0x3   :  { %35 = vmatpush.bf16.msra.mxu0 %v26_v1  ;;  %v60_v3 = vld [vmem:[%s104_s2] ss:$0 sm:$0xff] }
   0x4   :  { %v61_v4 = vld [vmem:[%s105_s3] ss:$0 sm:$0xff] }
   0x6   :  { %59 = vmatmul.msk.bf16.vlgmr.msra.gmra.mxu0 %vm20_vm1, %v18_v2 }
  0x83   :  { %v37_v5 = vpop.f32.mrf.mxu0 }
  0x84   :  { %v45_v6 = vmul.f32 %v60_v3, %v37_v5 }
  0x86   :  { %v50_v7 = vadd.f32 %v61_v4, %v45_v6 }
  0x88   :  { %v51_v8 = vmax.f32 %v50_v7, 0.0 }
  0x8a   :  { %v52_v9 = vpack.c.bf16 %v51_v8, %v51_v8 }
  0x8b   :  { %v39_v10 = vpop.f32.mrf.mxu0 }
  0x8c   :  { %54 = vst.msk [vmem:[%s106_s4] sm:$0x1] %vm53_vm2, %v52_v9 }

// kernel: prm_forward.26
= control target key start
LH: loop header
LB: loop body
LE: loop exit
PB: predicated region body
PF: predicated region fallthrough
CT: control target
= control target key end

     0   :  { %vm24_vm0 = vcmask 1043456   ;;  %vm20_vm1 = vcmask 64512   ;;  %vm44_vm2 = vcmask 125952   ;;  %s84_s1 = inlined_call_operand.vmem [shape: bf16[8,16], index: 1, kind: input, shape index: {}]   ;;  %s85_s0 = inlined_call_operand.vmem [shape: bf16[16,8], index: 0, kind: input, shape index: {}]   ;;  %s86_s2 = inlined_call_operand.vmem [shape: bf16[16,16], index: 2, kind: output, shape index: {}]  }
   0x1   :  { %v14_v0 = vld [vmem:[%s84_s1] sm:$0xf] }
   0x2   :  { %v26_v1 = vsel %vm24_vm0, %v14_v0, 0  ;;  %v56_v2 = vld [vmem:[%s85_s0] sm:$0xff] }
   0x3   :  { %35 = vmatpush.bf16.msra.mxu0 %v26_v1 }
   0x6   :  { %55 = vmatmul.msk.bf16.vlgmr.msra.gmra.mxu0 %vm20_vm1, %v56_v2 }
  0x83   :  { %v37_v3 = vpop.f32.mrf.mxu0 }
  0x84   :  { %v42_v4 = vpack.c.bf16 %v37_v3, %v37_v3 }
  0x86   :  { %45 = vst.msk [vmem:[%s86_s2] sm:$0xf] %vm44_vm2, %v42_v4 }
  0x8b   :  { %v39_v5 = vpop.f32.mrf.mxu0 }
  0x8c   :  { %v43_v6 = vpack.c.bf16 %v39_v5, %v39_v5 }
  0x8e   :  { %46 = vst.msk [vmem:[%s86_s2 + $0x4] sm:$0xf] %vm44_vm2, %v43_v6 }

// kernel: prm_forward.24
= control target key start
LH: loop header
LB: loop body
LE: loop exit
PB: predicated region body
PF: predicated region fallthrough
CT: control target
= control target key end

     0   :  { %s595_s15 = smov 0   ;;  %s675_s0 = inlined_call_operand.vmem [shape: bf16[2,12,8], index: 0, kind: input, shape index: {}]   ;;  %s676_s1 = inlined_call_operand.vmem [shape: bf16[9,8,8], index: 1, kind: input, shape index: {}]   ;;  %s677_s2 = inlined_call_operand.vmem [shape: f32[1,8], index: 2, kind: input, shape index: {}]   ;;  %s678_s3 = inlined_call_operand.vmem [shape: f32[1,8], index: 3, kind: input, shape index: {}]   ;;  %s679_s4 = inlined_call_operand.vmem [shape: bf16[2,3,8], index: 4, kind: output, shape index: {}]  }
   0x1 LB: > { %s519_s16 = sadd.s32 4294967295, %s568_s15   ;;  %p523_p0 = scmp.ge.s32.totalorder %s568_s15, 1  ;;  %s568_s15 = sphi %s595_s15, %s14_s15  }
   0x2   : > { %p162_p1 = scmp.lt.s32.totalorder %s568_s15, 3 }
   0x4   : > { %p163_p2 = pnand %p523_p0, %p162_p1 }
   0x5   : > { %p187_p3 = scmp.lt.s32.totalorder (!%p163_p2), %s519_s16, 1 }
   0x6   : > { %166 = sbr.rel (%p163_p2) target bundleno = 198 (0xc6), region = 36 }
   0xb   : > { %vm215_vm0 = vcmask 1043456   ;;  %v530_v0 = vld [vmem:[%s676_s1 + $0x8] sm:$0xf]  ;;  %v527_v2 = vld [vmem:[%s676_s1 + $0x4] sm:$0xf]  ;;  %s681_s16 = smov (!%p187_p3, %s519_s16), 1 }
   0xc   : > { %v262_v1 = vsel %vm215_vm0, %v530_v0, 0  ;;  %v198_v3 = vld [vmem:[%s676_s1] sm:$0xf]  ;;  %v217_v4 = vsel %vm215_vm0, %v527_v2, 0  ;;  %v532_v6 = vld [vmem:[%s676_s1 + $0xc] sm:$0xf] }
   0xd   : > { %271 = vmatpush.bf16.msra.mxu2 %v262_v1  ;;  %v236_v5 = vsel %vm215_vm0, %v198_v3, 0  ;;  %226 = vmatpush.bf16.msra.mxu0 %v217_v4  ;;  %v292_v7 = vsel %vm215_vm0, %v532_v6, 0  ;;  %v534_v8 = vld [vmem:[%s676_s1 + $0x10] sm:$0xf]  ;;  %v538_v9 = vld [vmem:[%s676_s1 + $0x18] sm:$0xf] }
   0xe   : > { %245 = vmatpush.bf16.msra.mxu1 %v236_v5  ;;  %s550_s29 = sshll.u32 %s681_s16, 3  ;;  %301 = vmatpush.bf16.msra.mxu3 %v292_v7  ;;  %v319_v10 = vsel %vm215_vm0, %v534_v8, 0  ;;  %v379_v11 = vsel %vm215_vm0, %v538_v9, 0  ;;  %v544_v12 = vld [vmem:[%s676_s1 + $0x1c] sm:$0xf]  ;;  %vm211_vm1 = vcmask 64512  }
   0xf   : > { %s636_s8 = scalar_lea.vmem %s675_s0, %s550_s29  ;;  %v409_v13 = vsel %vm215_vm0, %v544_v12, 0  ;;  %v536_v14 = vld [vmem:[%s676_s1 + $0x14] sm:$0xf]  ;;  %v546_v29 = vld [vmem:[%s676_s1 + $0x20] sm:$0xf]  ;;  %s526_s19 = sshll.u32 %s681_s16, 1 }
  0x10   : > { %v251_v15 = vld [vmem:[%s636_s8] sm:$0x6]  ;;  %v349_v17 = vsel %vm215_vm0, %v536_v14, 0  ;;  %v432_v36 = vsel %vm215_vm0, %v546_v29, 0  ;;  %v541_v38 = vld [vmem:[%s636_s8] sm:$0x8]  ;;  %s195_s22 = scalar_lea.vmem %s679_s4, %s526_s19 }
  0x11   : > { %328 = vmatpush.bf16.msrb.mxu0 %v319_v10  ;;  %388 = vmatpush.bf16.msrb.mxu2 %v379_v11  ;;  %v197_v16 = vld [vmem:[%s636_s8] sm:$0x3]  ;;  %v255_v18 = vunpack.c.l.b16 %v251_v15  ;;  %v308_v20 = vld [vmem:[%s636_s8] sm:$0xc]  ;;  %v551_v39 = vld [vmem:[%s636_s8] sm:$0x10] }
  0x12   : > { %418 = vmatpush.bf16.msrb.mxu3 %v409_v13  ;;  %v202_v19 = vunpack.c.l.b16 %v197_v16  ;;  %529 = vmatmul.msk.bf16.vlgmr.msra.gmra.mxu1 %vm211_vm1, %v197_v16  ;;  %v312_v21 = vunpack.c.l.b16 %v308_v20  ;;  %v542_v43 = vor.u32 %v551_v39, %v541_v38  ;;  %v425_v52 = vld [vmem:[%s636_s8 + $0x4] sm:$0x3]  ;;  %v560_v12 = vld [vmem:[%s677_s2] ss:$0 sm:$0xff]  ;;  %vm460_vm2 = vcmask 58368  }
  0x13   : > { %358 = vmatpush.bf16.msrb.mxu1 %v349_v17  ;;  %v256_v22 = vpack.c.b16 %v255_v18, %v255_v18  ;;  %v561_v15 = vld [vmem:[%s678_s3] ss:$0 sm:$0xff]  ;;  %vm461_vm3 = vsmask.f32 1280 }
  0x14   : > { %v203_v23 = vpack.c.b16 %v202_v19, %v202_v19  ;;  %v313_v24 = vpack.c.b16 %v312_v21, %v312_v21  ;;  %v398_v45 = vshrl.u32 %v542_v43, 16  ;;  %v401_v46 = vshll.u32 %v542_v43, 16  ;;  %vm462_vm4 = vmand %vm460_vm2, %vm461_vm3  ;;  %v463_v19 = vld [vmem:[%s195_s22] sm:$0x3] }
  0x15   : > { %v257_v25 = vrot.slane %v256_v22, 1  ;;  %v281_v28 = vshrl.u32 %v256_v22, 16  ;;  %v284_v30 = vshll.u32 %v256_v22, 16  ;;  %v374_v47 = vrot.slane %v542_v43, 3 }
  0x16   : > { %v205_v26 = vshrl.u32 %v203_v23, 16  ;;  %v207_v27 = vshll.u32 %v203_v23, 16  ;;  %v338_v33 = vshrl.u32 %v313_v24, 16  ;;  %v341_v34 = vshll.u32 %v313_v24, 16 }
  0x17   : > { %531 = vmatmul.msk.bf16.vlgmr.msra.gmra.mxu2 %vm211_vm1, %v257_v25  ;;  %v283_v32 = vrot.slane %v281_v28, 1  ;;  %v286_v35 = vrot.slane %v284_v30, 2  ;;  %v400_v48 = vrot.slane %v398_v45, 3  ;;  %v403_v49 = vrot.slane %v401_v46, 4 }
  0x18   : > { %v209_v31 = vrot.slane %v207_v27, 1  ;;  %v340_v40 = vrot.slane %v338_v33, 2  ;;  %v343_v41 = vrot.slane %v341_v34, 3  ;;  %v314_v50 = vrot.slane %v313_v24, 2 }
  0x19   : > { %v287_v42 = vor.u32 %v286_v35, %v283_v32  ;;  %v404_v51 = vor.u32 %v403_v49, %v400_v48 }
  0x1a   : > { %v210_v37 = vor.u32 %v209_v31, %v205_v26  ;;  %v344_v44 = vor.u32 %v343_v41, %v340_v40 }
  0x1b   : > { %533 = vmatmul.msk.bf16.vlgmr.msra.gmra.mxu3 %vm211_vm1, %v287_v42 }
  0x1c   : > { %528 = vmatmul.msk.bf16.vlgmr.msra.gmra.mxu0 %vm211_vm1, %v210_v37 }
  0x1d   : > { %441 = vmatpush.bf16.msra.mxu0 %v432_v36 }
  0x22   : > { %537 = vmatmul.msk.bf16.vlgmr.msrb.gmra.mxu1 %vm211_vm1, %v344_v44 }
  0x27   : > { %543 = vmatmul.msk.bf16.vlgmr.msrb.gmra.mxu2 %vm211_vm1, %v374_v47 }
  0x2b   : > { %545 = vmatmul.msk.bf16.vlgmr.msrb.gmra.mxu3 %vm211_vm1, %v404_v51 }
  0x2c   : > { %535 = vmatmul.msk.bf16.vlgmr.msrb.gmra.mxu0 %vm211_vm1, %v314_v50 }
  0x3c   : > { %547 = vmatmul.msk.bf16.vlgmr.msra.gmra.mxu0 %vm211_vm1, %v425_v52 }
  0x8f   : > { %v247_v53 = vpop.f32.mrf.mxu1 }
  0x97   : > { %v249_v54 = vpop.f32.mrf.mxu1 }
  0x99   : > { %v228_v55 = vpop.f32.mrf.mxu0 }
  0x9a   : > { %v273_v56 = vpop.f32.mrf.mxu2  ;;  %v248_v61 = vadd.f32 %v247_v53, %v228_v55 }
  0x9c   : > { %v277_v63 = vadd.f32 %v273_v56, %v248_v61 }
  0x9e   : > { %v303_v58 = vpop.f32.mrf.mxu3 }
  0x9f   : > { %v360_v57 = vpop.f32.mrf.mxu1  ;;  %v307_v2 = vadd.f32 %v303_v58, %v277_v63 }
  0xa1   : > { %v230_v59 = vpop.f32.mrf.mxu0 }
  0xa2   : > { %v275_v60 = vpop.f32.mrf.mxu2 }
  0xa6   : > { %v305_v0 = vpop.f32.mrf.mxu3 }
  0xa7   : > { %v362_v62 = vpop.f32.mrf.mxu1 }
  0xa9   : > { %v330_v1 = vpop.f32.mrf.mxu0 }
  0xaa   : > { %v390_v3 = vpop.f32.mrf.mxu2  ;;  %v334_v4 = vadd.f32 %v330_v1, %v307_v2 }
  0xac   : > { %v364_v5 = vadd.f32 %v360_v57, %v334_v4 }
  0xae   : > { %v420_v6 = vpop.f32.mrf.mxu3  ;;  %v394_v9 = vadd.f32 %v390_v3, %v364_v5 }
  0xb0   : > { %v424_v10 = vadd.f32 %v420_v6, %v394_v9 }
  0xb1   : > { %v332_v7 = vpop.f32.mrf.mxu0 }
  0xb2   : > { %v392_v8 = vpop.f32.mrf.mxu2 }
  0xb6   : > { %v422_v11 = vpop.f32.mrf.mxu3 }
  0xb9   : > { %v443_v13 = vpop.f32.mrf.mxu0 }
  0xba   : > { %v447_v14 = vadd.f32 %v443_v13, %v424_v10 }
  0xbc   : > { %v452_v16 = vmul.f32 %v560_v12, %v447_v14 }
  0xbe   : > { %v457_v17 = vadd.f32 %v561_v15, %v452_v16 }
  0xc0   : > { %v458_v18 = vmax.f32 %v457_v17, 0.0 }
  0xc1   : > { %v445_v20 = vpop.f32.mrf.mxu0 }
  0xc2   : > { %v459_v21 = vpack.c.bf16 %v458_v18, %v458_v18 }
  0xc4   : > { %v464_v22 = vsel %vm462_vm4, %v459_v21, %v463_v19 }
  0xc5   : > { %465 = vst [vmem:[%s195_s22] sm:$0x3] %v464_v22 }
  0xc6 PF: > { %s14_s15 = sadd.s32 1, %s568_s15  }
  0xc7   : > { %p11_p4 = scmp.ge.s32.totalorder %s14_s15, 4  }
  0xc9   :  { %13 = sbr.rel (!%p11_p4) target bundleno = 1 (0x1), region = 74 }

// kernel: prm_forward.27
= control target key start
LH: loop header
LB: loop body
LE: loop exit
PB: predicated region body
PF: predicated region fallthrough
CT: control target
= control target key end

     0   :  { %s284_s9 = smov 0   ;;  %s298_s0 = inlined_call_operand.vmem [shape: bf16[2,8,128], index: 0, kind: input, shape index: {}]   ;;  %s299_s1 = inlined_call_operand.vmem [shape: bf16[16,8], index: 1, kind: input, shape index: {}]   ;;  %s300_s2 = inlined_call_operand.vmem [shape: bf16[2,16,128], index: 2, kind: output, shape index: {}]  }
   0x1 LB: > { %s231_s10 = sadd.s32 4294967295, %s267_s9   ;;  %p235_p0 = scmp.ge.s32.totalorder %s267_s9, 1  ;;  %s267_s9 = sphi %s284_s9, %s12_s9  }
   0x2   : > { %p111_p1 = scmp.lt.s32.totalorder %s267_s9, 3 }
   0x4   : > { %p112_p2 = pnand %p235_p0, %p111_p1 }
   0x5   : > { %p132_p3 = scmp.lt.s32.totalorder (!%p112_p2), %s231_s10, 1 }
   0x6   : > { %115 = sbr.rel (%p112_p2) target bundleno = 156 (0x9c), region = 28 }
   0xb   : > { %s302_s10 = smov (!%p132_p3, %s231_s10), 1  ;;  %vm154_vm0 = vcmask 1043456   ;;  %v247_v2 = vld [vmem:[%s299_s1] sm:$0xff]  ;;  %vm150_vm1 = vcmask 64512  }
   0xc   : > { %s236_s11 = sshll.u32 %s302_s10, 2  ;;  %s246_s17 = sshll.u32 %s302_s10, 3 }
   0xd   : > { %s135_s14 = scalar_lea.vmem %s298_s0, %s236_s11  ;;  %s140_s20 = scalar_lea.vmem %s300_s2, %s246_s17 }
   0xe   : > { %v144_v0 = vld [vmem:[%s135_s14] sm:$0xf] }
   0xf   : > { %v156_v1 = vsel %vm154_vm0, %v144_v0, 0 }
  0x10   : > { %165 = vmatpush.bf16.msra.mxu0 %v156_v1 }
  0x13   : > { %243 = vmatmul.msk.bf16.vlgmr.msra.gmra.mxu0 %vm150_vm1, %v247_v2 }
  0x90   : > { %v167_v3 = vpop.f32.mrf.mxu0 }
  0x98   : > { %v169_v4 = vpop.f32.mrf.mxu0 }
  0x99   : > { %v251_v5 = vpack.c.bf16 %v169_v4, %v167_v3 }
  0x9b   : > { %252 = vst [vmem:[%s140_s20] sm:$0xff] %v251_v5  }
  0x9c PF: > { %s12_s9 = sadd.s32 1, %s267_s9  }
  0x9d   : > { %p9_p4 = scmp.ge.s32.totalorder %s12_s9, 4  }
  0x9f   :  { %11 = sbr.rel (!%p9_p4) target bundleno = 1 (0x1), region = 58 }

// kernel: prm_forward.20
= control target key start
LH: loop header
LB: loop body
LE: loop exit
PB: predicated region body
PF: predicated region fallthrough
CT: control target
= control target key end

     0   :  { %s1390_s15 = smov 0   ;;  %s1742_s0 = inlined_call_operand.vmem [shape: bf16[2,110,8], index: 0, kind: input, shape index: {}]   ;;  %s1743_s1 = inlined_call_operand.vmem [shape: bf16[9,8,8], index: 1, kind: input, shape index: {}]   ;;  %s1744_s2 = inlined_call_operand.vmem [shape: f32[1,8], index: 2, kind: input, shape index: {}]   ;;  %s1745_s3 = inlined_call_operand.vmem [shape: f32[1,8], index: 3, kind: input, shape index: {}]   ;;  %s1746_s4 = inlined_call_operand.vmem [shape: bf16[2,80,8], index: 4, kind: output, shape index: {}]  }
   0x1 LB: > { %s1213_s16 = sadd.s32 4294967295, %s1363_s15   ;;  %p1217_p0 = scmp.ge.s32.totalorder %s1363_s15, 1  ;;  %s1363_s15 = sphi %s1390_s15, %s14_s15  }
   0x2   : > { %p162_p1 = scmp.lt.s32.totalorder %s1363_s15, 3 }
   0x4   : > { %p163_p2 = pnand %p1217_p0, %p162_p1 }
   0x5   : > { %p188_p3 = scmp.lt.s32.totalorder (!%p163_p2), %s1213_s16, 1 }
   0x6   : > { %166 = sbr.rel (%p163_p2) target bundleno = 355 (0x163), region = 36 }
   0xb   : > { %v1220_v0 = vld [vmem:[%s1743_s1 + $0x4] sm:$0xf]  ;;  %vm302_vm0 = vcmask 1043456   ;;  %v1247_v2 = vld [vmem:[%s1743_s1 + $0x8] sm:$0xf]  ;;  %s1748_s16 = smov (!%p188_p3, %s1213_s16), 1 }
   0xc   : > { %v304_v1 = vsel %vm302_vm0, %v1220_v0, 0  ;;  %v209_v3 = vld [vmem:[%s1743_s1] sm:$0xf]  ;;  %v421_v4 = vsel %vm302_vm0, %v1247_v2, 0  ;;  %v1253_v6 = vld [vmem:[%s1743_s1 + $0xc] sm:$0xf] }
   0xd   : > { %1342 = vmatpush.bf16.msra.mxu1 %v304_v1  ;;  %1343 = vmatpush.bf16.msra.mxu2 %v304_v1  ;;  %v351_v5 = vsel %vm302_vm0, %v209_v3, 0  ;;  %v535_v7 = vsel %vm302_vm0, %v1253_v6, 0  ;;  %v1275_v8 = vld [vmem:[%s1743_s1 + $0x10] sm:$0xf]  ;;  %s1345_s27 = smul.u32 56, %s1748_s16  ;;  %vm286_vm2 = vcmask 64512  }
   0xe   : > { %1344 = vmatpush.bf16.msra.mxu3 %v304_v1  ;;  %313 = vmatpush.bf16.msra.mxu0 %v304_v1  ;;  %v657_v9 = vsel %vm302_vm0, %v1275_v8, 0  ;;  %vm241_vm1 = vsmask.f32 7424  ;;  %v1287_v44 = vld [vmem:[%s1743_s1 + $0x18] sm:$0xf]  ;;  %vm393_vm3 = vcmask 1046528  }
   0xf   : > { %s1424_s30 = scalar_lea.vmem %s1742_s0, %s1345_s27  ;;  %v851_v46 = vsel %vm302_vm0, %v1287_v44, 0  ;;  %v1309_v47 = vld [vmem:[%s1743_s1 + $0x1c] sm:$0xf]  ;;  %v1281_v51 = vld [vmem:[%s1743_s1 + $0x14] sm:$0xf]  ;;  %vm709_vm5 = vcmask 1045504  }
  0x10   : > { %v1427_v10 = vld [vmem:[%s1424_s30 + $0x8] sm:$0xff]  ;;  %v1430_v11 = vld [vmem:[%s1424_s30 + $0x10] sm:$0xff]  ;;  %v1433_v12 = vld [vmem:[%s1424_s30 + $0x18] sm:$0xff]  ;;  %v973_v57 = vsel %vm302_vm0, %v1309_v47, 0  ;;  %v737_v58 = vsel %vm302_vm0, %v1281_v51, 0  ;;  %vm1025_vm7 = vcmask 1044480  }
  0x11   : > { %430 = vmatpush.bf16.msrb.mxu2 %v421_v4  ;;  %360 = vmatpush.bf16.msrb.mxu1 %v351_v5  ;;  %v1436_v13 = vld [vmem:[%s1424_s30 + $0x20] sm:$0xff]  ;;  %v210_v14 = vld [vmem:[%s1424_s30 + $0x28] sm:$0x1]  ;;  %v250_v15 = vshll.u32 %v1427_v10, 16  ;;  %v254_v16 = vshrl.u32 %v1427_v10, 16  ;;  %v258_v17 = vshll.u32 %v1430_v11, 16 }
  0x12   : > { %544 = vmatpush.bf16.msrb.mxu3 %v535_v7  ;;  %666 = vmatpush.bf16.msrb.mxu0 %v657_v9  ;;  %v262_v18 = vshrl.u32 %v1430_v11, 16  ;;  %v1444_v19 = vld [vmem:[%s1424_s30] sm:$0xff]   ;;  %v266_v20 = vshll.u32 %v1433_v12, 16  ;;  %v234_v21 = vunpack.c.l.b16 %v210_v14  ;;  %v274_v22 = vshll.u32 %v1436_v13, 16  ;;  %v1451_v25 = vld [vmem:[%s1424_s30 + $0x8] sm:$0xff]   ;;  %s1346_s19 = smul.u32 40, %s1748_s16 }
  0x13   : > { %v278_v23 = vshrl.u32 %v1436_v13, 16  ;;  %v467_v24 = vld [vmem:[%s1424_s30 + $0x4] sm:$0xe]  ;;  %v252_v26 = vrot.slane %v250_v15, 1  ;;  %v260_v27 = vrot.slane %v258_v17, 1  ;;  %v243_v28 = vshrl.u32 %v1444_v19, 16 }
  0x14   : > { %v268_v29 = vrot.slane %v266_v20, 1  ;;  %v1454_v30 = vpack.c.b16 %v234_v21, %v234_v21  ;;  %v276_v31 = vrot.slane %v274_v22, 1  ;;  %v245_v32 = vshll.u32 %v1444_v19, 16  ;;  %v1475_v50 = vld [vmem:[%s1424_s30 + $0xc] sm:$0xff]  ;;  %v1315_v54 = vld [vmem:[%s1743_s1 + $0x20] sm:$0xf]  ;;  %s1691_s22 = scalar_lea.vmem %s1746_s4, %s1346_s19 }
  0x15   : > { %v256_v33 = vor.u32 %v254_v16, %v252_v26  ;;  %v264_v34 = vor.u32 %v262_v18, %v260_v27  ;;  %v491_v35 = vunpack.c.l.b16 %v467_v24  ;;  %v492_v36 = vunpack.c.l.b16 %v1451_v25  ;;  %v1339_v9 = vld [vmem:[%s1424_s30] sm:$0xf0]  ;;  %v1340_v14 = vld [vmem:[%s1424_s30] sm:$0xe]  ;;  %v1501_v15 = vld [vmem:[%s1424_s30 + $0x14] sm:$0xff] }
  0x16   : > { %v280_v37 = vor.u32 %v278_v23, %v276_v31  ;;  %v282_v38 = vshll.u32 %v1454_v30, 16  ;;  %v247_v39 = vrot.slane %v245_v32, 1  ;;  %v597_v55 = vshrl.u32 %v1475_v50, 16 }
  0x17   : > { %v261_v40 = vsel %vm241_vm1, %v256_v33, %v260_v27  ;;  %v269_v41 = vsel %vm241_vm1, %v264_v34, %v268_v29  ;;  %v502_v45 = vpack.c.b16 %v492_v36, %v491_v35  ;;  %v600_v56 = vshll.u32 %v1475_v50, 16 }
  0x18   : > { %1238 = vmatmul.msk.bf16.vlgmr.msra.gmra.mxu1 %vm286_vm2, %v261_v40  ;;  %1239 = vmatmul.msk.bf16.vlgmr.msra.gmra.mxu2 %vm286_vm2, %v269_v41  ;;  %v284_v42 = vrot.slane %v282_v38, 1  ;;  %v248_v43 = vor.u32 %v247_v39, %v243_v28  ;;  %v270_v59 = vshrl.u32 %v1433_v12, 16  ;;  %v1053_v60 = vsel %vm302_vm0, %v1315_v54, 0  ;;  %v1531_v41 = vld [vmem:[%s1424_s30 + $0x24] sm:$0xff] }
  0x19   : > { %860 = vmatpush.bf16.msra.mxu2 %v851_v46  ;;  %v589_v52 = vshrl.u32 %v502_v45, 16  ;;  %v592_v53 = vshll.u32 %v502_v45, 16  ;;  %746 = vmatpush.bf16.msra.mxu1 %v737_v58  ;;  %v599_v63 = vrot.slane %v597_v55, 1  ;;  %v602_v0 = vrot.slane %v600_v56, 2 }
  0x1a   : > { %v285_v48 = vsel %vm241_vm1, %v280_v37, %v284_v42  ;;  %v253_v49 = vsel %vm241_vm1, %v248_v43, %v252_v26  ;;  %v272_v1 = vor.u32 %v270_v59, %v268_v29  ;;  %v508_v2 = vrot.slane %v502_v45, 1  ;;  %v1516_v29 = vld [vmem:[%s1424_s30 + $0x1c] sm:$0xff] }
  0x1b   : > { %1241 = vmatmul.msk.bf16.vlgmr.msra.gmra.mxu3 %vm286_vm2, %v285_v48  ;;  %1237 = vmatmul.msk.bf16.vlgmr.msra.gmra.mxu0 %vm286_vm2, %v253_v49  ;;  %v591_v61 = vrot.slane %v589_v52, 1  ;;  %v594_v62 = vrot.slane %v592_v53, 2  ;;  %v509_v3 = vrot.slane %v1475_v50, 1  ;;  %v603_v5 = vor.u32 %v602_v0, %v599_v63  ;;  %v703_v48 = vld [vmem:[%s1424_s30 + $0x4] sm:$0xc] }
  0x1c   : > { %982 = vmatpush.bf16.msra.mxu3 %v973_v57  ;;  %1062 = vmatpush.bf16.msra.mxu0 %v1053_v60  ;;  %v277_v6 = vsel %vm241_vm1, %v272_v1, %v276_v31  ;;  %vm587_vm4 = vsmask.f32 6400  ;;  %v606_v16 = vshrl.u32 %v1501_v15, 16  ;;  %v609_v17 = vshll.u32 %v1501_v15, 16  ;;  %v581_v52 = vld [vmem:[%s1424_s30 + $0x2c] sm:$0x3] }
  0x1d   : > { %v595_v4 = vor.u32 %v594_v62, %v591_v61  ;;  %v510_v7 = vsel %vm393_vm3, %v508_v2, %v509_v3  ;;  %v1341_v18 = vor.u32 %v1340_v14, %v1339_v9  ;;  %v395_v22 = vrot.slane %v1427_v10, 1  ;;  %v477_v62 = vld [vmem:[%s1424_s30 + $0x2c] sm:$0x1] }
  0x1e   : > { %v608_v20 = vrot.slane %v606_v16, 1  ;;  %v511_v23 = vrot.slane %v1501_v15, 1  ;;  %v615_v31 = vshrl.u32 %v1516_v29, 16  ;;  %v618_v32 = vshll.u32 %v1516_v29, 16  ;;  %v1331_v16 = vld [vmem:[%s1424_s30 + $0x10] sm:$0xff] }
  0x1f   : > { %v604_v8 = vsel %vm587_vm4, %v595_v4, %v603_v5  ;;  %v394_v21 = vrot.slane %v1341_v18, 1  ;;  %v513_v35 = vrot.slane %v1516_v29, 1  ;;  %v401_v42 = vrot.slane %v1436_v13, 1 }
  0x20   : > { %v512_v27 = vsel %vm393_vm3, %v509_v3, %v511_v23  ;;  %v617_v33 = vrot.slane %v615_v31, 1  ;;  %v620_v34 = vrot.slane %v618_v32, 2  ;;  %v403_v43 = vrot.slane %v1454_v30, 1 }
  0x21   : > { %v396_v26 = vsel %vm393_vm3, %v394_v21, %v395_v22  ;;  %v514_v39 = vsel %vm393_vm3, %v511_v23, %v513_v35  ;;  %v624_v44 = vshrl.u32 %v1531_v41, 16  ;;  %v399_v49 = vrot.slane %v1433_v12, 1 }
  0x22   : > { %v621_v37 = vor.u32 %v620_v34, %v617_v33  ;;  %v1540_v45 = vsel %vm393_vm3, %v401_v42, %v403_v43  ;;  %v707_v51 = vunpack.c.l.b16 %v703_v48  ;;  %v515_v30 = vrot.slane %v1531_v41, 1 }
  0x23   : > { %v626_v46 = vrot.slane %v624_v44, 1  ;;  %v585_v55 = vunpack.c.l.b16 %v581_v52  ;;  %v711_v58 = vrot.slane %v1475_v50, 2  ;;  %v713_v50 = vrot.slane %v1501_v15, 2 }
  0x24   : > { %v708_v53 = vpack.c.b16 %v492_v36, %v707_v51  ;;  %v516_v36 = vsel %vm393_vm3, %v513_v35, %v515_v30  ;;  %v501_v63 = vunpack.c.l.b16 %v477_v62  ;;  %v808_v9 = vunpack.c.h.b16 %v1451_v25  ;;  %v1593_v51 = vld [vmem:[%s1424_s30 + $0x20] sm:$0xff] }
  0x25   : > { %v1556_v61 = vpack.c.b16 %v585_v55, %v585_v55  ;;  %v714_v1 = vsel %vm709_vm5, %v711_v58, %v713_v50  ;;  %v402_v14 = vsel %vm393_vm3, %v399_v49, %v401_v42  ;;  %v913_v21 = vshrl.u32 %v1331_v16, 16 }
  0x26   : > { %v710_v57 = vrot.slane %v708_v53, 2  ;;  %v507_v2 = vpack.c.b16 %v501_v63, %v501_v63  ;;  %v916_v23 = vshll.u32 %v1331_v16, 16  ;;  %vm903_vm6 = vsmask.f32 5376 }
  0x27   : > { %v636_v0 = vshll.u32 %v1556_v61, 16  ;;  %v931_v52 = vshrl.u32 %v1593_v51, 16  ;;  %v934_v53 = vshll.u32 %v1593_v51, 16  ;;  %v715_v55 = vrot.slane %v1516_v29, 2 }
  0x28   : > { %1240 = vmatmul.msk.bf16.gmra.mxu2 %vm286_vm2, %v277_v6  ;;  %1242 = vmatmul.msk.bf16.vlgmr.msrb.gmra.mxu1 %vm286_vm2, %v1444_v19  ;;  %v611_v19 = vrot.slane %v609_v17, 2  ;;  %v712_v59 = vsel %vm709_vm5, %v710_v57, %v711_v58  ;;  %v517_v6 = vrot.slane %v507_v2, 1  ;;  %v1031_v58 = vrot.slane %v1593_v51, 3 }
  0x29   : > { %v638_v4 = vrot.slane %v636_v0, 2  ;;  %vm1147_vm8 = vcmask 60416  }
  0x2a   : > { %v612_v24 = vor.u32 %v611_v19, %v608_v20  ;;  %v518_v17 = vsel %vm393_vm3, %v515_v30, %v517_v6  ;;  %v1019_v19 = vld [vmem:[%s1424_s30 + $0x8] sm:$0x8]  ;;  %v933_v30 = vrot.slane %v931_v52, 2  ;;  %v717_v6 = vrot.slane %v1531_v41, 2 }
  0x2b   : > { %1270 = vmatmul.msk.bf16.vlgmr.msrb.gmra.mxu3 %vm286_vm2, %v510_v7  ;;  %1276 = vmatmul.msk.bf16.vlgmr.msrb.gmra.mxu0 %vm286_vm2, %v604_v8 }
  0x2c   : > { %v613_v28 = vsel %vm587_vm4, %v603_v5, %v612_v24  ;;  %v622_v40 = vsel %vm587_vm4, %v612_v24, %v621_v37  ;;  %v783_v5 = vld [vmem:[%s1424_s30 + $0x8] sm:$0xc]  ;;  %v1023_v24 = vunpack.c.l.b16 %v1019_v19 }
  0x2d   : > { %v807_v8 = vunpack.c.l.b16 %v783_v5 }
  0x2e   : > { %v1024_v31 = vpack.c.b16 %v808_v9, %v1023_v24 }
  0x2f   : > { %v818_v20 = vpack.c.b16 %v808_v9, %v807_v8  ;;  %v897_v8 = vld [vmem:[%s1424_s30 + $0x30] sm:$0x7] }
  0x30   : > { %v1026_v34 = vrot.slane %v1024_v31, 3 }
  0x31   : > { %v905_v25 = vshrl.u32 %v818_v20, 16  ;;  %v824_v44 = vrot.slane %v818_v20, 2 }
  0x38   : > { %1243 = vmatmul.msk.bf16.gmra.mxu1 %vm286_vm2, %v1427_v10  ;;  %1248 = vmatmul.msk.bf16.vlgmr.msrb.gmra.mxu2 %vm286_vm2, %v396_v26  ;;  %v397_v10 = vrot.slane %v1430_v11, 1  ;;  %v915_v26 = vrot.slane %v913_v21, 2 }
  0x3a   : > { %v398_v38 = vsel %vm393_vm3, %v395_v22, %v397_v10  ;;  %v400_v56 = vsel %vm393_vm3, %v397_v10, %v399_v49  ;;  %v908_v22 = vshll.u32 %v818_v20, 16  ;;  %v1027_v10 = vrot.slane %v1331_v16, 3 }
  0x3b   : > { %1271 = vmatmul.msk.bf16.gmra.mxu3 %vm286_vm2, %v512_v27  ;;  %1277 = vmatmul.msk.bf16.gmra.mxu0 %vm286_vm2, %v613_v28  ;;  %v918_v28 = vrot.slane %v916_v23, 3  ;;  %v718_v20 = vsel %vm709_vm5, %v715_v55, %v717_v6 }
  0x3c   : > { %v910_v27 = vrot.slane %v908_v22, 3 }
  0x3d   : > { %v919_v33 = vor.u32 %v918_v28, %v915_v26 }
  0x48   : > { %1244 = vmatmul.msk.bf16.gmra.mxu1 %vm286_vm2, %v1430_v11  ;;  %1249 = vmatmul.msk.bf16.gmra.mxu2 %vm286_vm2, %v398_v38  ;;  %v627_v11 = vshll.u32 %v1531_v41, 16  ;;  %v1332_v38 = vld [vmem:[%s1424_s30 + $0x18] sm:$0xff] }
  0x4a   : > { %v629_v47 = vrot.slane %v627_v11, 2  ;;  %v825_v11 = vrot.slane %v1331_v16, 2 }
  0x4b   : > { %1272 = vmatmul.msk.bf16.gmra.mxu3 %vm286_vm2, %v514_v39  ;;  %1278 = vmatmul.msk.bf16.gmra.mxu0 %vm286_vm2, %v622_v40  ;;  %v922_v39 = vshrl.u32 %v1332_v38, 16  ;;  %v925_v40 = vshll.u32 %v1332_v38, 16 }
  0x4c   : > { %v630_v54 = vor.u32 %v629_v47, %v626_v46  ;;  %v826_v47 = vsel %vm709_vm5, %v824_v44, %v825_v11 }
  0x4d   : > { %v924_v42 = vrot.slane %v922_v39, 2  ;;  %v927_v43 = vrot.slane %v925_v40, 3 }
  0x4e   : > { %v631_v60 = vsel %vm587_vm4, %v621_v37, %v630_v54  ;;  %v1028_v37 = vsel %vm1025_vm7, %v1026_v34, %v1027_v10 }
  0x4f   : > { %v928_v46 = vor.u32 %v927_v43, %v924_v42 }
  0x51   : > { %v929_v48 = vsel %vm903_vm6, %v919_v33, %v928_v46 }
  0x58   : > { %1245 = vmatmul.msk.bf16.gmra.mxu1 %vm286_vm2, %v1433_v12  ;;  %1250 = vmatmul.msk.bf16.gmra.mxu2 %vm286_vm2, %v400_v56  ;;  %v633_v12 = vshrl.u32 %v1556_v61, 16  ;;  %v827_v56 = vrot.slane %v1332_v38, 2 }
  0x5a   : > { %v635_v3 = vrot.slane %v633_v12, 1  ;;  %v1610_v12 = vld [vmem:[%s1424_s30 + $0x28] sm:$0xff] }
  0x5b   : > { %1273 = vmatmul.msk.bf16.gmra.mxu3 %vm286_vm2, %v516_v36  ;;  %1279 = vmatmul.msk.bf16.gmra.mxu0 %vm286_vm2, %v631_v60  ;;  %v716_v36 = vsel %vm709_vm5, %v713_v50, %v715_v55  ;;  %v828_v60 = vsel %vm709_vm5, %v825_v11, %v827_v56  ;;  %v940_v15 = vshrl.u32 %v1610_v12, 16  ;;  %v943_v50 = vshll.u32 %v1610_v12, 16 }
  0x5c   : > { %v639_v7 = vor.u32 %v638_v4, %v635_v3  ;;  %v1033_v16 = vrot.slane %v1610_v12, 3 }
  0x5d   : > { %v942_v4 = vrot.slane %v940_v15, 2  ;;  %v945_v5 = vrot.slane %v943_v50, 3 }
  0x5e   : > { %v640_v18 = vsel %vm587_vm4, %v630_v54, %v639_v7  ;;  %v936_v54 = vrot.slane %v934_v53, 3  ;;  %v829_v7 = vrot.slane %v1593_v51, 2  ;;  %v1034_v23 = vsel %vm1025_vm7, %v1031_v58, %v1033_v16 }
  0x60   : > { %v937_v57 = vor.u32 %v936_v54, %v933_v30  ;;  %v830_v19 = vsel %vm709_vm5, %v827_v56, %v829_v7 }
  0x62   : > { %v938_v62 = vsel %vm903_vm6, %v928_v46, %v937_v57 }
  0x68   : > { %1246 = vmatmul.msk.bf16.gmra.mxu1 %vm286_vm2, %v1436_v13  ;;  %1251 = vmatmul.msk.bf16.gmra.mxu2 %vm286_vm2, %v402_v14  ;;  %v907_v13 = vrot.slane %v905_v25, 2  ;;  %v946_v14 = vor.u32 %v945_v5, %v942_v4 }
  0x6a   : > { %v911_v32 = vor.u32 %v910_v27, %v907_v13  ;;  %v947_v41 = vsel %vm903_vm6, %v937_v57, %v946_v14 }
  0x6b   : > { %1274 = vmatmul.msk.bf16.gmra.mxu3 %vm286_vm2, %v518_v17  ;;  %1280 = vmatmul.msk.bf16.gmra.mxu0 %vm286_vm2, %v640_v18  ;;  %v901_v17 = vunpack.c.l.b16 %v897_v8 }
  0x6c   : > { %v920_v35 = vsel %vm903_vm6, %v911_v32, %v919_v33 }
  0x6d   : > { %v902_v24 = vpack.c.b16 %v901_v17, %v901_v17 }
  0x6f   : > { %v949_v13 = vshrl.u32 %v902_v24, 16  ;;  %v952_v27 = vshll.u32 %v902_v24, 16  ;;  %v1035_v40 = vrot.slane %v902_v24, 3 }
  0x71   : > { %v951_v34 = vrot.slane %v949_v13, 2 }
  0x78   : > { %1252 = vmatmul.msk.bf16.gmra.mxu2 %vm286_vm2, %v1540_v45  ;;  %1282 = vmatmul.msk.bf16.vlgmr.msra.gmra.mxu1 %vm286_vm2, %v712_v59  ;;  %v1029_v45 = vrot.slane %v1332_v38, 3 }
  0x7a   : > { %v1030_v49 = vsel %vm1025_vm7, %v1027_v10, %v1029_v45  ;;  %v1032_v29 = vsel %vm1025_vm7, %v1029_v45, %v1031_v58  ;;  %v954_v10 = vrot.slane %v952_v27, 3  ;;  %v793_v45 = vld [vmem:[%s1424_s30 + $0x30] sm:$0x3] }
  0x7b   : > { %1310 = vmatmul.msk.bf16.vlgmr.msra.gmra.mxu3 %vm286_vm2, %v920_v35  ;;  %1316 = vmatmul.msk.bf16.vlgmr.msra.gmra.mxu0 %vm286_vm2, %v1028_v37  ;;  %v719_v35 = vrot.slane %v1556_v61, 2  ;;  %v831_v37 = vrot.slane %v1610_v12, 2 }
  0x7c   : > { %v955_v39 = vor.u32 %v954_v10, %v951_v34 }
  0x7d   : > { %v720_v43 = vsel %vm709_vm5, %v717_v6, %v719_v35  ;;  %v832_v44 = vsel %vm709_vm5, %v829_v7, %v831_v37 }
  0x88   : > { %1283 = vmatmul.msk.bf16.gmra.mxu1 %vm286_vm2, %v714_v1  ;;  %1304 = vmatmul.msk.bf16.vlgmr.msra.gmra.mxu2 %vm286_vm2, %v826_v47  ;;  %v956_v47 = vsel %vm903_vm6, %v946_v14, %v955_v39 }
  0x8b   : > { %1311 = vmatmul.msk.bf16.gmra.mxu3 %vm286_vm2, %v929_v48  ;;  %1317 = vmatmul.msk.bf16.gmra.mxu0 %vm286_vm2, %v1030_v49  ;;  %v1036_v48 = vsel %vm1025_vm7, %v1033_v16, %v1035_v40  ;;  %v817_v49 = vunpack.c.l.b16 %v793_v45 }
  0x8d   : > { %v823_v30 = vpack.c.b16 %v817_v49, %v817_v49 }
  0x95   : > { %v320_v59 = vpop.f32.mrf.mxu1 }
  0x98   : > { %1284 = vmatmul.msk.bf16.gmra.mxu1 %vm286_vm2, %v716_v36  ;;  %1305 = vmatmul.msk.bf16.gmra.mxu2 %vm286_vm2, %v828_v60  ;;  %v315_v63 = vpop.f32.mrf.mxu0 }
  0x9b   : > { %v1612_v0 = vpop.f32.mrf.mxu2  ;;  %1312 = vmatmul.msk.bf16.gmra.mxu3 %vm286_vm2, %v938_v62  ;;  %1318 = vmatmul.msk.bf16.gmra.mxu0 %vm286_vm2, %v1032_v29 }
  0x9d   : > { %v322_v1 = vpop.f32.mrf.mxu1 }
  0x9e   : > { %v1618_v2 = vpop.f32.mrf.mxu3 }
  0xa0   : > { %v317_v3 = vpop.f32.mrf.mxu0 }
  0xa3   : > { %v1623_v9 = vpop.f32.mrf.mxu2 }
  0xa5   : > { %v362_v18 = vpop.f32.mrf.mxu1 }
  0xa6   : > { %v363_v21 = vadd.f32 %v362_v18, %v315_v63  ;;  %v1628_v25 = vpop.f32.mrf.mxu3 }
  0xa8   : > { %1285 = vmatmul.msk.bf16.gmra.mxu1 %vm286_vm2, %v718_v20  ;;  %1306 = vmatmul.msk.bf16.gmra.mxu2 %vm286_vm2, %v830_v19  ;;  %v668_v22 = vpop.f32.mrf.mxu0 }
  0xab   : > { %v330_v26 = vpop.f32.mrf.mxu2  ;;  %1313 = vmatmul.msk.bf16.gmra.mxu3 %vm286_vm2, %v947_v41  ;;  %1319 = vmatmul.msk.bf16.gmra.mxu0 %vm286_vm2, %v1034_v23 }
  0xad   : > { %v364_v28 = vpop.f32.mrf.mxu1 }
  0xae   : > { %v365_v31 = vadd.f32 %v364_v28, %v317_v3  ;;  %v546_v32 = vpop.f32.mrf.mxu3 }
  0xb0   : > { %v670_v33 = vpop.f32.mrf.mxu0 }
  0xb3   : > { %v332_v38 = vpop.f32.mrf.mxu2 }
  0xb5   : > { %v367_v42 = vpop.f32.mrf.mxu1 }
  0xb6   : > { %v368_v11 = vadd.f32 %v367_v42, %v320_v59  ;;  %v548_v46 = vpop.f32.mrf.mxu3  ;;  %v833_v59 = vrot.slane %v823_v30, 2 }
  0xb8   : > { %1286 = vmatmul.msk.bf16.gmra.mxu1 %vm286_vm2, %v720_v43  ;;  %1307 = vmatmul.msk.bf16.gmra.mxu2 %vm286_vm2, %v832_v44  ;;  %v673_v61 = vpop.f32.mrf.mxu0  ;;  %v834_v63 = vsel %vm709_vm5, %v831_v37, %v833_v59 }
  0xbb   : > { %v432_v51 = vpop.f32.mrf.mxu2  ;;  %1314 = vmatmul.msk.bf16.gmra.mxu3 %vm286_vm2, %v956_v47  ;;  %1320 = vmatmul.msk.bf16.gmra.mxu0 %vm286_vm2, %v1036_v48 }
  0xbc   : > { %v457_v52 = vadd.f32 %v432_v51, %v363_v21 }
  0xbd   : > { %v369_v53 = vpop.f32.mrf.mxu1 }
  0xbe   : > { %v571_v54 = vadd.f32 %v546_v32, %v457_v52  ;;  %v370_v55 = vadd.f32 %v369_v53, %v322_v1  ;;  %v551_v56 = vpop.f32.mrf.mxu3 }
  0xc0   : > { %v675_v57 = vpop.f32.mrf.mxu0  ;;  %v1647_v58 = vadd.f32 %v668_v22, %v571_v54 }
  0xc3   : > { %v434_v36 = vpop.f32.mrf.mxu2 }
  0xc4   : > { %v458_v60 = vadd.f32 %v434_v36, %v365_v31 }
  0xc5   : > { %v372_v62 = vpop.f32.mrf.mxu1 }
  0xc6   : > { %v572_v29 = vadd.f32 %v548_v46, %v458_v60  ;;  %v373_v12 = vadd.f32 %v372_v62, %v1612_v0  ;;  %v553_v15 = vpop.f32.mrf.mxu3 }
  0xc8   : > { %1308 = vmatmul.msk.bf16.gmra.mxu2 %vm286_vm2, %v834_v63  ;;  %v678_v50 = vpop.f32.mrf.mxu0  ;;  %v1652_v3 = vadd.f32 %v670_v33, %v572_v29 }
  0xcb   : > { %v437_v1 = vpop.f32.mrf.mxu2 }
  0xcc   : > { %v459_v4 = vadd.f32 %v437_v1, %v368_v11 }
  0xcd   : > { %v374_v5 = vpop.f32.mrf.mxu1 }
  0xce   : > { %v573_v6 = vadd.f32 %v551_v56, %v459_v4  ;;  %v375_v7 = vadd.f32 %v374_v5, %v1623_v9  ;;  %v556_v8 = vpop.f32.mrf.mxu3  ;;  %v1677_v5 = vld [vmem:[%s1744_s2] ss:$0 sm:$0xff] }
  0xd0   : > { %v680_v14 = vpop.f32.mrf.mxu0  ;;  %v1655_v16 = vadd.f32 %v673_v61, %v573_v6 }
  0xd3   : > { %v439_v17 = vpop.f32.mrf.mxu2 }
  0xd4   : > { %v460_v18 = vadd.f32 %v439_v17, %v370_v55 }
  0xd5   : > { %v377_v20 = vpop.f32.mrf.mxu1 }
  0xd6   : > { %v574_v0 = vadd.f32 %v553_v15, %v460_v18  ;;  %v378_v19 = vadd.f32 %v377_v20, %v330_v26  ;;  %v558_v21 = vpop.f32.mrf.mxu3 }
  0xd8   : > { %v683_v41 = vpop.f32.mrf.mxu0  ;;  %v1657_v22 = vadd.f32 %v675_v57, %v574_v0 }
  0xdb   : > { %v442_v23 = vpop.f32.mrf.mxu2 }
  0xdc   : > { %v461_v24 = vadd.f32 %v442_v23, %v373_v12 }
  0xdd   : > { %v379_v13 = vpop.f32.mrf.mxu1 }
  0xde   : > { %v575_v27 = vadd.f32 %v556_v8, %v461_v24  ;;  %v380_v28 = vadd.f32 %v379_v13, %v332_v38  ;;  %v561_v31 = vpop.f32.mrf.mxu3  ;;  %v1682_v8 = vld [vmem:[%s1745_s3] ss:$0 sm:$0xff] }
  0xe0   : > { %v685_v9 = vpop.f32.mrf.mxu0  ;;  %v1659_v32 = vadd.f32 %v678_v50, %v575_v27 }
  0xe3   : > { %v444_v33 = vpop.f32.mrf.mxu2 }
  0xe4   : > { %v462_v34 = vadd.f32 %v444_v33, %v375_v7 }
  0xe5   : > { %v382_v10 = vpop.f32.mrf.mxu1 }
  0xe6   : > { %v576_v35 = vadd.f32 %v558_v21, %v462_v34  ;;  %v383_v37 = vadd.f32 %v382_v10, %v1618_v2  ;;  %v563_v26 = vpop.f32.mrf.mxu3 }
  0xe8   : > { %v1662_v39 = vadd.f32 %v680_v14, %v576_v35  ;;  %v688_v40 = vpop.f32.mrf.mxu0 }
  0xeb   : > { %v447_v42 = vpop.f32.mrf.mxu2 }
  0xec   : > { %v463_v43 = vadd.f32 %v447_v42, %v378_v19 }
  0xed   : > { %v384_v44 = vpop.f32.mrf.mxu1 }
  0xee   : > { %v577_v11 = vadd.f32 %v561_v31, %v463_v43  ;;  %v385_v38 = vadd.f32 %v384_v44, %v1628_v25  ;;  %v566_v46 = vpop.f32.mrf.mxu3 }
  0xf0   : > { %v1665_v45 = vadd.f32 %v683_v41, %v577_v11  ;;  %v690_v61 = vpop.f32.mrf.mxu0 }
  0xf3   : > { %v449_v47 = vpop.f32.mrf.mxu2 }
  0xf4   : > { %v464_v48 = vadd.f32 %v449_v47, %v380_v28 }
  0xf5   : > { %v748_v49 = vpop.f32.mrf.mxu1 }
  0xf6   : > { %v578_v51 = vadd.f32 %v563_v26, %v464_v48  ;;  %v568_v52 = vpop.f32.mrf.mxu3  ;;  %v773_v15 = vadd.f32 %v748_v49, %v1647_v58 }
  0xf8   : > { %v1667_v2 = vadd.f32 %v685_v9, %v578_v51  ;;  %v1064_v54 = vpop.f32.mrf.mxu0 }
  0xfb   : > { %v452_v53 = vpop.f32.mrf.mxu2 }
  0xfc   : > { %v465_v30 = vadd.f32 %v452_v53, %v383_v37 }
  0xfd   : > { %v750_v57 = vpop.f32.mrf.mxu1 }
  0xfe   : > { %v579_v55 = vadd.f32 %v566_v46, %v465_v30  ;;  %v984_v56 = vpop.f32.mrf.mxu3  ;;  %v774_v17 = vadd.f32 %v750_v57, %v1652_v3 }
 0x100   : > { %v1669_v59 = vadd.f32 %v688_v40, %v579_v55  ;;  %v1066_v63 = vpop.f32.mrf.mxu0 }
 0x103   : > { %v454_v25 = vpop.f32.mrf.mxu2 }
 0x104   : > { %v466_v36 = vadd.f32 %v454_v25, %v385_v38 }
 0x105   : > { %v753_v12 = vpop.f32.mrf.mxu1 }
 0x106   : > { %v580_v60 = vadd.f32 %v568_v52, %v466_v36  ;;  %v986_v62 = vpop.f32.mrf.mxu3  ;;  %v775_v13 = vadd.f32 %v753_v12, %v1655_v16 }
 0x108   : > { %v1671_v29 = vadd.f32 %v690_v61, %v580_v60  ;;  %v1069_v14 = vpop.f32.mrf.mxu0 }
 0x10b   : > { %v862_v50 = vpop.f32.mrf.mxu2 }
 0x10c   : > { %v887_v1 = vadd.f32 %v862_v50, %v773_v15 }
 0x10d   : > { %v755_v18 = vpop.f32.mrf.mxu1 }
 0x10e   : > { %v1009_v4 = vadd.f32 %v984_v56, %v887_v1  ;;  %v989_v6 = vpop.f32.mrf.mxu3  ;;  %v776_v40 = vadd.f32 %v755_v18, %v1657_v22 }
 0x110   : > { %v1089_v7 = vadd.f32 %v1064_v54, %v1009_v4  ;;  %v1071_v31 = vpop.f32.mrf.mxu0 }
 0x112   : > { %v1103_v58 = vmul.f32 %v1677_v5, %v1089_v7 }
 0x113   : > { %v864_v20 = vpop.f32.mrf.mxu2 }
 0x114   : > { %v1117_v0 = vadd.f32 %v1682_v8, %v1103_v58  ;;  %v888_v19 = vadd.f32 %v864_v20, %v774_v17 }
 0x115   : > { %v758_v34 = vpop.f32.mrf.mxu1 }
 0x116   : > { %v1127_v21 = vmax.f32 %v1117_v0, 0.0  ;;  %v1010_v41 = vadd.f32 %v986_v62, %v888_v19  ;;  %v991_v24 = vpop.f32.mrf.mxu3  ;;  %v777_v51 = vadd.f32 %v758_v34, %v1659_v32 }
 0x118   : > { %v1137_v23 = vpack.c.bf16 %v1127_v21, %v1127_v21  ;;  %v1090_v3 = vadd.f32 %v1066_v63, %v1010_v41  ;;  %v1074_v38 = vpop.f32.mrf.mxu0 }
 0x11a   : > { %1148 = vst.msk [vmem:[%s1691_s22] sm:$0xf] %vm1147_vm8, %v1137_v23  ;;  %v1104_v27 = vmul.f32 %v1677_v5, %v1090_v3 }
 0x11b   : > { %v867_v28 = vpop.f32.mrf.mxu2 }
 0x11c   : > { %v1118_v9 = vadd.f32 %v1682_v8, %v1104_v27  ;;  %v889_v33 = vadd.f32 %v867_v28, %v775_v13 }
 0x11d   : > { %v760_v61 = vpop.f32.mrf.mxu1 }
 0x11e   : > { %v1128_v10 = vmax.f32 %v1118_v9, 0.0  ;;  %v1011_v35 = vadd.f32 %v989_v6, %v889_v33  ;;  %v994_v43 = vpop.f32.mrf.mxu3  ;;  %v778_v62 = vadd.f32 %v760_v61, %v1662_v39 }
 0x120   : > { %v1138_v37 = vpack.c.bf16 %v1128_v10, %v1128_v10  ;;  %v1091_v26 = vadd.f32 %v1069_v14, %v1011_v35  ;;  %v1076_v57 = vpop.f32.mrf.mxu0 }
 0x122   : > { %1149 = vst.msk [vmem:[%s1691_s22 + $0x4] sm:$0xf] %vm1147_vm8, %v1138_v37  ;;  %v1105_v16 = vmul.f32 %v1677_v5, %v1091_v26 }
 0x123   : > { %v869_v42 = vpop.f32.mrf.mxu2 }
 0x124   : > { %v1119_v44 = vadd.f32 %v1682_v8, %v1105_v16  ;;  %v890_v11 = vadd.f32 %v869_v42, %v776_v40 }
 0x125   : > { %v763_v60 = vpop.f32.mrf.mxu1 }
 0x126   : > { %v1129_v46 = vmax.f32 %v1119_v44, 0.0  ;;  %v1012_v47 = vadd.f32 %v991_v24, %v890_v11  ;;  %v996_v54 = vpop.f32.mrf.mxu3  ;;  %v779_v17 = vadd.f32 %v763_v60, %v1665_v45 }
 0x128   : > { %v1139_v48 = vpack.c.bf16 %v1129_v46, %v1129_v46  ;;  %v1092_v49 = vadd.f32 %v1071_v31, %v1012_v47  ;;  %v1079_v14 = vpop.f32.mrf.mxu0 }
 0x12a   : > { %1150 = vst.msk [vmem:[%s1691_s22 + $0x8] sm:$0xf] %vm1147_vm8, %v1139_v48  ;;  %v1106_v22 = vmul.f32 %v1677_v5, %v1092_v49 }
 0x12b   : > { %v872_v52 = vpop.f32.mrf.mxu2 }
 0x12c   : > { %v1120_v53 = vadd.f32 %v1682_v8, %v1106_v22  ;;  %v891_v30 = vadd.f32 %v872_v52, %v777_v51 }
 0x12d   : > { %v765_v58 = vpop.f32.mrf.mxu1 }
 0x12e   : > { %v1130_v55 = vmax.f32 %v1120_v53, 0.0  ;;  %v1013_v56 = vadd.f32 %v994_v43, %v891_v30  ;;  %v999_v4 = vpop.f32.mrf.mxu3  ;;  %v780_v24 = vadd.f32 %v765_v58, %v1667_v2 }
 0x130   : > { %v1140_v25 = vpack.c.bf16 %v1130_v55, %v1130_v55  ;;  %v1093_v36 = vadd.f32 %v1074_v38, %v1013_v56  ;;  %v1081_v13 = vpop.f32.mrf.mxu0 }
 0x132   : > { %1151 = vst.msk [vmem:[%s1691_s22 + $0xc] sm:$0xf] %vm1147_vm8, %v1140_v25  ;;  %v1107_v32 = vmul.f32 %v1677_v5, %v1093_v36 }
 0x133   : > { %v874_v63 = vpop.f32.mrf.mxu2 }
 0x134   : > { %v1121_v12 = vadd.f32 %v1682_v8, %v1107_v32  ;;  %v892_v15 = vadd.f32 %v874_v63, %v778_v62 }
 0x135   : > { %v768_v9 = vpop.f32.mrf.mxu1 }
 0x136   : > { %v1131_v50 = vmax.f32 %v1121_v12, 0.0  ;;  %v1014_v1 = vadd.f32 %v996_v54, %v892_v15  ;;  %v1001_v3 = vpop.f32.mrf.mxu3  ;;  %v781_v37 = vadd.f32 %v768_v9, %v1669_v59 }
 0x138   : > { %v1141_v6 = vpack.c.bf16 %v1131_v50, %v1131_v50  ;;  %v1094_v7 = vadd.f32 %v1076_v57, %v1014_v1  ;;  %v1084_v43 = vpop.f32.mrf.mxu0 }
 0x13a   : > { %1152 = vst.msk [vmem:[%s1691_s22 + $0x10] sm:$0xf] %vm1147_vm8, %v1141_v6  ;;  %v1108_v39 = vmul.f32 %v1677_v5, %v1094_v7 }
 0x13b   : > { %v877_v18 = vpop.f32.mrf.mxu2 }
 0x13c   : > { %v1122_v20 = vadd.f32 %v1682_v8, %v1108_v39  ;;  %v893_v0 = vadd.f32 %v877_v18, %v779_v17 }
 0x13d   : > { %v770_v38 = vpop.f32.mrf.mxu1 }
 0x13e   : > { %v1132_v19 = vmax.f32 %v1122_v20, 0.0  ;;  %v1015_v21 = vadd.f32 %v999_v4, %v893_v0  ;;  %v1004_v26 = vpop.f32.mrf.mxu3  ;;  %v782_v61 = vadd.f32 %v770_v38, %v1671_v29 }
 0x140   : > { %v1142_v41 = vpack.c.bf16 %v1132_v19, %v1132_v19  ;;  %v1095_v23 = vadd.f32 %v1079_v14, %v1015_v21  ;;  %v1086_v30 = vpop.f32.mrf.mxu0 }
 0x142   : > { %1153 = vst.msk [vmem:[%s1691_s22 + $0x14] sm:$0xf] %vm1147_vm8, %v1142_v41  ;;  %v1109_v45 = vmul.f32 %v1677_v5, %v1095_v23 }
 0x143   : > { %v879_v27 = vpop.f32.mrf.mxu2 }
 0x144   : > { %v1123_v28 = vadd.f32 %v1682_v8, %v1109_v45  ;;  %v894_v31 = vadd.f32 %v879_v27, %v780_v24 }
 0x146   : > { %v1133_v33 = vmax.f32 %v1123_v28, 0.0  ;;  %v1016_v34 = vadd.f32 %v1001_v3, %v894_v31  ;;  %v1006_v22 = vpop.f32.mrf.mxu3 }
 0x148   : > { %v1143_v10 = vpack.c.bf16 %v1133_v33, %v1133_v33  ;;  %v1096_v35 = vadd.f32 %v1081_v13, %v1016_v34 }
 0x14a   : > { %1154 = vst.msk [vmem:[%s1691_s22 + $0x18] sm:$0xf] %vm1147_vm8, %v1143_v10  ;;  %v1110_v2 = vmul.f32 %v1677_v5, %v1096_v35 }
 0x14b   : > { %v882_v40 = vpop.f32.mrf.mxu2 }
 0x14c   : > { %v1124_v16 = vadd.f32 %v1682_v8, %v1110_v2  ;;  %v895_v42 = vadd.f32 %v882_v40, %v781_v37 }
 0x14e   : > { %v1134_v44 = vmax.f32 %v1124_v16, 0.0  ;;  %v1017_v11 = vadd.f32 %v1004_v26, %v895_v42 }
 0x150   : > { %v1144_v46 = vpack.c.bf16 %v1134_v44, %v1134_v44  ;;  %v1097_v47 = vadd.f32 %v1084_v43, %v1017_v11 }
 0x152   : > { %1155 = vst.msk [vmem:[%s1691_s22 + $0x1c] sm:$0xf] %vm1147_vm8, %v1144_v46  ;;  %v1111_v59 = vmul.f32 %v1677_v5, %v1097_v47 }
 0x153   : > { %v884_v48 = vpop.f32.mrf.mxu2 }
 0x154   : > { %v1125_v49 = vadd.f32 %v1682_v8, %v1111_v59  ;;  %v896_v51 = vadd.f32 %v884_v48, %v782_v61 }
 0x156   : > { %v1135_v52 = vmax.f32 %v1125_v49, 0.0  ;;  %v1018_v53 = vadd.f32 %v1006_v22, %v896_v51 }
 0x158   : > { %v1145_v54 = vpack.c.bf16 %v1135_v52, %v1135_v52  ;;  %v1098_v55 = vadd.f32 %v1086_v30, %v1018_v53 }
 0x15a   : > { %1156 = vst.msk [vmem:[%s1691_s22 + $0x20] sm:$0xf] %vm1147_vm8, %v1145_v54  ;;  %v1112_v56 = vmul.f32 %v1677_v5, %v1098_v55 }
 0x15c   : > { %v1126_v29 = vadd.f32 %v1682_v8, %v1112_v56 }
 0x15e   : > { %v1136_v57 = vmax.f32 %v1126_v29, 0.0 }
 0x160   : > { %v1146_v25 = vpack.c.bf16 %v1136_v57, %v1136_v57 }
 0x162   : > { %1157 = vst.msk [vmem:[%s1691_s22 + $0x24] sm:$0xf] %vm1147_vm8, %v1146_v25 }
 0x163 PF: > { %s14_s15 = sadd.s32 1, %s1363_s15  }
 0x164   : > { %p11_p4 = scmp.ge.s32.totalorder %s14_s15, 4  }
 0x166   :  { %13 = sbr.rel (!%p11_p4) target bundleno = 1 (0x1), region = 74 }

// kernel: prm_forward.21
= control target key start
LH: loop header
LB: loop body
LE: loop exit
PB: predicated region body
PF: predicated region fallthrough
CT: control target
= control target key end

     0   :  { %vm100_vm0 = vcmask 1043456   ;;  %vm75_vm1 = vcmask 64512   ;;  %vm225_vm2 = vcmask 60416   ;;  %s465_s1 = inlined_call_operand.vmem [shape: bf16[8,8], index: 1, kind: input, shape index: {}]   ;;  %s466_s0 = inlined_call_operand.vmem [shape: bf16[128,8], index: 0, kind: input, shape index: {}]   ;;  %s467_s2 = inlined_call_operand.vmem [shape: f32[1,8], index: 2, kind: input, shape index: {}]   ;;  %s468_s3 = inlined_call_operand.vmem [shape: f32[1,8], index: 3, kind: input, shape index: {}]   ;;  %s469_s4 = inlined_call_operand.vmem [shape: bf16[128,8], index: 4, kind: output, shape index: {}]  }
   0x1   :  { %v34_v0 = vld [vmem:[%s465_s1] sm:$0xf]  ;;  %v288_v3 = vld [vmem:[%s466_s0 + $0x10] sm:$0xff]  ;;  %v287_v6 = vld [vmem:[%s466_s0 + $0x8] sm:$0xff] }
   0x2   :  { %v102_v1 = vsel %vm100_vm0, %v34_v0, 0  ;;  %v286_v2 = vld [vmem:[%s466_s0] sm:$0xff]  ;;  %v292_v5 = vld [vmem:[%s466_s0 + $0x30] sm:$0xff]  ;;  %v289_v7 = vld [vmem:[%s466_s0 + $0x18] sm:$0xff] }
   0x3   :  { %111 = vmatpush.bf16.msra.mxu0 %v102_v1  ;;  %294 = vmatpush.bf16.msra.mxu1 %v102_v1  ;;  %v290_v4 = vld [vmem:[%s466_s0 + $0x20] sm:$0xff]  ;;  %v291_v8 = vld [vmem:[%s466_s0 + $0x28] sm:$0xff]  ;;  %v293_v9 = vld [vmem:[%s466_s0 + $0x38] sm:$0xff] }
   0x4   :  { %295 = vmatpush.bf16.msra.mxu2 %v102_v1  ;;  %296 = vmatpush.bf16.msra.mxu3 %v102_v1  ;;  %v362_v10 = vld [vmem:[%s467_s2] ss:$0 sm:$0xff] }
   0x5   :  { %v367_v11 = vld [vmem:[%s468_s3] ss:$0 sm:$0xff] }
   0x6   :  { %278 = vmatmul.msk.bf16.vlgmr.msra.gmra.mxu0 %vm75_vm1, %v286_v2  ;;  %280 = vmatmul.msk.bf16.vlgmr.msra.gmra.mxu1 %vm75_vm1, %v288_v3 }
   0x7   :  { %282 = vmatmul.msk.bf16.vlgmr.msra.gmra.mxu2 %vm75_vm1, %v290_v4  ;;  %284 = vmatmul.msk.bf16.vlgmr.msra.gmra.mxu3 %vm75_vm1, %v292_v5 }
  0x16   :  { %279 = vmatmul.msk.bf16.gmra.mxu0 %vm75_vm1, %v287_v6  ;;  %281 = vmatmul.msk.bf16.gmra.mxu1 %vm75_vm1, %v289_v7 }
  0x17   :  { %283 = vmatmul.msk.bf16.gmra.mxu2 %vm75_vm1, %v291_v8  ;;  %285 = vmatmul.msk.bf16.gmra.mxu3 %vm75_vm1, %v293_v9 }
  0x83   :  { %v113_v12 = vpop.f32.mrf.mxu0  ;;  %v123_v13 = vpop.f32.mrf.mxu1 }
  0x84   :  { %v157_v14 = vmul.f32 %v362_v10, %v113_v12  ;;  %v161_v15 = vmul.f32 %v362_v10, %v123_v13 }
  0x86   :  { %v177_v16 = vadd.f32 %v367_v11, %v157_v14  ;;  %v181_v17 = vadd.f32 %v367_v11, %v161_v15 }
  0x88   :  { %v193_v18 = vmax.f32 %v177_v16, 0.0  ;;  %v197_v19 = vmax.f32 %v181_v17, 0.0 }
  0x8a   :  { %v209_v20 = vpack.c.bf16 %v193_v18, %v193_v18  ;;  %v213_v21 = vpack.c.bf16 %v197_v19, %v197_v19  ;;  %v133_v22 = vpop.f32.mrf.mxu2  ;;  %v143_v23 = vpop.f32.mrf.mxu3 }
  0x8b   :  { %v165_v24 = vmul.f32 %v362_v10, %v133_v22  ;;  %v169_v25 = vmul.f32 %v362_v10, %v143_v23  ;;  %v115_v26 = vpop.f32.mrf.mxu0  ;;  %v125_v27 = vpop.f32.mrf.mxu1 }
  0x8c   :  { %226 = vst.msk [vmem:[%s469_s4] sm:$0xf] %vm225_vm2, %v209_v20  ;;  %v158_v28 = vmul.f32 %v362_v10, %v115_v26  ;;  %v162_v29 = vmul.f32 %v362_v10, %v125_v27 }
  0x8d   :  { %230 = vst.msk [vmem:[%s469_s4 + $0x10] sm:$0xf] %vm225_vm2, %v213_v21  ;;  %v185_v30 = vadd.f32 %v367_v11, %v165_v24  ;;  %v189_v31 = vadd.f32 %v367_v11, %v169_v25 }
  0x8e   :  { %v178_v32 = vadd.f32 %v367_v11, %v158_v28  ;;  %v182_v33 = vadd.f32 %v367_v11, %v162_v29 }
  0x8f   :  { %v201_v34 = vmax.f32 %v185_v30, 0.0  ;;  %v205_v35 = vmax.f32 %v189_v31, 0.0 }
  0x90   :  { %v194_v36 = vmax.f32 %v178_v32, 0.0  ;;  %v198_v37 = vmax.f32 %v182_v33, 0.0 }
  0x91   :  { %v217_v38 = vpack.c.bf16 %v201_v34, %v201_v34  ;;  %v221_v39 = vpack.c.bf16 %v205_v35, %v205_v35 }
  0x92   :  { %v210_v40 = vpack.c.bf16 %v194_v36, %v194_v36  ;;  %v214_v41 = vpack.c.bf16 %v198_v37, %v198_v37  ;;  %v135_v42 = vpop.f32.mrf.mxu2  ;;  %v145_v43 = vpop.f32.mrf.mxu3 }
  0x93   :  { %234 = vst.msk [vmem:[%s469_s4 + $0x20] sm:$0xf] %vm225_vm2, %v217_v38  ;;  %v166_v44 = vmul.f32 %v362_v10, %v135_v42  ;;  %v170_v45 = vmul.f32 %v362_v10, %v145_v43  ;;  %v118_v46 = vpop.f32.mrf.mxu0  ;;  %v128_v47 = vpop.f32.mrf.mxu1 }
  0x94   :  { %238 = vst.msk [vmem:[%s469_s4 + $0x30] sm:$0xf] %vm225_vm2, %v221_v39  ;;  %v159_v48 = vmul.f32 %v362_v10, %v118_v46  ;;  %v163_v49 = vmul.f32 %v362_v10, %v128_v47 }
  0x95   :  { %227 = vst.msk [vmem:[%s469_s4 + $0x4] sm:$0xf] %vm225_vm2, %v210_v40  ;;  %v186_v50 = vadd.f32 %v367_v11, %v166_v44  ;;  %v190_v51 = vadd.f32 %v367_v11, %v170_v45 }
  0x96   :  { %231 = vst.msk [vmem:[%s469_s4 + $0x14] sm:$0xf] %vm225_vm2, %v214_v41  ;;  %v179_v52 = vadd.f32 %v367_v11, %v159_v48  ;;  %v183_v53 = vadd.f32 %v367_v11, %v163_v49 }
  0x97   :  { %v202_v54 = vmax.f32 %v186_v50, 0.0  ;;  %v206_v55 = vmax.f32 %v190_v51, 0.0 }
  0x98   :  { %v195_v56 = vmax.f32 %v179_v52, 0.0  ;;  %v199_v57 = vmax.f32 %v183_v53, 0.0 }
  0x99   :  { %v218_v58 = vpack.c.bf16 %v202_v54, %v202_v54  ;;  %v222_v59 = vpack.c.bf16 %v206_v55, %v206_v55 }
  0x9a   :  { %v211_v60 = vpack.c.bf16 %v195_v56, %v195_v56  ;;  %v215_v61 = vpack.c.bf16 %v199_v57, %v199_v57  ;;  %v138_v62 = vpop.f32.mrf.mxu2  ;;  %v148_v63 = vpop.f32.mrf.mxu3 }
  0x9b   :  { %235 = vst.msk [vmem:[%s469_s4 + $0x24] sm:$0xf] %vm225_vm2, %v218_v58  ;;  %v167_v0 = vmul.f32 %v362_v10, %v138_v62  ;;  %v171_v1 = vmul.f32 %v362_v10, %v148_v63  ;;  %v120_v2 = vpop.f32.mrf.mxu0  ;;  %v130_v3 = vpop.f32.mrf.mxu1 }
  0x9c   :  { %239 = vst.msk [vmem:[%s469_s4 + $0x34] sm:$0xf] %vm225_vm2, %v222_v59  ;;  %v160_v4 = vmul.f32 %v362_v10, %v120_v2  ;;  %v164_v5 = vmul.f32 %v362_v10, %v130_v3 }
  0x9d   :  { %228 = vst.msk [vmem:[%s469_s4 + $0x8] sm:$0xf] %vm225_vm2, %v211_v60  ;;  %v187_v6 = vadd.f32 %v367_v11, %v167_v0  ;;  %v191_v7 = vadd.f32 %v367_v11, %v171_v1 }
  0x9e   :  { %232 = vst.msk [vmem:[%s469_s4 + $0x18] sm:$0xf] %vm225_vm2, %v215_v61  ;;  %v180_v8 = vadd.f32 %v367_v11, %v160_v4  ;;  %v184_v9 = vadd.f32 %v367_v11, %v164_v5 }
  0x9f   :  { %v203_v12 = vmax.f32 %v187_v6, 0.0  ;;  %v207_v13 = vmax.f32 %v191_v7, 0.0 }
  0xa0   :  { %v196_v14 = vmax.f32 %v180_v8, 0.0  ;;  %v200_v15 = vmax.f32 %v184_v9, 0.0 }
  0xa1   :  { %v219_v16 = vpack.c.bf16 %v203_v12, %v203_v12  ;;  %v223_v17 = vpack.c.bf16 %v207_v13, %v207_v13 }
  0xa2   :  { %v212_v18 = vpack.c.bf16 %v196_v14, %v196_v14  ;;  %v216_v19 = vpack.c.bf16 %v200_v15, %v200_v15  ;;  %v140_v20 = vpop.f32.mrf.mxu2  ;;  %v150_v21 = vpop.f32.mrf.mxu3 }
  0xa3   :  { %236 = vst.msk [vmem:[%s469_s4 + $0x28] sm:$0xf] %vm225_vm2, %v219_v16  ;;  %v168_v22 = vmul.f32 %v362_v10, %v140_v20  ;;  %v172_v23 = vmul.f32 %v362_v10, %v150_v21 }
  0xa4   :  { %240 = vst.msk [vmem:[%s469_s4 + $0x38] sm:$0xf] %vm225_vm2, %v223_v17 }
  0xa5   :  { %229 = vst.msk [vmem:[%s469_s4 + $0xc] sm:$0xf] %vm225_vm2, %v212_v18  ;;  %v188_v24 = vadd.f32 %v367_v11, %v168_v22  ;;  %v192_v25 = vadd.f32 %v367_v11, %v172_v23 }
  0xa6   :  { %233 = vst.msk [vmem:[%s469_s4 + $0x1c] sm:$0xf] %vm225_vm2, %v216_v19 }
  0xa7   :  { %v204_v10 = vmax.f32 %v188_v24, 0.0  ;;  %v208_v26 = vmax.f32 %v192_v25, 0.0 }
  0xa9   :  { %v220_v27 = vpack.c.bf16 %v204_v10, %v204_v10  ;;  %v224_v28 = vpack.c.bf16 %v208_v26, %v208_v26 }
  0xab   :  { %237 = vst.msk [vmem:[%s469_s4 + $0x2c] sm:$0xf] %vm225_vm2, %v220_v27 }
  0xac   :  { %241 = vst.msk [vmem:[%s469_s4 + $0x3c] sm:$0xf] %vm225_vm2, %v224_v28 }

// kernel: prm_forward.22
= control target key start
LH: loop header
LB: loop body
LE: loop exit
PB: predicated region body
PF: predicated region fallthrough
CT: control target
= control target key end

     0   :  { %vm94_vm0 = vcmask 1043456   ;;  %vm69_vm1 = vcmask 64512   ;;  %vm163_vm2 = vcmask 125952   ;;  %s349_s1 = inlined_call_operand.vmem [shape: bf16[8,16], index: 1, kind: input, shape index: {}]   ;;  %s350_s0 = inlined_call_operand.vmem [shape: bf16[128,8], index: 0, kind: input, shape index: {}]   ;;  %s351_s2 = inlined_call_operand.vmem [shape: bf16[128,16], index: 2, kind: output, shape index: {}]  }
   0x1   :  { %v28_v0 = vld [vmem:[%s349_s1] sm:$0xf]  ;;  %v226_v3 = vld [vmem:[%s350_s0 + $0x10] sm:$0xff]  ;;  %v225_v6 = vld [vmem:[%s350_s0 + $0x8] sm:$0xff] }
   0x2   :  { %v96_v1 = vsel %vm94_vm0, %v28_v0, 0  ;;  %v224_v2 = vld [vmem:[%s350_s0] sm:$0xff]  ;;  %v230_v5 = vld [vmem:[%s350_s0 + $0x30] sm:$0xff]  ;;  %v227_v7 = vld [vmem:[%s350_s0 + $0x18] sm:$0xff] }
   0x3   :  { %105 = vmatpush.bf16.msra.mxu0 %v96_v1  ;;  %232 = vmatpush.bf16.msra.mxu1 %v96_v1  ;;  %v228_v4 = vld [vmem:[%s350_s0 + $0x20] sm:$0xff]  ;;  %v229_v8 = vld [vmem:[%s350_s0 + $0x28] sm:$0xff]  ;;  %v231_v9 = vld [vmem:[%s350_s0 + $0x38] sm:$0xff] }
   0x4   :  { %233 = vmatpush.bf16.msra.mxu2 %v96_v1  ;;  %234 = vmatpush.bf16.msra.mxu3 %v96_v1 }
   0x6   :  { %216 = vmatmul.msk.bf16.vlgmr.msra.gmra.mxu0 %vm69_vm1, %v224_v2  ;;  %218 = vmatmul.msk.bf16.vlgmr.msra.gmra.mxu1 %vm69_vm1, %v226_v3 }
   0x7   :  { %220 = vmatmul.msk.bf16.vlgmr.msra.gmra.mxu2 %vm69_vm1, %v228_v4  ;;  %222 = vmatmul.msk.bf16.vlgmr.msra.gmra.mxu3 %vm69_vm1, %v230_v5 }
  0x16   :  { %217 = vmatmul.msk.bf16.gmra.mxu0 %vm69_vm1, %v225_v6  ;;  %219 = vmatmul.msk.bf16.gmra.mxu1 %vm69_vm1, %v227_v7 }
  0x17   :  { %221 = vmatmul.msk.bf16.gmra.mxu2 %vm69_vm1, %v229_v8  ;;  %223 = vmatmul.msk.bf16.gmra.mxu3 %vm69_vm1, %v231_v9 }
  0x83   :  { %v107_v10 = vpop.f32.mrf.mxu0  ;;  %v117_v11 = vpop.f32.mrf.mxu1 }
  0x84   :  { %v147_v12 = vpack.c.bf16 %v107_v10, %v107_v10  ;;  %v151_v13 = vpack.c.bf16 %v117_v11, %v117_v11 }
  0x86   :  { %164 = vst.msk [vmem:[%s351_s2] sm:$0xf] %vm163_vm2, %v147_v12 }
  0x87   :  { %168 = vst.msk [vmem:[%s351_s2 + $0x10] sm:$0xf] %vm163_vm2, %v151_v13 }
  0x8a   :  { %v127_v14 = vpop.f32.mrf.mxu2  ;;  %v137_v15 = vpop.f32.mrf.mxu3 }
  0x8b   :  { %v155_v16 = vpack.c.bf16 %v127_v14, %v127_v14  ;;  %v159_v17 = vpack.c.bf16 %v137_v15, %v137_v15  ;;  %v109_v18 = vpop.f32.mrf.mxu0  ;;  %v119_v19 = vpop.f32.mrf.mxu1 }
  0x8c   :  { %v148_v20 = vpack.c.bf16 %v109_v18, %v109_v18  ;;  %v152_v21 = vpack.c.bf16 %v119_v19, %v119_v19 }
  0x8d   :  { %172 = vst.msk [vmem:[%s351_s2 + $0x20] sm:$0xf] %vm163_vm2, %v155_v16 }
  0x8e   :  { %176 = vst.msk [vmem:[%s351_s2 + $0x30] sm:$0xf] %vm163_vm2, %v159_v17 }
  0x8f   :  { %165 = vst.msk [vmem:[%s351_s2 + $0x4] sm:$0xf] %vm163_vm2, %v148_v20 }
  0x90   :  { %169 = vst.msk [vmem:[%s351_s2 + $0x14] sm:$0xf] %vm163_vm2, %v152_v21 }
  0x92   :  { %v129_v22 = vpop.f32.mrf.mxu2  ;;  %v139_v23 = vpop.f32.mrf.mxu3 }
  0x93   :  { %v156_v24 = vpack.c.bf16 %v129_v22, %v129_v22  ;;  %v160_v25 = vpack.c.bf16 %v139_v23, %v139_v23  ;;  %v112_v26 = vpop.f32.mrf.mxu0  ;;  %v122_v27 = vpop.f32.mrf.mxu1 }
  0x94   :  { %v149_v28 = vpack.c.bf16 %v112_v26, %v112_v26  ;;  %v153_v29 = vpack.c.bf16 %v122_v27, %v122_v27 }
  0x95   :  { %173 = vst.msk [vmem:[%s351_s2 + $0x24] sm:$0xf] %vm163_vm2, %v156_v24 }
  0x96   :  { %177 = vst.msk [vmem:[%s351_s2 + $0x34] sm:$0xf] %vm163_vm2, %v160_v25 }
  0x97   :  { %166 = vst.msk [vmem:[%s351_s2 + $0x8] sm:$0xf] %vm163_vm2, %v149_v28 }
  0x98   :  { %170 = vst.msk [vmem:[%s351_s2 + $0x18] sm:$0xf] %vm163_vm2, %v153_v29 }
  0x9a   :  { %v132_v30 = vpop.f32.mrf.mxu2  ;;  %v142_v31 = vpop.f32.mrf.mxu3 }
  0x9b   :  { %v157_v32 = vpack.c.bf16 %v132_v30, %v132_v30  ;;  %v161_v33 = vpack.c.bf16 %v142_v31, %v142_v31  ;;  %v114_v34 = vpop.f32.mrf.mxu0  ;;  %v124_v35 = vpop.f32.mrf.mxu1 }
  0x9c   :  { %v150_v36 = vpack.c.bf16 %v114_v34, %v114_v34  ;;  %v154_v37 = vpack.c.bf16 %v124_v35, %v124_v35 }
  0x9d   :  { %174 = vst.msk [vmem:[%s351_s2 + $0x28] sm:$0xf] %vm163_vm2, %v157_v32 }
  0x9e   :  { %178 = vst.msk [vmem:[%s351_s2 + $0x38] sm:$0xf] %vm163_vm2, %v161_v33 }
  0x9f   :  { %167 = vst.msk [vmem:[%s351_s2 + $0xc] sm:$0xf] %vm163_vm2, %v150_v36 }
  0xa0   :  { %171 = vst.msk [vmem:[%s351_s2 + $0x1c] sm:$0xf] %vm163_vm2, %v154_v37 }
  0xa2   :  { %v134_v38 = vpop.f32.mrf.mxu2  ;;  %v144_v39 = vpop.f32.mrf.mxu3 }
  0xa3   :  { %v158_v40 = vpack.c.bf16 %v134_v38, %v134_v38  ;;  %v162_v41 = vpack.c.bf16 %v144_v39, %v144_v39 }
  0xa5   :  { %175 = vst.msk [vmem:[%s351_s2 + $0x2c] sm:$0xf] %vm163_vm2, %v158_v40 }
  0xa6   :  { %179 = vst.msk [vmem:[%s351_s2 + $0x3c] sm:$0xf] %vm163_vm2, %v162_v41 }

// kernel: prm_forward.28
= control target key start
LH: loop header
LB: loop body
LE: loop exit
PB: predicated region body
PF: predicated region fallthrough
CT: control target
= control target key end

     0   :  { %vm677_vm0 = vcmask 1043456   ;;  %vm580_vm1 = vcmask 64512   ;;  %vm1050_vm2 = vcmask 60416   ;;  %s2275_s4 = inlined_call_operand.vmem [shape: bf16[8,8], index: 4, kind: input, shape index: {}]   ;;  %s2276_s0 = inlined_call_operand.vmem [shape: bf16[512,8], index: 0, kind: input, shape index: {}]   ;;  %s2277_s1 = inlined_call_operand.vmem [shape: bf16[512,8], index: 1, kind: input, shape index: {}]   ;;  %s2278_s2 = inlined_call_operand.vmem [shape: f32[1,8], index: 2, kind: input, shape index: {}]   ;;  %s2279_s3 = inlined_call_operand.vmem [shape: f32[1,8], index: 3, kind: input, shape index: {}]   ;;  %s2280_s5 = inlined_call_operand.vmem [shape: f32[1,8], index: 5, kind: input, shape index: {}]   ;;  %s2281_s6 = inlined_call_operand.vmem [shape: f32[1,8], index: 6, kind: input, shape index: {}]   ;;  %s2282_s7 = inlined_call_operand.vmem [shape: bf16[512,8], index: 7, kind: output, shape index: {}]  }
   0x1   :  { %v579_v0 = vld [vmem:[%s2275_s4] sm:$0xf]  ;;  %v1407_v41 = vld [vmem:[%s2276_s0 + $0x8] sm:$0xff]  }
   0x2   :  { %v1152_v1 = vld [vmem:[%s2276_s0] sm:$0xff]   ;;  %v679_v3 = vsel %vm677_vm0, %v579_v0, 0  ;;  %v1438_v50 = vld [vmem:[%s2277_s1 + $0x8] sm:$0xff]   ;;  %v1157_v54 = vunpack.c.l.bf16 %v1407_v41  ;;  %v1158_v63 = vunpack.c.h.bf16 %v1407_v41 }
   0x3   :  { %v1280_v2 = vld [vmem:[%s2277_s1] sm:$0xff]   ;;  %v1153_v4 = vunpack.c.l.bf16 %v1152_v1  ;;  %v1154_v5 = vunpack.c.h.bf16 %v1152_v1  ;;  %688 = vmatpush.bf16.msra.mxu0 %v679_v3  ;;  %1469 = vmatpush.bf16.msra.mxu1 %v679_v3  ;;  %v1415_v55 = vld [vmem:[%s2276_s0 + $0x48] sm:$0xff]   ;;  %v1285_v0 = vunpack.c.l.bf16 %v1438_v50 }
   0x4   :  { %v1281_v6 = vunpack.c.l.bf16 %v1280_v2  ;;  %v1528_v7 = vld [vmem:[%s2278_s2] ss:$0 sm:$0xff]  ;;  %v1282_v9 = vunpack.c.h.bf16 %v1280_v2  ;;  %1470 = vmatpush.bf16.msra.mxu2 %v679_v3  ;;  %1471 = vmatpush.bf16.msra.mxu3 %v679_v3  ;;  %v1446_v60 = vld [vmem:[%s2277_s1 + $0x48] sm:$0xff]   ;;  %v1286_v3 = vunpack.c.h.bf16 %v1438_v50 }
   0x5   :  { %v1414_v8 = vld [vmem:[%s2276_s0 + $0x40] sm:$0xff]  }
   0x6   :  { %v1536_v10 = vld [vmem:[%s2279_s3] ss:$0 sm:$0xff]  ;;  %v1185_v11 = vunpack.c.l.bf16 %v1414_v8  ;;  %v1186_v12 = vunpack.c.h.bf16 %v1414_v8  ;;  %v283_v14 = vadd.f32 %v1281_v6, %v1153_v4  ;;  %v284_v20 = vadd.f32 %v1282_v9, %v1154_v5  ;;  %v1423_v5 = vld [vmem:[%s2276_s0 + $0x88] sm:$0xff]  }
   0x7   :  { %v1445_v13 = vld [vmem:[%s2277_s1 + $0x40] sm:$0xff]   ;;  %v1189_v4 = vunpack.c.l.bf16 %v1415_v55  ;;  %v285_v8 = vadd.f32 %v1285_v0, %v1157_v54  ;;  %v1190_v9 = vunpack.c.h.bf16 %v1415_v55 }
   0x8   :  { %v1313_v15 = vunpack.c.l.bf16 %v1445_v13  ;;  %v1314_v16 = vunpack.c.h.bf16 %v1445_v13  ;;  %v1422_v17 = vld [vmem:[%s2276_s0 + $0x80] sm:$0xff]   ;;  %v351_v24 = vmul.f32 %v1528_v7, %v283_v14  ;;  %v352_v29 = vmul.f32 %v1528_v7, %v284_v20 }
   0x9   :  { %v1453_v18 = vld [vmem:[%s2277_s1 + $0x80] sm:$0xff]   ;;  %v1217_v21 = vunpack.c.l.bf16 %v1422_v17  ;;  %v1218_v22 = vunpack.c.h.bf16 %v1422_v17  ;;  %v1431_v17 = vld [vmem:[%s2276_s0 + $0xc8] sm:$0xff]   ;;  %v1221_v20 = vunpack.c.l.bf16 %v1423_v5 }
   0xa   :  { %v1430_v19 = vld [vmem:[%s2276_s0 + $0xc0] sm:$0xff]   ;;  %v1345_v23 = vunpack.c.l.bf16 %v1453_v18  ;;  %v299_v25 = vadd.f32 %v1313_v15, %v1185_v11  ;;  %v300_v26 = vadd.f32 %v1314_v16, %v1186_v12  ;;  %v1346_v27 = vunpack.c.h.bf16 %v1453_v18  ;;  %v1454_v12 = vld [vmem:[%s2277_s1 + $0x88] sm:$0xff]  }
   0xb   :  { %v1461_v28 = vld [vmem:[%s2277_s1 + $0xc0] sm:$0xff]   ;;  %v1249_v31 = vunpack.c.l.bf16 %v1430_v19  ;;  %v1250_v32 = vunpack.c.h.bf16 %v1430_v19  ;;  %v419_v33 = vadd.f32 %v1536_v10, %v351_v24  ;;  %v420_v37 = vadd.f32 %v1536_v10, %v352_v29 }
   0xc   :  { %v315_v30 = vadd.f32 %v1345_v23, %v1217_v21  ;;  %v367_v34 = vmul.f32 %v1528_v7, %v299_v25  ;;  %v368_v35 = vmul.f32 %v1528_v7, %v300_v26  ;;  %v316_v36 = vadd.f32 %v1346_v27, %v1218_v22  ;;  %v1462_v26 = vld [vmem:[%s2277_s1 + $0xc8] sm:$0xff]  }
   0xd   :  { %v1377_v39 = vunpack.c.l.bf16 %v1461_v28  ;;  %v1378_v40 = vunpack.c.h.bf16 %v1461_v28  ;;  %v483_v42 = vmax.f32 %v419_v33, 0.0  ;;  %v484_v46 = vmax.f32 %v420_v37, 0.0 }
   0xe   :  { %v383_v38 = vmul.f32 %v1528_v7, %v315_v30  ;;  %v435_v43 = vadd.f32 %v1536_v10, %v367_v34  ;;  %v436_v44 = vadd.f32 %v1536_v10, %v368_v35  ;;  %v384_v45 = vmul.f32 %v1528_v7, %v316_v36  ;;  %v1408_v35 = vld [vmem:[%s2276_s0 + $0x10] sm:$0xff]  }
   0xf   :  { %v331_v48 = vadd.f32 %v1377_v39, %v1249_v31  ;;  %v332_v49 = vadd.f32 %v1378_v40, %v1250_v32  ;;  %v547_v56 = vpack.c.bf16 %v484_v46, %v483_v42  ;;  %v1317_v11 = vunpack.c.l.bf16 %v1446_v60 }
  0x10   :  { %v451_v47 = vadd.f32 %v1536_v10, %v383_v38  ;;  %v499_v51 = vmax.f32 %v435_v43, 0.0  ;;  %v500_v52 = vmax.f32 %v436_v44, 0.0  ;;  %v452_v53 = vadd.f32 %v1536_v10, %v384_v45  ;;  %v1439_v44 = vld [vmem:[%s2277_s1 + $0x10] sm:$0xff]  }
  0x11   :  { %v399_v58 = vmul.f32 %v1528_v7, %v331_v48  ;;  %v400_v59 = vmul.f32 %v1528_v7, %v332_v49  ;;  %1119 = vmatmul.msk.bf16.vlgmr.msra.gmra.mxu0 %vm580_vm1, %v547_v56  ;;  %v286_v15 = vadd.f32 %v1286_v3, %v1158_v63  ;;  %v1318_v16 = vunpack.c.h.bf16 %v1446_v60  ;;  %v1424_v3 = vld [vmem:[%s2276_s0 + $0x90] sm:$0xff]  }
  0x12   :  { %v515_v57 = vmax.f32 %v451_v47, 0.0  ;;  %v555_v61 = vpack.c.bf16 %v500_v52, %v499_v51  ;;  %v516_v62 = vmax.f32 %v452_v53, 0.0  ;;  %v353_v18 = vmul.f32 %v1528_v7, %v285_v8  ;;  %v1416_v53 = vld [vmem:[%s2276_s0 + $0x50] sm:$0xff]  }
  0x13   :  { %v467_v1 = vadd.f32 %v1536_v10, %v399_v58  ;;  %v468_v2 = vadd.f32 %v1536_v10, %v400_v59  ;;  %v301_v19 = vadd.f32 %v1317_v11, %v1189_v4  ;;  %v1222_v21 = vunpack.c.h.bf16 %v1423_v5  ;;  %v1447_v58 = vld [vmem:[%s2277_s1 + $0x50] sm:$0xff]  }
  0x14   :  { %1127 = vmatmul.msk.bf16.vlgmr.msra.gmra.mxu1 %vm580_vm1, %v555_v61  ;;  %v563_v6 = vpack.c.bf16 %v516_v62, %v515_v57  ;;  %v354_v23 = vmul.f32 %v1528_v7, %v286_v15  ;;  %v302_v24 = vadd.f32 %v1318_v16, %v1190_v9  ;;  %v1349_v25 = vunpack.c.l.bf16 %v1454_v12  ;;  %v1455_v9 = vld [vmem:[%s2277_s1 + $0x90] sm:$0xff]  }
  0x15   :  { %v531_v13 = vmax.f32 %v467_v1, 0.0  ;;  %v532_v14 = vmax.f32 %v468_v2, 0.0  ;;  %v421_v27 = vadd.f32 %v1536_v10, %v353_v18  ;;  %v369_v28 = vmul.f32 %v1528_v7, %v301_v19  ;;  %v1432_v19 = vld [vmem:[%s2276_s0 + $0xd0] sm:$0xff]  }
  0x16   :  { %1135 = vmatmul.msk.bf16.vlgmr.msra.gmra.mxu2 %vm580_vm1, %v563_v6  ;;  %v1350_v29 = vunpack.c.h.bf16 %v1454_v12  ;;  %v1253_v30 = vunpack.c.l.bf16 %v1431_v17  ;;  %v422_v31 = vadd.f32 %v1536_v10, %v354_v23  ;;  %v370_v32 = vmul.f32 %v1528_v7, %v302_v24 }
  0x17   :  { %v571_v22 = vpack.c.bf16 %v532_v14, %v531_v13  ;;  %v317_v33 = vadd.f32 %v1349_v25, %v1221_v20  ;;  %v1254_v34 = vunpack.c.h.bf16 %v1431_v17  ;;  %v485_v36 = vmax.f32 %v421_v27, 0.0 }
  0x18   :  { %v437_v37 = vadd.f32 %v1536_v10, %v369_v28  ;;  %v318_v38 = vadd.f32 %v1350_v29, %v1222_v21  ;;  %v1381_v39 = vunpack.c.l.bf16 %v1462_v26  ;;  %v486_v40 = vmax.f32 %v422_v31, 0.0  ;;  %v1463_v28 = vld [vmem:[%s2277_s1 + $0xd0] sm:$0xff]  }
  0x19   :  { %1143 = vmatmul.msk.bf16.vlgmr.msra.gmra.mxu3 %vm580_vm1, %v571_v22  ;;  %v438_v41 = vadd.f32 %v1536_v10, %v370_v32  ;;  %v385_v42 = vmul.f32 %v1528_v7, %v317_v33  ;;  %v1382_v43 = vunpack.c.h.bf16 %v1462_v26  ;;  %v1161_v48 = vunpack.c.l.bf16 %v1408_v35  ;;  %v1409_v32 = vld [vmem:[%s2276_s0 + $0x18] sm:$0xff]  }
  0x1a   :  { %v501_v45 = vmax.f32 %v437_v37, 0.0  ;;  %v386_v46 = vmul.f32 %v1528_v7, %v318_v38  ;;  %v333_v47 = vadd.f32 %v1381_v39, %v1253_v30  ;;  %v548_v49 = vpack.c.bf16 %v486_v40, %v485_v36 }
  0x1b   :  { %v502_v50 = vmax.f32 %v438_v41, 0.0  ;;  %v453_v51 = vadd.f32 %v1536_v10, %v385_v42  ;;  %v334_v52 = vadd.f32 %v1382_v43, %v1254_v34  ;;  %v1162_v56 = vunpack.c.h.bf16 %v1408_v35  ;;  %v1440_v41 = vld [vmem:[%s2277_s1 + $0x18] sm:$0xff]  }
  0x1c   :  { %v454_v54 = vadd.f32 %v1536_v10, %v386_v46  ;;  %v401_v55 = vmul.f32 %v1528_v7, %v333_v47  ;;  %v1289_v57 = vunpack.c.l.bf16 %v1439_v44  ;;  %v1290_v62 = vunpack.c.h.bf16 %v1439_v44 }
  0x1d   :  { %v556_v59 = vpack.c.bf16 %v502_v50, %v501_v45  ;;  %v517_v60 = vmax.f32 %v453_v51, 0.0  ;;  %v402_v61 = vmul.f32 %v1528_v7, %v334_v52  ;;  %v1193_v2 = vunpack.c.l.bf16 %v1416_v53  ;;  %v1417_v50 = vld [vmem:[%s2276_s0 + $0x58] sm:$0xff]  }
  0x1e   :  { %v518_v63 = vmax.f32 %v454_v54, 0.0  ;;  %v469_v0 = vadd.f32 %v1536_v10, %v401_v55  ;;  %v287_v1 = vadd.f32 %v1289_v57, %v1161_v48  ;;  %v288_v5 = vadd.f32 %v1290_v62, %v1162_v56  ;;  %v1448_v55 = vld [vmem:[%s2277_s1 + $0x58] sm:$0xff]  }
  0x1f   :  { %v470_v4 = vadd.f32 %v1536_v10, %v402_v61  ;;  %v1194_v6 = vunpack.c.h.bf16 %v1416_v53  ;;  %v1321_v8 = vunpack.c.l.bf16 %v1447_v58  ;;  %v1322_v14 = vunpack.c.h.bf16 %v1447_v58 }
  0x20   :  { %v564_v11 = vpack.c.bf16 %v518_v63, %v517_v60  ;;  %v533_v12 = vmax.f32 %v469_v0, 0.0  ;;  %v355_v13 = vmul.f32 %v1528_v7, %v287_v1  ;;  %v356_v16 = vmul.f32 %v1528_v7, %v288_v5  ;;  %v1425_v63 = vld [vmem:[%s2276_s0 + $0x98] sm:$0xff]  }
  0x21   :  { %1120 = vmatmul.msk.bf16.gmra.mxu0 %vm580_vm1, %v548_v49  ;;  %v534_v15 = vmax.f32 %v470_v4, 0.0  ;;  %v303_v17 = vadd.f32 %v1321_v8, %v1193_v2  ;;  %v1225_v18 = vunpack.c.l.bf16 %v1424_v3  ;;  %v304_v21 = vadd.f32 %v1322_v14, %v1194_v6  ;;  %v1456_v8 = vld [vmem:[%s2277_s1 + $0x98] sm:$0xff]  }
  0x22   :  { %v423_v20 = vadd.f32 %v1536_v10, %v355_v13  ;;  %v1226_v22 = vunpack.c.h.bf16 %v1424_v3  ;;  %v1353_v23 = vunpack.c.l.bf16 %v1455_v9  ;;  %v424_v25 = vadd.f32 %v1536_v10, %v356_v16  ;;  %v1433_v14 = vld [vmem:[%s2276_s0 + $0xd8] sm:$0xff]  }
  0x23   :  { %v572_v24 = vpack.c.bf16 %v534_v15, %v533_v12  ;;  %v371_v26 = vmul.f32 %v1528_v7, %v303_v17  ;;  %v1354_v27 = vunpack.c.h.bf16 %v1455_v9  ;;  %v372_v29 = vmul.f32 %v1528_v7, %v304_v21 }
  0x24   :  { %1128 = vmatmul.msk.bf16.gmra.mxu1 %vm580_vm1, %v556_v59  ;;  %v319_v30 = vadd.f32 %v1353_v23, %v1225_v18  ;;  %v1257_v31 = vunpack.c.l.bf16 %v1432_v19  ;;  %v487_v33 = vmax.f32 %v423_v20, 0.0  ;;  %v1258_v36 = vunpack.c.h.bf16 %v1432_v19  ;;  %v1464_v23 = vld [vmem:[%s2277_s1 + $0xd8] sm:$0xff]  }
  0x25   :  { %v439_v34 = vadd.f32 %v1536_v10, %v371_v26  ;;  %v320_v35 = vadd.f32 %v1354_v27, %v1226_v22  ;;  %v440_v37 = vadd.f32 %v1536_v10, %v372_v29  ;;  %v1385_v39 = vunpack.c.l.bf16 %v1463_v28 }
  0x26   :  { %1136 = vmatmul.msk.bf16.gmra.mxu2 %vm580_vm1, %v564_v11  ;;  %v387_v38 = vmul.f32 %v1528_v7, %v319_v30  ;;  %v1386_v40 = vunpack.c.h.bf16 %v1463_v28  ;;  %v488_v42 = vmax.f32 %v424_v25, 0.0  ;;  %v1165_v45 = vunpack.c.l.bf16 %v1409_v32  ;;  %v1410_v30 = vld [vmem:[%s2276_s0 + $0x20] sm:$0xff]  }
  0x27   :  { %v503_v43 = vmax.f32 %v439_v34, 0.0  ;;  %v388_v44 = vmul.f32 %v1528_v7, %v320_v35  ;;  %v504_v46 = vmax.f32 %v440_v37, 0.0  ;;  %v335_v48 = vadd.f32 %v1385_v39, %v1257_v31  ;;  %v1441_v35 = vld [vmem:[%s2277_s1 + $0x20] sm:$0xff]  }
  0x28   :  { %v455_v47 = vadd.f32 %v1536_v10, %v387_v38  ;;  %v336_v49 = vadd.f32 %v1386_v40, %v1258_v36  ;;  %v1166_v52 = vunpack.c.h.bf16 %v1409_v32  ;;  %v1293_v53 = vunpack.c.l.bf16 %v1440_v41  ;;  %v1418_v40 = vld [vmem:[%s2276_s0 + $0x60] sm:$0xff]  }
  0x29   :  { %1144 = vmatmul.msk.bf16.gmra.mxu3 %vm580_vm1, %v572_v24  ;;  %v456_v51 = vadd.f32 %v1536_v10, %v388_v44  ;;  %v1294_v54 = vunpack.c.h.bf16 %v1440_v41  ;;  %v403_v57 = vmul.f32 %v1528_v7, %v335_v48  ;;  %v1197_v62 = vunpack.c.l.bf16 %v1417_v50 }
  0x2a   :  { %v519_v56 = vmax.f32 %v455_v47, 0.0  ;;  %v404_v58 = vmul.f32 %v1528_v7, %v336_v49  ;;  %v289_v60 = vadd.f32 %v1293_v53, %v1165_v45  ;;  %v1198_v2 = vunpack.c.h.bf16 %v1417_v50  ;;  %v1449_v49 = vld [vmem:[%s2277_s1 + $0x60] sm:$0xff]  }
  0x2b   :  { %v520_v59 = vmax.f32 %v456_v51, 0.0  ;;  %v290_v61 = vadd.f32 %v1294_v54, %v1166_v52  ;;  %v471_v0 = vadd.f32 %v1536_v10, %v403_v57  ;;  %v1325_v3 = vunpack.c.l.bf16 %v1448_v55 }
  0x2c   :  { %v472_v1 = vadd.f32 %v1536_v10, %v404_v58  ;;  %v549_v4 = vpack.c.bf16 %v488_v42, %v487_v33  ;;  %v557_v5 = vpack.c.bf16 %v504_v46, %v503_v43  ;;  %v1326_v6 = vunpack.c.h.bf16 %v1448_v55 }
  0x2d   :  { %v357_v9 = vmul.f32 %v1528_v7, %v289_v60  ;;  %v358_v11 = vmul.f32 %v1528_v7, %v290_v61  ;;  %v305_v12 = vadd.f32 %v1325_v3, %v1197_v62  ;;  %v1229_v13 = vunpack.c.l.bf16 %v1425_v63  ;;  %v1426_v61 = vld [vmem:[%s2276_s0 + $0xa0] sm:$0xff]  }
  0x2e   :  { %v535_v15 = vmax.f32 %v471_v0, 0.0  ;;  %v536_v16 = vmax.f32 %v472_v1, 0.0  ;;  %v306_v17 = vadd.f32 %v1326_v6, %v1198_v2  ;;  %v1230_v18 = vunpack.c.h.bf16 %v1425_v63  ;;  %v1457_v2 = vld [vmem:[%s2277_s1 + $0xa0] sm:$0xff]  }
  0x2f   :  { %v565_v19 = vpack.c.bf16 %v520_v59, %v519_v56  ;;  %v373_v20 = vmul.f32 %v1528_v7, %v305_v12  ;;  %v1357_v21 = vunpack.c.l.bf16 %v1456_v8  ;;  %v1358_v22 = vunpack.c.h.bf16 %v1456_v8 }
  0x30   :  { %v374_v24 = vmul.f32 %v1528_v7, %v306_v17  ;;  %v1261_v25 = vunpack.c.l.bf16 %v1433_v14  ;;  %v425_v26 = vadd.f32 %v1536_v10, %v357_v9  ;;  %v1262_v29 = vunpack.c.h.bf16 %v1433_v14 }
  0x31   :  { %1121 = vmatmul.msk.bf16.gmra.mxu0 %vm580_vm1, %v549_v4  ;;  %v321_v27 = vadd.f32 %v1357_v21, %v1229_v13  ;;  %v322_v28 = vadd.f32 %v1358_v22, %v1230_v18  ;;  %v573_v31 = vpack.c.bf16 %v536_v16, %v535_v15  ;;  %v426_v32 = vadd.f32 %v1536_v10, %v358_v11  ;;  %v1465_v16 = vld [vmem:[%s2277_s1 + $0xe0] sm:$0xff]  }
  0x32   :  { %v1389_v33 = vunpack.c.l.bf16 %v1464_v23  ;;  %v1390_v34 = vunpack.c.h.bf16 %v1464_v23  ;;  %v441_v36 = vadd.f32 %v1536_v10, %v373_v20  ;;  %v442_v37 = vadd.f32 %v1536_v10, %v374_v24 }
  0x33   :  { %v389_v38 = vmul.f32 %v1528_v7, %v321_v27  ;;  %v390_v39 = vmul.f32 %v1528_v7, %v322_v28  ;;  %v1169_v43 = vunpack.c.l.bf16 %v1410_v30  ;;  %v1170_v44 = vunpack.c.h.bf16 %v1410_v30 }
  0x34   :  { %1129 = vmatmul.msk.bf16.gmra.mxu1 %vm580_vm1, %v557_v5  ;;  %v337_v41 = vadd.f32 %v1389_v33, %v1261_v25  ;;  %v338_v42 = vadd.f32 %v1390_v34, %v1262_v29  ;;  %v1297_v47 = vunpack.c.l.bf16 %v1441_v35  ;;  %v1298_v48 = vunpack.c.h.bf16 %v1441_v35  ;;  %v1434_v5 = vld [vmem:[%s2276_s0 + $0xe0] sm:$0xff]  }
  0x35   :  { %v457_v45 = vadd.f32 %v1536_v10, %v389_v38  ;;  %v458_v46 = vadd.f32 %v1536_v10, %v390_v39  ;;  %v1201_v52 = vunpack.c.l.bf16 %v1418_v40  ;;  %v489_v53 = vmax.f32 %v425_v26, 0.0  ;;  %v1411_v38 = vld [vmem:[%s2276_s0 + $0x28] sm:$0xff]  }
  0x36   :  { %1137 = vmatmul.msk.bf16.gmra.mxu2 %vm580_vm1, %v565_v19  ;;  %v405_v50 = vmul.f32 %v1528_v7, %v337_v41  ;;  %v406_v51 = vmul.f32 %v1528_v7, %v338_v42  ;;  %v490_v54 = vmax.f32 %v426_v32, 0.0  ;;  %v505_v55 = vmax.f32 %v441_v36, 0.0  ;;  %v1442_v39 = vld [vmem:[%s2277_s1 + $0x28] sm:$0xff]  }
  0x37   :  { %v506_v56 = vmax.f32 %v442_v37, 0.0  ;;  %v521_v57 = vmax.f32 %v457_v45, 0.0  ;;  %v522_v58 = vmax.f32 %v458_v46, 0.0  ;;  %v1202_v59 = vunpack.c.h.bf16 %v1418_v40  ;;  %v1450_v45 = vld [vmem:[%s2277_s1 + $0x68] sm:$0xff]  }
  0x38   :  { %v1329_v60 = vunpack.c.l.bf16 %v1449_v49  ;;  %v473_v62 = vadd.f32 %v1536_v10, %v405_v50  ;;  %v291_v63 = vadd.f32 %v1297_v47, %v1169_v43  ;;  %v292_v0 = vadd.f32 %v1298_v48, %v1170_v44  ;;  %v1419_v44 = vld [vmem:[%s2276_s0 + $0x68] sm:$0xff]  }
  0x39   :  { %1145 = vmatmul.msk.bf16.gmra.mxu3 %vm580_vm1, %v573_v31  ;;  %v1330_v1 = vunpack.c.h.bf16 %v1449_v49  ;;  %v474_v3 = vadd.f32 %v1536_v10, %v406_v51  ;;  %v550_v6 = vpack.c.bf16 %v490_v54, %v489_v53  ;;  %v1233_v9 = vunpack.c.l.bf16 %v1426_v61  ;;  %v1427_v54 = vld [vmem:[%s2276_s0 + $0xa8] sm:$0xff]  }
  0x3a   :  { %v307_v4 = vadd.f32 %v1329_v60, %v1201_v52  ;;  %v1234_v11 = vunpack.c.h.bf16 %v1426_v61  ;;  %v558_v12 = vpack.c.bf16 %v506_v56, %v505_v55  ;;  %v566_v13 = vpack.c.bf16 %v522_v58, %v521_v57  ;;  %v1458_v55 = vld [vmem:[%s2277_s1 + $0xa8] sm:$0xff]  }
  0x3b   :  { %v308_v8 = vadd.f32 %v1330_v1, %v1202_v59  ;;  %v1361_v14 = vunpack.c.l.bf16 %v1457_v2  ;;  %v1362_v15 = vunpack.c.h.bf16 %v1457_v2  ;;  %v537_v17 = vmax.f32 %v473_v62, 0.0  ;;  %v1435_v2 = vld [vmem:[%s2276_s0 + $0xe8] sm:$0xff]  }
  0x3c   :  { %v359_v18 = vmul.f32 %v1528_v7, %v291_v63  ;;  %v360_v19 = vmul.f32 %v1528_v7, %v292_v0  ;;  %v1265_v20 = vunpack.c.l.bf16 %v1434_v5  ;;  %v538_v21 = vmax.f32 %v474_v3, 0.0  ;;  %v1466_v3 = vld [vmem:[%s2277_s1 + $0xe8] sm:$0xff]  }
  0x3d   :  { %v375_v22 = vmul.f32 %v1528_v7, %v307_v4  ;;  %v376_v23 = vmul.f32 %v1528_v7, %v308_v8  ;;  %v1266_v24 = vunpack.c.h.bf16 %v1434_v5  ;;  %v323_v25 = vadd.f32 %v1361_v14, %v1233_v9 }
  0x3e   :  { %v324_v26 = vadd.f32 %v1362_v15, %v1234_v11  ;;  %v1393_v27 = vunpack.c.l.bf16 %v1465_v16  ;;  %v1394_v28 = vunpack.c.h.bf16 %v1465_v16  ;;  %v427_v29 = vadd.f32 %v1536_v10, %v359_v18 }
  0x3f   :  { %v428_v30 = vadd.f32 %v1536_v10, %v360_v19  ;;  %v574_v33 = vpack.c.bf16 %v538_v21, %v537_v17  ;;  %v443_v34 = vadd.f32 %v1536_v10, %v375_v22  ;;  %v444_v35 = vadd.f32 %v1536_v10, %v376_v23 }
  0x40   :  { %v339_v31 = vadd.f32 %v1393_v27, %v1265_v20  ;;  %v340_v32 = vadd.f32 %v1394_v28, %v1266_v24  ;;  %v391_v36 = vmul.f32 %v1528_v7, %v323_v25  ;;  %v392_v37 = vmul.f32 %v1528_v7, %v324_v26 }
  0x41   :  { %1122 = vmatmul.msk.bf16.gmra.mxu0 %vm580_vm1, %v550_v6  ;;  %v491_v40 = vmax.f32 %v427_v29, 0.0  ;;  %v492_v41 = vmax.f32 %v428_v30, 0.0  ;;  %v507_v46 = vmax.f32 %v443_v34, 0.0  ;;  %v508_v47 = vmax.f32 %v444_v35, 0.0  ;;  %v1412_v29 = vld [vmem:[%s2276_s0 + $0x30] sm:$0xff]  }
  0x42   :  { %v407_v42 = vmul.f32 %v1528_v7, %v339_v31  ;;  %v408_v43 = vmul.f32 %v1528_v7, %v340_v32  ;;  %v1173_v48 = vunpack.c.l.bf16 %v1411_v38  ;;  %v1174_v49 = vunpack.c.h.bf16 %v1411_v38 }
  0x43   :  { %v459_v50 = vadd.f32 %v1536_v10, %v391_v36  ;;  %v460_v51 = vadd.f32 %v1536_v10, %v392_v37  ;;  %v1301_v52 = vunpack.c.l.bf16 %v1442_v39  ;;  %v1302_v53 = vunpack.c.h.bf16 %v1442_v39 }
  0x44   :  { %1130 = vmatmul.msk.bf16.gmra.mxu1 %vm580_vm1, %v558_v12  ;;  %v1205_v56 = vunpack.c.l.bf16 %v1419_v44  ;;  %v1206_v57 = vunpack.c.h.bf16 %v1419_v44  ;;  %v1333_v58 = vunpack.c.l.bf16 %v1450_v45  ;;  %v1334_v59 = vunpack.c.h.bf16 %v1450_v45 }
  0x45   :  { %v475_v60 = vadd.f32 %v1536_v10, %v407_v42  ;;  %v476_v61 = vadd.f32 %v1536_v10, %v408_v43  ;;  %v1237_v62 = vunpack.c.l.bf16 %v1427_v54  ;;  %v1238_v63 = vunpack.c.h.bf16 %v1427_v54 }
  0x46   :  { %1138 = vmatmul.msk.bf16.gmra.mxu2 %vm580_vm1, %v566_v13  ;;  %v1365_v0 = vunpack.c.l.bf16 %v1458_v55  ;;  %v1366_v1 = vunpack.c.h.bf16 %v1458_v55  ;;  %v523_v4 = vmax.f32 %v459_v50, 0.0  ;;  %v524_v5 = vmax.f32 %v460_v51, 0.0 }
  0x47   :  { %v293_v6 = vadd.f32 %v1301_v52, %v1173_v48  ;;  %v294_v8 = vadd.f32 %v1302_v53, %v1174_v49  ;;  %v551_v9 = vpack.c.bf16 %v492_v41, %v491_v40  ;;  %v559_v11 = vpack.c.bf16 %v508_v47, %v507_v46  ;;  %v1420_v40 = vld [vmem:[%s2276_s0 + $0x70] sm:$0xff]  }
  0x48   :  { %v309_v12 = vadd.f32 %v1333_v58, %v1205_v56  ;;  %v310_v13 = vadd.f32 %v1334_v59, %v1206_v57  ;;  %v1269_v14 = vunpack.c.l.bf16 %v1435_v2  ;;  %v1270_v15 = vunpack.c.h.bf16 %v1435_v2  ;;  %v1451_v41 = vld [vmem:[%s2277_s1 + $0x70] sm:$0xff]  }
  0x49   :  { %1146 = vmatmul.msk.bf16.gmra.mxu3 %vm580_vm1, %v574_v33  ;;  %v1397_v16 = vunpack.c.l.bf16 %v1466_v3  ;;  %v1398_v17 = vunpack.c.h.bf16 %v1466_v3  ;;  %v539_v18 = vmax.f32 %v475_v60, 0.0  ;;  %v540_v19 = vmax.f32 %v476_v61, 0.0  ;;  %v1443_v33 = vld [vmem:[%s2277_s1 + $0x30] sm:$0xff]  }
  0x4a   :  { %v325_v20 = vadd.f32 %v1365_v0, %v1237_v62  ;;  %v326_v21 = vadd.f32 %v1366_v1, %v1238_v63  ;;  %v567_v22 = vpack.c.bf16 %v524_v5, %v523_v4  ;;  %v361_v23 = vmul.f32 %v1528_v7, %v293_v6  ;;  %v1428_v52 = vld [vmem:[%s2276_s0 + $0xb0] sm:$0xff]  }
  0x4b   :  { %v362_v24 = vmul.f32 %v1528_v7, %v294_v8  ;;  %v377_v25 = vmul.f32 %v1528_v7, %v309_v12  ;;  %v378_v26 = vmul.f32 %v1528_v7, %v310_v13  ;;  %v341_v27 = vadd.f32 %v1397_v16, %v1269_v14  ;;  %v1459_v53 = vld [vmem:[%s2277_s1 + $0xb0] sm:$0xff]  }
  0x4c   :  { %v342_v28 = vadd.f32 %v1398_v17, %v1270_v15  ;;  %v575_v30 = vpack.c.bf16 %v540_v19, %v539_v18  ;;  %v393_v31 = vmul.f32 %v1528_v7, %v325_v20  ;;  %v394_v32 = vmul.f32 %v1528_v7, %v326_v21  ;;  %v1436_v62 = vld [vmem:[%s2276_s0 + $0xf0] sm:$0xff]  }
  0x4d   :  { %v429_v34 = vadd.f32 %v1536_v10, %v361_v23  ;;  %v430_v35 = vadd.f32 %v1536_v10, %v362_v24  ;;  %v445_v36 = vadd.f32 %v1536_v10, %v377_v25  ;;  %v446_v37 = vadd.f32 %v1536_v10, %v378_v26  ;;  %v1467_v63 = vld [vmem:[%s2277_s1 + $0xf0] sm:$0xff]  }
  0x4e   :  { %v1177_v38 = vunpack.c.l.bf16 %v1412_v29  ;;  %v1178_v39 = vunpack.c.h.bf16 %v1412_v29  ;;  %v409_v42 = vmul.f32 %v1528_v7, %v341_v27  ;;  %v410_v43 = vmul.f32 %v1528_v7, %v342_v28 }
  0x4f   :  { %v1305_v44 = vunpack.c.l.bf16 %v1443_v33  ;;  %v1306_v45 = vunpack.c.h.bf16 %v1443_v33  ;;  %v461_v46 = vadd.f32 %v1536_v10, %v393_v31  ;;  %v462_v47 = vadd.f32 %v1536_v10, %v394_v32 }
  0x50   :  { %v1209_v48 = vunpack.c.l.bf16 %v1420_v40  ;;  %v1210_v49 = vunpack.c.h.bf16 %v1420_v40  ;;  %v1337_v50 = vunpack.c.l.bf16 %v1451_v41  ;;  %v1338_v51 = vunpack.c.h.bf16 %v1451_v41 }
  0x51   :  { %1123 = vmatmul.msk.bf16.gmra.mxu0 %vm580_vm1, %v551_v9  ;;  %v493_v54 = vmax.f32 %v429_v34, 0.0  ;;  %v494_v55 = vmax.f32 %v430_v35, 0.0  ;;  %v509_v56 = vmax.f32 %v445_v36, 0.0  ;;  %v510_v57 = vmax.f32 %v446_v37, 0.0  ;;  %v1413_v35 = vld [vmem:[%s2276_s0 + $0x38] sm:$0xff]  }
  0x52   :  { %v477_v58 = vadd.f32 %v1536_v10, %v409_v42  ;;  %v478_v59 = vadd.f32 %v1536_v10, %v410_v43  ;;  %v295_v60 = vadd.f32 %v1305_v44, %v1177_v38  ;;  %v296_v61 = vadd.f32 %v1306_v45, %v1178_v39  ;;  %v1444_v37 = vld [vmem:[%s2277_s1 + $0x38] sm:$0xff]  }
  0x53   :  { %v1241_v0 = vunpack.c.l.bf16 %v1428_v52  ;;  %v1242_v1 = vunpack.c.h.bf16 %v1428_v52  ;;  %v1369_v2 = vunpack.c.l.bf16 %v1459_v53  ;;  %v1370_v3 = vunpack.c.h.bf16 %v1459_v53  ;;  %v1421_v38 = vld [vmem:[%s2276_s0 + $0x78] sm:$0xff]  }
  0x54   :  { %1131 = vmatmul.msk.bf16.gmra.mxu1 %vm580_vm1, %v559_v11  ;;  %v525_v4 = vmax.f32 %v461_v46, 0.0  ;;  %v526_v5 = vmax.f32 %v462_v47, 0.0  ;;  %v311_v6 = vadd.f32 %v1337_v50, %v1209_v48  ;;  %v312_v8 = vadd.f32 %v1338_v51, %v1210_v49  ;;  %v1452_v43 = vld [vmem:[%s2277_s1 + $0x78] sm:$0xff]  }
  0x55   :  { %v552_v9 = vpack.c.bf16 %v494_v55, %v493_v54  ;;  %v560_v11 = vpack.c.bf16 %v510_v57, %v509_v56  ;;  %v1273_v12 = vunpack.c.l.bf16 %v1436_v62  ;;  %v1401_v13 = vunpack.c.l.bf16 %v1467_v63  ;;  %v1429_v52 = vld [vmem:[%s2276_s0 + $0xb8] sm:$0xff]  }
  0x56   :  { %1139 = vmatmul.msk.bf16.gmra.mxu2 %vm580_vm1, %v567_v22  ;;  %v363_v14 = vmul.f32 %v1528_v7, %v295_v60  ;;  %v364_v15 = vmul.f32 %v1528_v7, %v296_v61  ;;  %v1274_v16 = vunpack.c.h.bf16 %v1436_v62  ;;  %v1402_v17 = vunpack.c.h.bf16 %v1467_v63  ;;  %v1460_v53 = vld [vmem:[%s2277_s1 + $0xb8] sm:$0xff]  }
  0x57   :  { %v541_v18 = vmax.f32 %v477_v58, 0.0  ;;  %v542_v19 = vmax.f32 %v478_v59, 0.0  ;;  %v327_v20 = vadd.f32 %v1369_v2, %v1241_v0  ;;  %v328_v21 = vadd.f32 %v1370_v3, %v1242_v1  ;;  %v1437_v0 = vld [vmem:[%s2276_s0 + $0xf8] sm:$0xff]  }
  0x58   :  { %v568_v22 = vpack.c.bf16 %v526_v5, %v525_v4  ;;  %v379_v23 = vmul.f32 %v1528_v7, %v311_v6  ;;  %v380_v24 = vmul.f32 %v1528_v7, %v312_v8  ;;  %v343_v25 = vadd.f32 %v1401_v13, %v1273_v12  ;;  %v1468_v1 = vld [vmem:[%s2277_s1 + $0xf8] sm:$0xff]  }
  0x59   :  { %1147 = vmatmul.msk.bf16.gmra.mxu3 %vm580_vm1, %v575_v30  ;;  %v431_v26 = vadd.f32 %v1536_v10, %v363_v14  ;;  %v344_v27 = vadd.f32 %v1402_v17, %v1274_v16  ;;  %v576_v28 = vpack.c.bf16 %v542_v19, %v541_v18  ;;  %v432_v29 = vadd.f32 %v1536_v10, %v364_v15 }
  0x5a   :  { %v395_v30 = vmul.f32 %v1528_v7, %v327_v20  ;;  %v396_v31 = vmul.f32 %v1528_v7, %v328_v21  ;;  %v447_v32 = vadd.f32 %v1536_v10, %v379_v23  ;;  %v448_v33 = vadd.f32 %v1536_v10, %v380_v24 }
  0x5b   :  { %v411_v34 = vmul.f32 %v1528_v7, %v343_v25  ;;  %v412_v36 = vmul.f32 %v1528_v7, %v344_v27  ;;  %v495_v39 = vmax.f32 %v431_v26, 0.0  ;;  %v496_v40 = vmax.f32 %v432_v29, 0.0 }
  0x5c   :  { %v463_v41 = vadd.f32 %v1536_v10, %v395_v30  ;;  %v464_v42 = vadd.f32 %v1536_v10, %v396_v31  ;;  %v511_v44 = vmax.f32 %v447_v32, 0.0  ;;  %v512_v45 = vmax.f32 %v448_v33, 0.0 }
  0x5d   :  { %v1181_v46 = vunpack.c.l.bf16 %v1413_v35  ;;  %v1182_v47 = vunpack.c.h.bf16 %v1413_v35  ;;  %v479_v48 = vadd.f32 %v1536_v10, %v411_v34  ;;  %v1309_v49 = vunpack.c.l.bf16 %v1444_v37 }
  0x5e   :  { %v1310_v50 = vunpack.c.h.bf16 %v1444_v37  ;;  %v1213_v51 = vunpack.c.l.bf16 %v1421_v38  ;;  %v480_v54 = vadd.f32 %v1536_v10, %v412_v36  ;;  %v1214_v55 = vunpack.c.h.bf16 %v1421_v38 }
  0x5f   :  { %v1341_v56 = vunpack.c.l.bf16 %v1452_v43  ;;  %v1342_v57 = vunpack.c.h.bf16 %v1452_v43  ;;  %v527_v58 = vmax.f32 %v463_v41, 0.0  ;;  %v528_v59 = vmax.f32 %v464_v42, 0.0 }
  0x60   :  { %v1245_v60 = vunpack.c.l.bf16 %v1429_v52  ;;  %v1246_v61 = vunpack.c.h.bf16 %v1429_v52  ;;  %v1373_v62 = vunpack.c.l.bf16 %v1460_v53  ;;  %v1374_v63 = vunpack.c.h.bf16 %v1460_v53 }
  0x61   :  { %1124 = vmatmul.msk.bf16.gmra.mxu0 %vm580_vm1, %v552_v9  ;;  %v553_v2 = vpack.c.bf16 %v496_v40, %v495_v39  ;;  %v561_v3 = vpack.c.bf16 %v512_v45, %v511_v44  ;;  %v297_v4 = vadd.f32 %v1309_v49, %v1181_v46  ;;  %v298_v5 = vadd.f32 %v1310_v50, %v1182_v47  ;;  %v1889_v49 = vld [vmem:[%s2281_s6] ss:$0 sm:$0xff] }
  0x62   :  { %v543_v6 = vmax.f32 %v479_v48, 0.0  ;;  %v544_v8 = vmax.f32 %v480_v54, 0.0  ;;  %v313_v9 = vadd.f32 %v1341_v56, %v1213_v51  ;;  %v1277_v12 = vunpack.c.l.bf16 %v1437_v0 }
  0x63   :  { %v1278_v13 = vunpack.c.h.bf16 %v1437_v0  ;;  %v1405_v14 = vunpack.c.l.bf16 %v1468_v1  ;;  %v1406_v15 = vunpack.c.h.bf16 %v1468_v1  ;;  %v569_v16 = vpack.c.bf16 %v528_v59, %v527_v58 }
  0x64   :  { %1132 = vmatmul.msk.bf16.gmra.mxu1 %vm580_vm1, %v560_v11  ;;  %v314_v11 = vadd.f32 %v1342_v57, %v1214_v55  ;;  %v329_v17 = vadd.f32 %v1373_v62, %v1245_v60  ;;  %v330_v18 = vadd.f32 %v1374_v63, %v1246_v61  ;;  %v365_v19 = vmul.f32 %v1528_v7, %v297_v4 }
  0x65   :  { %v366_v20 = vmul.f32 %v1528_v7, %v298_v5  ;;  %v381_v21 = vmul.f32 %v1528_v7, %v313_v9  ;;  %v577_v23 = vpack.c.bf16 %v544_v8, %v543_v6  ;;  %v345_v24 = vadd.f32 %v1405_v14, %v1277_v12 }
  0x66   :  { %1140 = vmatmul.msk.bf16.gmra.mxu2 %vm580_vm1, %v568_v22  ;;  %v382_v22 = vmul.f32 %v1528_v7, %v314_v11  ;;  %v346_v25 = vadd.f32 %v1406_v15, %v1278_v13  ;;  %v397_v26 = vmul.f32 %v1528_v7, %v329_v17  ;;  %v398_v27 = vmul.f32 %v1528_v7, %v330_v18 }
  0x67   :  { %v434_v29 = vadd.f32 %v1536_v10, %v366_v20  ;;  %v449_v30 = vadd.f32 %v1536_v10, %v381_v21  ;;  %v413_v32 = vmul.f32 %v1528_v7, %v345_v24 }
  0x68   :  { %v450_v31 = vadd.f32 %v1536_v10, %v382_v22  ;;  %v414_v33 = vmul.f32 %v1528_v7, %v346_v25  ;;  %v465_v34 = vadd.f32 %v1536_v10, %v397_v26  ;;  %v466_v35 = vadd.f32 %v1536_v10, %v398_v27 }
  0x69   :  { %1148 = vmatmul.msk.bf16.gmra.mxu3 %vm580_vm1, %v576_v28  ;;  %v433_v28 = vadd.f32 %v1536_v10, %v365_v19  ;;  %v498_v37 = vmax.f32 %v434_v29, 0.0  ;;  %v513_v38 = vmax.f32 %v449_v30, 0.0  ;;  %v481_v40 = vadd.f32 %v1536_v10, %v413_v32 }
  0x6a   :  { %v514_v39 = vmax.f32 %v450_v31, 0.0  ;;  %v482_v41 = vadd.f32 %v1536_v10, %v414_v33  ;;  %v529_v42 = vmax.f32 %v465_v34, 0.0  ;;  %v530_v43 = vmax.f32 %v466_v35, 0.0  ;;  %v1884_v10 = vld [vmem:[%s2280_s5] ss:$0 sm:$0xff] }
  0x6b   :  { %v497_v36 = vmax.f32 %v433_v28, 0.0  ;;  %v545_v46 = vmax.f32 %v481_v40, 0.0 }
  0x6c   :  { %v562_v45 = vpack.c.bf16 %v514_v39, %v513_v38  ;;  %v546_v47 = vmax.f32 %v482_v41, 0.0  ;;  %v570_v48 = vpack.c.bf16 %v530_v43, %v529_v42 }
  0x6d   :  { %v554_v44 = vpack.c.bf16 %v498_v37, %v497_v36 }
  0x6e   :  { %v578_v7 = vpack.c.bf16 %v546_v47, %v545_v46 }
  0x71   :  { %1125 = vmatmul.msk.bf16.gmra.mxu0 %vm580_vm1, %v553_v2 }
  0x74   :  { %1133 = vmatmul.msk.bf16.gmra.mxu1 %vm580_vm1, %v561_v3 }
  0x76   :  { %1141 = vmatmul.msk.bf16.gmra.mxu2 %vm580_vm1, %v569_v16 }
  0x79   :  { %1149 = vmatmul.msk.bf16.gmra.mxu3 %vm580_vm1, %v577_v23 }
  0x81   :  { %1126 = vmatmul.msk.bf16.gmra.mxu0 %vm580_vm1, %v554_v44 }
  0x84   :  { %1134 = vmatmul.msk.bf16.gmra.mxu1 %vm580_vm1, %v562_v45 }
  0x86   :  { %1142 = vmatmul.msk.bf16.gmra.mxu2 %vm580_vm1, %v570_v48 }
  0x89   :  { %1150 = vmatmul.msk.bf16.gmra.mxu3 %vm580_vm1, %v578_v7 }
  0x8e   :  { %v690_v50 = vpop.f32.mrf.mxu0 }
  0x8f   :  { %v854_v51 = vmul.f32 %v1884_v10, %v690_v50 }
  0x91   :  { %v730_v52 = vpop.f32.mrf.mxu1  ;;  %v922_v54 = vadd.f32 %v1889_v49, %v854_v51 }
  0x92   :  { %v870_v53 = vmul.f32 %v1884_v10, %v730_v52 }
  0x93   :  { %v986_v56 = vpack.c.bf16 %v922_v54, %v922_v54 }
  0x94   :  { %v938_v55 = vadd.f32 %v1889_v49, %v870_v53 }
  0x95   :  { %1051 = vst.msk [vmem:[%s2282_s7] sm:$0xf] %vm1050_vm2, %v986_v56 }
  0x96   :  { %v1002_v57 = vpack.c.bf16 %v938_v55, %v938_v55  ;;  %v692_v58 = vpop.f32.mrf.mxu0 }
  0x97   :  { %v855_v60 = vmul.f32 %v1884_v10, %v692_v58 }
  0x98   :  { %1067 = vst.msk [vmem:[%s2282_s7 + $0x40] sm:$0xf] %vm1050_vm2, %v1002_v57 }
  0x99   :  { %v770_v59 = vpop.f32.mrf.mxu2  ;;  %v732_v61 = vpop.f32.mrf.mxu1  ;;  %v923_v0 = vadd.f32 %v1889_v49, %v855_v60 }
  0x9a   :  { %v886_v62 = vmul.f32 %v1884_v10, %v770_v59  ;;  %v871_v63 = vmul.f32 %v1884_v10, %v732_v61 }
  0x9b   :  { %v987_v5 = vpack.c.bf16 %v923_v0, %v923_v0 }
  0x9c   :  { %v954_v1 = vadd.f32 %v1889_v49, %v886_v62  ;;  %v810_v2 = vpop.f32.mrf.mxu3  ;;  %v939_v3 = vadd.f32 %v1889_v49, %v871_v63 }
  0x9d   :  { %v902_v4 = vmul.f32 %v1884_v10, %v810_v2  ;;  %1052 = vst.msk [vmem:[%s2282_s7 + $0x4] sm:$0xf] %vm1050_vm2, %v987_v5 }
  0x9e   :  { %v1018_v6 = vpack.c.bf16 %v954_v1, %v954_v1  ;;  %v1003_v8 = vpack.c.bf16 %v939_v3, %v939_v3  ;;  %v695_v11 = vpop.f32.mrf.mxu0 }
  0x9f   :  { %v970_v9 = vadd.f32 %v1889_v49, %v902_v4  ;;  %v856_v14 = vmul.f32 %v1884_v10, %v695_v11 }
  0xa0   :  { %1083 = vst.msk [vmem:[%s2282_s7 + $0x80] sm:$0xf] %vm1050_vm2, %v1018_v6 }
  0xa1   :  { %v1034_v12 = vpack.c.bf16 %v970_v9, %v970_v9  ;;  %1068 = vst.msk [vmem:[%s2282_s7 + $0x44] sm:$0xf] %vm1050_vm2, %v1003_v8  ;;  %v772_v13 = vpop.f32.mrf.mxu2  ;;  %v735_v15 = vpop.f32.mrf.mxu1  ;;  %v924_v18 = vadd.f32 %v1889_v49, %v856_v14 }
  0xa2   :  { %v887_v16 = vmul.f32 %v1884_v10, %v772_v13  ;;  %v872_v17 = vmul.f32 %v1884_v10, %v735_v15 }
  0xa3   :  { %1099 = vst.msk [vmem:[%s2282_s7 + $0xc0] sm:$0xf] %vm1050_vm2, %v1034_v12  ;;  %v988_v23 = vpack.c.bf16 %v924_v18, %v924_v18 }
  0xa4   :  { %v955_v19 = vadd.f32 %v1889_v49, %v887_v16  ;;  %v812_v20 = vpop.f32.mrf.mxu3  ;;  %v940_v21 = vadd.f32 %v1889_v49, %v872_v17 }
  0xa5   :  { %v903_v22 = vmul.f32 %v1884_v10, %v812_v20  ;;  %1053 = vst.msk [vmem:[%s2282_s7 + $0x8] sm:$0xf] %vm1050_vm2, %v988_v23 }
  0xa6   :  { %v1019_v24 = vpack.c.bf16 %v955_v19, %v955_v19  ;;  %v1004_v25 = vpack.c.bf16 %v940_v21, %v940_v21  ;;  %v697_v27 = vpop.f32.mrf.mxu0 }
  0xa7   :  { %v971_v26 = vadd.f32 %v1889_v49, %v903_v22  ;;  %v857_v30 = vmul.f32 %v1884_v10, %v697_v27 }
  0xa8   :  { %1084 = vst.msk [vmem:[%s2282_s7 + $0x84] sm:$0xf] %vm1050_vm2, %v1019_v24 }
  0xa9   :  { %v1035_v28 = vpack.c.bf16 %v971_v26, %v971_v26  ;;  %1069 = vst.msk [vmem:[%s2282_s7 + $0x48] sm:$0xf] %vm1050_vm2, %v1004_v25  ;;  %v775_v29 = vpop.f32.mrf.mxu2  ;;  %v737_v31 = vpop.f32.mrf.mxu1  ;;  %v925_v34 = vadd.f32 %v1889_v49, %v857_v30 }
  0xaa   :  { %v888_v32 = vmul.f32 %v1884_v10, %v775_v29  ;;  %v873_v33 = vmul.f32 %v1884_v10, %v737_v31 }
  0xab   :  { %1100 = vst.msk [vmem:[%s2282_s7 + $0xc4] sm:$0xf] %vm1050_vm2, %v1035_v28  ;;  %v989_v39 = vpack.c.bf16 %v925_v34, %v925_v34 }
  0xac   :  { %v956_v35 = vadd.f32 %v1889_v49, %v888_v32  ;;  %v815_v36 = vpop.f32.mrf.mxu3  ;;  %v941_v37 = vadd.f32 %v1889_v49, %v873_v33 }
  0xad   :  { %v904_v38 = vmul.f32 %v1884_v10, %v815_v36  ;;  %1054 = vst.msk [vmem:[%s2282_s7 + $0xc] sm:$0xf] %vm1050_vm2, %v989_v39 }
  0xae   :  { %v1020_v40 = vpack.c.bf16 %v956_v35, %v956_v35  ;;  %v1005_v41 = vpack.c.bf16 %v941_v37, %v941_v37  ;;  %v700_v43 = vpop.f32.mrf.mxu0 }
  0xaf   :  { %v972_v42 = vadd.f32 %v1889_v49, %v904_v38  ;;  %v858_v46 = vmul.f32 %v1884_v10, %v700_v43 }
  0xb0   :  { %1085 = vst.msk [vmem:[%s2282_s7 + $0x88] sm:$0xf] %vm1050_vm2, %v1020_v40 }
  0xb1   :  { %v1036_v44 = vpack.c.bf16 %v972_v42, %v972_v42  ;;  %1070 = vst.msk [vmem:[%s2282_s7 + $0x4c] sm:$0xf] %vm1050_vm2, %v1005_v41  ;;  %v777_v45 = vpop.f32.mrf.mxu2  ;;  %v740_v47 = vpop.f32.mrf.mxu1  ;;  %v926_v50 = vadd.f32 %v1889_v49, %v858_v46 }
  0xb2   :  { %v889_v48 = vmul.f32 %v1884_v10, %v777_v45  ;;  %v874_v7 = vmul.f32 %v1884_v10, %v740_v47 }
  0xb3   :  { %1101 = vst.msk [vmem:[%s2282_s7 + $0xc8] sm:$0xf] %vm1050_vm2, %v1036_v44  ;;  %v990_v55 = vpack.c.bf16 %v926_v50, %v926_v50 }
  0xb4   :  { %v957_v51 = vadd.f32 %v1889_v49, %v889_v48  ;;  %v817_v52 = vpop.f32.mrf.mxu3  ;;  %v942_v53 = vadd.f32 %v1889_v49, %v874_v7 }
  0xb5   :  { %v905_v54 = vmul.f32 %v1884_v10, %v817_v52  ;;  %1055 = vst.msk [vmem:[%s2282_s7 + $0x10] sm:$0xf] %vm1050_vm2, %v990_v55 }
  0xb6   :  { %v1021_v56 = vpack.c.bf16 %v957_v51, %v957_v51  ;;  %v1006_v57 = vpack.c.bf16 %v942_v53, %v942_v53  ;;  %v702_v59 = vpop.f32.mrf.mxu0 }
  0xb7   :  { %v973_v58 = vadd.f32 %v1889_v49, %v905_v54  ;;  %v859_v62 = vmul.f32 %v1884_v10, %v702_v59 }
  0xb8   :  { %1086 = vst.msk [vmem:[%s2282_s7 + $0x8c] sm:$0xf] %vm1050_vm2, %v1021_v56 }
  0xb9   :  { %v1037_v60 = vpack.c.bf16 %v973_v58, %v973_v58  ;;  %1071 = vst.msk [vmem:[%s2282_s7 + $0x50] sm:$0xf] %vm1050_vm2, %v1006_v57  ;;  %v780_v61 = vpop.f32.mrf.mxu2  ;;  %v742_v63 = vpop.f32.mrf.mxu1  ;;  %v927_v2 = vadd.f32 %v1889_v49, %v859_v62 }
  0xba   :  { %v890_v0 = vmul.f32 %v1884_v10, %v780_v61  ;;  %v875_v1 = vmul.f32 %v1884_v10, %v742_v63 }
  0xbb   :  { %1102 = vst.msk [vmem:[%s2282_s7 + $0xcc] sm:$0xf] %vm1050_vm2, %v1037_v60  ;;  %v991_v8 = vpack.c.bf16 %v927_v2, %v927_v2 }
  0xbc   :  { %v958_v3 = vadd.f32 %v1889_v49, %v890_v0  ;;  %v820_v4 = vpop.f32.mrf.mxu3  ;;  %v943_v5 = vadd.f32 %v1889_v49, %v875_v1 }
  0xbd   :  { %v906_v6 = vmul.f32 %v1884_v10, %v820_v4  ;;  %1056 = vst.msk [vmem:[%s2282_s7 + $0x14] sm:$0xf] %vm1050_vm2, %v991_v8 }
  0xbe   :  { %v1022_v9 = vpack.c.bf16 %v958_v3, %v958_v3  ;;  %v1007_v11 = vpack.c.bf16 %v943_v5, %v943_v5  ;;  %v705_v13 = vpop.f32.mrf.mxu0 }
  0xbf   :  { %v974_v12 = vadd.f32 %v1889_v49, %v906_v6  ;;  %v860_v16 = vmul.f32 %v1884_v10, %v705_v13 }
  0xc0   :  { %1087 = vst.msk [vmem:[%s2282_s7 + $0x90] sm:$0xf] %vm1050_vm2, %v1022_v9 }
  0xc1   :  { %v1038_v14 = vpack.c.bf16 %v974_v12, %v974_v12  ;;  %1072 = vst.msk [vmem:[%s2282_s7 + $0x54] sm:$0xf] %vm1050_vm2, %v1007_v11  ;;  %v782_v15 = vpop.f32.mrf.mxu2  ;;  %v745_v17 = vpop.f32.mrf.mxu1  ;;  %v928_v20 = vadd.f32 %v1889_v49, %v860_v16 }
  0xc2   :  { %v891_v18 = vmul.f32 %v1884_v10, %v782_v15  ;;  %v876_v19 = vmul.f32 %v1884_v10, %v745_v17 }
  0xc3   :  { %1103 = vst.msk [vmem:[%s2282_s7 + $0xd0] sm:$0xf] %vm1050_vm2, %v1038_v14  ;;  %v992_v25 = vpack.c.bf16 %v928_v20, %v928_v20 }
  0xc4   :  { %v959_v21 = vadd.f32 %v1889_v49, %v891_v18  ;;  %v822_v22 = vpop.f32.mrf.mxu3  ;;  %v944_v23 = vadd.f32 %v1889_v49, %v876_v19 }
  0xc5   :  { %v907_v24 = vmul.f32 %v1884_v10, %v822_v22  ;;  %1057 = vst.msk [vmem:[%s2282_s7 + $0x18] sm:$0xf] %vm1050_vm2, %v992_v25 }
  0xc6   :  { %v1023_v26 = vpack.c.bf16 %v959_v21, %v959_v21  ;;  %v1008_v27 = vpack.c.bf16 %v944_v23, %v944_v23  ;;  %v707_v29 = vpop.f32.mrf.mxu0 }
  0xc7   :  { %v975_v28 = vadd.f32 %v1889_v49, %v907_v24  ;;  %v861_v32 = vmul.f32 %v1884_v10, %v707_v29 }
  0xc8   :  { %1088 = vst.msk [vmem:[%s2282_s7 + $0x94] sm:$0xf] %vm1050_vm2, %v1023_v26 }
  0xc9   :  { %v1039_v30 = vpack.c.bf16 %v975_v28, %v975_v28  ;;  %1073 = vst.msk [vmem:[%s2282_s7 + $0x58] sm:$0xf] %vm1050_vm2, %v1008_v27  ;;  %v785_v31 = vpop.f32.mrf.mxu2  ;;  %v747_v33 = vpop.f32.mrf.mxu1  ;;  %v929_v36 = vadd.f32 %v1889_v49, %v861_v32 }
  0xca   :  { %v892_v34 = vmul.f32 %v1884_v10, %v785_v31  ;;  %v877_v35 = vmul.f32 %v1884_v10, %v747_v33 }
  0xcb   :  { %1104 = vst.msk [vmem:[%s2282_s7 + $0xd4] sm:$0xf] %vm1050_vm2, %v1039_v30  ;;  %v993_v41 = vpack.c.bf16 %v929_v36, %v929_v36 }
  0xcc   :  { %v960_v37 = vadd.f32 %v1889_v49, %v892_v34  ;;  %v825_v38 = vpop.f32.mrf.mxu3  ;;  %v945_v39 = vadd.f32 %v1889_v49, %v877_v35 }
  0xcd   :  { %v908_v40 = vmul.f32 %v1884_v10, %v825_v38  ;;  %1058 = vst.msk [vmem:[%s2282_s7 + $0x1c] sm:$0xf] %vm1050_vm2, %v993_v41 }
  0xce   :  { %v1024_v42 = vpack.c.bf16 %v960_v37, %v960_v37  ;;  %v1009_v43 = vpack.c.bf16 %v945_v39, %v945_v39  ;;  %v710_v45 = vpop.f32.mrf.mxu0 }
  0xcf   :  { %v976_v44 = vadd.f32 %v1889_v49, %v908_v40  ;;  %v862_v48 = vmul.f32 %v1884_v10, %v710_v45 }
  0xd0   :  { %1089 = vst.msk [vmem:[%s2282_s7 + $0x98] sm:$0xf] %vm1050_vm2, %v1024_v42 }
  0xd1   :  { %v1040_v46 = vpack.c.bf16 %v976_v44, %v976_v44  ;;  %1074 = vst.msk [vmem:[%s2282_s7 + $0x5c] sm:$0xf] %vm1050_vm2, %v1009_v43  ;;  %v787_v47 = vpop.f32.mrf.mxu2  ;;  %v750_v7 = vpop.f32.mrf.mxu1  ;;  %v930_v52 = vadd.f32 %v1889_v49, %v862_v48 }
  0xd2   :  { %v893_v50 = vmul.f32 %v1884_v10, %v787_v47  ;;  %v878_v51 = vmul.f32 %v1884_v10, %v750_v7 }
  0xd3   :  { %1105 = vst.msk [vmem:[%s2282_s7 + $0xd8] sm:$0xf] %vm1050_vm2, %v1040_v46  ;;  %v994_v57 = vpack.c.bf16 %v930_v52, %v930_v52 }
  0xd4   :  { %v961_v53 = vadd.f32 %v1889_v49, %v893_v50  ;;  %v827_v54 = vpop.f32.mrf.mxu3  ;;  %v946_v55 = vadd.f32 %v1889_v49, %v878_v51 }
  0xd5   :  { %v909_v56 = vmul.f32 %v1884_v10, %v827_v54  ;;  %1059 = vst.msk [vmem:[%s2282_s7 + $0x20] sm:$0xf] %vm1050_vm2, %v994_v57 }
  0xd6   :  { %v1025_v58 = vpack.c.bf16 %v961_v53, %v961_v53  ;;  %v1010_v59 = vpack.c.bf16 %v946_v55, %v946_v55  ;;  %v712_v61 = vpop.f32.mrf.mxu0 }
  0xd7   :  { %v977_v60 = vadd.f32 %v1889_v49, %v909_v56  ;;  %v863_v0 = vmul.f32 %v1884_v10, %v712_v61 }
  0xd8   :  { %1090 = vst.msk [vmem:[%s2282_s7 + $0x9c] sm:$0xf] %vm1050_vm2, %v1025_v58 }
  0xd9   :  { %v1041_v62 = vpack.c.bf16 %v977_v60, %v977_v60  ;;  %1075 = vst.msk [vmem:[%s2282_s7 + $0x60] sm:$0xf] %vm1050_vm2, %v1010_v59  ;;  %v790_v63 = vpop.f32.mrf.mxu2  ;;  %v752_v1 = vpop.f32.mrf.mxu1  ;;  %v931_v4 = vadd.f32 %v1889_v49, %v863_v0 }
  0xda   :  { %v894_v2 = vmul.f32 %v1884_v10, %v790_v63  ;;  %v879_v3 = vmul.f32 %v1884_v10, %v752_v1 }
  0xdb   :  { %1106 = vst.msk [vmem:[%s2282_s7 + $0xdc] sm:$0xf] %vm1050_vm2, %v1041_v62  ;;  %v995_v11 = vpack.c.bf16 %v931_v4, %v931_v4 }
  0xdc   :  { %v962_v5 = vadd.f32 %v1889_v49, %v894_v2  ;;  %v830_v6 = vpop.f32.mrf.mxu3  ;;  %v947_v8 = vadd.f32 %v1889_v49, %v879_v3 }
  0xdd   :  { %v910_v9 = vmul.f32 %v1884_v10, %v830_v6  ;;  %1060 = vst.msk [vmem:[%s2282_s7 + $0x24] sm:$0xf] %vm1050_vm2, %v995_v11 }
  0xde   :  { %v1026_v12 = vpack.c.bf16 %v962_v5, %v962_v5  ;;  %v1011_v13 = vpack.c.bf16 %v947_v8, %v947_v8  ;;  %v715_v15 = vpop.f32.mrf.mxu0 }
  0xdf   :  { %v978_v14 = vadd.f32 %v1889_v49, %v910_v9  ;;  %v864_v18 = vmul.f32 %v1884_v10, %v715_v15 }
  0xe0   :  { %1091 = vst.msk [vmem:[%s2282_s7 + $0xa0] sm:$0xf] %vm1050_vm2, %v1026_v12 }
  0xe1   :  { %v1042_v16 = vpack.c.bf16 %v978_v14, %v978_v14  ;;  %1076 = vst.msk [vmem:[%s2282_s7 + $0x64] sm:$0xf] %vm1050_vm2, %v1011_v13  ;;  %v792_v17 = vpop.f32.mrf.mxu2  ;;  %v755_v19 = vpop.f32.mrf.mxu1  ;;  %v932_v22 = vadd.f32 %v1889_v49, %v864_v18 }
  0xe2   :  { %v895_v20 = vmul.f32 %v1884_v10, %v792_v17  ;;  %v880_v21 = vmul.f32 %v1884_v10, %v755_v19 }
  0xe3   :  { %1107 = vst.msk [vmem:[%s2282_s7 + $0xe0] sm:$0xf] %vm1050_vm2, %v1042_v16  ;;  %v996_v27 = vpack.c.bf16 %v932_v22, %v932_v22 }
  0xe4   :  { %v963_v23 = vadd.f32 %v1889_v49, %v895_v20  ;;  %v832_v24 = vpop.f32.mrf.mxu3  ;;  %v948_v25 = vadd.f32 %v1889_v49, %v880_v21 }
  0xe5   :  { %v911_v26 = vmul.f32 %v1884_v10, %v832_v24  ;;  %1061 = vst.msk [vmem:[%s2282_s7 + $0x28] sm:$0xf] %vm1050_vm2, %v996_v27 }
  0xe6   :  { %v1027_v28 = vpack.c.bf16 %v963_v23, %v963_v23  ;;  %v1012_v29 = vpack.c.bf16 %v948_v25, %v948_v25  ;;  %v717_v31 = vpop.f32.mrf.mxu0 }
  0xe7   :  { %v979_v30 = vadd.f32 %v1889_v49, %v911_v26  ;;  %v865_v34 = vmul.f32 %v1884_v10, %v717_v31 }
  0xe8   :  { %1092 = vst.msk [vmem:[%s2282_s7 + $0xa4] sm:$0xf] %vm1050_vm2, %v1027_v28 }
  0xe9   :  { %v1043_v32 = vpack.c.bf16 %v979_v30, %v979_v30  ;;  %1077 = vst.msk [vmem:[%s2282_s7 + $0x68] sm:$0xf] %vm1050_vm2, %v1012_v29  ;;  %v795_v33 = vpop.f32.mrf.mxu2  ;;  %v757_v35 = vpop.f32.mrf.mxu1  ;;  %v933_v38 = vadd.f32 %v1889_v49, %v865_v34 }
  0xea   :  { %v896_v36 = vmul.f32 %v1884_v10, %v795_v33  ;;  %v881_v37 = vmul.f32 %v1884_v10, %v757_v35 }
  0xeb   :  { %1108 = vst.msk [vmem:[%s2282_s7 + $0xe4] sm:$0xf] %vm1050_vm2, %v1043_v32  ;;  %v997_v43 = vpack.c.bf16 %v933_v38, %v933_v38 }
  0xec   :  { %v964_v39 = vadd.f32 %v1889_v49, %v896_v36  ;;  %v835_v40 = vpop.f32.mrf.mxu3  ;;  %v949_v41 = vadd.f32 %v1889_v49, %v881_v37 }
  0xed   :  { %v912_v42 = vmul.f32 %v1884_v10, %v835_v40  ;;  %1062 = vst.msk [vmem:[%s2282_s7 + $0x2c] sm:$0xf] %vm1050_vm2, %v997_v43 }
  0xee   :  { %v1028_v44 = vpack.c.bf16 %v964_v39, %v964_v39  ;;  %v1013_v45 = vpack.c.bf16 %v949_v41, %v949_v41  ;;  %v720_v47 = vpop.f32.mrf.mxu0 }
  0xef   :  { %v980_v46 = vadd.f32 %v1889_v49, %v912_v42  ;;  %v866_v50 = vmul.f32 %v1884_v10, %v720_v47 }
  0xf0   :  { %1093 = vst.msk [vmem:[%s2282_s7 + $0xa8] sm:$0xf] %vm1050_vm2, %v1028_v44 }
  0xf1   :  { %v1044_v48 = vpack.c.bf16 %v980_v46, %v980_v46  ;;  %1078 = vst.msk [vmem:[%s2282_s7 + $0x6c] sm:$0xf] %vm1050_vm2, %v1013_v45  ;;  %v797_v7 = vpop.f32.mrf.mxu2  ;;  %v760_v51 = vpop.f32.mrf.mxu1  ;;  %v934_v54 = vadd.f32 %v1889_v49, %v866_v50 }
  0xf2   :  { %v897_v52 = vmul.f32 %v1884_v10, %v797_v7  ;;  %v882_v53 = vmul.f32 %v1884_v10, %v760_v51 }
  0xf3   :  { %1109 = vst.msk [vmem:[%s2282_s7 + $0xe8] sm:$0xf] %vm1050_vm2, %v1044_v48  ;;  %v998_v59 = vpack.c.bf16 %v934_v54, %v934_v54 }
  0xf4   :  { %v965_v55 = vadd.f32 %v1889_v49, %v897_v52  ;;  %v837_v56 = vpop.f32.mrf.mxu3  ;;  %v950_v57 = vadd.f32 %v1889_v49, %v882_v53 }
  0xf5   :  { %v913_v58 = vmul.f32 %v1884_v10, %v837_v56  ;;  %1063 = vst.msk [vmem:[%s2282_s7 + $0x30] sm:$0xf] %vm1050_vm2, %v998_v59 }
  0xf6   :  { %v1029_v60 = vpack.c.bf16 %v965_v55, %v965_v55  ;;  %v1014_v61 = vpack.c.bf16 %v950_v57, %v950_v57  ;;  %v722_v63 = vpop.f32.mrf.mxu0 }
  0xf7   :  { %v981_v62 = vadd.f32 %v1889_v49, %v913_v58  ;;  %v867_v2 = vmul.f32 %v1884_v10, %v722_v63 }
  0xf8   :  { %1094 = vst.msk [vmem:[%s2282_s7 + $0xac] sm:$0xf] %vm1050_vm2, %v1029_v60 }
  0xf9   :  { %v1045_v0 = vpack.c.bf16 %v981_v62, %v981_v62  ;;  %1079 = vst.msk [vmem:[%s2282_s7 + $0x70] sm:$0xf] %vm1050_vm2, %v1014_v61  ;;  %v800_v1 = vpop.f32.mrf.mxu2  ;;  %v762_v3 = vpop.f32.mrf.mxu1  ;;  %v935_v6 = vadd.f32 %v1889_v49, %v867_v2 }
  0xfa   :  { %v898_v4 = vmul.f32 %v1884_v10, %v800_v1  ;;  %v883_v5 = vmul.f32 %v1884_v10, %v762_v3 }
  0xfb   :  { %1110 = vst.msk [vmem:[%s2282_s7 + $0xec] sm:$0xf] %vm1050_vm2, %v1045_v0  ;;  %v999_v13 = vpack.c.bf16 %v935_v6, %v935_v6 }
  0xfc   :  { %v966_v8 = vadd.f32 %v1889_v49, %v898_v4  ;;  %v840_v9 = vpop.f32.mrf.mxu3  ;;  %v951_v11 = vadd.f32 %v1889_v49, %v883_v5 }
  0xfd   :  { %v914_v12 = vmul.f32 %v1884_v10, %v840_v9  ;;  %1064 = vst.msk [vmem:[%s2282_s7 + $0x34] sm:$0xf] %vm1050_vm2, %v999_v13 }
  0xfe   :  { %v1030_v14 = vpack.c.bf16 %v966_v8, %v966_v8  ;;  %v1015_v15 = vpack.c.bf16 %v951_v11, %v951_v11  ;;  %v725_v17 = vpop.f32.mrf.mxu0 }
  0xff   :  { %v982_v16 = vadd.f32 %v1889_v49, %v914_v12  ;;  %v868_v20 = vmul.f32 %v1884_v10, %v725_v17 }
 0x100   :  { %1095 = vst.msk [vmem:[%s2282_s7 + $0xb0] sm:$0xf] %vm1050_vm2, %v1030_v14 }
 0x101   :  { %v1046_v18 = vpack.c.bf16 %v982_v16, %v982_v16  ;;  %1080 = vst.msk [vmem:[%s2282_s7 + $0x74] sm:$0xf] %vm1050_vm2, %v1015_v15  ;;  %v802_v19 = vpop.f32.mrf.mxu2  ;;  %v765_v21 = vpop.f32.mrf.mxu1  ;;  %v936_v24 = vadd.f32 %v1889_v49, %v868_v20 }
 0x102   :  { %v899_v22 = vmul.f32 %v1884_v10, %v802_v19  ;;  %v884_v23 = vmul.f32 %v1884_v10, %v765_v21 }
 0x103   :  { %1111 = vst.msk [vmem:[%s2282_s7 + $0xf0] sm:$0xf] %vm1050_vm2, %v1046_v18  ;;  %v1000_v29 = vpack.c.bf16 %v936_v24, %v936_v24 }
 0x104   :  { %v967_v25 = vadd.f32 %v1889_v49, %v899_v22  ;;  %v842_v26 = vpop.f32.mrf.mxu3  ;;  %v952_v27 = vadd.f32 %v1889_v49, %v884_v23 }
 0x105   :  { %v915_v28 = vmul.f32 %v1884_v10, %v842_v26  ;;  %1065 = vst.msk [vmem:[%s2282_s7 + $0x38] sm:$0xf] %vm1050_vm2, %v1000_v29 }
 0x106   :  { %v1031_v30 = vpack.c.bf16 %v967_v25, %v967_v25  ;;  %v1016_v31 = vpack.c.bf16 %v952_v27, %v952_v27  ;;  %v727_v33 = vpop.f32.mrf.mxu0 }
 0x107   :  { %v983_v32 = vadd.f32 %v1889_v49, %v915_v28  ;;  %v869_v36 = vmul.f32 %v1884_v10, %v727_v33 }
 0x108   :  { %1096 = vst.msk [vmem:[%s2282_s7 + $0xb4] sm:$0xf] %vm1050_vm2, %v1031_v30 }
 0x109   :  { %v1047_v34 = vpack.c.bf16 %v983_v32, %v983_v32  ;;  %1081 = vst.msk [vmem:[%s2282_s7 + $0x78] sm:$0xf] %vm1050_vm2, %v1016_v31  ;;  %v805_v35 = vpop.f32.mrf.mxu2  ;;  %v767_v37 = vpop.f32.mrf.mxu1  ;;  %v937_v40 = vadd.f32 %v1889_v49, %v869_v36 }
 0x10a   :  { %v900_v38 = vmul.f32 %v1884_v10, %v805_v35  ;;  %v885_v39 = vmul.f32 %v1884_v10, %v767_v37 }
 0x10b   :  { %1112 = vst.msk [vmem:[%s2282_s7 + $0xf4] sm:$0xf] %vm1050_vm2, %v1047_v34  ;;  %v1001_v45 = vpack.c.bf16 %v937_v40, %v937_v40 }
 0x10c   :  { %v968_v41 = vadd.f32 %v1889_v49, %v900_v38  ;;  %v845_v42 = vpop.f32.mrf.mxu3  ;;  %v953_v43 = vadd.f32 %v1889_v49, %v885_v39 }
 0x10d   :  { %v916_v44 = vmul.f32 %v1884_v10, %v845_v42  ;;  %1066 = vst.msk [vmem:[%s2282_s7 + $0x3c] sm:$0xf] %vm1050_vm2, %v1001_v45 }
 0x10e   :  { %v1032_v46 = vpack.c.bf16 %v968_v41, %v968_v41  ;;  %v1017_v47 = vpack.c.bf16 %v953_v43, %v953_v43 }
 0x10f   :  { %v984_v48 = vadd.f32 %v1889_v49, %v916_v44 }
 0x110   :  { %1097 = vst.msk [vmem:[%s2282_s7 + $0xb8] sm:$0xf] %vm1050_vm2, %v1032_v46 }
 0x111   :  { %v1048_v7 = vpack.c.bf16 %v984_v48, %v984_v48  ;;  %1082 = vst.msk [vmem:[%s2282_s7 + $0x7c] sm:$0xf] %vm1050_vm2, %v1017_v47  ;;  %v807_v50 = vpop.f32.mrf.mxu2 }
 0x112   :  { %v901_v51 = vmul.f32 %v1884_v10, %v807_v50 }
 0x113   :  { %1113 = vst.msk [vmem:[%s2282_s7 + $0xf8] sm:$0xf] %vm1050_vm2, %v1048_v7 }
 0x114   :  { %v969_v52 = vadd.f32 %v1889_v49, %v901_v51  ;;  %v847_v53 = vpop.f32.mrf.mxu3 }
 0x115   :  { %v917_v54 = vmul.f32 %v1884_v10, %v847_v53 }
 0x116   :  { %v1033_v55 = vpack.c.bf16 %v969_v52, %v969_v52 }
 0x117   :  { %v985_v56 = vadd.f32 %v1889_v49, %v917_v54 }
 0x118   :  { %1098 = vst.msk [vmem:[%s2282_s7 + $0xbc] sm:$0xf] %vm1050_vm2, %v1033_v55 }
 0x119   :  { %v1049_v57 = vpack.c.bf16 %v985_v56, %v985_v56 }
 0x11b   :  { %1114 = vst.msk [vmem:[%s2282_s7 + $0xfc] sm:$0xf] %vm1050_vm2, %v1049_v57 }

// kernel: prm_forward.29
= control target key start
LH: loop header
LB: loop body
LE: loop exit
PB: predicated region body
PF: predicated region fallthrough
CT: control target
= control target key end

     0   :  { %vm686_vm0 = vcmask 1043456   ;;  %vm589_vm1 = vcmask 64512   ;;  %vm1387_vm2 = vcmask 130048   ;;  %s3162_s5 = inlined_call_operand.vmem [shape: bf16[8,16], index: 5, kind: input, shape index: {}]   ;;  %s3163_s0 = inlined_call_operand.vmem [shape: bf16[512,8], index: 0, kind: input, shape index: {}]   ;;  %s3164_s1 = inlined_call_operand.vmem [shape: bf16[512,8], index: 1, kind: input, shape index: {}]   ;;  %s3165_s3 = inlined_call_operand.vmem [shape: f32[1,8], index: 3, kind: input, shape index: {}]   ;;  %s3166_s4 = inlined_call_operand.vmem [shape: f32[1,8], index: 4, kind: input, shape index: {}]   ;;  %s3167_s6 = inlined_call_operand.vmem [shape: f32[1,16], index: 6, kind: input, shape index: {}]   ;;  %s3168_s7 = inlined_call_operand.vmem [shape: f32[1,16], index: 7, kind: input, shape index: {}]   ;;  %s3169_s8 = inlined_call_operand.vmem [shape: f32[1,16], index: 8, kind: input, shape index: {}]   ;;  %s3170_s9 = inlined_call_operand.vmem [shape: f32[1,16], index: 9, kind: input, shape index: {}]   ;;  %s3171_s2 = inlined_call_operand.vmem [shape: bf16[512,16], index: 2, kind: input, shape index: {}]   ;;  %s3172_s10 = inlined_call_operand.vmem [shape: f32[512,16], index: 10, kind: output, shape index: {}]  }
   0x1   :  { %v588_v0 = vld [vmem:[%s3162_s5] sm:$0xf]  ;;  %v1872_v41 = vld [vmem:[%s3163_s0 + $0x8] sm:$0xff]  }
   0x2   :  { %v1489_v1 = vld [vmem:[%s3163_s0] sm:$0xff]   ;;  %v688_v3 = vsel %vm686_vm0, %v588_v0, 0  ;;  %v1903_v50 = vld [vmem:[%s3164_s1 + $0x8] sm:$0xff]   ;;  %v1494_v54 = vunpack.c.l.bf16 %v1872_v41  ;;  %v1495_v63 = vunpack.c.h.bf16 %v1872_v41 }
   0x3   :  { %v1617_v2 = vld [vmem:[%s3164_s1] sm:$0xff]   ;;  %v1490_v4 = vunpack.c.l.bf16 %v1489_v1  ;;  %v1491_v5 = vunpack.c.h.bf16 %v1489_v1  ;;  %697 = vmatpush.bf16.msra.mxu0 %v688_v3  ;;  %1965 = vmatpush.bf16.msra.mxu1 %v688_v3  ;;  %v1880_v55 = vld [vmem:[%s3163_s0 + $0x48] sm:$0xff]   ;;  %v1622_v0 = vunpack.c.l.bf16 %v1903_v50 }
   0x4   :  { %v1618_v6 = vunpack.c.l.bf16 %v1617_v2  ;;  %v2045_v7 = vld [vmem:[%s3165_s3] ss:$0 sm:$0xff]  ;;  %v1619_v9 = vunpack.c.h.bf16 %v1617_v2  ;;  %1966 = vmatpush.bf16.msra.mxu2 %v688_v3  ;;  %1967 = vmatpush.bf16.msra.mxu3 %v688_v3  ;;  %v1911_v60 = vld [vmem:[%s3164_s1 + $0x48] sm:$0xff]   ;;  %v1623_v3 = vunpack.c.h.bf16 %v1903_v50 }
   0x5   :  { %v1879_v8 = vld [vmem:[%s3163_s0 + $0x40] sm:$0xff]  }
   0x6   :  { %v2053_v10 = vld [vmem:[%s3166_s4] ss:$0 sm:$0xff]  ;;  %v1522_v11 = vunpack.c.l.bf16 %v1879_v8  ;;  %v1523_v12 = vunpack.c.h.bf16 %v1879_v8  ;;  %v292_v14 = vadd.f32 %v1618_v6, %v1490_v4  ;;  %v293_v20 = vadd.f32 %v1619_v9, %v1491_v5  ;;  %v1888_v5 = vld [vmem:[%s3163_s0 + $0x88] sm:$0xff]  }
   0x7   :  { %v1910_v13 = vld [vmem:[%s3164_s1 + $0x40] sm:$0xff]   ;;  %v1526_v4 = vunpack.c.l.bf16 %v1880_v55  ;;  %v294_v8 = vadd.f32 %v1622_v0, %v1494_v54  ;;  %v1527_v9 = vunpack.c.h.bf16 %v1880_v55 }
   0x8   :  { %v1650_v15 = vunpack.c.l.bf16 %v1910_v13  ;;  %v1651_v16 = vunpack.c.h.bf16 %v1910_v13  ;;  %v1887_v17 = vld [vmem:[%s3163_s0 + $0x80] sm:$0xff]   ;;  %v360_v24 = vmul.f32 %v2045_v7, %v292_v14  ;;  %v361_v29 = vmul.f32 %v2045_v7, %v293_v20 }
   0x9   :  { %v1918_v18 = vld [vmem:[%s3164_s1 + $0x80] sm:$0xff]   ;;  %v1554_v21 = vunpack.c.l.bf16 %v1887_v17  ;;  %v1555_v22 = vunpack.c.h.bf16 %v1887_v17  ;;  %v1896_v17 = vld [vmem:[%s3163_s0 + $0xc8] sm:$0xff]   ;;  %v1558_v20 = vunpack.c.l.bf16 %v1888_v5 }
   0xa   :  { %v1895_v19 = vld [vmem:[%s3163_s0 + $0xc0] sm:$0xff]   ;;  %v1682_v23 = vunpack.c.l.bf16 %v1918_v18  ;;  %v308_v25 = vadd.f32 %v1650_v15, %v1522_v11  ;;  %v309_v26 = vadd.f32 %v1651_v16, %v1523_v12  ;;  %v1683_v27 = vunpack.c.h.bf16 %v1918_v18  ;;  %v1919_v12 = vld [vmem:[%s3164_s1 + $0x88] sm:$0xff]  }
   0xb   :  { %v1926_v28 = vld [vmem:[%s3164_s1 + $0xc0] sm:$0xff]   ;;  %v1586_v31 = vunpack.c.l.bf16 %v1895_v19  ;;  %v1587_v32 = vunpack.c.h.bf16 %v1895_v19  ;;  %v428_v33 = vadd.f32 %v2053_v10, %v360_v24  ;;  %v429_v37 = vadd.f32 %v2053_v10, %v361_v29 }
   0xc   :  { %v324_v30 = vadd.f32 %v1682_v23, %v1554_v21  ;;  %v376_v34 = vmul.f32 %v2045_v7, %v308_v25  ;;  %v377_v35 = vmul.f32 %v2045_v7, %v309_v26  ;;  %v325_v36 = vadd.f32 %v1683_v27, %v1555_v22  ;;  %v1927_v26 = vld [vmem:[%s3164_s1 + $0xc8] sm:$0xff]  }
   0xd   :  { %v1714_v39 = vunpack.c.l.bf16 %v1926_v28  ;;  %v1715_v40 = vunpack.c.h.bf16 %v1926_v28  ;;  %v492_v42 = vmax.f32 %v428_v33, 0.0  ;;  %v493_v46 = vmax.f32 %v429_v37, 0.0 }
   0xe   :  { %v392_v38 = vmul.f32 %v2045_v7, %v324_v30  ;;  %v444_v43 = vadd.f32 %v2053_v10, %v376_v34  ;;  %v445_v44 = vadd.f32 %v2053_v10, %v377_v35  ;;  %v393_v45 = vmul.f32 %v2045_v7, %v325_v36  ;;  %v1873_v35 = vld [vmem:[%s3163_s0 + $0x10] sm:$0xff]  }
   0xf   :  { %v340_v48 = vadd.f32 %v1714_v39, %v1586_v31  ;;  %v341_v49 = vadd.f32 %v1715_v40, %v1587_v32  ;;  %v556_v56 = vpack.c.bf16 %v493_v46, %v492_v42  ;;  %v1654_v11 = vunpack.c.l.bf16 %v1911_v60 }
  0x10   :  { %v460_v47 = vadd.f32 %v2053_v10, %v392_v38  ;;  %v508_v51 = vmax.f32 %v444_v43, 0.0  ;;  %v509_v52 = vmax.f32 %v445_v44, 0.0  ;;  %v461_v53 = vadd.f32 %v2053_v10, %v393_v45  ;;  %v1904_v44 = vld [vmem:[%s3164_s1 + $0x10] sm:$0xff]  }
  0x11   :  { %v408_v58 = vmul.f32 %v2045_v7, %v340_v48  ;;  %v409_v59 = vmul.f32 %v2045_v7, %v341_v49  ;;  %1456 = vmatmul.msk.bf16.vlgmr.msra.gmra.mxu0 %vm589_vm1, %v556_v56  ;;  %v295_v15 = vadd.f32 %v1623_v3, %v1495_v63  ;;  %v1655_v16 = vunpack.c.h.bf16 %v1911_v60  ;;  %v1889_v3 = vld [vmem:[%s3163_s0 + $0x90] sm:$0xff]  }
  0x12   :  { %v524_v57 = vmax.f32 %v460_v47, 0.0  ;;  %v564_v61 = vpack.c.bf16 %v509_v52, %v508_v51  ;;  %v525_v62 = vmax.f32 %v461_v53, 0.0  ;;  %v362_v18 = vmul.f32 %v2045_v7, %v294_v8  ;;  %v1881_v53 = vld [vmem:[%s3163_s0 + $0x50] sm:$0xff]  }
  0x13   :  { %v476_v1 = vadd.f32 %v2053_v10, %v408_v58  ;;  %v477_v2 = vadd.f32 %v2053_v10, %v409_v59  ;;  %v310_v19 = vadd.f32 %v1654_v11, %v1526_v4  ;;  %v1559_v21 = vunpack.c.h.bf16 %v1888_v5  ;;  %v1912_v58 = vld [vmem:[%s3164_s1 + $0x50] sm:$0xff]  }
  0x14   :  { %1464 = vmatmul.msk.bf16.vlgmr.msra.gmra.mxu1 %vm589_vm1, %v564_v61  ;;  %v572_v6 = vpack.c.bf16 %v525_v62, %v524_v57  ;;  %v363_v23 = vmul.f32 %v2045_v7, %v295_v15  ;;  %v311_v24 = vadd.f32 %v1655_v16, %v1527_v9  ;;  %v1686_v25 = vunpack.c.l.bf16 %v1919_v12  ;;  %v1920_v9 = vld [vmem:[%s3164_s1 + $0x90] sm:$0xff]  }
  0x15   :  { %v540_v13 = vmax.f32 %v476_v1, 0.0  ;;  %v541_v14 = vmax.f32 %v477_v2, 0.0  ;;  %v430_v27 = vadd.f32 %v2053_v10, %v362_v18  ;;  %v378_v28 = vmul.f32 %v2045_v7, %v310_v19  ;;  %v1897_v19 = vld [vmem:[%s3163_s0 + $0xd0] sm:$0xff]  }
  0x16   :  { %1472 = vmatmul.msk.bf16.vlgmr.msra.gmra.mxu2 %vm589_vm1, %v572_v6  ;;  %v1687_v29 = vunpack.c.h.bf16 %v1919_v12  ;;  %v1590_v30 = vunpack.c.l.bf16 %v1896_v17  ;;  %v431_v31 = vadd.f32 %v2053_v10, %v363_v23  ;;  %v379_v32 = vmul.f32 %v2045_v7, %v311_v24 }
  0x17   :  { %v580_v22 = vpack.c.bf16 %v541_v14, %v540_v13  ;;  %v326_v33 = vadd.f32 %v1686_v25, %v1558_v20  ;;  %v1591_v34 = vunpack.c.h.bf16 %v1896_v17  ;;  %v494_v36 = vmax.f32 %v430_v27, 0.0 }
  0x18   :  { %v446_v37 = vadd.f32 %v2053_v10, %v378_v28  ;;  %v327_v38 = vadd.f32 %v1687_v29, %v1559_v21  ;;  %v1718_v39 = vunpack.c.l.bf16 %v1927_v26  ;;  %v495_v40 = vmax.f32 %v431_v31, 0.0  ;;  %v1928_v28 = vld [vmem:[%s3164_s1 + $0xd0] sm:$0xff]  }
  0x19   :  { %1480 = vmatmul.msk.bf16.vlgmr.msra.gmra.mxu3 %vm589_vm1, %v580_v22  ;;  %v447_v41 = vadd.f32 %v2053_v10, %v379_v32  ;;  %v394_v42 = vmul.f32 %v2045_v7, %v326_v33  ;;  %v1719_v43 = vunpack.c.h.bf16 %v1927_v26  ;;  %v1498_v48 = vunpack.c.l.bf16 %v1873_v35  ;;  %v1874_v32 = vld [vmem:[%s3163_s0 + $0x18] sm:$0xff]  }
  0x1a   :  { %v510_v45 = vmax.f32 %v446_v37, 0.0  ;;  %v395_v46 = vmul.f32 %v2045_v7, %v327_v38  ;;  %v342_v47 = vadd.f32 %v1718_v39, %v1590_v30  ;;  %v557_v49 = vpack.c.bf16 %v495_v40, %v494_v36 }
  0x1b   :  { %v511_v50 = vmax.f32 %v447_v41, 0.0  ;;  %v462_v51 = vadd.f32 %v2053_v10, %v394_v42  ;;  %v343_v52 = vadd.f32 %v1719_v43, %v1591_v34  ;;  %v1499_v56 = vunpack.c.h.bf16 %v1873_v35  ;;  %v1905_v41 = vld [vmem:[%s3164_s1 + $0x18] sm:$0xff]  }
  0x1c   :  { %v463_v54 = vadd.f32 %v2053_v10, %v395_v46  ;;  %v410_v55 = vmul.f32 %v2045_v7, %v342_v47  ;;  %v1626_v57 = vunpack.c.l.bf16 %v1904_v44  ;;  %v1627_v62 = vunpack.c.h.bf16 %v1904_v44 }
  0x1d   :  { %v565_v59 = vpack.c.bf16 %v511_v50, %v510_v45  ;;  %v526_v60 = vmax.f32 %v462_v51, 0.0  ;;  %v411_v61 = vmul.f32 %v2045_v7, %v343_v52  ;;  %v1530_v2 = vunpack.c.l.bf16 %v1881_v53  ;;  %v1882_v50 = vld [vmem:[%s3163_s0 + $0x58] sm:$0xff]  }
  0x1e   :  { %v527_v63 = vmax.f32 %v463_v54, 0.0  ;;  %v478_v0 = vadd.f32 %v2053_v10, %v410_v55  ;;  %v296_v1 = vadd.f32 %v1626_v57, %v1498_v48  ;;  %v297_v5 = vadd.f32 %v1627_v62, %v1499_v56  ;;  %v1913_v55 = vld [vmem:[%s3164_s1 + $0x58] sm:$0xff]  }
  0x1f   :  { %v479_v4 = vadd.f32 %v2053_v10, %v411_v61  ;;  %v1531_v6 = vunpack.c.h.bf16 %v1881_v53  ;;  %v1658_v8 = vunpack.c.l.bf16 %v1912_v58  ;;  %v1659_v14 = vunpack.c.h.bf16 %v1912_v58 }
  0x20   :  { %v573_v11 = vpack.c.bf16 %v527_v63, %v526_v60  ;;  %v542_v12 = vmax.f32 %v478_v0, 0.0  ;;  %v364_v13 = vmul.f32 %v2045_v7, %v296_v1  ;;  %v365_v16 = vmul.f32 %v2045_v7, %v297_v5  ;;  %v1890_v63 = vld [vmem:[%s3163_s0 + $0x98] sm:$0xff]  }
  0x21   :  { %1457 = vmatmul.msk.bf16.gmra.mxu0 %vm589_vm1, %v557_v49  ;;  %v543_v15 = vmax.f32 %v479_v4, 0.0  ;;  %v312_v17 = vadd.f32 %v1658_v8, %v1530_v2  ;;  %v1562_v18 = vunpack.c.l.bf16 %v1889_v3  ;;  %v313_v21 = vadd.f32 %v1659_v14, %v1531_v6  ;;  %v1921_v8 = vld [vmem:[%s3164_s1 + $0x98] sm:$0xff]  }
  0x22   :  { %v432_v20 = vadd.f32 %v2053_v10, %v364_v13  ;;  %v1563_v22 = vunpack.c.h.bf16 %v1889_v3  ;;  %v1690_v23 = vunpack.c.l.bf16 %v1920_v9  ;;  %v433_v25 = vadd.f32 %v2053_v10, %v365_v16  ;;  %v1898_v14 = vld [vmem:[%s3163_s0 + $0xd8] sm:$0xff]  }
  0x23   :  { %v581_v24 = vpack.c.bf16 %v543_v15, %v542_v12  ;;  %v380_v26 = vmul.f32 %v2045_v7, %v312_v17  ;;  %v1691_v27 = vunpack.c.h.bf16 %v1920_v9  ;;  %v381_v29 = vmul.f32 %v2045_v7, %v313_v21 }
  0x24   :  { %1465 = vmatmul.msk.bf16.gmra.mxu1 %vm589_vm1, %v565_v59  ;;  %v328_v30 = vadd.f32 %v1690_v23, %v1562_v18  ;;  %v1594_v31 = vunpack.c.l.bf16 %v1897_v19  ;;  %v496_v33 = vmax.f32 %v432_v20, 0.0  ;;  %v1595_v36 = vunpack.c.h.bf16 %v1897_v19  ;;  %v1929_v23 = vld [vmem:[%s3164_s1 + $0xd8] sm:$0xff]  }
  0x25   :  { %v448_v34 = vadd.f32 %v2053_v10, %v380_v26  ;;  %v329_v35 = vadd.f32 %v1691_v27, %v1563_v22  ;;  %v449_v37 = vadd.f32 %v2053_v10, %v381_v29  ;;  %v1722_v39 = vunpack.c.l.bf16 %v1928_v28 }
  0x26   :  { %1473 = vmatmul.msk.bf16.gmra.mxu2 %vm589_vm1, %v573_v11  ;;  %v396_v38 = vmul.f32 %v2045_v7, %v328_v30  ;;  %v1723_v40 = vunpack.c.h.bf16 %v1928_v28  ;;  %v497_v42 = vmax.f32 %v433_v25, 0.0  ;;  %v1502_v45 = vunpack.c.l.bf16 %v1874_v32  ;;  %v1875_v30 = vld [vmem:[%s3163_s0 + $0x20] sm:$0xff]  }
  0x27   :  { %v512_v43 = vmax.f32 %v448_v34, 0.0  ;;  %v397_v44 = vmul.f32 %v2045_v7, %v329_v35  ;;  %v513_v46 = vmax.f32 %v449_v37, 0.0  ;;  %v344_v48 = vadd.f32 %v1722_v39, %v1594_v31  ;;  %v1906_v35 = vld [vmem:[%s3164_s1 + $0x20] sm:$0xff]  }
  0x28   :  { %v464_v47 = vadd.f32 %v2053_v10, %v396_v38  ;;  %v345_v49 = vadd.f32 %v1723_v40, %v1595_v36  ;;  %v1503_v52 = vunpack.c.h.bf16 %v1874_v32  ;;  %v1630_v53 = vunpack.c.l.bf16 %v1905_v41  ;;  %v1883_v40 = vld [vmem:[%s3163_s0 + $0x60] sm:$0xff]  }
  0x29   :  { %1481 = vmatmul.msk.bf16.gmra.mxu3 %vm589_vm1, %v581_v24  ;;  %v465_v51 = vadd.f32 %v2053_v10, %v397_v44  ;;  %v1631_v54 = vunpack.c.h.bf16 %v1905_v41  ;;  %v412_v57 = vmul.f32 %v2045_v7, %v344_v48  ;;  %v1534_v62 = vunpack.c.l.bf16 %v1882_v50 }
  0x2a   :  { %v528_v56 = vmax.f32 %v464_v47, 0.0  ;;  %v413_v58 = vmul.f32 %v2045_v7, %v345_v49  ;;  %v298_v60 = vadd.f32 %v1630_v53, %v1502_v45  ;;  %v1535_v2 = vunpack.c.h.bf16 %v1882_v50  ;;  %v1914_v49 = vld [vmem:[%s3164_s1 + $0x60] sm:$0xff]  }
  0x2b   :  { %v529_v59 = vmax.f32 %v465_v51, 0.0  ;;  %v299_v61 = vadd.f32 %v1631_v54, %v1503_v52  ;;  %v480_v0 = vadd.f32 %v2053_v10, %v412_v57  ;;  %v1662_v3 = vunpack.c.l.bf16 %v1913_v55 }
  0x2c   :  { %v481_v1 = vadd.f32 %v2053_v10, %v413_v58  ;;  %v558_v4 = vpack.c.bf16 %v497_v42, %v496_v33  ;;  %v566_v5 = vpack.c.bf16 %v513_v46, %v512_v43  ;;  %v1663_v6 = vunpack.c.h.bf16 %v1913_v55 }
  0x2d   :  { %v366_v9 = vmul.f32 %v2045_v7, %v298_v60  ;;  %v367_v11 = vmul.f32 %v2045_v7, %v299_v61  ;;  %v314_v12 = vadd.f32 %v1662_v3, %v1534_v62  ;;  %v1566_v13 = vunpack.c.l.bf16 %v1890_v63  ;;  %v1891_v61 = vld [vmem:[%s3163_s0 + $0xa0] sm:$0xff]  }
  0x2e   :  { %v544_v15 = vmax.f32 %v480_v0, 0.0  ;;  %v545_v16 = vmax.f32 %v481_v1, 0.0  ;;  %v315_v17 = vadd.f32 %v1663_v6, %v1535_v2  ;;  %v1567_v18 = vunpack.c.h.bf16 %v1890_v63  ;;  %v1922_v2 = vld [vmem:[%s3164_s1 + $0xa0] sm:$0xff]  }
  0x2f   :  { %v574_v19 = vpack.c.bf16 %v529_v59, %v528_v56  ;;  %v382_v20 = vmul.f32 %v2045_v7, %v314_v12  ;;  %v1694_v21 = vunpack.c.l.bf16 %v1921_v8  ;;  %v1695_v22 = vunpack.c.h.bf16 %v1921_v8 }
  0x30   :  { %v383_v24 = vmul.f32 %v2045_v7, %v315_v17  ;;  %v1598_v25 = vunpack.c.l.bf16 %v1898_v14  ;;  %v434_v26 = vadd.f32 %v2053_v10, %v366_v9  ;;  %v1599_v29 = vunpack.c.h.bf16 %v1898_v14 }
  0x31   :  { %1458 = vmatmul.msk.bf16.gmra.mxu0 %vm589_vm1, %v558_v4  ;;  %v330_v27 = vadd.f32 %v1694_v21, %v1566_v13  ;;  %v331_v28 = vadd.f32 %v1695_v22, %v1567_v18  ;;  %v582_v31 = vpack.c.bf16 %v545_v16, %v544_v15  ;;  %v435_v32 = vadd.f32 %v2053_v10, %v367_v11  ;;  %v1930_v16 = vld [vmem:[%s3164_s1 + $0xe0] sm:$0xff]  }
  0x32   :  { %v1726_v33 = vunpack.c.l.bf16 %v1929_v23  ;;  %v1727_v34 = vunpack.c.h.bf16 %v1929_v23  ;;  %v450_v36 = vadd.f32 %v2053_v10, %v382_v20  ;;  %v451_v37 = vadd.f32 %v2053_v10, %v383_v24 }
  0x33   :  { %v398_v38 = vmul.f32 %v2045_v7, %v330_v27  ;;  %v399_v39 = vmul.f32 %v2045_v7, %v331_v28  ;;  %v1506_v43 = vunpack.c.l.bf16 %v1875_v30  ;;  %v1507_v44 = vunpack.c.h.bf16 %v1875_v30 }
  0x34   :  { %1466 = vmatmul.msk.bf16.gmra.mxu1 %vm589_vm1, %v566_v5  ;;  %v346_v41 = vadd.f32 %v1726_v33, %v1598_v25  ;;  %v347_v42 = vadd.f32 %v1727_v34, %v1599_v29  ;;  %v1634_v47 = vunpack.c.l.bf16 %v1906_v35  ;;  %v1635_v48 = vunpack.c.h.bf16 %v1906_v35  ;;  %v1899_v5 = vld [vmem:[%s3163_s0 + $0xe0] sm:$0xff]  }
  0x35   :  { %v466_v45 = vadd.f32 %v2053_v10, %v398_v38  ;;  %v467_v46 = vadd.f32 %v2053_v10, %v399_v39  ;;  %v1538_v52 = vunpack.c.l.bf16 %v1883_v40  ;;  %v498_v53 = vmax.f32 %v434_v26, 0.0  ;;  %v1876_v38 = vld [vmem:[%s3163_s0 + $0x28] sm:$0xff]  }
  0x36   :  { %1474 = vmatmul.msk.bf16.gmra.mxu2 %vm589_vm1, %v574_v19  ;;  %v414_v50 = vmul.f32 %v2045_v7, %v346_v41  ;;  %v415_v51 = vmul.f32 %v2045_v7, %v347_v42  ;;  %v499_v54 = vmax.f32 %v435_v32, 0.0  ;;  %v514_v55 = vmax.f32 %v450_v36, 0.0  ;;  %v1907_v39 = vld [vmem:[%s3164_s1 + $0x28] sm:$0xff]  }
  0x37   :  { %v515_v56 = vmax.f32 %v451_v37, 0.0  ;;  %v530_v57 = vmax.f32 %v466_v45, 0.0  ;;  %v531_v58 = vmax.f32 %v467_v46, 0.0  ;;  %v1539_v59 = vunpack.c.h.bf16 %v1883_v40  ;;  %v1915_v45 = vld [vmem:[%s3164_s1 + $0x68] sm:$0xff]  }
  0x38   :  { %v1666_v60 = vunpack.c.l.bf16 %v1914_v49  ;;  %v482_v62 = vadd.f32 %v2053_v10, %v414_v50  ;;  %v300_v63 = vadd.f32 %v1634_v47, %v1506_v43  ;;  %v301_v0 = vadd.f32 %v1635_v48, %v1507_v44  ;;  %v1884_v44 = vld [vmem:[%s3163_s0 + $0x68] sm:$0xff]  }
  0x39   :  { %1482 = vmatmul.msk.bf16.gmra.mxu3 %vm589_vm1, %v582_v31  ;;  %v1667_v1 = vunpack.c.h.bf16 %v1914_v49  ;;  %v483_v3 = vadd.f32 %v2053_v10, %v415_v51  ;;  %v559_v6 = vpack.c.bf16 %v499_v54, %v498_v53  ;;  %v1570_v9 = vunpack.c.l.bf16 %v1891_v61  ;;  %v1892_v54 = vld [vmem:[%s3163_s0 + $0xa8] sm:$0xff]  }
  0x3a   :  { %v316_v4 = vadd.f32 %v1666_v60, %v1538_v52  ;;  %v1571_v11 = vunpack.c.h.bf16 %v1891_v61  ;;  %v567_v12 = vpack.c.bf16 %v515_v56, %v514_v55  ;;  %v575_v13 = vpack.c.bf16 %v531_v58, %v530_v57  ;;  %v1923_v55 = vld [vmem:[%s3164_s1 + $0xa8] sm:$0xff]  }
  0x3b   :  { %v317_v8 = vadd.f32 %v1667_v1, %v1539_v59  ;;  %v1698_v14 = vunpack.c.l.bf16 %v1922_v2  ;;  %v1699_v15 = vunpack.c.h.bf16 %v1922_v2  ;;  %v546_v17 = vmax.f32 %v482_v62, 0.0  ;;  %v1900_v2 = vld [vmem:[%s3163_s0 + $0xe8] sm:$0xff]  }
  0x3c   :  { %v368_v18 = vmul.f32 %v2045_v7, %v300_v63  ;;  %v369_v19 = vmul.f32 %v2045_v7, %v301_v0  ;;  %v1602_v20 = vunpack.c.l.bf16 %v1899_v5  ;;  %v547_v21 = vmax.f32 %v483_v3, 0.0  ;;  %v1931_v3 = vld [vmem:[%s3164_s1 + $0xe8] sm:$0xff]  }
  0x3d   :  { %v384_v22 = vmul.f32 %v2045_v7, %v316_v4  ;;  %v385_v23 = vmul.f32 %v2045_v7, %v317_v8  ;;  %v1603_v24 = vunpack.c.h.bf16 %v1899_v5  ;;  %v332_v25 = vadd.f32 %v1698_v14, %v1570_v9 }
  0x3e   :  { %v333_v26 = vadd.f32 %v1699_v15, %v1571_v11  ;;  %v1730_v27 = vunpack.c.l.bf16 %v1930_v16  ;;  %v1731_v28 = vunpack.c.h.bf16 %v1930_v16  ;;  %v436_v29 = vadd.f32 %v2053_v10, %v368_v18 }
  0x3f   :  { %v437_v30 = vadd.f32 %v2053_v10, %v369_v19  ;;  %v583_v33 = vpack.c.bf16 %v547_v21, %v546_v17  ;;  %v452_v34 = vadd.f32 %v2053_v10, %v384_v22  ;;  %v453_v35 = vadd.f32 %v2053_v10, %v385_v23 }
  0x40   :  { %v348_v31 = vadd.f32 %v1730_v27, %v1602_v20  ;;  %v349_v32 = vadd.f32 %v1731_v28, %v1603_v24  ;;  %v400_v36 = vmul.f32 %v2045_v7, %v332_v25  ;;  %v401_v37 = vmul.f32 %v2045_v7, %v333_v26 }
  0x41   :  { %1459 = vmatmul.msk.bf16.gmra.mxu0 %vm589_vm1, %v559_v6  ;;  %v500_v40 = vmax.f32 %v436_v29, 0.0  ;;  %v501_v41 = vmax.f32 %v437_v30, 0.0  ;;  %v516_v46 = vmax.f32 %v452_v34, 0.0  ;;  %v517_v47 = vmax.f32 %v453_v35, 0.0  ;;  %v1877_v29 = vld [vmem:[%s3163_s0 + $0x30] sm:$0xff]  }
  0x42   :  { %v416_v42 = vmul.f32 %v2045_v7, %v348_v31  ;;  %v417_v43 = vmul.f32 %v2045_v7, %v349_v32  ;;  %v1510_v48 = vunpack.c.l.bf16 %v1876_v38  ;;  %v1511_v49 = vunpack.c.h.bf16 %v1876_v38 }
  0x43   :  { %v468_v50 = vadd.f32 %v2053_v10, %v400_v36  ;;  %v469_v51 = vadd.f32 %v2053_v10, %v401_v37  ;;  %v1638_v52 = vunpack.c.l.bf16 %v1907_v39  ;;  %v1639_v53 = vunpack.c.h.bf16 %v1907_v39 }
  0x44   :  { %1467 = vmatmul.msk.bf16.gmra.mxu1 %vm589_vm1, %v567_v12  ;;  %v1542_v56 = vunpack.c.l.bf16 %v1884_v44  ;;  %v1543_v57 = vunpack.c.h.bf16 %v1884_v44  ;;  %v1670_v58 = vunpack.c.l.bf16 %v1915_v45  ;;  %v1671_v59 = vunpack.c.h.bf16 %v1915_v45 }
  0x45   :  { %v484_v60 = vadd.f32 %v2053_v10, %v416_v42  ;;  %v485_v61 = vadd.f32 %v2053_v10, %v417_v43  ;;  %v1574_v62 = vunpack.c.l.bf16 %v1892_v54  ;;  %v1575_v63 = vunpack.c.h.bf16 %v1892_v54 }
  0x46   :  { %1475 = vmatmul.msk.bf16.gmra.mxu2 %vm589_vm1, %v575_v13  ;;  %v1702_v0 = vunpack.c.l.bf16 %v1923_v55  ;;  %v1703_v1 = vunpack.c.h.bf16 %v1923_v55  ;;  %v532_v4 = vmax.f32 %v468_v50, 0.0  ;;  %v533_v5 = vmax.f32 %v469_v51, 0.0 }
  0x47   :  { %v302_v6 = vadd.f32 %v1638_v52, %v1510_v48  ;;  %v303_v8 = vadd.f32 %v1639_v53, %v1511_v49  ;;  %v560_v9 = vpack.c.bf16 %v501_v41, %v500_v40  ;;  %v568_v11 = vpack.c.bf16 %v517_v47, %v516_v46  ;;  %v1885_v40 = vld [vmem:[%s3163_s0 + $0x70] sm:$0xff]  }
  0x48   :  { %v318_v12 = vadd.f32 %v1670_v58, %v1542_v56  ;;  %v319_v13 = vadd.f32 %v1671_v59, %v1543_v57  ;;  %v1606_v14 = vunpack.c.l.bf16 %v1900_v2  ;;  %v1607_v15 = vunpack.c.h.bf16 %v1900_v2  ;;  %v1916_v41 = vld [vmem:[%s3164_s1 + $0x70] sm:$0xff]  }
  0x49   :  { %1483 = vmatmul.msk.bf16.gmra.mxu3 %vm589_vm1, %v583_v33  ;;  %v1734_v16 = vunpack.c.l.bf16 %v1931_v3  ;;  %v1735_v17 = vunpack.c.h.bf16 %v1931_v3  ;;  %v548_v18 = vmax.f32 %v484_v60, 0.0  ;;  %v549_v19 = vmax.f32 %v485_v61, 0.0  ;;  %v1908_v33 = vld [vmem:[%s3164_s1 + $0x30] sm:$0xff]  }
  0x4a   :  { %v334_v20 = vadd.f32 %v1702_v0, %v1574_v62  ;;  %v335_v21 = vadd.f32 %v1703_v1, %v1575_v63  ;;  %v576_v22 = vpack.c.bf16 %v533_v5, %v532_v4  ;;  %v370_v23 = vmul.f32 %v2045_v7, %v302_v6  ;;  %v1893_v52 = vld [vmem:[%s3163_s0 + $0xb0] sm:$0xff]  }
  0x4b   :  { %v371_v24 = vmul.f32 %v2045_v7, %v303_v8  ;;  %v386_v25 = vmul.f32 %v2045_v7, %v318_v12  ;;  %v387_v26 = vmul.f32 %v2045_v7, %v319_v13  ;;  %v350_v27 = vadd.f32 %v1734_v16, %v1606_v14  ;;  %v1924_v53 = vld [vmem:[%s3164_s1 + $0xb0] sm:$0xff]  }
  0x4c   :  { %v351_v28 = vadd.f32 %v1735_v17, %v1607_v15  ;;  %v584_v30 = vpack.c.bf16 %v549_v19, %v548_v18  ;;  %v402_v31 = vmul.f32 %v2045_v7, %v334_v20  ;;  %v403_v32 = vmul.f32 %v2045_v7, %v335_v21  ;;  %v1901_v62 = vld [vmem:[%s3163_s0 + $0xf0] sm:$0xff]  }
  0x4d   :  { %v438_v34 = vadd.f32 %v2053_v10, %v370_v23  ;;  %v439_v35 = vadd.f32 %v2053_v10, %v371_v24  ;;  %v454_v36 = vadd.f32 %v2053_v10, %v386_v25  ;;  %v455_v37 = vadd.f32 %v2053_v10, %v387_v26  ;;  %v1932_v63 = vld [vmem:[%s3164_s1 + $0xf0] sm:$0xff]  }
  0x4e   :  { %v1514_v38 = vunpack.c.l.bf16 %v1877_v29  ;;  %v1515_v39 = vunpack.c.h.bf16 %v1877_v29  ;;  %v418_v42 = vmul.f32 %v2045_v7, %v350_v27  ;;  %v419_v43 = vmul.f32 %v2045_v7, %v351_v28 }
  0x4f   :  { %v1642_v44 = vunpack.c.l.bf16 %v1908_v33  ;;  %v1643_v45 = vunpack.c.h.bf16 %v1908_v33  ;;  %v470_v46 = vadd.f32 %v2053_v10, %v402_v31  ;;  %v471_v47 = vadd.f32 %v2053_v10, %v403_v32 }
  0x50   :  { %v1546_v48 = vunpack.c.l.bf16 %v1885_v40  ;;  %v1547_v49 = vunpack.c.h.bf16 %v1885_v40  ;;  %v1674_v50 = vunpack.c.l.bf16 %v1916_v41  ;;  %v1675_v51 = vunpack.c.h.bf16 %v1916_v41 }
  0x51   :  { %1460 = vmatmul.msk.bf16.gmra.mxu0 %vm589_vm1, %v560_v9  ;;  %v502_v54 = vmax.f32 %v438_v34, 0.0  ;;  %v503_v55 = vmax.f32 %v439_v35, 0.0  ;;  %v518_v56 = vmax.f32 %v454_v36, 0.0  ;;  %v519_v57 = vmax.f32 %v455_v37, 0.0  ;;  %v1878_v35 = vld [vmem:[%s3163_s0 + $0x38] sm:$0xff]  }
  0x52   :  { %v486_v58 = vadd.f32 %v2053_v10, %v418_v42  ;;  %v487_v59 = vadd.f32 %v2053_v10, %v419_v43  ;;  %v304_v60 = vadd.f32 %v1642_v44, %v1514_v38  ;;  %v305_v61 = vadd.f32 %v1643_v45, %v1515_v39  ;;  %v1909_v37 = vld [vmem:[%s3164_s1 + $0x38] sm:$0xff]  }
  0x53   :  { %v1578_v0 = vunpack.c.l.bf16 %v1893_v52  ;;  %v1579_v1 = vunpack.c.h.bf16 %v1893_v52  ;;  %v1706_v2 = vunpack.c.l.bf16 %v1924_v53  ;;  %v1707_v3 = vunpack.c.h.bf16 %v1924_v53  ;;  %v1886_v38 = vld [vmem:[%s3163_s0 + $0x78] sm:$0xff]  }
  0x54   :  { %1468 = vmatmul.msk.bf16.gmra.mxu1 %vm589_vm1, %v568_v11  ;;  %v534_v4 = vmax.f32 %v470_v46, 0.0  ;;  %v535_v5 = vmax.f32 %v471_v47, 0.0  ;;  %v320_v6 = vadd.f32 %v1674_v50, %v1546_v48  ;;  %v321_v8 = vadd.f32 %v1675_v51, %v1547_v49  ;;  %v1917_v43 = vld [vmem:[%s3164_s1 + $0x78] sm:$0xff]  }
  0x55   :  { %v561_v9 = vpack.c.bf16 %v503_v55, %v502_v54  ;;  %v569_v11 = vpack.c.bf16 %v519_v57, %v518_v56  ;;  %v1610_v12 = vunpack.c.l.bf16 %v1901_v62  ;;  %v1738_v13 = vunpack.c.l.bf16 %v1932_v63  ;;  %v1894_v52 = vld [vmem:[%s3163_s0 + $0xb8] sm:$0xff]  }
  0x56   :  { %1476 = vmatmul.msk.bf16.gmra.mxu2 %vm589_vm1, %v576_v22  ;;  %v372_v14 = vmul.f32 %v2045_v7, %v304_v60  ;;  %v373_v15 = vmul.f32 %v2045_v7, %v305_v61  ;;  %v1611_v16 = vunpack.c.h.bf16 %v1901_v62  ;;  %v1739_v17 = vunpack.c.h.bf16 %v1932_v63  ;;  %v1925_v53 = vld [vmem:[%s3164_s1 + $0xb8] sm:$0xff]  }
  0x57   :  { %v550_v18 = vmax.f32 %v486_v58, 0.0  ;;  %v551_v19 = vmax.f32 %v487_v59, 0.0  ;;  %v336_v20 = vadd.f32 %v1706_v2, %v1578_v0  ;;  %v337_v21 = vadd.f32 %v1707_v3, %v1579_v1  ;;  %v1902_v0 = vld [vmem:[%s3163_s0 + $0xf8] sm:$0xff]  }
  0x58   :  { %v577_v22 = vpack.c.bf16 %v535_v5, %v534_v4  ;;  %v388_v23 = vmul.f32 %v2045_v7, %v320_v6  ;;  %v389_v24 = vmul.f32 %v2045_v7, %v321_v8  ;;  %v352_v25 = vadd.f32 %v1738_v13, %v1610_v12  ;;  %v1933_v1 = vld [vmem:[%s3164_s1 + $0xf8] sm:$0xff]  }
  0x59   :  { %1484 = vmatmul.msk.bf16.gmra.mxu3 %vm589_vm1, %v584_v30  ;;  %v440_v26 = vadd.f32 %v2053_v10, %v372_v14  ;;  %v353_v27 = vadd.f32 %v1739_v17, %v1611_v16  ;;  %v585_v28 = vpack.c.bf16 %v551_v19, %v550_v18  ;;  %v441_v29 = vadd.f32 %v2053_v10, %v373_v15 }
  0x5a   :  { %v404_v30 = vmul.f32 %v2045_v7, %v336_v20  ;;  %v405_v31 = vmul.f32 %v2045_v7, %v337_v21  ;;  %v456_v32 = vadd.f32 %v2053_v10, %v388_v23  ;;  %v457_v33 = vadd.f32 %v2053_v10, %v389_v24 }
  0x5b   :  { %v420_v34 = vmul.f32 %v2045_v7, %v352_v25  ;;  %v421_v36 = vmul.f32 %v2045_v7, %v353_v27  ;;  %v504_v39 = vmax.f32 %v440_v26, 0.0  ;;  %v505_v40 = vmax.f32 %v441_v29, 0.0 }
  0x5c   :  { %v472_v41 = vadd.f32 %v2053_v10, %v404_v30  ;;  %v473_v42 = vadd.f32 %v2053_v10, %v405_v31  ;;  %v520_v44 = vmax.f32 %v456_v32, 0.0  ;;  %v521_v45 = vmax.f32 %v457_v33, 0.0 }
  0x5d   :  { %v1518_v46 = vunpack.c.l.bf16 %v1878_v35  ;;  %v1519_v47 = vunpack.c.h.bf16 %v1878_v35  ;;  %v488_v48 = vadd.f32 %v2053_v10, %v420_v34  ;;  %v1646_v49 = vunpack.c.l.bf16 %v1909_v37 }
  0x5e   :  { %v1647_v50 = vunpack.c.h.bf16 %v1909_v37  ;;  %v1550_v51 = vunpack.c.l.bf16 %v1886_v38  ;;  %v489_v54 = vadd.f32 %v2053_v10, %v421_v36  ;;  %v1551_v55 = vunpack.c.h.bf16 %v1886_v38 }
  0x5f   :  { %v1678_v56 = vunpack.c.l.bf16 %v1917_v43  ;;  %v1679_v57 = vunpack.c.h.bf16 %v1917_v43  ;;  %v536_v58 = vmax.f32 %v472_v41, 0.0  ;;  %v537_v59 = vmax.f32 %v473_v42, 0.0 }
  0x60   :  { %v1582_v60 = vunpack.c.l.bf16 %v1894_v52  ;;  %v1583_v61 = vunpack.c.h.bf16 %v1894_v52  ;;  %v1710_v62 = vunpack.c.l.bf16 %v1925_v53  ;;  %v1711_v63 = vunpack.c.h.bf16 %v1925_v53 }
  0x61   :  { %1461 = vmatmul.msk.bf16.gmra.mxu0 %vm589_vm1, %v561_v9  ;;  %v562_v2 = vpack.c.bf16 %v505_v40, %v504_v39  ;;  %v570_v3 = vpack.c.bf16 %v521_v45, %v520_v44  ;;  %v306_v4 = vadd.f32 %v1646_v49, %v1518_v46  ;;  %v307_v5 = vadd.f32 %v1647_v50, %v1519_v47  ;;  %v1745_v49 = vld [vmem:[%s3171_s2] sm:$0xff]  }
  0x62   :  { %v552_v6 = vmax.f32 %v488_v48, 0.0  ;;  %v553_v8 = vmax.f32 %v489_v54, 0.0  ;;  %v322_v9 = vadd.f32 %v1678_v56, %v1550_v51  ;;  %v1614_v12 = vunpack.c.l.bf16 %v1902_v0  ;;  %v2409_v50 = vld [vmem:[%s3168_s7] ss:$0 sm:$0xff] }
  0x63   :  { %v1615_v13 = vunpack.c.h.bf16 %v1902_v0  ;;  %v1742_v14 = vunpack.c.l.bf16 %v1933_v1  ;;  %v1743_v15 = vunpack.c.h.bf16 %v1933_v1  ;;  %v578_v16 = vpack.c.bf16 %v537_v59, %v536_v58  ;;  %v1941_v51 = vld [vmem:[%s3171_s2 + $0x40] sm:$0xff]  }
  0x64   :  { %1469 = vmatmul.msk.bf16.gmra.mxu1 %vm589_vm1, %v569_v11  ;;  %v323_v11 = vadd.f32 %v1679_v57, %v1551_v55  ;;  %v338_v17 = vadd.f32 %v1710_v62, %v1582_v60  ;;  %v339_v18 = vadd.f32 %v1711_v63, %v1583_v61  ;;  %v374_v19 = vmul.f32 %v2045_v7, %v306_v4  ;;  %v2420_v59 = vld [vmem:[%s3169_s8] ss:$0 sm:$0xff] }
  0x65   :  { %v375_v20 = vmul.f32 %v2045_v7, %v307_v5  ;;  %v390_v21 = vmul.f32 %v2045_v7, %v322_v9  ;;  %v586_v23 = vpack.c.bf16 %v553_v8, %v552_v6  ;;  %v354_v24 = vadd.f32 %v1742_v14, %v1614_v12  ;;  %v2426_v62 = vld [vmem:[%s3170_s9] ss:$0 sm:$0xff] }
  0x66   :  { %1477 = vmatmul.msk.bf16.gmra.mxu2 %vm589_vm1, %v577_v22  ;;  %v391_v22 = vmul.f32 %v2045_v7, %v323_v11  ;;  %v355_v25 = vadd.f32 %v1743_v15, %v1615_v13  ;;  %v406_v26 = vmul.f32 %v2045_v7, %v338_v17  ;;  %v407_v27 = vmul.f32 %v2045_v7, %v339_v18  ;;  %v2431_v0 = vld [vmem:[%s3171_s2 + $0x80] sm:$0xff]  }
  0x67   :  { %v443_v29 = vadd.f32 %v2053_v10, %v375_v20  ;;  %v458_v30 = vadd.f32 %v2053_v10, %v390_v21  ;;  %v422_v32 = vmul.f32 %v2045_v7, %v354_v24  ;;  %v1746_v54 = vunpack.c.l.bf16 %v1745_v49  ;;  %v2443_v14 = vld [vmem:[%s3171_s2 + $0xc0] sm:$0xff]  }
  0x68   :  { %v459_v31 = vadd.f32 %v2053_v10, %v391_v22  ;;  %v423_v33 = vmul.f32 %v2045_v7, %v355_v25  ;;  %v474_v34 = vadd.f32 %v2053_v10, %v406_v26  ;;  %v475_v35 = vadd.f32 %v2053_v10, %v407_v27  ;;  %v2458_v26 = vld [vmem:[%s3171_s2 + $0x8] sm:$0xff]  }
  0x69   :  { %1485 = vmatmul.msk.bf16.gmra.mxu3 %vm589_vm1, %v585_v28  ;;  %v442_v28 = vadd.f32 %v2053_v10, %v374_v19  ;;  %v507_v37 = vmax.f32 %v443_v29, 0.0  ;;  %v522_v38 = vmax.f32 %v458_v30, 0.0  ;;  %v490_v40 = vadd.f32 %v2053_v10, %v422_v32  ;;  %v2467_v29 = vld [vmem:[%s3171_s2 + $0x48] sm:$0xff]  }
  0x6a   :  { %v523_v39 = vmax.f32 %v459_v31, 0.0  ;;  %v491_v41 = vadd.f32 %v2053_v10, %v423_v33  ;;  %v538_v42 = vmax.f32 %v474_v34, 0.0  ;;  %v539_v43 = vmax.f32 %v475_v35, 0.0  ;;  %v2401_v10 = vld [vmem:[%s3167_s6] ss:$0 sm:$0xff] }
  0x6b   :  { %v506_v36 = vmax.f32 %v442_v28, 0.0  ;;  %v554_v46 = vmax.f32 %v490_v40, 0.0  ;;  %v1778_v57 = vunpack.c.l.bf16 %v1941_v51  ;;  %v1810_v6 = vunpack.c.l.bf16 %v2431_v0 }
  0x6c   :  { %v571_v45 = vpack.c.bf16 %v523_v39, %v522_v38  ;;  %v555_v47 = vmax.f32 %v491_v41, 0.0  ;;  %v579_v48 = vpack.c.bf16 %v539_v43, %v538_v42  ;;  %v1747_v9 = vunpack.c.h.bf16 %v1745_v49 }
  0x6d   :  { %v563_v44 = vpack.c.bf16 %v507_v37, %v506_v36  ;;  %v1842_v24 = vunpack.c.l.bf16 %v2443_v14  ;;  %v1811_v34 = vunpack.c.h.bf16 %v2431_v0  ;;  %v1750_v36 = vunpack.c.l.bf16 %v2458_v26 }
  0x6e   :  { %v587_v7 = vpack.c.bf16 %v555_v47, %v554_v46  ;;  %v1782_v42 = vunpack.c.l.bf16 %v2467_v29 }
  0x71   :  { %1462 = vmatmul.msk.bf16.gmra.mxu0 %vm589_vm1, %v562_v2 }
  0x74   :  { %1470 = vmatmul.msk.bf16.gmra.mxu1 %vm589_vm1, %v570_v3 }
  0x76   :  { %1478 = vmatmul.msk.bf16.gmra.mxu2 %vm589_vm1, %v578_v16  ;;  %v1779_v16 = vunpack.c.h.bf16 %v1941_v51 }
  0x79   :  { %1486 = vmatmul.msk.bf16.gmra.mxu3 %vm589_vm1, %v586_v23 }
  0x81   :  { %1463 = vmatmul.msk.bf16.gmra.mxu0 %vm589_vm1, %v563_v44 }
  0x84   :  { %1471 = vmatmul.msk.bf16.gmra.mxu1 %vm589_vm1, %v571_v45 }
  0x86   :  { %1479 = vmatmul.msk.bf16.gmra.mxu2 %vm589_vm1, %v579_v48 }
  0x89   :  { %1487 = vmatmul.msk.bf16.gmra.mxu3 %vm589_vm1, %v587_v7 }
  0x8e   :  { %v699_v52 = vpop.f32.mrf.mxu0 }
  0x8f   :  { %v863_v53 = vmul.f32 %v2401_v10, %v699_v52 }
  0x91   :  { %v739_v55 = vpop.f32.mrf.mxu1  ;;  %v931_v58 = vadd.f32 %v2409_v50, %v863_v53 }
  0x92   :  { %v879_v56 = vmul.f32 %v2401_v10, %v739_v55 }
  0x93   :  { %v1123_v61 = vadd.f32 %v1746_v54, %v931_v58 }
  0x94   :  { %v947_v60 = vadd.f32 %v2409_v50, %v879_v56 }
  0x95   :  { %v1191_v1 = vmul.f32 %v2420_v59, %v1123_v61 }
  0x96   :  { %v1139_v63 = vadd.f32 %v1778_v57, %v947_v60  ;;  %v701_v3 = vpop.f32.mrf.mxu0  ;;  %v1843_v57 = vunpack.c.h.bf16 %v2443_v14  ;;  %v2496_v60 = vld [vmem:[%s3171_s2 + $0x88] sm:$0xff]  }
  0x97   :  { %v1259_v4 = vadd.f32 %v2426_v62, %v1191_v1  ;;  %v864_v8 = vmul.f32 %v2401_v10, %v701_v3 }
  0x98   :  { %v1207_v2 = vmul.f32 %v2420_v59, %v1139_v63 }
  0x99   :  { %v779_v5 = vpop.f32.mrf.mxu2  ;;  %v741_v11 = vpop.f32.mrf.mxu1  ;;  %v1323_v17 = vmax.f32 %v1259_v4, 0.0  ;;  %v932_v18 = vadd.f32 %v2409_v50, %v864_v8  ;;  %v1751_v8 = vunpack.c.h.bf16 %v2458_v26 }
  0x9a   :  { %v1275_v12 = vadd.f32 %v2426_v62, %v1207_v2  ;;  %v895_v13 = vmul.f32 %v2401_v10, %v779_v5  ;;  %v880_v15 = vmul.f32 %v2401_v10, %v741_v11  ;;  %v1814_v5 = vunpack.c.l.bf16 %v2496_v60 }
  0x9b   :  { %1388 = vst.msk [vmem:[%s3172_s10] sm:$0xff] %vm1387_vm2, %v1323_v17  ;;  %v1124_v25 = vadd.f32 %v1747_v9, %v932_v18 }
  0x9c   :  { %v1339_v19 = vmax.f32 %v1275_v12, 0.0  ;;  %v963_v20 = vadd.f32 %v2409_v50, %v895_v13  ;;  %v819_v21 = vpop.f32.mrf.mxu3  ;;  %v948_v22 = vadd.f32 %v2409_v50, %v880_v15  ;;  %v1783_v15 = vunpack.c.h.bf16 %v2467_v29 }
  0x9d   :  { %v911_v23 = vmul.f32 %v2401_v10, %v819_v21  ;;  %v1192_v31 = vmul.f32 %v2420_v59, %v1124_v25 }
  0x9e   :  { %1404 = vst.msk [vmem:[%s3172_s10 + $0x80] sm:$0xff] %vm1387_vm2, %v1339_v19  ;;  %v1155_v27 = vadd.f32 %v1810_v6, %v963_v20  ;;  %v1140_v28 = vadd.f32 %v1779_v16, %v948_v22  ;;  %v704_v35 = vpop.f32.mrf.mxu0  ;;  %v2525_v19 = vld [vmem:[%s3171_s2 + $0xc8] sm:$0xff]  }
  0x9f   :  { %v979_v30 = vadd.f32 %v2409_v50, %v911_v23  ;;  %v1260_v38 = vadd.f32 %v2426_v62, %v1192_v31  ;;  %v865_v40 = vmul.f32 %v2401_v10, %v704_v35  ;;  %v1846_v31 = vunpack.c.l.bf16 %v2525_v19 }
  0xa0   :  { %v1223_v32 = vmul.f32 %v2420_v59, %v1155_v27  ;;  %v1208_v33 = vmul.f32 %v2420_v59, %v1140_v28 }
  0xa1   :  { %v1171_v37 = vadd.f32 %v1842_v24, %v979_v30  ;;  %v781_v39 = vpop.f32.mrf.mxu2  ;;  %v744_v41 = vpop.f32.mrf.mxu1  ;;  %v1324_v48 = vmax.f32 %v1260_v38, 0.0  ;;  %v933_v7 = vadd.f32 %v2409_v50, %v865_v40 }
  0xa2   :  { %v1291_v43 = vadd.f32 %v2426_v62, %v1223_v32  ;;  %v1276_v44 = vadd.f32 %v2426_v62, %v1208_v33  ;;  %v896_v45 = vmul.f32 %v2401_v10, %v781_v39  ;;  %v881_v46 = vmul.f32 %v2401_v10, %v744_v41  ;;  %v2542_v33 = vld [vmem:[%s3171_s2 + $0x10] sm:$0xff]  }
  0xa3   :  { %v1239_v47 = vmul.f32 %v2420_v59, %v1171_v37  ;;  %1389 = vst.msk [vmem:[%s3172_s10 + $0x8] sm:$0xff] %vm1387_vm2, %v1324_v48  ;;  %v1125_v58 = vadd.f32 %v1750_v36, %v933_v7  ;;  %v2551_v36 = vld [vmem:[%s3171_s2 + $0x50] sm:$0xff]  }
  0xa4   :  { %v1355_v49 = vmax.f32 %v1291_v43, 0.0  ;;  %v1340_v51 = vmax.f32 %v1276_v44, 0.0  ;;  %v964_v52 = vadd.f32 %v2409_v50, %v896_v45  ;;  %v821_v53 = vpop.f32.mrf.mxu3  ;;  %v949_v54 = vadd.f32 %v2409_v50, %v881_v46 }
  0xa5   :  { %v1307_v55 = vadd.f32 %v2426_v62, %v1239_v47  ;;  %v912_v56 = vmul.f32 %v2401_v10, %v821_v53  ;;  %v1193_v2 = vmul.f32 %v2420_v59, %v1125_v58  ;;  %v1754_v44 = vunpack.c.l.bf16 %v2542_v33 }
  0xa6   :  { %1420 = vst.msk [vmem:[%s3172_s10 + $0x100] sm:$0xff] %vm1387_vm2, %v1355_v49  ;;  %v1156_v61 = vadd.f32 %v1811_v34, %v964_v52  ;;  %v1141_v63 = vadd.f32 %v1782_v42, %v949_v54  ;;  %v706_v6 = vpop.f32.mrf.mxu0  ;;  %v1815_v42 = vunpack.c.h.bf16 %v2496_v60  ;;  %v1786_v49 = vunpack.c.l.bf16 %v2551_v36 }
  0xa7   :  { %v1371_v0 = vmax.f32 %v1307_v55, 0.0  ;;  %1405 = vst.msk [vmem:[%s3172_s10 + $0x88] sm:$0xff] %vm1387_vm2, %v1340_v51  ;;  %v980_v1 = vadd.f32 %v2409_v50, %v912_v56  ;;  %v1261_v11 = vadd.f32 %v2426_v62, %v1193_v2  ;;  %v866_v13 = vmul.f32 %v2401_v10, %v706_v6 }
  0xa8   :  { %v1224_v3 = vmul.f32 %v2420_v59, %v1156_v61  ;;  %v1209_v4 = vmul.f32 %v2420_v59, %v1141_v63 }
  0xa9   :  { %1436 = vst.msk [vmem:[%s3172_s10 + $0x180] sm:$0xff] %vm1387_vm2, %v1371_v0  ;;  %v1172_v9 = vadd.f32 %v1843_v57, %v980_v1  ;;  %v784_v12 = vpop.f32.mrf.mxu2  ;;  %v746_v14 = vpop.f32.mrf.mxu1  ;;  %v1325_v22 = vmax.f32 %v1261_v11, 0.0  ;;  %v934_v23 = vadd.f32 %v2409_v50, %v866_v13 }
  0xaa   :  { %v1292_v16 = vadd.f32 %v2426_v62, %v1224_v3  ;;  %v1277_v17 = vadd.f32 %v2426_v62, %v1209_v4  ;;  %v897_v18 = vmul.f32 %v2401_v10, %v784_v12  ;;  %v882_v20 = vmul.f32 %v2401_v10, %v746_v14 }
  0xab   :  { %v1240_v21 = vmul.f32 %v2420_v59, %v1172_v9  ;;  %1390 = vst.msk [vmem:[%s3172_s10 + $0x10] sm:$0xff] %vm1387_vm2, %v1325_v22  ;;  %v1126_v32 = vadd.f32 %v1751_v8, %v934_v23  ;;  %v1847_v3 = vunpack.c.h.bf16 %v2525_v19  ;;  %v1787_v23 = vunpack.c.h.bf16 %v2551_v36 }
  0xac   :  { %v1356_v24 = vmax.f32 %v1292_v16, 0.0  ;;  %v1341_v25 = vmax.f32 %v1277_v17, 0.0  ;;  %v965_v26 = vadd.f32 %v2409_v50, %v897_v18  ;;  %v824_v27 = vpop.f32.mrf.mxu3  ;;  %v950_v28 = vadd.f32 %v2409_v50, %v882_v20 }
  0xad   :  { %v1308_v29 = vadd.f32 %v2426_v62, %v1240_v21  ;;  %v913_v30 = vmul.f32 %v2401_v10, %v824_v27  ;;  %v1194_v39 = vmul.f32 %v2420_v59, %v1126_v32  ;;  %v1755_v17 = vunpack.c.h.bf16 %v2542_v33  ;;  %v2617_v27 = vld [vmem:[%s3171_s2 + $0xd0] sm:$0xff]  }
  0xae   :  { %1421 = vst.msk [vmem:[%s3172_s10 + $0x108] sm:$0xff] %vm1387_vm2, %v1356_v24  ;;  %v1157_v34 = vadd.f32 %v1814_v5, %v965_v26  ;;  %v1142_v35 = vadd.f32 %v1783_v15, %v950_v28  ;;  %v709_v43 = vpop.f32.mrf.mxu0  ;;  %v2588_v5 = vld [vmem:[%s3171_s2 + $0x90] sm:$0xff]  }
  0xaf   :  { %v1372_v37 = vmax.f32 %v1308_v29, 0.0  ;;  %1406 = vst.msk [vmem:[%s3172_s10 + $0x90] sm:$0xff] %vm1387_vm2, %v1341_v25  ;;  %v981_v38 = vadd.f32 %v2409_v50, %v913_v30  ;;  %v1262_v46 = vadd.f32 %v2426_v62, %v1194_v39  ;;  %v867_v48 = vmul.f32 %v2401_v10, %v709_v43 }
  0xb0   :  { %v1225_v40 = vmul.f32 %v2420_v59, %v1157_v34  ;;  %v1210_v41 = vmul.f32 %v2420_v59, %v1142_v35  ;;  %v1818_v15 = vunpack.c.l.bf16 %v2588_v5  ;;  %v1850_v39 = vunpack.c.l.bf16 %v2617_v27 }
  0xb1   :  { %1437 = vst.msk [vmem:[%s3172_s10 + $0x188] sm:$0xff] %vm1387_vm2, %v1372_v37  ;;  %v1173_v45 = vadd.f32 %v1846_v31, %v981_v38  ;;  %v786_v47 = vpop.f32.mrf.mxu2  ;;  %v749_v7 = vpop.f32.mrf.mxu1  ;;  %v1326_v56 = vmax.f32 %v1262_v46, 0.0  ;;  %v935_v57 = vadd.f32 %v2409_v50, %v867_v48 }
  0xb2   :  { %v1293_v51 = vadd.f32 %v2426_v62, %v1225_v40  ;;  %v1278_v52 = vadd.f32 %v2426_v62, %v1210_v41  ;;  %v898_v53 = vmul.f32 %v2401_v10, %v786_v47  ;;  %v883_v54 = vmul.f32 %v2401_v10, %v749_v7  ;;  %v2634_v41 = vld [vmem:[%s3171_s2 + $0x18] sm:$0xff]  }
  0xb3   :  { %v1241_v55 = vmul.f32 %v2420_v59, %v1173_v45  ;;  %1391 = vst.msk [vmem:[%s3172_s10 + $0x18] sm:$0xff] %vm1387_vm2, %v1326_v56  ;;  %v1127_v4 = vadd.f32 %v1754_v44, %v935_v57  ;;  %v2643_v44 = vld [vmem:[%s3171_s2 + $0x58] sm:$0xff]  }
  0xb4   :  { %v1357_v58 = vmax.f32 %v1293_v51, 0.0  ;;  %v1342_v60 = vmax.f32 %v1278_v52, 0.0  ;;  %v966_v61 = vadd.f32 %v2409_v50, %v898_v53  ;;  %v826_v63 = vpop.f32.mrf.mxu3  ;;  %v951_v0 = vadd.f32 %v2409_v50, %v883_v54 }
  0xb5   :  { %v1309_v1 = vadd.f32 %v2426_v62, %v1241_v55  ;;  %v914_v2 = vmul.f32 %v2401_v10, %v826_v63  ;;  %v1195_v12 = vmul.f32 %v2420_v59, %v1127_v4  ;;  %v1758_v52 = vunpack.c.l.bf16 %v2634_v41 }
  0xb6   :  { %1422 = vst.msk [vmem:[%s3172_s10 + $0x110] sm:$0xff] %vm1387_vm2, %v1357_v58  ;;  %v1158_v6 = vadd.f32 %v1815_v42, %v966_v61  ;;  %v1143_v8 = vadd.f32 %v1786_v49, %v951_v0  ;;  %v711_v16 = vpop.f32.mrf.mxu0  ;;  %v1819_v49 = vunpack.c.h.bf16 %v2588_v5  ;;  %v1790_v58 = vunpack.c.l.bf16 %v2643_v44 }
  0xb7   :  { %v1373_v9 = vmax.f32 %v1309_v1, 0.0  ;;  %1407 = vst.msk [vmem:[%s3172_s10 + $0x98] sm:$0xff] %vm1387_vm2, %v1342_v60  ;;  %v982_v11 = vadd.f32 %v2409_v50, %v914_v2  ;;  %v1263_v19 = vadd.f32 %v2426_v62, %v1195_v12  ;;  %v868_v21 = vmul.f32 %v2401_v10, %v711_v16 }
  0xb8   :  { %v1226_v13 = vmul.f32 %v2420_v59, %v1158_v6  ;;  %v1211_v14 = vmul.f32 %v2420_v59, %v1143_v8 }
  0xb9   :  { %1438 = vst.msk [vmem:[%s3172_s10 + $0x190] sm:$0xff] %vm1387_vm2, %v1373_v9  ;;  %v1174_v18 = vadd.f32 %v1847_v3, %v982_v11  ;;  %v789_v20 = vpop.f32.mrf.mxu2  ;;  %v751_v22 = vpop.f32.mrf.mxu1  ;;  %v1327_v30 = vmax.f32 %v1263_v19, 0.0  ;;  %v936_v31 = vadd.f32 %v2409_v50, %v868_v21 }
  0xba   :  { %v1294_v24 = vadd.f32 %v2426_v62, %v1226_v13  ;;  %v1279_v25 = vadd.f32 %v2426_v62, %v1211_v14  ;;  %v899_v26 = vmul.f32 %v2401_v10, %v789_v20  ;;  %v884_v28 = vmul.f32 %v2401_v10, %v751_v22 }
  0xbb   :  { %v1242_v29 = vmul.f32 %v2420_v59, %v1174_v18  ;;  %1392 = vst.msk [vmem:[%s3172_s10 + $0x20] sm:$0xff] %vm1387_vm2, %v1327_v30  ;;  %v1128_v40 = vadd.f32 %v1755_v17, %v936_v31  ;;  %v1851_v13 = vunpack.c.h.bf16 %v2617_v27  ;;  %v1791_v31 = vunpack.c.h.bf16 %v2643_v44 }
  0xbc   :  { %v1358_v32 = vmax.f32 %v1294_v24, 0.0  ;;  %v1343_v33 = vmax.f32 %v1279_v25, 0.0  ;;  %v967_v34 = vadd.f32 %v2409_v50, %v899_v26  ;;  %v829_v35 = vpop.f32.mrf.mxu3  ;;  %v952_v36 = vadd.f32 %v2409_v50, %v884_v28 }
  0xbd   :  { %v1310_v37 = vadd.f32 %v2426_v62, %v1242_v29  ;;  %v915_v38 = vmul.f32 %v2401_v10, %v829_v35  ;;  %v1196_v47 = vmul.f32 %v2420_v59, %v1128_v40  ;;  %v1759_v25 = vunpack.c.h.bf16 %v2634_v41  ;;  %v2709_v35 = vld [vmem:[%s3171_s2 + $0xd8] sm:$0xff]  }
  0xbe   :  { %1423 = vst.msk [vmem:[%s3172_s10 + $0x118] sm:$0xff] %vm1387_vm2, %v1358_v32  ;;  %v1159_v42 = vadd.f32 %v1818_v15, %v967_v34  ;;  %v1144_v43 = vadd.f32 %v1787_v23, %v952_v36  ;;  %v714_v51 = vpop.f32.mrf.mxu0  ;;  %v2680_v15 = vld [vmem:[%s3171_s2 + $0x98] sm:$0xff]  }
  0xbf   :  { %v1374_v45 = vmax.f32 %v1310_v37, 0.0  ;;  %1408 = vst.msk [vmem:[%s3172_s10 + $0xa0] sm:$0xff] %vm1387_vm2, %v1343_v33  ;;  %v983_v46 = vadd.f32 %v2409_v50, %v915_v38  ;;  %v1264_v54 = vadd.f32 %v2426_v62, %v1196_v47  ;;  %v869_v56 = vmul.f32 %v2401_v10, %v714_v51 }
  0xc0   :  { %v1227_v48 = vmul.f32 %v2420_v59, %v1159_v42  ;;  %v1212_v7 = vmul.f32 %v2420_v59, %v1144_v43  ;;  %v1822_v23 = vunpack.c.l.bf16 %v2680_v15  ;;  %v1854_v47 = vunpack.c.l.bf16 %v2709_v35 }
  0xc1   :  { %1439 = vst.msk [vmem:[%s3172_s10 + $0x198] sm:$0xff] %vm1387_vm2, %v1374_v45  ;;  %v1175_v53 = vadd.f32 %v1850_v39, %v983_v46  ;;  %v791_v55 = vpop.f32.mrf.mxu2  ;;  %v754_v57 = vpop.f32.mrf.mxu1  ;;  %v1328_v2 = vmax.f32 %v1264_v54, 0.0  ;;  %v937_v3 = vadd.f32 %v2409_v50, %v869_v56 }
  0xc2   :  { %v1295_v60 = vadd.f32 %v2426_v62, %v1227_v48  ;;  %v1280_v61 = vadd.f32 %v2426_v62, %v1212_v7  ;;  %v900_v63 = vmul.f32 %v2401_v10, %v791_v55  ;;  %v885_v0 = vmul.f32 %v2401_v10, %v754_v57  ;;  %v2726_v7 = vld [vmem:[%s3171_s2 + $0x20] sm:$0xff]  }
  0xc3   :  { %v1243_v1 = vmul.f32 %v2420_v59, %v1175_v53  ;;  %1393 = vst.msk [vmem:[%s3172_s10 + $0x28] sm:$0xff] %vm1387_vm2, %v1328_v2  ;;  %v1129_v14 = vadd.f32 %v1758_v52, %v937_v3  ;;  %v2735_v52 = vld [vmem:[%s3171_s2 + $0x60] sm:$0xff]  }
  0xc4   :  { %v1359_v4 = vmax.f32 %v1295_v60, 0.0  ;;  %v1344_v5 = vmax.f32 %v1280_v61, 0.0  ;;  %v968_v6 = vadd.f32 %v2409_v50, %v900_v63  ;;  %v831_v8 = vpop.f32.mrf.mxu3  ;;  %v953_v9 = vadd.f32 %v2409_v50, %v885_v0 }
  0xc5   :  { %v1311_v11 = vadd.f32 %v2426_v62, %v1243_v1  ;;  %v916_v12 = vmul.f32 %v2401_v10, %v831_v8  ;;  %v1197_v20 = vmul.f32 %v2420_v59, %v1129_v14  ;;  %v1762_v61 = vunpack.c.l.bf16 %v2726_v7 }
  0xc6   :  { %1424 = vst.msk [vmem:[%s3172_s10 + $0x120] sm:$0xff] %vm1387_vm2, %v1359_v4  ;;  %v1160_v16 = vadd.f32 %v1819_v49, %v968_v6  ;;  %v1145_v17 = vadd.f32 %v1790_v58, %v953_v9  ;;  %v716_v24 = vpop.f32.mrf.mxu0  ;;  %v1823_v58 = vunpack.c.h.bf16 %v2680_v15  ;;  %v1794_v4 = vunpack.c.l.bf16 %v2735_v52 }
  0xc7   :  { %v1375_v18 = vmax.f32 %v1311_v11, 0.0  ;;  %1409 = vst.msk [vmem:[%s3172_s10 + $0xa8] sm:$0xff] %vm1387_vm2, %v1344_v5  ;;  %v984_v19 = vadd.f32 %v2409_v50, %v916_v12  ;;  %v1265_v27 = vadd.f32 %v2426_v62, %v1197_v20  ;;  %v870_v29 = vmul.f32 %v2401_v10, %v716_v24 }
  0xc8   :  { %v1228_v21 = vmul.f32 %v2420_v59, %v1160_v16  ;;  %v1213_v22 = vmul.f32 %v2420_v59, %v1145_v17 }
  0xc9   :  { %1440 = vst.msk [vmem:[%s3172_s10 + $0x1a0] sm:$0xff] %vm1387_vm2, %v1375_v18  ;;  %v1176_v26 = vadd.f32 %v1851_v13, %v984_v19  ;;  %v794_v28 = vpop.f32.mrf.mxu2  ;;  %v756_v30 = vpop.f32.mrf.mxu1  ;;  %v1329_v38 = vmax.f32 %v1265_v27, 0.0  ;;  %v938_v39 = vadd.f32 %v2409_v50, %v870_v29 }
  0xca   :  { %v1296_v32 = vadd.f32 %v2426_v62, %v1228_v21  ;;  %v1281_v33 = vadd.f32 %v2426_v62, %v1213_v22  ;;  %v901_v34 = vmul.f32 %v2401_v10, %v794_v28  ;;  %v886_v36 = vmul.f32 %v2401_v10, %v756_v30 }
  0xcb   :  { %v1244_v37 = vmul.f32 %v2420_v59, %v1176_v26  ;;  %1394 = vst.msk [vmem:[%s3172_s10 + $0x30] sm:$0xff] %vm1387_vm2, %v1329_v38  ;;  %v1130_v48 = vadd.f32 %v1759_v25, %v938_v39  ;;  %v1855_v21 = vunpack.c.h.bf16 %v2709_v35  ;;  %v1795_v39 = vunpack.c.h.bf16 %v2735_v52 }
  0xcc   :  { %v1360_v40 = vmax.f32 %v1296_v32, 0.0  ;;  %v1345_v41 = vmax.f32 %v1281_v33, 0.0  ;;  %v969_v42 = vadd.f32 %v2409_v50, %v901_v34  ;;  %v834_v43 = vpop.f32.mrf.mxu3  ;;  %v954_v44 = vadd.f32 %v2409_v50, %v886_v36 }
  0xcd   :  { %v1312_v45 = vadd.f32 %v2426_v62, %v1244_v37  ;;  %v917_v46 = vmul.f32 %v2401_v10, %v834_v43  ;;  %v1198_v55 = vmul.f32 %v2420_v59, %v1130_v48  ;;  %v1763_v33 = vunpack.c.h.bf16 %v2726_v7  ;;  %v2801_v43 = vld [vmem:[%s3171_s2 + $0xe0] sm:$0xff]  }
  0xce   :  { %1425 = vst.msk [vmem:[%s3172_s10 + $0x128] sm:$0xff] %vm1387_vm2, %v1360_v40  ;;  %v1161_v49 = vadd.f32 %v1822_v23, %v969_v42  ;;  %v1146_v51 = vadd.f32 %v1791_v31, %v954_v44  ;;  %v719_v60 = vpop.f32.mrf.mxu0  ;;  %v2772_v23 = vld [vmem:[%s3171_s2 + $0xa0] sm:$0xff]  }
  0xcf   :  { %v1376_v53 = vmax.f32 %v1312_v45, 0.0  ;;  %1410 = vst.msk [vmem:[%s3172_s10 + $0xb0] sm:$0xff] %vm1387_vm2, %v1345_v41  ;;  %v985_v54 = vadd.f32 %v2409_v50, %v917_v46  ;;  %v1266_v0 = vadd.f32 %v2426_v62, %v1198_v55  ;;  %v871_v2 = vmul.f32 %v2401_v10, %v719_v60 }
  0xd0   :  { %v1229_v56 = vmul.f32 %v2420_v59, %v1161_v49  ;;  %v1214_v57 = vmul.f32 %v2420_v59, %v1146_v51  ;;  %v1826_v31 = vunpack.c.l.bf16 %v2772_v23  ;;  %v1858_v55 = vunpack.c.l.bf16 %v2801_v43 }
  0xd1   :  { %1441 = vst.msk [vmem:[%s3172_s10 + $0x1a8] sm:$0xff] %vm1387_vm2, %v1376_v53  ;;  %v1177_v63 = vadd.f32 %v1854_v47, %v985_v54  ;;  %v796_v1 = vpop.f32.mrf.mxu2  ;;  %v759_v3 = vpop.f32.mrf.mxu1  ;;  %v1330_v12 = vmax.f32 %v1266_v0, 0.0  ;;  %v939_v13 = vadd.f32 %v2409_v50, %v871_v2 }
  0xd2   :  { %v1297_v5 = vadd.f32 %v2426_v62, %v1229_v56  ;;  %v1282_v6 = vadd.f32 %v2426_v62, %v1214_v57  ;;  %v902_v8 = vmul.f32 %v2401_v10, %v796_v1  ;;  %v887_v9 = vmul.f32 %v2401_v10, %v759_v3  ;;  %v2818_v57 = vld [vmem:[%s3171_s2 + $0x28] sm:$0xff]  }
  0xd3   :  { %v1245_v11 = vmul.f32 %v2420_v59, %v1177_v63  ;;  %1395 = vst.msk [vmem:[%s3172_s10 + $0x38] sm:$0xff] %vm1387_vm2, %v1330_v12  ;;  %v1131_v22 = vadd.f32 %v1762_v61, %v939_v13  ;;  %v2827_v61 = vld [vmem:[%s3171_s2 + $0x68] sm:$0xff]  }
  0xd4   :  { %v1361_v14 = vmax.f32 %v1297_v5, 0.0  ;;  %v1346_v15 = vmax.f32 %v1282_v6, 0.0  ;;  %v970_v16 = vadd.f32 %v2409_v50, %v902_v8  ;;  %v836_v17 = vpop.f32.mrf.mxu3  ;;  %v955_v18 = vadd.f32 %v2409_v50, %v887_v9 }
  0xd5   :  { %v1313_v19 = vadd.f32 %v2426_v62, %v1245_v11  ;;  %v918_v20 = vmul.f32 %v2401_v10, %v836_v17  ;;  %v1199_v28 = vmul.f32 %v2420_v59, %v1131_v22  ;;  %v1766_v6 = vunpack.c.l.bf16 %v2818_v57 }
  0xd6   :  { %1426 = vst.msk [vmem:[%s3172_s10 + $0x130] sm:$0xff] %vm1387_vm2, %v1361_v14  ;;  %v1162_v24 = vadd.f32 %v1823_v58, %v970_v16  ;;  %v1147_v25 = vadd.f32 %v1794_v4, %v955_v18  ;;  %v721_v32 = vpop.f32.mrf.mxu0  ;;  %v1827_v4 = vunpack.c.h.bf16 %v2772_v23  ;;  %v1798_v14 = vunpack.c.l.bf16 %v2827_v61 }
  0xd7   :  { %v1377_v26 = vmax.f32 %v1313_v19, 0.0  ;;  %1411 = vst.msk [vmem:[%s3172_s10 + $0xb8] sm:$0xff] %vm1387_vm2, %v1346_v15  ;;  %v986_v27 = vadd.f32 %v2409_v50, %v918_v20  ;;  %v1267_v35 = vadd.f32 %v2426_v62, %v1199_v28  ;;  %v872_v37 = vmul.f32 %v2401_v10, %v721_v32 }
  0xd8   :  { %v1230_v29 = vmul.f32 %v2420_v59, %v1162_v24  ;;  %v1215_v30 = vmul.f32 %v2420_v59, %v1147_v25 }
  0xd9   :  { %1442 = vst.msk [vmem:[%s3172_s10 + $0x1b0] sm:$0xff] %vm1387_vm2, %v1377_v26  ;;  %v1178_v34 = vadd.f32 %v1855_v21, %v986_v27  ;;  %v799_v36 = vpop.f32.mrf.mxu2  ;;  %v761_v38 = vpop.f32.mrf.mxu1  ;;  %v1331_v46 = vmax.f32 %v1267_v35, 0.0  ;;  %v940_v47 = vadd.f32 %v2409_v50, %v872_v37 }
  0xda   :  { %v1298_v40 = vadd.f32 %v2426_v62, %v1230_v29  ;;  %v1283_v41 = vadd.f32 %v2426_v62, %v1215_v30  ;;  %v903_v42 = vmul.f32 %v2401_v10, %v799_v36  ;;  %v888_v44 = vmul.f32 %v2401_v10, %v761_v38 }
  0xdb   :  { %v1246_v45 = vmul.f32 %v2420_v59, %v1178_v34  ;;  %1396 = vst.msk [vmem:[%s3172_s10 + $0x40] sm:$0xff] %vm1387_vm2, %v1331_v46  ;;  %v1132_v56 = vadd.f32 %v1763_v33, %v940_v47  ;;  %v1859_v29 = vunpack.c.h.bf16 %v2801_v43  ;;  %v1799_v47 = vunpack.c.h.bf16 %v2827_v61 }
  0xdc   :  { %v1362_v48 = vmax.f32 %v1298_v40, 0.0  ;;  %v1347_v7 = vmax.f32 %v1283_v41, 0.0  ;;  %v971_v49 = vadd.f32 %v2409_v50, %v903_v42  ;;  %v839_v51 = vpop.f32.mrf.mxu3  ;;  %v956_v52 = vadd.f32 %v2409_v50, %v888_v44 }
  0xdd   :  { %v1314_v53 = vadd.f32 %v2426_v62, %v1246_v45  ;;  %v919_v54 = vmul.f32 %v2401_v10, %v839_v51  ;;  %v1200_v1 = vmul.f32 %v2420_v59, %v1132_v56  ;;  %v1767_v41 = vunpack.c.h.bf16 %v2818_v57  ;;  %v2893_v51 = vld [vmem:[%s3171_s2 + $0xe8] sm:$0xff]  }
  0xde   :  { %1427 = vst.msk [vmem:[%s3172_s10 + $0x138] sm:$0xff] %vm1387_vm2, %v1362_v48  ;;  %v1163_v58 = vadd.f32 %v1826_v31, %v971_v49  ;;  %v1148_v60 = vadd.f32 %v1795_v39, %v956_v52  ;;  %v724_v5 = vpop.f32.mrf.mxu0  ;;  %v2864_v31 = vld [vmem:[%s3171_s2 + $0xa8] sm:$0xff]  }
  0xdf   :  { %v1378_v63 = vmax.f32 %v1314_v53, 0.0  ;;  %1412 = vst.msk [vmem:[%s3172_s10 + $0xc0] sm:$0xff] %vm1387_vm2, %v1347_v7  ;;  %v987_v0 = vadd.f32 %v2409_v50, %v919_v54  ;;  %v1268_v9 = vadd.f32 %v2426_v62, %v1200_v1  ;;  %v873_v12 = vmul.f32 %v2401_v10, %v724_v5 }
  0xe0   :  { %v1231_v2 = vmul.f32 %v2420_v59, %v1163_v58  ;;  %v1216_v3 = vmul.f32 %v2420_v59, %v1148_v60  ;;  %v1830_v39 = vunpack.c.l.bf16 %v2864_v31  ;;  %v1862_v1 = vunpack.c.l.bf16 %v2893_v51 }
  0xe1   :  { %1443 = vst.msk [vmem:[%s3172_s10 + $0x1b8] sm:$0xff] %vm1387_vm2, %v1378_v63  ;;  %v1179_v8 = vadd.f32 %v1858_v55, %v987_v0  ;;  %v801_v11 = vpop.f32.mrf.mxu2  ;;  %v764_v13 = vpop.f32.mrf.mxu1  ;;  %v1332_v20 = vmax.f32 %v1268_v9, 0.0  ;;  %v941_v21 = vadd.f32 %v2409_v50, %v873_v12 }
  0xe2   :  { %v1299_v15 = vadd.f32 %v2426_v62, %v1231_v2  ;;  %v1284_v16 = vadd.f32 %v2426_v62, %v1216_v3  ;;  %v904_v17 = vmul.f32 %v2401_v10, %v801_v11  ;;  %v889_v18 = vmul.f32 %v2401_v10, %v764_v13  ;;  %v2910_v3 = vld [vmem:[%s3171_s2 + $0x30] sm:$0xff]  }
  0xe3   :  { %v1247_v19 = vmul.f32 %v2420_v59, %v1179_v8  ;;  %1397 = vst.msk [vmem:[%s3172_s10 + $0x48] sm:$0xff] %vm1387_vm2, %v1332_v20  ;;  %v1133_v30 = vadd.f32 %v1766_v6, %v941_v21  ;;  %v2919_v6 = vld [vmem:[%s3171_s2 + $0x70] sm:$0xff]  }
  0xe4   :  { %v1363_v22 = vmax.f32 %v1299_v15, 0.0  ;;  %v1348_v23 = vmax.f32 %v1284_v16, 0.0  ;;  %v972_v24 = vadd.f32 %v2409_v50, %v904_v17  ;;  %v841_v25 = vpop.f32.mrf.mxu3  ;;  %v957_v26 = vadd.f32 %v2409_v50, %v889_v18 }
  0xe5   :  { %v1315_v27 = vadd.f32 %v2426_v62, %v1247_v19  ;;  %v920_v28 = vmul.f32 %v2401_v10, %v841_v25  ;;  %v1201_v36 = vmul.f32 %v2420_v59, %v1133_v30  ;;  %v1770_v16 = vunpack.c.l.bf16 %v2910_v3 }
  0xe6   :  { %1428 = vst.msk [vmem:[%s3172_s10 + $0x140] sm:$0xff] %vm1387_vm2, %v1363_v22  ;;  %v1164_v32 = vadd.f32 %v1827_v4, %v972_v24  ;;  %v1149_v33 = vadd.f32 %v1798_v14, %v957_v26  ;;  %v726_v40 = vpop.f32.mrf.mxu0  ;;  %v1831_v14 = vunpack.c.h.bf16 %v2864_v31  ;;  %v1802_v22 = vunpack.c.l.bf16 %v2919_v6 }
  0xe7   :  { %v1379_v34 = vmax.f32 %v1315_v27, 0.0  ;;  %1413 = vst.msk [vmem:[%s3172_s10 + $0xc8] sm:$0xff] %vm1387_vm2, %v1348_v23  ;;  %v988_v35 = vadd.f32 %v2409_v50, %v920_v28  ;;  %v1269_v43 = vadd.f32 %v2426_v62, %v1201_v36  ;;  %v874_v45 = vmul.f32 %v2401_v10, %v726_v40 }
  0xe8   :  { %v1232_v37 = vmul.f32 %v2420_v59, %v1164_v32  ;;  %v1217_v38 = vmul.f32 %v2420_v59, %v1149_v33 }
  0xe9   :  { %1444 = vst.msk [vmem:[%s3172_s10 + $0x1c0] sm:$0xff] %vm1387_vm2, %v1379_v34  ;;  %v1180_v42 = vadd.f32 %v1859_v29, %v988_v35  ;;  %v804_v44 = vpop.f32.mrf.mxu2  ;;  %v766_v46 = vpop.f32.mrf.mxu1  ;;  %v1333_v54 = vmax.f32 %v1269_v43, 0.0  ;;  %v942_v55 = vadd.f32 %v2409_v50, %v874_v45 }
  0xea   :  { %v1300_v48 = vadd.f32 %v2426_v62, %v1232_v37  ;;  %v1285_v7 = vadd.f32 %v2426_v62, %v1217_v38  ;;  %v905_v49 = vmul.f32 %v2401_v10, %v804_v44  ;;  %v890_v52 = vmul.f32 %v2401_v10, %v766_v46 }
  0xeb   :  { %v1248_v53 = vmul.f32 %v2420_v59, %v1180_v42  ;;  %1398 = vst.msk [vmem:[%s3172_s10 + $0x50] sm:$0xff] %vm1387_vm2, %v1333_v54  ;;  %v1134_v2 = vadd.f32 %v1767_v41, %v942_v55  ;;  %v1863_v37 = vunpack.c.h.bf16 %v2893_v51  ;;  %v1803_v55 = vunpack.c.h.bf16 %v2919_v6 }
  0xec   :  { %v1364_v56 = vmax.f32 %v1300_v48, 0.0  ;;  %v1349_v57 = vmax.f32 %v1285_v7, 0.0  ;;  %v973_v58 = vadd.f32 %v2409_v50, %v905_v49  ;;  %v844_v60 = vpop.f32.mrf.mxu3  ;;  %v958_v61 = vadd.f32 %v2409_v50, %v890_v52 }
  0xed   :  { %v1316_v63 = vadd.f32 %v2426_v62, %v1248_v53  ;;  %v921_v0 = vmul.f32 %v2401_v10, %v844_v60  ;;  %v1202_v11 = vmul.f32 %v2420_v59, %v1134_v2  ;;  %v1771_v7 = vunpack.c.h.bf16 %v2910_v3  ;;  %v2985_v60 = vld [vmem:[%s3171_s2 + $0xf0] sm:$0xff]  }
  0xee   :  { %1429 = vst.msk [vmem:[%s3172_s10 + $0x148] sm:$0xff] %vm1387_vm2, %v1364_v56  ;;  %v1165_v4 = vadd.f32 %v1830_v39, %v973_v58  ;;  %v1150_v5 = vadd.f32 %v1799_v47, %v958_v61  ;;  %v729_v15 = vpop.f32.mrf.mxu0  ;;  %v2956_v39 = vld [vmem:[%s3171_s2 + $0xb0] sm:$0xff]  }
  0xef   :  { %v1380_v8 = vmax.f32 %v1316_v63, 0.0  ;;  %1414 = vst.msk [vmem:[%s3172_s10 + $0xd0] sm:$0xff] %vm1387_vm2, %v1349_v57  ;;  %v989_v9 = vadd.f32 %v2409_v50, %v921_v0  ;;  %v1270_v18 = vadd.f32 %v2426_v62, %v1202_v11  ;;  %v875_v20 = vmul.f32 %v2401_v10, %v729_v15 }
  0xf0   :  { %v1233_v12 = vmul.f32 %v2420_v59, %v1165_v4  ;;  %v1218_v13 = vmul.f32 %v2420_v59, %v1150_v5  ;;  %v1834_v47 = vunpack.c.l.bf16 %v2956_v39  ;;  %v1866_v11 = vunpack.c.l.bf16 %v2985_v60 }
  0xf1   :  { %1445 = vst.msk [vmem:[%s3172_s10 + $0x1c8] sm:$0xff] %vm1387_vm2, %v1380_v8  ;;  %v1181_v17 = vadd.f32 %v1862_v1, %v989_v9  ;;  %v806_v19 = vpop.f32.mrf.mxu2  ;;  %v769_v21 = vpop.f32.mrf.mxu1  ;;  %v1334_v28 = vmax.f32 %v1270_v18, 0.0  ;;  %v943_v29 = vadd.f32 %v2409_v50, %v875_v20 }
  0xf2   :  { %v1301_v23 = vadd.f32 %v2426_v62, %v1233_v12  ;;  %v1286_v24 = vadd.f32 %v2426_v62, %v1218_v13  ;;  %v906_v25 = vmul.f32 %v2401_v10, %v806_v19  ;;  %v891_v26 = vmul.f32 %v2401_v10, %v769_v21  ;;  %v3002_v13 = vld [vmem:[%s3171_s2 + $0x38] sm:$0xff]  }
  0xf3   :  { %v1249_v27 = vmul.f32 %v2420_v59, %v1181_v17  ;;  %1399 = vst.msk [vmem:[%s3172_s10 + $0x58] sm:$0xff] %vm1387_vm2, %v1334_v28  ;;  %v1135_v38 = vadd.f32 %v1770_v16, %v943_v29  ;;  %v3011_v16 = vld [vmem:[%s3171_s2 + $0x78] sm:$0xff]   ;;  %v1835_v21 = vunpack.c.h.bf16 %v2956_v39 }
  0xf4   :  { %v1365_v30 = vmax.f32 %v1301_v23, 0.0  ;;  %v1350_v31 = vmax.f32 %v1286_v24, 0.0  ;;  %v974_v32 = vadd.f32 %v2409_v50, %v906_v25  ;;  %v846_v33 = vpop.f32.mrf.mxu3  ;;  %v959_v34 = vadd.f32 %v2409_v50, %v891_v26  ;;  %v3031_v26 = vld [vmem:[%s3167_s6] ss:$0 sm:$0xff] }
  0xf5   :  { %v1317_v35 = vadd.f32 %v2426_v62, %v1249_v27  ;;  %v922_v36 = vmul.f32 %v2401_v10, %v846_v33  ;;  %v1203_v44 = vmul.f32 %v2420_v59, %v1135_v38  ;;  %v1774_v23 = vunpack.c.l.bf16 %v3002_v13 }
  0xf6   :  { %1430 = vst.msk [vmem:[%s3172_s10 + $0x150] sm:$0xff] %vm1387_vm2, %v1365_v30  ;;  %v1166_v40 = vadd.f32 %v1831_v14, %v974_v32  ;;  %v1151_v41 = vadd.f32 %v1802_v22, %v959_v34  ;;  %v731_v48 = vpop.f32.mrf.mxu0  ;;  %v1806_v29 = vunpack.c.l.bf16 %v3011_v16 }
  0xf7   :  { %v1381_v42 = vmax.f32 %v1317_v35, 0.0  ;;  %1415 = vst.msk [vmem:[%s3172_s10 + $0xd8] sm:$0xff] %vm1387_vm2, %v1350_v31  ;;  %v990_v43 = vadd.f32 %v2409_v50, %v922_v36  ;;  %v1271_v51 = vadd.f32 %v2426_v62, %v1203_v44  ;;  %v876_v53 = vmul.f32 %v2401_v10, %v731_v48  ;;  %v3043_v36 = vld [vmem:[%s3168_s7] ss:$0 sm:$0xff] }
  0xf8   :  { %v1234_v45 = vmul.f32 %v2420_v59, %v1166_v40  ;;  %v1219_v46 = vmul.f32 %v2420_v59, %v1151_v41  ;;  %v1867_v44 = vunpack.c.h.bf16 %v2985_v60 }
  0xf9   :  { %1446 = vst.msk [vmem:[%s3172_s10 + $0x1d0] sm:$0xff] %vm1387_vm2, %v1381_v42  ;;  %v1182_v49 = vadd.f32 %v1863_v37, %v990_v43  ;;  %v809_v52 = vpop.f32.mrf.mxu2  ;;  %v771_v54 = vpop.f32.mrf.mxu1  ;;  %v1335_v0 = vmax.f32 %v1271_v51, 0.0  ;;  %v944_v1 = vadd.f32 %v2409_v50, %v876_v53  ;;  %v3051_v42 = vld [vmem:[%s3170_s9] ss:$0 sm:$0xff] }
  0xfa   :  { %v1302_v56 = vadd.f32 %v2426_v62, %v1234_v45  ;;  %v1287_v57 = vadd.f32 %v2426_v62, %v1219_v46  ;;  %v907_v58 = vmul.f32 %v2401_v10, %v809_v52  ;;  %v892_v61 = vmul.f32 %v2401_v10, %v771_v54  ;;  %v3063_v46 = vld [vmem:[%s3171_s2 + $0xb8] sm:$0xff]   ;;  %v3077_v51 = vld [vmem:[%s3169_s8] ss:$0 sm:$0xff] }
  0xfb   :  { %v1250_v63 = vmul.f32 %v2420_v59, %v1182_v49  ;;  %1400 = vst.msk [vmem:[%s3172_s10 + $0x60] sm:$0xff] %vm1387_vm2, %v1335_v0  ;;  %v1136_v12 = vadd.f32 %v1771_v7, %v944_v1  ;;  %v1807_v1 = vunpack.c.h.bf16 %v3011_v16 }
  0xfc   :  { %v1366_v2 = vmax.f32 %v1302_v56, 0.0  ;;  %v1351_v3 = vmax.f32 %v1287_v57, 0.0  ;;  %v975_v4 = vadd.f32 %v2409_v50, %v907_v58  ;;  %v849_v5 = vpop.f32.mrf.mxu3  ;;  %v960_v6 = vadd.f32 %v2409_v50, %v892_v61 }
  0xfd   :  { %v1318_v8 = vadd.f32 %v2426_v62, %v1250_v63  ;;  %v923_v9 = vmul.f32 %v2401_v10, %v849_v5  ;;  %v1204_v18 = vmul.f32 %v2420_v59, %v1136_v12  ;;  %v1775_v57 = vunpack.c.h.bf16 %v3002_v13  ;;  %v1964_v5 = vld [vmem:[%s3171_s2 + $0xf8] sm:$0xff]  }
  0xfe   :  { %1431 = vst.msk [vmem:[%s3172_s10 + $0x158] sm:$0xff] %vm1387_vm2, %v1366_v2  ;;  %v1167_v14 = vadd.f32 %v1834_v47, %v975_v4  ;;  %v1152_v15 = vadd.f32 %v1803_v55, %v960_v6  ;;  %v734_v22 = vpop.f32.mrf.mxu0  ;;  %v1838_v55 = vunpack.c.l.bf16 %v3063_v46 }
  0xff   :  { %v1382_v10 = vmax.f32 %v1318_v8, 0.0  ;;  %1416 = vst.msk [vmem:[%s3172_s10 + $0xe0] sm:$0xff] %vm1387_vm2, %v1351_v3  ;;  %v991_v17 = vadd.f32 %v2409_v50, %v923_v9  ;;  %v1272_v25 = vadd.f32 %v2426_v62, %v1204_v18  ;;  %v877_v27 = vmul.f32 %v3031_v26, %v734_v22 }
 0x100   :  { %v1235_v19 = vmul.f32 %v2420_v59, %v1167_v14  ;;  %v1220_v20 = vmul.f32 %v2420_v59, %v1152_v15  ;;  %v1870_v18 = vunpack.c.l.bf16 %v1964_v5 }
 0x101   :  { %1447 = vst.msk [vmem:[%s3172_s10 + $0x1d8] sm:$0xff] %vm1387_vm2, %v1382_v10  ;;  %v1183_v24 = vadd.f32 %v1866_v11, %v991_v17  ;;  %v811_v50 = vpop.f32.mrf.mxu2  ;;  %v774_v28 = vpop.f32.mrf.mxu1  ;;  %v1336_v35 = vmax.f32 %v1272_v25, 0.0  ;;  %v945_v37 = vadd.f32 %v3043_v36, %v877_v27 }
 0x102   :  { %v1303_v30 = vadd.f32 %v2426_v62, %v1235_v19  ;;  %v1288_v31 = vadd.f32 %v2426_v62, %v1220_v20  ;;  %v908_v32 = vmul.f32 %v3031_v26, %v811_v50  ;;  %v893_v33 = vmul.f32 %v3031_v26, %v774_v28 }
 0x103   :  { %v1251_v34 = vmul.f32 %v2420_v59, %v1183_v24  ;;  %1401 = vst.msk [vmem:[%s3172_s10 + $0x68] sm:$0xff] %vm1387_vm2, %v1336_v35  ;;  %v1137_v45 = vadd.f32 %v1774_v23, %v945_v37 }
 0x104   :  { %v1367_v38 = vmax.f32 %v1303_v30, 0.0  ;;  %v1352_v39 = vmax.f32 %v1288_v31, 0.0  ;;  %v976_v40 = vadd.f32 %v3043_v36, %v908_v32  ;;  %v851_v41 = vpop.f32.mrf.mxu3  ;;  %v961_v62 = vadd.f32 %v3043_v36, %v893_v33 }
 0x105   :  { %v1319_v59 = vadd.f32 %v3051_v42, %v1251_v34  ;;  %v924_v43 = vmul.f32 %v3031_v26, %v851_v41  ;;  %v1205_v52 = vmul.f32 %v3077_v51, %v1137_v45  ;;  %v1839_v33 = vunpack.c.h.bf16 %v3063_v46 }
 0x106   :  { %1432 = vst.msk [vmem:[%s3172_s10 + $0x160] sm:$0xff] %vm1387_vm2, %v1367_v38  ;;  %v1168_v47 = vadd.f32 %v1835_v21, %v976_v40  ;;  %v1153_v48 = vadd.f32 %v1806_v29, %v961_v62  ;;  %v736_v56 = vpop.f32.mrf.mxu0 }
 0x107   :  { %v1383_v7 = vmax.f32 %v1319_v59, 0.0  ;;  %1417 = vst.msk [vmem:[%s3172_s10 + $0xe8] sm:$0xff] %vm1387_vm2, %v1352_v39  ;;  %v992_v49 = vadd.f32 %v3043_v36, %v924_v43  ;;  %v1273_v60 = vadd.f32 %v3051_v42, %v1205_v52  ;;  %v878_v63 = vmul.f32 %v3031_v26, %v736_v56 }
 0x108   :  { %v1236_v53 = vmul.f32 %v3077_v51, %v1168_v47  ;;  %v1221_v54 = vmul.f32 %v3077_v51, %v1153_v48  ;;  %v1871_v59 = vunpack.c.h.bf16 %v1964_v5 }
 0x109   :  { %1448 = vst.msk [vmem:[%s3172_s10 + $0x1e0] sm:$0xff] %vm1387_vm2, %v1383_v7  ;;  %v1184_v58 = vadd.f32 %v1867_v44, %v992_v49  ;;  %v814_v61 = vpop.f32.mrf.mxu2  ;;  %v776_v0 = vpop.f32.mrf.mxu1  ;;  %v1337_v9 = vmax.f32 %v1273_v60, 0.0  ;;  %v946_v11 = vadd.f32 %v3043_v36, %v878_v63 }
 0x10a   :  { %v1304_v2 = vadd.f32 %v3051_v42, %v1236_v53  ;;  %v1289_v3 = vadd.f32 %v3051_v42, %v1221_v54  ;;  %v909_v4 = vmul.f32 %v3031_v26, %v814_v61  ;;  %v894_v6 = vmul.f32 %v3031_v26, %v776_v0 }
 0x10b   :  { %v1252_v8 = vmul.f32 %v3077_v51, %v1184_v58  ;;  %1402 = vst.msk [vmem:[%s3172_s10 + $0x70] sm:$0xff] %vm1387_vm2, %v1337_v9  ;;  %v1138_v19 = vadd.f32 %v1775_v57, %v946_v11 }
 0x10c   :  { %v1368_v12 = vmax.f32 %v1304_v2, 0.0  ;;  %v1353_v13 = vmax.f32 %v1289_v3, 0.0  ;;  %v977_v14 = vadd.f32 %v3043_v36, %v909_v4  ;;  %v854_v15 = vpop.f32.mrf.mxu3  ;;  %v962_v16 = vadd.f32 %v3043_v36, %v894_v6 }
 0x10d   :  { %v1320_v10 = vadd.f32 %v3051_v42, %v1252_v8  ;;  %v925_v17 = vmul.f32 %v3031_v26, %v854_v15  ;;  %v1206_v24 = vmul.f32 %v3077_v51, %v1138_v19 }
 0x10e   :  { %1433 = vst.msk [vmem:[%s3172_s10 + $0x168] sm:$0xff] %vm1387_vm2, %v1368_v12  ;;  %v1169_v20 = vadd.f32 %v1838_v55, %v977_v14  ;;  %v1154_v21 = vadd.f32 %v1807_v1, %v962_v16 }
 0x10f   :  { %v1384_v22 = vmax.f32 %v1320_v10, 0.0  ;;  %1418 = vst.msk [vmem:[%s3172_s10 + $0xf0] sm:$0xff] %vm1387_vm2, %v1353_v13  ;;  %v993_v23 = vadd.f32 %v3043_v36, %v925_v17  ;;  %v1274_v28 = vadd.f32 %v3051_v42, %v1206_v24 }
 0x110   :  { %v1237_v25 = vmul.f32 %v3077_v51, %v1169_v20  ;;  %v1222_v50 = vmul.f32 %v3077_v51, %v1154_v21 }
 0x111   :  { %1449 = vst.msk [vmem:[%s3172_s10 + $0x1e8] sm:$0xff] %vm1387_vm2, %v1384_v22  ;;  %v1185_v27 = vadd.f32 %v1870_v18, %v993_v23  ;;  %v816_v29 = vpop.f32.mrf.mxu2  ;;  %v1338_v35 = vmax.f32 %v1274_v28, 0.0 }
 0x112   :  { %v1305_v30 = vadd.f32 %v3051_v42, %v1237_v25  ;;  %v1290_v31 = vadd.f32 %v3051_v42, %v1222_v50  ;;  %v910_v32 = vmul.f32 %v3031_v26, %v816_v29 }
 0x113   :  { %v1253_v34 = vmul.f32 %v3077_v51, %v1185_v27  ;;  %1403 = vst.msk [vmem:[%s3172_s10 + $0x78] sm:$0xff] %vm1387_vm2, %v1338_v35 }
 0x114   :  { %v1369_v37 = vmax.f32 %v1305_v30, 0.0  ;;  %v1354_v38 = vmax.f32 %v1290_v31, 0.0  ;;  %v978_v39 = vadd.f32 %v3043_v36, %v910_v32  ;;  %v856_v40 = vpop.f32.mrf.mxu3 }
 0x115   :  { %v1321_v41 = vadd.f32 %v3051_v42, %v1253_v34  ;;  %v926_v62 = vmul.f32 %v3031_v26, %v856_v40 }
 0x116   :  { %1434 = vst.msk [vmem:[%s3172_s10 + $0x170] sm:$0xff] %vm1387_vm2, %v1369_v37  ;;  %v1170_v43 = vadd.f32 %v1839_v33, %v978_v39 }
 0x117   :  { %v1385_v44 = vmax.f32 %v1321_v41, 0.0  ;;  %1419 = vst.msk [vmem:[%s3172_s10 + $0xf8] sm:$0xff] %vm1387_vm2, %v1354_v38  ;;  %v994_v45 = vadd.f32 %v3043_v36, %v926_v62 }
 0x118   :  { %v1238_v46 = vmul.f32 %v3077_v51, %v1170_v43 }
 0x119   :  { %1450 = vst.msk [vmem:[%s3172_s10 + $0x1f0] sm:$0xff] %vm1387_vm2, %v1385_v44  ;;  %v1186_v26 = vadd.f32 %v1871_v59, %v994_v45 }
 0x11a   :  { %v1306_v47 = vadd.f32 %v3051_v42, %v1238_v46 }
 0x11b   :  { %v1254_v48 = vmul.f32 %v3077_v51, %v1186_v26 }
 0x11c   :  { %v1370_v7 = vmax.f32 %v1306_v47, 0.0 }
 0x11d   :  { %v1322_v49 = vadd.f32 %v3051_v42, %v1254_v48 }
 0x11e   :  { %1435 = vst.msk [vmem:[%s3172_s10 + $0x178] sm:$0xff] %vm1387_vm2, %v1370_v7 }
 0x11f   :  { %v1386_v36 = vmax.f32 %v1322_v49, 0.0 }
 0x121   :  { %1451 = vst.msk [vmem:[%s3172_s10 + $0x1f8] sm:$0xff] %vm1387_vm2, %v1386_v36 }

// kernel: prm_forward.17
= control target key start
LH: loop header
LB: loop body
LE: loop exit
PB: predicated region body
PF: predicated region fallthrough
CT: control target
= control target key end

     0   :  { %s3700_s15 = smov 0   ;;  %s4856_s0 = inlined_call_operand.vmem [shape: bf16[2,342,8], index: 0, kind: input, shape index: {}]   ;;  %s4857_s1 = inlined_call_operand.vmem [shape: bf16[9,8,8], index: 1, kind: input, shape index: {}]   ;;  %s4858_s2 = inlined_call_operand.vmem [shape: f32[1,8], index: 2, kind: input, shape index: {}]   ;;  %s4859_s3 = inlined_call_operand.vmem [shape: f32[1,8], index: 3, kind: input, shape index: {}]   ;;  %s4860_s4 = inlined_call_operand.vmem [shape: bf16[2,288,8], index: 4, kind: output, shape index: {}]  }
   0x1 LB: > { %s3189_s16 = sadd.s32 4294967295, %s3673_s15   ;;  %p3193_p0 = scmp.ge.s32.totalorder %s3673_s15, 1  ;;  %s3673_s15 = sphi %s3700_s15, %s14_s15  }
   0x2   : > { %p162_p1 = scmp.lt.s32.totalorder %s3673_s15, 3 }
   0x4   : > { %p163_p2 = pnand %p3193_p0, %p162_p1 }
   0x6   : > { %166 = sbr.rel (%p163_p2) target bundleno = 821 (0x335), region = 36 }
   0xb   : > { %v3196_v0 = vld [vmem:[%s4857_s1 + $0x4] sm:$0xf]  ;;  %vm536_vm0 = vcmask 1043456   ;;  %p188_p3 = scmp.lt.s32.totalorder %s3189_s16, 1  ;;  %v3301_v2 = vld [vmem:[%s4857_s1 + $0x8] sm:$0xf] }
   0xc   : > { %v538_v1 = vsel %vm536_vm0, %v3196_v0, 0  ;;  %v235_v3 = vld [vmem:[%s4857_s1] sm:$0xf]  ;;  %v876_v4 = vsel %vm536_vm0, %v3301_v2, 0  ;;  %v3407_v6 = vld [vmem:[%s4857_s1 + $0x10] sm:$0xf] }
   0xd   : > { %3630 = vmatpush.bf16.msra.mxu1 %v538_v1  ;;  %3631 = vmatpush.bf16.msra.mxu2 %v538_v1  ;;  %s4890_s16 = smov (!%p188_p3, %s3189_s16), 1  ;;  %v676_v5 = vsel %vm536_vm0, %v235_v3, 0  ;;  %v1606_v7 = vsel %vm536_vm0, %v3407_v6, 0  ;;  %vm332_vm1 = vsmask.f32 7424  ;;  %vm481_vm2 = vcmask 64512  }
   0xe   : > { %547 = vmatpush.bf16.msra.mxu0 %v538_v1  ;;  %s3633_s25 = smul.u32 172, %s4890_s16  ;;  %3632 = vmatpush.bf16.msra.mxu3 %v538_v1  ;;  %v3320_v45 = vld [vmem:[%s4857_s1 + $0xc] sm:$0xf]  ;;  %vm783_vm3 = vcmask 1046528   ;;  %vm1380_vm4 = vsmask.f32 6400 }
   0xf   : > { %v1237_v53 = vsel %vm536_vm0, %v3320_v45, 0  ;;  %vm2346_vm5 = vsmask.f32 5376  ;;  %vm1749_vm6 = vcmask 1045504   ;;  %vm2715_vm7 = vcmask 1044480   ;;  %s3634_s19 = smul.u32 144, %s4890_s16 }
  0x10   : > { %s3730_s28 = scalar_lea.vmem %s4856_s0, %s3633_s25  ;;  %vm3097_vm8 = vcmask 60416  }
  0x11   : > { %885 = vmatpush.bf16.msrb.mxu2 %v876_v4  ;;  %685 = vmatpush.bf16.msrb.mxu1 %v676_v5  ;;  %v3733_v8 = vld [vmem:[%s3730_s28 + $0x28] sm:$0xff]  ;;  %v3736_v9 = vld [vmem:[%s3730_s28 + $0x30] sm:$0xff]  ;;  %v3742_v11 = vld [vmem:[%s3730_s28 + $0x58] sm:$0xff]  ;;  %s4504_s21 = scalar_lea.vmem %s4860_s4, %s3634_s19 }
  0x12   : > { %1615 = vmatpush.bf16.msrb.mxu0 %v1606_v7  ;;  %v3739_v10 = vld [vmem:[%s3730_s28 + $0x50] sm:$0xff]  ;;  %v3745_v12 = vld [vmem:[%s3730_s28] sm:$0xff]   ;;  %v3748_v13 = vld [vmem:[%s3730_s28 + $0x8] sm:$0xff]  ;;  %v373_v14 = vshll.u32 %v3733_v8, 16  ;;  %v377_v15 = vshrl.u32 %v3733_v8, 16  ;;  %v381_v16 = vshll.u32 %v3736_v9, 16  ;;  %1246 = vmatpush.bf16.msrb.mxu3 %v1237_v53 }
  0x13   : > { %v413_v17 = vshll.u32 %v3739_v10, 16  ;;  %v417_v18 = vshrl.u32 %v3739_v10, 16  ;;  %v421_v19 = vshll.u32 %v3742_v11, 16  ;;  %v334_v20 = vshrl.u32 %v3745_v12, 16  ;;  %v3766_v31 = vld [vmem:[%s3730_s28 + $0x78] sm:$0xff]  ;;  %v3587_v32 = vld [vmem:[%s3730_s28 + $0x80] sm:$0xff] }
  0x14   : > { %v336_v21 = vshll.u32 %v3745_v12, 16  ;;  %v3758_v22 = vrot.slane %v373_v14, 1  ;;  %v383_v23 = vrot.slane %v381_v16, 1  ;;  %v341_v25 = vshll.u32 %v3748_v13, 16  ;;  %v3775_v37 = vld [vmem:[%s3730_s28 + $0x38] sm:$0xff]  ;;  %v3779_v38 = vld [vmem:[%s3730_s28 + $0x60] sm:$0xff] }
  0x15   : > { %v3760_v24 = vrot.slane %v413_v17, 1  ;;  %v423_v26 = vrot.slane %v421_v19, 1  ;;  %v453_v39 = vshll.u32 %v3766_v31, 16  ;;  %v457_v40 = vshrl.u32 %v3766_v31, 16  ;;  %v3784_v42 = vld [vmem:[%s3730_s28 + $0x10] sm:$0xff]  ;;  %v3588_v59 = vld [vmem:[%s3730_s28 + $0x88] sm:$0xff] }
  0x16   : > { %v338_v27 = vrot.slane %v336_v21, 1  ;;  %v379_v28 = vor.u32 %v377_v15, %v3758_v22  ;;  %v343_v30 = vrot.slane %v341_v25, 1  ;;  %v461_v41 = vshll.u32 %v3587_v32, 16  ;;  %v3803_v60 = vld [vmem:[%s3730_s28 + $0x48] sm:$0xff]  ;;  %v3812_v5 = vld [vmem:[%s3730_s28 + $0x40] sm:$0xff]  ;;  %v3820_v17 = vld [vmem:[%s3730_s28 + $0x18] sm:$0xff] }
  0x17   : > { %v419_v29 = vor.u32 %v417_v18, %v3760_v24  ;;  %v3786_v43 = vrot.slane %v453_v39, 1  ;;  %v385_v46 = vshrl.u32 %v3736_v9, 16  ;;  %v389_v47 = vshll.u32 %v3775_v37, 16  ;;  %v3815_v6 = vld [vmem:[%s3730_s28 + $0x68] sm:$0xff]  ;;  %v236_v18 = vld [vmem:[%s3730_s28 + $0x90] sm:$0x1] }
  0x18   : > { %v339_v33 = vor.u32 %v338_v27, %v334_v20  ;;  %v384_v34 = vsel %vm332_vm1, %v379_v28, %v383_v23  ;;  %v463_v44 = vrot.slane %v461_v41, 1  ;;  %v425_v48 = vshrl.u32 %v3742_v11, 16  ;;  %v3829_v27 = vld [vmem:[%s3730_s28 + $0x20] sm:$0xff] }
  0x19   : > { %v424_v35 = vsel %vm332_vm1, %v419_v29, %v423_v26  ;;  %3270 = vmatmul.msk.bf16.vlgmr.msra.gmra.mxu1 %vm481_vm2, %v384_v34  ;;  %v429_v49 = vshll.u32 %v3779_v38, 16  ;;  %v459_v50 = vor.u32 %v457_v40, %v3786_v43  ;;  %v345_v51 = vshrl.u32 %v3748_v13, 16 }
  0x1a   : > { %3275 = vmatmul.msk.bf16.vlgmr.msra.gmra.mxu2 %vm481_vm2, %v424_v35  ;;  %v344_v36 = vsel %vm332_vm1, %v339_v33, %v343_v30  ;;  %v349_v52 = vshll.u32 %v3784_v42, 16  ;;  %v387_v55 = vor.u32 %v385_v46, %v383_v23  ;;  %v391_v56 = vrot.slane %v389_v47, 1 }
  0x1b   : > { %3265 = vmatmul.msk.bf16.vlgmr.msra.gmra.mxu0 %vm481_vm2, %v344_v36  ;;  %v464_v54 = vsel %vm332_vm1, %v459_v50, %v463_v44  ;;  %v427_v57 = vor.u32 %v425_v48, %v423_v26  ;;  %v431_v58 = vrot.slane %v429_v49, 1  ;;  %v347_v61 = vor.u32 %v345_v51, %v343_v30 }
  0x1c   : > { %3280 = vmatmul.msk.bf16.vlgmr.msra.gmra.mxu3 %vm481_vm2, %v464_v54  ;;  %v351_v62 = vrot.slane %v349_v52, 1  ;;  %v392_v63 = vsel %vm332_vm1, %v387_v55, %v391_v56  ;;  %v465_v1 = vshrl.u32 %v3587_v32, 16  ;;  %v469_v2 = vshll.u32 %v3588_v59, 16  ;;  %v3850_v52 = vld [vmem:[%s3730_s28 + $0x70] sm:$0xff] }
  0x1d   : > { %v432_v0 = vsel %vm332_vm1, %v427_v57, %v431_v58  ;;  %v405_v3 = vshll.u32 %v3803_v60, 16  ;;  %v409_v16 = vshrl.u32 %v3803_v60, 16  ;;  %v393_v20 = vshrl.u32 %v3775_v37, 16 }
  0x1e   : > { %v352_v4 = vsel %vm332_vm1, %v347_v61, %v351_v62  ;;  %v467_v7 = vor.u32 %v465_v1, %v463_v44  ;;  %v471_v14 = vrot.slane %v469_v2, 1  ;;  %v397_v21 = vshll.u32 %v3812_v5, 16 }
  0x1f   : > { %v407_v15 = vrot.slane %v405_v3, 1  ;;  %v433_v23 = vshrl.u32 %v3779_v38, 16  ;;  %v437_v25 = vshll.u32 %v3815_v6, 16  ;;  %v312_v28 = vunpack.c.l.b16 %v236_v18 }
  0x20   : > { %v472_v26 = vsel %vm332_vm1, %v467_v7, %v471_v14  ;;  %v353_v30 = vshrl.u32 %v3784_v42, 16  ;;  %v357_v32 = vshll.u32 %v3820_v17, 16  ;;  %v395_v33 = vor.u32 %v393_v20, %v391_v56  ;;  %v3589_v7 = vld [vmem:[%s3730_s28 + $0x10] sm:$0xff] }
  0x21   : > { %v411_v19 = vor.u32 %v409_v16, %v407_v15  ;;  %v399_v34 = vrot.slane %v397_v21, 1  ;;  %v435_v35 = vor.u32 %v433_v23, %v431_v58  ;;  %v439_v36 = vrot.slane %v437_v25, 1  ;;  %v3445_v21 = vld [vmem:[%s4857_s1 + $0x18] sm:$0xf]  ;;  %v3532_v25 = vld [vmem:[%s4857_s1 + $0x1c] sm:$0xf] }
  0x22   : > { %v365_v39 = vshll.u32 %v3829_v27, 16  ;;  %v3839_v40 = vpack.c.b16 %v312_v28, %v312_v28  ;;  %v355_v41 = vor.u32 %v353_v30, %v351_v62  ;;  %v359_v44 = vrot.slane %v357_v32, 1  ;;  %v1013_v62 = vld [vmem:[%s3730_s28 + $0x8] sm:$0xe]  ;;  %v3551_v32 = vld [vmem:[%s4857_s1 + $0x20] sm:$0xf] }
  0x23   : > { %v3833_v29 = vsel %vm332_vm1, %v411_v19, %v3760_v24  ;;  %v400_v24 = vsel %vm332_vm1, %v395_v33, %v399_v34  ;;  %v440_v45 = vsel %vm332_vm1, %v435_v35, %v439_v36  ;;  %v473_v47 = vshrl.u32 %v3588_v59, 16 }
  0x24   : > { %v367_v46 = vrot.slane %v365_v39, 1  ;;  %v477_v48 = vshll.u32 %v3839_v40, 16  ;;  %v369_v49 = vshrl.u32 %v3829_v27, 16  ;;  %v360_v50 = vsel %vm332_vm1, %v355_v41, %v359_v44  ;;  %v3590_v41 = vld [vmem:[%s3730_s28 + $0x18] sm:$0xff] }
  0x25   : > { %v475_v53 = vor.u32 %v473_v47, %v471_v14  ;;  %v401_v56 = vshrl.u32 %v3812_v5, 16  ;;  %v441_v57 = vshrl.u32 %v3815_v6, 16  ;;  %v445_v58 = vshll.u32 %v3850_v52, 16 }
  0x26   : > { %v371_v51 = vor.u32 %v369_v49, %v367_v46  ;;  %v479_v54 = vrot.slane %v477_v48, 1  ;;  %v361_v61 = vshrl.u32 %v3820_v17, 16  ;;  %v1089_v3 = vunpack.c.l.b16 %v1013_v62 }
  0x27   : > { %v443_v1 = vor.u32 %v441_v57, %v439_v36  ;;  %v447_v2 = vrot.slane %v445_v58, 1  ;;  %v1146_v20 = vrot.slane %v3589_v7, 1  ;;  %v2572_v28 = vsel %vm536_vm0, %v3532_v25, 0 }
  0x28   : > { %v376_v55 = vsel %vm332_vm1, %v371_v51, %v3758_v22  ;;  %v480_v59 = vsel %vm332_vm1, %v475_v53, %v479_v54  ;;  %2581 = vmatpush.bf16.msra.mxu3 %v2572_v28  ;;  %v2808_v33 = vsel %vm536_vm0, %v3551_v32, 0  ;;  %v1390_v48 = vshrl.u32 %v3589_v7, 16 }
  0x29   : > { %3271 = vmatmul.msk.bf16.gmra.mxu1 %vm481_vm2, %v392_v63  ;;  %v3861_v63 = vld [vmem:[%s3730_s28 + $0xc] sm:$0xf]  ;;  %v448_v16 = vsel %vm332_vm1, %v443_v1, %v447_v2  ;;  %2817 = vmatpush.bf16.msra.mxu0 %v2808_v33  ;;  %v1393_v49 = vshll.u32 %v3589_v7, 16  ;;  %v1399_v1 = vshrl.u32 %v3590_v41, 16  ;;  %v789_v28 = vrot.slane %v3820_v17, 1  ;;  %v3593_v33 = vld [vmem:[%s3730_s28 + $0x30] sm:$0xff] }
  0x2a   : > { %3276 = vmatmul.msk.bf16.gmra.mxu2 %vm481_vm2, %v432_v0  ;;  %v403_v0 = vor.u32 %v401_v56, %v399_v34  ;;  %v4861_v22 = vunpack.c.l.b16 %v3861_v63  ;;  %v449_v34 = vshrl.u32 %v3850_v52, 16  ;;  %v1392_v54 = vrot.slane %v1390_v48, 1 }
  0x2b   : > { %3266 = vmatmul.msk.bf16.gmra.mxu0 %vm481_vm2, %v352_v4  ;;  %v363_v4 = vor.u32 %v361_v61, %v359_v44  ;;  %v3627_v44 = vld [vmem:[%s3730_s28] sm:$0xf0]  ;;  %v1395_v56 = vrot.slane %v1393_v49, 2 }
  0x2c   : > { %3281 = vmatmul.msk.bf16.gmra.mxu3 %vm481_vm2, %v472_v26  ;;  %v408_v14 = vsel %vm332_vm1, %v403_v0, %v407_v15  ;;  %v1126_v18 = vpack.c.b16 %v4861_v22, %v1089_v3  ;;  %v2203_v15 = vsel %vm536_vm0, %v3445_v21, 0  ;;  %v3426_v26 = vld [vmem:[%s4857_s1 + $0x14] sm:$0xf]  ;;  %v451_v36 = vor.u32 %v449_v34, %v447_v2  ;;  %v3591_v61 = vld [vmem:[%s3730_s28 + $0x20] sm:$0xff] }
  0x2d   : > { %v368_v19 = vsel %vm332_vm1, %v363_v4, %v367_v46  ;;  %2212 = vmatpush.bf16.msra.mxu2 %v2203_v15  ;;  %v1842_v30 = vsel %vm536_vm0, %v3426_v26, 0  ;;  %v1396_v58 = vor.u32 %v1395_v56, %v1392_v54  ;;  %v1150_v0 = vrot.slane %v3591_v61, 1  ;;  %v3599_v22 = vld [vmem:[%s3730_s28 + $0x60] sm:$0xff] }
  0x2e   : > { %v1145_v23 = vrot.slane %v1126_v18, 1  ;;  %1851 = vmatpush.bf16.msra.mxu1 %v1842_v30  ;;  %v456_v39 = vsel %vm332_vm1, %v451_v36, %v3786_v43  ;;  %v1382_v46 = vshrl.u32 %v1126_v18, 16  ;;  %v1385_v47 = vshll.u32 %v1126_v18, 16 }
  0x2f   : > { %v1402_v2 = vshll.u32 %v3590_v41, 16  ;;  %v1401_v4 = vrot.slane %v1399_v1, 1  ;;  %v1408_v21 = vshrl.u32 %v3591_v61, 16  ;;  %v1154_v34 = vrot.slane %v3593_v33, 1  ;;  %v3595_v1 = vld [vmem:[%s3730_s28 + $0x40] sm:$0xff] }
  0x30   : > { %v1147_v35 = vsel %vm783_vm3, %v1145_v23, %v1146_v20  ;;  %v1384_v43 = vrot.slane %v1382_v46, 1  ;;  %v1387_v53 = vrot.slane %v1385_v47, 2  ;;  %v1411_v23 = vshll.u32 %v3591_v61, 16  ;;  %v3594_v47 = vld [vmem:[%s3730_s28 + $0x38] sm:$0xff] }
  0x31   : > { %v1404_v7 = vrot.slane %v1402_v2, 2  ;;  %v1410_v25 = vrot.slane %v1408_v21, 1 }
  0x32   : > { %v1388_v57 = vor.u32 %v1387_v53, %v1384_v43  ;;  %v1413_v26 = vrot.slane %v1411_v23, 2  ;;  %v1429_v43 = vshll.u32 %v3593_v33, 16  ;;  %v795_v23 = vrot.slane %v3736_v9, 1 }
  0x34   : > { %v1397_v62 = vsel %vm1380_vm4, %v1388_v57, %v1396_v58  ;;  %v1414_v30 = vor.u32 %v1413_v26, %v1410_v25  ;;  %v1431_v57 = vrot.slane %v1429_v43, 2 }
  0x39   : > { %3272 = vmatmul.msk.bf16.gmra.mxu1 %vm481_vm2, %v400_v24  ;;  %v1148_v24 = vrot.slane %v3590_v41, 1 }
  0x3a   : > { %3277 = vmatmul.msk.bf16.gmra.mxu2 %vm481_vm2, %v440_v45  ;;  %v3628_v45 = vld [vmem:[%s3730_s28] sm:$0xe] }
  0x3b   : > { %3267 = vmatmul.msk.bf16.gmra.mxu0 %vm481_vm2, %v360_v50  ;;  %v3629_v50 = vor.u32 %v3628_v45, %v3627_v44  ;;  %v1149_v51 = vsel %vm783_vm3, %v1146_v20, %v1148_v24  ;;  %v1151_v3 = vsel %vm783_vm3, %v1148_v24, %v1150_v0  ;;  %v791_v24 = vrot.slane %v3829_v27, 1 }
  0x3c   : > { %3282 = vmatmul.msk.bf16.gmra.mxu3 %vm481_vm2, %v480_v59 }
  0x49   : > { %3273 = vmatmul.msk.bf16.gmra.mxu1 %vm481_vm2, %v408_v14  ;;  %v787_v14 = vrot.slane %v3784_v42, 1 }
  0x4a   : > { %3278 = vmatmul.msk.bf16.gmra.mxu2 %vm481_vm2, %v448_v16  ;;  %v1405_v16 = vor.u32 %v1404_v7, %v1401_v4  ;;  %v1158_v4 = vrot.slane %v3595_v1, 1  ;;  %v1435_v7 = vshrl.u32 %v3594_v47, 16 }
  0x4b   : > { %3268 = vmatmul.msk.bf16.gmra.mxu0 %vm481_vm2, %v368_v19  ;;  %v790_v32 = vsel %vm783_vm3, %v787_v14, %v789_v28 }
  0x4c   : > { %3389 = vmatmul.msk.bf16.vlgmr.msrb.gmra.mxu3 %vm481_vm2, %v1147_v35  ;;  %v1406_v19 = vsel %vm1380_vm4, %v1396_v58, %v1405_v16  ;;  %v1437_v21 = vrot.slane %v1435_v7, 1 }
  0x59   : > { %3274 = vmatmul.msk.bf16.gmra.mxu1 %vm481_vm2, %v3833_v29  ;;  %v784_v29 = vrot.slane %v3629_v50, 1  ;;  %v1156_v50 = vrot.slane %v3594_v47, 1 }
  0x5a   : > { %3279 = vmatmul.msk.bf16.gmra.mxu2 %vm481_vm2, %v456_v39 }
  0x5b   : > { %3269 = vmatmul.msk.bf16.gmra.mxu0 %vm481_vm2, %v376_v55  ;;  %v785_v55 = vrot.slane %v3748_v13, 1  ;;  %v1157_v56 = vsel %vm783_vm3, %v1154_v34, %v1156_v50 }
  0x5c   : > { %3390 = vmatmul.msk.bf16.gmra.mxu3 %vm481_vm2, %v1149_v51  ;;  %v1426_v51 = vshrl.u32 %v3593_v33, 16 }
  0x5d   : > { %v786_v59 = vsel %vm783_vm3, %v784_v29, %v785_v55  ;;  %v788_v18 = vsel %vm783_vm3, %v785_v55, %v787_v14  ;;  %v1438_v14 = vshll.u32 %v3594_v47, 16  ;;  %v797_v47 = vrot.slane %v3775_v37, 1 }
  0x5e   : > { %v1428_v55 = vrot.slane %v1426_v51, 1 }
  0x60   : > { %v1432_v58 = vor.u32 %v1431_v57, %v1428_v55  ;;  %v3597_v55 = vld [vmem:[%s3730_s28 + $0x50] sm:$0xff] }
  0x69   : > { %3283 = vmatmul.msk.bf16.vlgmr.msrb.gmra.mxu1 %vm481_vm2, %v3745_v12  ;;  %v3592_v12 = vld [vmem:[%s3730_s28 + $0x28] sm:$0xff] }
  0x6a   : > { %3302 = vmatmul.msk.bf16.vlgmr.msrb.gmra.mxu2 %vm481_vm2, %v786_v59  ;;  %v1152_v20 = vrot.slane %v3592_v12, 1  ;;  %v1417_v35 = vshrl.u32 %v3592_v12, 16  ;;  %v1420_v36 = vshll.u32 %v3592_v12, 16 }
  0x6b   : > { %3408 = vmatmul.msk.bf16.vlgmr.msrb.gmra.mxu0 %vm481_vm2, %v1397_v62 }
  0x6c   : > { %3391 = vmatmul.msk.bf16.gmra.mxu3 %vm481_vm2, %v1151_v3  ;;  %v1153_v15 = vsel %vm783_vm3, %v1150_v0, %v1152_v20  ;;  %v1155_v39 = vsel %vm783_vm3, %v1152_v20, %v1154_v34  ;;  %v1419_v41 = vrot.slane %v1417_v35, 1  ;;  %v1422_v44 = vrot.slane %v1420_v36, 2 }
  0x6d   : > { %v1444_v35 = vshrl.u32 %v3595_v1, 16  ;;  %v1447_v36 = vshll.u32 %v3595_v1, 16 }
  0x6e   : > { %v1423_v45 = vor.u32 %v1422_v44, %v1419_v41 }
  0x70   : > { %v1424_v49 = vsel %vm1380_vm4, %v1414_v30, %v1423_v45  ;;  %v1433_v3 = vsel %vm1380_vm4, %v1423_v45, %v1432_v58 }
  0x79   : > { %3284 = vmatmul.msk.bf16.gmra.mxu1 %vm481_vm2, %v3748_v13  ;;  %v1415_v13 = vsel %vm1380_vm4, %v1405_v16, %v1414_v30 }
  0x7a   : > { %3303 = vmatmul.msk.bf16.gmra.mxu2 %vm481_vm2, %v788_v18 }
  0x7b   : > { %3409 = vmatmul.msk.bf16.gmra.mxu0 %vm481_vm2, %v1406_v19  ;;  %v1159_v19 = vsel %vm783_vm3, %v1156_v50, %v1158_v4 }
  0x7c   : > { %3392 = vmatmul.msk.bf16.gmra.mxu3 %vm481_vm2, %v1153_v15 }
  0x89   : > { %3285 = vmatmul.msk.bf16.gmra.mxu1 %vm481_vm2, %v3784_v42  ;;  %v792_v42 = vsel %vm783_vm3, %v789_v28, %v791_v24 }
  0x8a   : > { %3304 = vmatmul.msk.bf16.gmra.mxu2 %vm481_vm2, %v790_v32  ;;  %v3596_v32 = vld [vmem:[%s3730_s28 + $0x48] sm:$0xff] }
  0x8b   : > { %3410 = vmatmul.msk.bf16.gmra.mxu0 %vm481_vm2, %v1415_v13  ;;  %v1160_v34 = vrot.slane %v3596_v32, 1  ;;  %v1456_v1 = vshll.u32 %v3596_v32, 16 }
  0x8c   : > { %3393 = vmatmul.msk.bf16.gmra.mxu3 %vm481_vm2, %v1155_v39 }
  0x96   : > { %v3935_v46 = vpop.f32.mrf.mxu1 }
  0x98   : > { %v3939_v48 = vpop.f32.mrf.mxu0 }
  0x99   : > { %3286 = vmatmul.msk.bf16.gmra.mxu1 %vm481_vm2, %v3820_v17  ;;  %v793_v17 = vrot.slane %v3733_v8, 1 }
  0x9a   : > { %3305 = vmatmul.msk.bf16.gmra.mxu2 %vm481_vm2, %v792_v42  ;;  %v1446_v42 = vrot.slane %v1444_v35, 1  ;;  %v3598_v35 = vld [vmem:[%s3730_s28 + $0x58] sm:$0xff] }
  0x9b   : > { %3411 = vmatmul.msk.bf16.gmra.mxu0 %vm481_vm2, %v1424_v49  ;;  %v794_v0 = vsel %vm783_vm3, %v791_v24, %v793_v17  ;;  %v796_v30 = vsel %vm783_vm3, %v793_v17, %v795_v23  ;;  %v1161_v24 = vsel %vm783_vm3, %v1158_v4, %v1160_v34 }
  0x9c   : > { %3394 = vmatmul.msk.bf16.gmra.mxu3 %vm481_vm2, %v1157_v56  ;;  %v798_v56 = vsel %vm783_vm3, %v795_v23, %v797_v47 }
  0x9d   : > { %v3946_v53 = vpop.f32.mrf.mxu2 }
  0x9e   : > { %v3948_v54 = vpop.f32.mrf.mxu1 }
  0x9f   : > { %v3957_v61 = vpop.f32.mrf.mxu3 }
  0xa0   : > { %v3951_v29 = vpop.f32.mrf.mxu0  ;;  %4863 = vst [vmem:[#allocation2_spill] sm:$0xff] %v3957_v61 }
  0xa5   : > { %v3955_v59 = vpop.f32.mrf.mxu2 }
  0xa6   : > { %v3959_v62 = vpop.f32.mrf.mxu1 }
  0xa7   : > { %v3972_v18 = vpop.f32.mrf.mxu3 }
  0xa8   : > { %v3963_v2 = vpop.f32.mrf.mxu0  ;;  %4864 = vst [vmem:[#allocation3_spill] sm:$0xff] %v3972_v18 }
  0xa9   : > { %3287 = vmatmul.msk.bf16.gmra.mxu1 %vm481_vm2, %v3829_v27  ;;  %v1440_v27 = vrot.slane %v1438_v14, 2 }
  0xaa   : > { %3306 = vmatmul.msk.bf16.gmra.mxu2 %vm481_vm2, %v794_v0  ;;  %v1453_v0 = vshrl.u32 %v3596_v32, 16 }
  0xab   : > { %3412 = vmatmul.msk.bf16.gmra.mxu0 %vm481_vm2, %v1433_v3  ;;  %v1441_v15 = vor.u32 %v1440_v27, %v1437_v21  ;;  %v799_v27 = vrot.slane %v3812_v5, 1 }
  0xac   : > { %3395 = vmatmul.msk.bf16.gmra.mxu3 %vm481_vm2, %v1159_v19  ;;  %v1455_v21 = vrot.slane %v1453_v0, 1 }
  0xad   : > { %v3970_v16 = vpop.f32.mrf.mxu2  ;;  %v1442_v13 = vsel %vm1380_vm4, %v1432_v58, %v1441_v15  ;;  %v1162_v58 = vrot.slane %v3597_v55, 1 }
  0xae   : > { %v3974_v12 = vpop.f32.mrf.mxu1 }
  0xaf   : > { %v3983_v26 = vpop.f32.mrf.mxu3  ;;  %v1163_v14 = vsel %vm783_vm3, %v1160_v34, %v1162_v58 }
  0xb0   : > { %v3977_v20 = vpop.f32.mrf.mxu0  ;;  %4865 = vst [vmem:[#allocation4_spill] sm:$0xff] %v3983_v26 }
  0xb5   : > { %v3981_v25 = vpop.f32.mrf.mxu2 }
  0xb6   : > { %v3985_v28 = vpop.f32.mrf.mxu1 }
  0xb7   : > { %v3998_v41 = vpop.f32.mrf.mxu3 }
  0xb8   : > { %v3989_v33 = vpop.f32.mrf.mxu0  ;;  %4866 = vst [vmem:[#allocation5_spill] sm:$0xff] %v3998_v41 }
  0xb9   : > { %3288 = vmatmul.msk.bf16.gmra.mxu1 %vm481_vm2, %v3733_v8  ;;  %v1449_v8 = vrot.slane %v1447_v36, 2 }
  0xba   : > { %3307 = vmatmul.msk.bf16.gmra.mxu2 %vm481_vm2, %v796_v30 }
  0xbb   : > { %3413 = vmatmul.msk.bf16.gmra.mxu0 %vm481_vm2, %v1442_v13  ;;  %v1450_v49 = vor.u32 %v1449_v8, %v1446_v42  ;;  %v800_v13 = vsel %vm783_vm3, %v797_v47, %v799_v27  ;;  %v1462_v42 = vshrl.u32 %v3597_v55, 16  ;;  %v1465_v8 = vshll.u32 %v3597_v55, 16 }
  0xbc   : > { %3396 = vmatmul.msk.bf16.gmra.mxu3 %vm481_vm2, %v1161_v24  ;;  %v1164_v24 = vrot.slane %v3598_v35, 1 }
  0xbd   : > { %v3996_v39 = vpop.f32.mrf.mxu2  ;;  %v1451_v17 = vsel %vm1380_vm4, %v1441_v15, %v1450_v49 }
  0xbe   : > { %v4000_v44 = vpop.f32.mrf.mxu1  ;;  %v1165_v0 = vsel %vm783_vm3, %v1162_v58, %v1164_v24  ;;  %v1166_v58 = vrot.slane %v3599_v22, 1 }
  0xbf   : > { %v4009_v51 = vpop.f32.mrf.mxu3 }
  0xc0   : > { %v4003_v45 = vpop.f32.mrf.mxu0  ;;  %4867 = vst [vmem:[#allocation6_spill] sm:$0xff] %v4009_v51  ;;  %v1167_v26 = vsel %vm783_vm3, %v1164_v24, %v1166_v58  ;;  %v3600_v24 = vld [vmem:[%s3730_s28 + $0x68] sm:$0xff] }
  0xc5   : > { %v4007_v50 = vpop.f32.mrf.mxu2 }
  0xc6   : > { %v4011_v43 = vpop.f32.mrf.mxu1 }
  0xc7   : > { %v4024_v4 = vpop.f32.mrf.mxu3 }
  0xc8   : > { %v4015_v57 = vpop.f32.mrf.mxu0  ;;  %4868 = vst [vmem:[#allocation7_spill] sm:$0xff] %v4024_v4 }
  0xc9   : > { %3289 = vmatmul.msk.bf16.gmra.mxu1 %vm481_vm2, %v3736_v9  ;;  %v1458_v9 = vrot.slane %v1456_v1, 2 }
  0xca   : > { %3308 = vmatmul.msk.bf16.gmra.mxu2 %vm481_vm2, %v798_v56 }
  0xcb   : > { %3414 = vmatmul.msk.bf16.gmra.mxu0 %vm481_vm2, %v1451_v17  ;;  %v1459_v23 = vor.u32 %v1458_v9, %v1455_v21 }
  0xcc   : > { %3397 = vmatmul.msk.bf16.gmra.mxu3 %vm481_vm2, %v1163_v14  ;;  %v1467_v14 = vrot.slane %v1465_v8, 2  ;;  %v1471_v8 = vshrl.u32 %v3598_v35, 16 }
  0xcd   : > { %v4022_v3 = vpop.f32.mrf.mxu2  ;;  %v1460_v34 = vsel %vm1380_vm4, %v1450_v49, %v1459_v23  ;;  %v1464_v49 = vrot.slane %v1462_v42, 1 }
  0xce   : > { %v4026_v7 = vpop.f32.mrf.mxu1  ;;  %v1473_v61 = vrot.slane %v1471_v8, 1 }
  0xcf   : > { %v1248_v30 = vpop.f32.mrf.mxu3  ;;  %v1468_v21 = vor.u32 %v1467_v14, %v1464_v49 }
  0xd0   : > { %v4029_v19 = vpop.f32.mrf.mxu0 }
  0xd1   : > { %v1469_v51 = vsel %vm1380_vm4, %v1459_v23, %v1468_v21 }
  0xd5   : > { %v4033_v15 = vpop.f32.mrf.mxu2 }
  0xd6   : > { %v4035_v32 = vpop.f32.mrf.mxu1 }
  0xd7   : > { %v1250_v17 = vpop.f32.mrf.mxu3 }
  0xd8   : > { %v4039_v36 = vpop.f32.mrf.mxu0 }
  0xd9   : > { %3290 = vmatmul.msk.bf16.gmra.mxu1 %vm481_vm2, %v3775_v37  ;;  %v801_v37 = vrot.slane %v3803_v60, 1 }
  0xda   : > { %3309 = vmatmul.msk.bf16.gmra.mxu2 %vm481_vm2, %v800_v13 }
  0xdb   : > { %3415 = vmatmul.msk.bf16.gmra.mxu0 %vm481_vm2, %v1460_v34  ;;  %v802_v34 = vsel %vm783_vm3, %v799_v27, %v801_v37 }
  0xdc   : > { %3398 = vmatmul.msk.bf16.gmra.mxu3 %vm481_vm2, %v1165_v0  ;;  %v1474_v0 = vshll.u32 %v3598_v35, 16 }
  0xdd   : > { %v4046_v56 = vpop.f32.mrf.mxu2 }
  0xde   : > { %4869 = vst [vmem:[#allocation8_spill] sm:$0xff] %v4046_v56  ;;  %v4048_v47 = vpop.f32.mrf.mxu1 }
  0xdf   : > { %v1253_v13 = vpop.f32.mrf.mxu3 }
  0xe0   : > { %v4051_v1 = vpop.f32.mrf.mxu0 }
  0xe5   : > { %v4055_v9 = vpop.f32.mrf.mxu2 }
  0xe6   : > { %4870 = vst [vmem:[#allocation9_spill] sm:$0xff] %v4055_v9  ;;  %v687_v55 = vpop.f32.mrf.mxu1 }
  0xe7   : > { %v688_v42 = vadd.f32 %v687_v55, %v3939_v48  ;;  %v1255_v14 = vpop.f32.mrf.mxu3 }
  0xe8   : > { %v1617_v4 = vpop.f32.mrf.mxu0 }
  0xe9   : > { %3291 = vmatmul.msk.bf16.gmra.mxu1 %vm481_vm2, %v3812_v5  ;;  %v1476_v5 = vrot.slane %v1474_v0, 2  ;;  %v1483_v0 = vshll.u32 %v3599_v22, 16 }
  0xea   : > { %3310 = vmatmul.msk.bf16.gmra.mxu2 %vm481_vm2, %v802_v34 }
  0xeb   : > { %3416 = vmatmul.msk.bf16.gmra.mxu0 %vm481_vm2, %v1469_v51  ;;  %v803_v51 = vrot.slane %v3739_v10, 1  ;;  %v1477_v35 = vor.u32 %v1476_v5, %v1473_v61 }
  0xec   : > { %3399 = vmatmul.msk.bf16.gmra.mxu3 %vm481_vm2, %v1167_v26 }
  0xed   : > { %v887_v49 = vpop.f32.mrf.mxu2  ;;  %v804_v56 = vsel %vm783_vm3, %v801_v37, %v803_v51  ;;  %v1478_v8 = vsel %vm1380_vm4, %v1468_v21, %v1477_v35 }
  0xee   : > { %v977_v41 = vadd.f32 %v887_v49, %v688_v42  ;;  %v689_v27 = vpop.f32.mrf.mxu1 }
  0xef   : > { %v690_v48 = vadd.f32 %v689_v27, %v3951_v29  ;;  %v1258_v9 = vpop.f32.mrf.mxu3  ;;  %v1168_v29 = vrot.slane %v3600_v24, 1 }
  0xf0   : > { %v1338_v23 = vadd.f32 %v1248_v30, %v977_v41  ;;  %v1619_v18 = vpop.f32.mrf.mxu0 }
  0xf1   : > { %v1169_v21 = vsel %vm783_vm3, %v1166_v58, %v1168_v29  ;;  %v3601_v58 = vld [vmem:[%s3730_s28 + $0x70] sm:$0xff] }
  0xf2   : > { %v4067_v34 = vadd.f32 %v1617_v4, %v1338_v23  ;;  %v1480_v4 = vshrl.u32 %v3599_v22, 16 }
  0xf5   : > { %v889_v55 = vpop.f32.mrf.mxu2 }
  0xf6   : > { %v978_v42 = vadd.f32 %v889_v55, %v690_v48  ;;  %v692_v49 = vpop.f32.mrf.mxu1  ;;  %v1482_v48 = vrot.slane %v1480_v4, 1  ;;  %v805_v55 = vrot.slane %v3742_v11, 1 }
  0xf7   : > { %v693_v61 = vadd.f32 %v692_v49, %v3963_v2  ;;  %v1260_v27 = vpop.f32.mrf.mxu3 }
  0xf8   : > { %v1339_v41 = vadd.f32 %v1250_v17, %v978_v42  ;;  %v1622_v30 = vpop.f32.mrf.mxu0 }
  0xf9   : > { %3292 = vmatmul.msk.bf16.gmra.mxu1 %vm481_vm2, %v3803_v60 }
  0xfa   : > { %3311 = vmatmul.msk.bf16.gmra.mxu2 %vm481_vm2, %v804_v56  ;;  %v4077_v26 = vadd.f32 %v1619_v18, %v1339_v41  ;;  %v1485_v56 = vrot.slane %v1483_v0, 2 }
  0xfb   : > { %3417 = vmatmul.msk.bf16.gmra.mxu0 %vm481_vm2, %v1478_v8 }
  0xfc   : > { %3400 = vmatmul.msk.bf16.gmra.mxu3 %vm481_vm2, %v1169_v21  ;;  %v1486_v22 = vor.u32 %v1485_v56, %v1482_v48 }
  0xfd   : > { %v892_v37 = vpop.f32.mrf.mxu2 }
  0xfe   : > { %v979_v17 = vadd.f32 %v892_v37, %v693_v61  ;;  %v694_v23 = vpop.f32.mrf.mxu1  ;;  %v806_v61 = vsel %vm783_vm3, %v803_v51, %v805_v55  ;;  %v1487_v4 = vsel %vm1380_vm4, %v1477_v35, %v1486_v22 }
  0xff   : > { %v695_v2 = vadd.f32 %v694_v23, %v3977_v20  ;;  %v1263_v49 = vpop.f32.mrf.mxu3  ;;  %v1170_v20 = vrot.slane %v3601_v58, 1  ;;  %v1492_v23 = vshll.u32 %v3600_v24, 16 }
 0x100   : > { %v1340_v5 = vadd.f32 %v1253_v13, %v979_v17  ;;  %v1624_v60 = vpop.f32.mrf.mxu0  ;;  %v1489_v17 = vshrl.u32 %v3600_v24, 16 }
 0x101   : > { %v1171_v35 = vsel %vm783_vm3, %v1168_v29, %v1170_v20  ;;  %v3602_v29 = vld [vmem:[%s3730_s28 + $0x78] sm:$0xff] }
 0x102   : > { %v4083_v18 = vadd.f32 %v1622_v30, %v1340_v5  ;;  %v1491_v56 = vrot.slane %v1489_v17, 1 }
 0x105   : > { %v894_v42 = vpop.f32.mrf.mxu2 }
 0x106   : > { %v980_v41 = vadd.f32 %v894_v42, %v695_v2  ;;  %v697_v8 = vpop.f32.mrf.mxu1  ;;  %v1494_v2 = vrot.slane %v1492_v23, 2  ;;  %v807_v42 = vrot.slane %v3779_v38, 1 }
 0x107   : > { %v698_v0 = vadd.f32 %v697_v8, %v3989_v33  ;;  %v1265_v21 = vpop.f32.mrf.mxu3 }
 0x108   : > { %v1341_v13 = vadd.f32 %v1255_v14, %v980_v41  ;;  %v1627_v37 = vpop.f32.mrf.mxu0  ;;  %v1495_v24 = vor.u32 %v1494_v2, %v1491_v56 }
 0x109   : > { %3293 = vmatmul.msk.bf16.gmra.mxu1 %vm481_vm2, %v3739_v10 }
 0x10a   : > { %3312 = vmatmul.msk.bf16.gmra.mxu2 %vm481_vm2, %v806_v61  ;;  %v4093_v30 = vadd.f32 %v1624_v60, %v1341_v13  ;;  %v1496_v17 = vsel %vm1380_vm4, %v1486_v22, %v1495_v24 }
 0x10b   : > { %3418 = vmatmul.msk.bf16.gmra.mxu0 %vm481_vm2, %v1487_v4  ;;  %v808_v4 = vsel %vm783_vm3, %v805_v55, %v807_v42 }
 0x10c   : > { %3401 = vmatmul.msk.bf16.gmra.mxu3 %vm481_vm2, %v1171_v35 }
 0x10d   : > { %v897_v51 = vpop.f32.mrf.mxu2 }
 0x10e   : > { %v981_v14 = vadd.f32 %v897_v51, %v698_v0  ;;  %v699_v5 = vpop.f32.mrf.mxu1  ;;  %v1498_v51 = vshrl.u32 %v3601_v58, 16 }
 0x10f   : > { %v700_v33 = vadd.f32 %v699_v5, %v4003_v45  ;;  %v1268_v8 = vpop.f32.mrf.mxu3  ;;  %v1172_v45 = vrot.slane %v3602_v29, 1 }
 0x110   : > { %v1342_v48 = vadd.f32 %v1258_v9, %v981_v14  ;;  %v1629_v10 = vpop.f32.mrf.mxu0  ;;  %v1501_v14 = vshll.u32 %v3601_v58, 16  ;;  %v1500_v56 = vrot.slane %v1498_v51, 1 }
 0x111   : > { %v1173_v22 = vsel %vm783_vm3, %v1170_v20, %v1172_v45  ;;  %v3603_v20 = vld [vmem:[%s3730_s28 + $0x80] sm:$0xff] }
 0x112   : > { %v4099_v60 = vadd.f32 %v1627_v37, %v1342_v48  ;;  %v1503_v2 = vrot.slane %v1501_v14, 2  ;;  %v1507_v14 = vshrl.u32 %v3602_v29, 16 }
 0x114   : > { %v1504_v58 = vor.u32 %v1503_v2, %v1500_v56  ;;  %v811_v2 = vrot.slane %v3850_v52, 1 }
 0x115   : > { %v899_v41 = vpop.f32.mrf.mxu2 }
 0x116   : > { %v982_v61 = vadd.f32 %v899_v41, %v700_v33  ;;  %v702_v13 = vpop.f32.mrf.mxu1  ;;  %v809_v33 = vrot.slane %v3815_v6, 1 }
 0x117   : > { %v703_v23 = vadd.f32 %v702_v13, %v4015_v57  ;;  %v1270_v5 = vpop.f32.mrf.mxu3 }
 0x118   : > { %v1343_v9 = vadd.f32 %v1260_v27, %v982_v61  ;;  %v1632_v0 = vpop.f32.mrf.mxu0 }
 0x119   : > { %3294 = vmatmul.msk.bf16.gmra.mxu1 %vm481_vm2, %v3742_v11 }
 0x11a   : > { %3313 = vmatmul.msk.bf16.gmra.mxu2 %vm481_vm2, %v808_v4  ;;  %v4109_v37 = vadd.f32 %v1629_v10, %v1343_v9  ;;  %v810_v9 = vsel %vm783_vm3, %v807_v42, %v809_v33 }
 0x11b   : > { %3419 = vmatmul.msk.bf16.gmra.mxu0 %vm481_vm2, %v1496_v17 }
 0x11c   : > { %3402 = vmatmul.msk.bf16.gmra.mxu3 %vm481_vm2, %v1173_v22 }
 0x11d   : > { %v902_v55 = vpop.f32.mrf.mxu2 }
 0x11e   : > { %v983_v27 = vadd.f32 %v902_v55, %v703_v23  ;;  %v704_v35 = vpop.f32.mrf.mxu1  ;;  %v1505_v23 = vsel %vm1380_vm4, %v1495_v24, %v1504_v58  ;;  %v1510_v55 = vshll.u32 %v3602_v29, 16 }
 0x11f   : > { %v705_v57 = vadd.f32 %v704_v35, %v4029_v19  ;;  %v1273_v61 = vpop.f32.mrf.mxu3  ;;  %v1174_v19 = vrot.slane %v3603_v20, 1 }
 0x120   : > { %v1344_v48 = vadd.f32 %v1263_v49, %v983_v27  ;;  %v1634_v11 = vpop.f32.mrf.mxu0  ;;  %v1512_v56 = vrot.slane %v1510_v55, 2  ;;  %v1519_v55 = vshll.u32 %v3603_v20, 16 }
 0x121   : > { %v1175_v24 = vsel %vm783_vm3, %v1172_v45, %v1174_v19  ;;  %v3604_v45 = vld [vmem:[%s3730_s28 + $0x88] sm:$0xff] }
 0x122   : > { %v4115_v10 = vadd.f32 %v1632_v0, %v1344_v48  ;;  %v1509_v48 = vrot.slane %v1507_v14, 1  ;;  %v1516_v14 = vshrl.u32 %v3603_v20, 16 }
 0x124   : > { %v1513_v29 = vor.u32 %v1512_v56, %v1509_v48  ;;  %v813_v48 = vrot.slane %v3766_v31, 1 }
 0x125   : > { %v904_v41 = vpop.f32.mrf.mxu2 }
 0x126   : > { %v984_v13 = vadd.f32 %v904_v41, %v705_v57  ;;  %v707_v4 = vpop.f32.mrf.mxu1 }
 0x127   : > { %v708_v51 = vadd.f32 %v707_v4, %v4039_v36  ;;  %v1275_v27 = vpop.f32.mrf.mxu3 }
 0x128   : > { %v1345_v49 = vadd.f32 %v1265_v21, %v984_v13  ;;  %v1637_v17 = vpop.f32.mrf.mxu0 }
 0x129   : > { %3295 = vmatmul.msk.bf16.gmra.mxu1 %vm481_vm2, %v3779_v38 }
 0x12a   : > { %3314 = vmatmul.msk.bf16.gmra.mxu2 %vm481_vm2, %v810_v9  ;;  %v4125_v0 = vadd.f32 %v1634_v11, %v1345_v49  ;;  %v812_v9 = vsel %vm783_vm3, %v809_v33, %v811_v2 }
 0x12b   : > { %3420 = vmatmul.msk.bf16.gmra.mxu0 %vm481_vm2, %v1505_v23  ;;  %v1514_v23 = vsel %vm1380_vm4, %v1504_v58, %v1513_v29 }
 0x12c   : > { %3403 = vmatmul.msk.bf16.gmra.mxu3 %vm481_vm2, %v1175_v24  ;;  %v1518_v24 = vrot.slane %v1516_v14, 1 }
 0x12d   : > { %v907_v42 = vpop.f32.mrf.mxu2 }
 0x12e   : > { %v985_v21 = vadd.f32 %v907_v42, %v708_v51  ;;  %v709_v35 = vpop.f32.mrf.mxu1 }
 0x12f   : > { %v710_v36 = vadd.f32 %v709_v35, %v4051_v1  ;;  %v1278_v41 = vpop.f32.mrf.mxu3  ;;  %v1176_v1 = vrot.slane %v3604_v45, 1 }
 0x130   : > { %v1346_v22 = vadd.f32 %v1268_v8, %v985_v21  ;;  %v1639_v38 = vpop.f32.mrf.mxu0 }
 0x131   : > { %v1177_v58 = vsel %vm783_vm3, %v1174_v19, %v1176_v1  ;;  %v3605_v19 = vld [vmem:[%s3730_s28 + $0x90] sm:$0xff] }
 0x132   : > { %v4131_v11 = vadd.f32 %v1637_v17, %v1346_v22  ;;  %v1521_v22 = vrot.slane %v1519_v55, 2 }
 0x134   : > { %v1522_v20 = vor.u32 %v1521_v22, %v1518_v24 }
 0x135   : > { %v909_v57 = vpop.f32.mrf.mxu2 }
 0x136   : > { %v986_v13 = vadd.f32 %v909_v57, %v710_v36  ;;  %v712_v4 = vpop.f32.mrf.mxu1 }
 0x137   : > { %v713_v51 = vadd.f32 %v712_v4, %v3935_v46  ;;  %v1280_v42 = vpop.f32.mrf.mxu3  ;;  %v814_v4 = vsel %vm783_vm3, %v811_v2, %v813_v48  ;;  %v1525_v2 = vshrl.u32 %v3604_v45, 16 }
 0x138   : > { %v1347_v8 = vadd.f32 %v1270_v5, %v986_v13  ;;  %v1642_v49 = vpop.f32.mrf.mxu0 }
 0x139   : > { %3296 = vmatmul.msk.bf16.gmra.mxu1 %vm481_vm2, %v3815_v6 }
 0x13a   : > { %3315 = vmatmul.msk.bf16.gmra.mxu2 %vm481_vm2, %v812_v9  ;;  %v4141_v17 = vadd.f32 %v1639_v38, %v1347_v8  ;;  %v1523_v8 = vsel %vm1380_vm4, %v1513_v29, %v1522_v20 }
 0x13b   : > { %3421 = vmatmul.msk.bf16.gmra.mxu0 %vm481_vm2, %v1514_v23  ;;  %v1528_v23 = vshll.u32 %v3604_v45, 16 }
 0x13c   : > { %3404 = vmatmul.msk.bf16.gmra.mxu3 %vm481_vm2, %v1177_v58  ;;  %v1049_v58 = vld [vmem:[%s3730_s28 + $0x98] sm:$0x1] }
 0x13d   : > { %v912_v33 = vpop.f32.mrf.mxu2 }
 0x13e   : > { %v987_v5 = vadd.f32 %v912_v33, %v713_v51  ;;  %v714_v21 = vpop.f32.mrf.mxu1 }
 0x13f   : > { %v715_v46 = vadd.f32 %v714_v21, %v3948_v54  ;;  %v1283_v36 = vpop.f32.mrf.mxu3  ;;  %v1178_v54 = vrot.slane %v3605_v19, 1  ;;  %v1530_v21 = vrot.slane %v1528_v23, 2 }
 0x140   : > { %v1348_v35 = vadd.f32 %v1273_v61, %v987_v5  ;;  %v1644_v6 = vpop.f32.mrf.mxu0  ;;  %v1527_v5 = vrot.slane %v1525_v2, 1  ;;  %v3646_v2 = vld [vmem:[%s3730_s28 + $0x78] sm:$0xff] }
 0x142   : > { %v4147_v38 = vadd.f32 %v1642_v49, %v1348_v35 }
 0x145   : > { %v914_v56 = vpop.f32.mrf.mxu2 }
 0x146   : > { %v988_v57 = vadd.f32 %v914_v56, %v715_v46  ;;  %v717_v13 = vpop.f32.mrf.mxu1 }
 0x147   : > { %v718_v49 = vadd.f32 %v717_v13, %v3959_v62  ;;  %v4161_v51 = vpop.f32.mrf.mxu3  ;;  %v4169_v62 = vld [vmem:[%s3730_s28 + $0x80] sm:$0xff] }
 0x148   : > { %v1349_v61 = vadd.f32 %v1275_v27, %v988_v57  ;;  %v1647_v9 = vpop.f32.mrf.mxu0  ;;  %v815_v45 = vrot.slane %v4169_v62, 1 }
 0x149   : > { %3297 = vmatmul.msk.bf16.gmra.mxu1 %vm481_vm2, %v3850_v52  ;;  %v1179_v52 = vsel %vm783_vm3, %v1176_v1, %v1178_v54  ;;  %v1531_v1 = vor.u32 %v1530_v21, %v1527_v5  ;;  %v4193_v21 = vld [vmem:[%s3730_s28 + $0x18] sm:$0xff] }
 0x14a   : > { %3316 = vmatmul.msk.bf16.gmra.mxu2 %vm481_vm2, %v814_v4  ;;  %v4157_v31 = vadd.f32 %v1644_v6, %v1349_v61  ;;  %v1125_v6 = vunpack.c.l.b16 %v1049_v58  ;;  %v816_v57 = vsel %vm783_vm3, %v813_v48, %v815_v45 }
 0x14b   : > { %3422 = vmatmul.msk.bf16.gmra.mxu0 %vm481_vm2, %v1523_v8  ;;  %v1979_v8 = vld [vmem:[%s3730_s28 + $0x10] sm:$0xc] }
 0x14c   : > { %3405 = vmatmul.msk.bf16.gmra.mxu3 %vm481_vm2, %v1179_v52  ;;  %v1144_v13 = vpack.c.b16 %v1125_v6, %v1125_v6  ;;  %v2055_v48 = vunpack.c.l.b16 %v1979_v8 }
 0x14d   : > { %v917_v27 = vpop.f32.mrf.mxu2 }
 0x14e   : > { %v989_v29 = vadd.f32 %v917_v27, %v718_v49  ;;  %v719_v14 = vpop.f32.mrf.mxu1  ;;  %v4179_v49 = vld [vmem:[%s3730_s28 + $0x14] sm:$0xf]  ;;  %v1180_v23 = vrot.slane %v1144_v13, 1  ;;  %v1534_v27 = vshrl.u32 %v3605_v19, 16 }
 0x14f   : > { %v720_v24 = vadd.f32 %v719_v14, %v3974_v12  ;;  %v4173_v22 = vpop.f32.mrf.mxu3 }
 0x150   : > { %v1350_v55 = vadd.f32 %v1278_v41, %v989_v29  ;;  %v1649_v33 = vpop.f32.mrf.mxu0  ;;  %v1537_v29 = vshll.u32 %v3605_v19, 16 }
 0x152   : > { %v4166_v35 = vadd.f32 %v1647_v9, %v1350_v55  ;;  %v1532_v9 = vsel %vm1380_vm4, %v1522_v20, %v1531_v1 }
 0x155   : > { %v919_v41 = vpop.f32.mrf.mxu2 }
 0x156   : > { %v990_v46 = vadd.f32 %v919_v41, %v720_v24  ;;  %v722_v56 = vpop.f32.mrf.mxu1  ;;  %v1536_v41 = vrot.slane %v1534_v27, 1 }
 0x157   : > { %v723_v20 = vadd.f32 %v722_v56, %v3985_v28  ;;  %v4189_v52 = vpop.f32.mrf.mxu3  ;;  %v1374_v28 = vld [vmem:[%s3730_s28 + $0x98] sm:$0x3]  ;;  %v4201_v56 = vld [vmem:[%s3730_s28 + $0x88] sm:$0xff] }
 0x158   : > { %v1351_v4 = vadd.f32 %v1280_v42, %v990_v46  ;;  %v1652_v61 = vpop.f32.mrf.mxu0  ;;  %v4862_v42 = vunpack.c.l.b16 %v4179_v49  ;;  %v1539_v46 = vrot.slane %v1537_v29, 2  ;;  %v817_v19 = vrot.slane %v4201_v56, 1 }
 0x159   : > { %3298 = vmatmul.msk.bf16.gmra.mxu1 %vm481_vm2, %v3646_v2  ;;  %v1378_v2 = vunpack.c.l.b16 %v1374_v28 }
 0x15a   : > { %3317 = vmatmul.msk.bf16.gmra.mxu2 %vm481_vm2, %v816_v57  ;;  %v4184_v12 = vadd.f32 %v1649_v33, %v1351_v4  ;;  %v1181_v33 = vsel %vm783_vm3, %v1178_v54, %v1180_v23  ;;  %v4197_v58 = vpack.c.b16 %v4862_v42, %v2055_v48  ;;  %v2356_v4 = vshrl.u32 %v4193_v21, 16 }
 0x15b   : > { %3423 = vmatmul.msk.bf16.gmra.mxu0 %vm481_vm2, %v1532_v9  ;;  %v1540_v8 = vor.u32 %v1539_v46, %v1536_v41  ;;  %v818_v27 = vsel %vm783_vm3, %v815_v45, %v817_v19 }
 0x15c   : > { %4871 = vst [vmem:[#allocation10_spill] sm:$0xff] %v4184_v12  ;;  %3406 = vmatmul.msk.bf16.gmra.mxu3 %vm481_vm2, %v1181_v33  ;;  %v2348_v54 = vshrl.u32 %v4197_v58, 16  ;;  %v2351_v13 = vshll.u32 %v4197_v58, 16  ;;  %v4217_v12 = vpack.c.b16 %v1378_v2, %v1378_v2  ;;  %v819_v2 = vrot.slane %v3839_v40, 1 }
 0x15d   : > { %v922_v14 = vpop.f32.mrf.mxu2 }
 0x15e   : > { %v991_v55 = vadd.f32 %v922_v14, %v723_v20  ;;  %v724_v5 = vpop.f32.mrf.mxu1  ;;  %v2350_v29 = vrot.slane %v2348_v54, 2  ;;  %v2353_v14 = vrot.slane %v2351_v13, 3 }
 0x15f   : > { %v725_v9 = vadd.f32 %v724_v5, %v4000_v44  ;;  %v4212_v48 = vpop.f32.mrf.mxu3 }
 0x160   : > { %v1352_v6 = vadd.f32 %v1283_v36, %v991_v55  ;;  %v1654_v24 = vpop.f32.mrf.mxu0  ;;  %v2359_v36 = vshll.u32 %v4193_v21, 16  ;;  %v2358_v55 = vrot.slane %v2356_v4, 2  ;;  %v2354_v45 = vor.u32 %v2353_v14, %v2350_v29 }
 0x162   : > { %v4205_v57 = vadd.f32 %v1652_v61, %v1352_v6  ;;  %v2361_v33 = vrot.slane %v2359_v36, 3 }
 0x164   : > { %4872 = vst [vmem:[#allocation11_spill] sm:$0xff] %v4205_v57  ;;  %v1541_v57 = vsel %vm1380_vm4, %v1531_v1, %v1540_v8  ;;  %v2362_v5 = vor.u32 %v2361_v33, %v2358_v55  ;;  %v1546_v1 = vshll.u32 %v4217_v12, 16  ;;  %v820_v33 = vsel %vm783_vm3, %v817_v19, %v819_v2  ;;  %v4262_v2 = vld [vmem:[%s3730_s28 + $0x28] sm:$0xff] }
 0x165   : > { %v924_v23 = vpop.f32.mrf.mxu2 }
 0x166   : > { %v992_v20 = vadd.f32 %v924_v23, %v725_v9  ;;  %v727_v61 = vpop.f32.mrf.mxu1  ;;  %v2363_v13 = vsel %vm2346_vm5, %v2354_v45, %v2362_v5 }
 0x167   : > { %v728_v41 = vadd.f32 %v727_v61, %v4011_v43  ;;  %v4228_v28 = vpop.f32.mrf.mxu3  ;;  %v1548_v43 = vrot.slane %v1546_v1, 2  ;;  %v2709_v1 = vld [vmem:[%s3730_s28 + $0x10] sm:$0x8] }
 0x168   : > { %v1353_v6 = vadd.f32 %v4161_v51, %v992_v20  ;;  %v1657_v42 = vpop.f32.mrf.mxu0  ;;  %v1543_v51 = vshrl.u32 %v4217_v12, 16 }
 0x169   : > { %3299 = vmatmul.msk.bf16.gmra.mxu1 %vm481_vm2, %v4169_v62 }
 0x16a   : > { %3318 = vmatmul.msk.bf16.gmra.mxu2 %vm481_vm2, %v818_v27  ;;  %v4222_v44 = vadd.f32 %v1654_v24, %v1353_v6  ;;  %v4232_v24 = vld [vmem:[%s3730_s28 + $0x20] sm:$0xff]  ;;  %v1545_v36 = vrot.slane %v1543_v51, 1  ;;  %v1743_v6 = vld [vmem:[%s3730_s28 + $0x8] sm:$0xc] }
 0x16b   : > { %3424 = vmatmul.msk.bf16.gmra.mxu0 %vm481_vm2, %v1541_v57  ;;  %v2365_v23 = vshrl.u32 %v4232_v24, 16  ;;  %v2368_v20 = vshll.u32 %v4232_v24, 16 }
 0x16c   : > { %3533 = vmatmul.msk.bf16.vlgmr.msra.gmra.mxu3 %vm481_vm2, %v2363_v13  ;;  %v1549_v61 = vor.u32 %v1548_v43, %v1545_v36 }
 0x16d   : > { %v927_v46 = vpop.f32.mrf.mxu2  ;;  %v2370_v45 = vrot.slane %v2368_v20, 3  ;;  %v4874_v20 = vunpack.c.l.b16 %v4179_v49 }
 0x16e   : > { %v993_v54 = vadd.f32 %v927_v46, %v728_v41  ;;  %v729_v62 = vpop.f32.mrf.mxu1  ;;  %v1550_v51 = vsel %vm1380_vm4, %v1540_v8, %v1549_v61  ;;  %v3648_v61 = vld [vmem:[%s3730_s28 + $0x10] sm:$0xff] }
 0x16f   : > { %v730_v27 = vadd.f32 %v729_v62, %v4026_v7  ;;  %v1747_v7 = vunpack.c.l.b16 %v1743_v6  ;;  %v2717_v6 = vrot.slane %v4193_v21, 3 }
 0x170   : > { %v1354_v57 = vadd.f32 %v4173_v22, %v993_v54  ;;  %v1659_v4 = vpop.f32.mrf.mxu0  ;;  %v4242_v22 = vpop.f32.mrf.mxu3 }
 0x172   : > { %v4236_v9 = vadd.f32 %v1657_v42, %v1354_v57  ;;  %v2367_v42 = vrot.slane %v2365_v23, 2  ;;  %v4873_v57 = vunpack.c.l.b16 %v3861_v63  ;;  %v2111_v63 = vrot.slane %v4197_v58, 2 }
 0x174   : > { %v2371_v19 = vor.u32 %v2370_v45, %v2367_v42  ;;  %v1748_v36 = vpack.c.b16 %v4873_v57, %v1747_v7 }
 0x175   : > { %v929_v29 = vpop.f32.mrf.mxu2 }
 0x176   : > { %v994_v14 = vadd.f32 %v929_v29, %v730_v27  ;;  %v732_v55 = vpop.f32.mrf.mxu1  ;;  %v2372_v43 = vsel %vm2346_vm5, %v2362_v5, %v2371_v19  ;;  %v1751_v29 = vrot.slane %v3648_v61, 2  ;;  %v2374_v5 = vshrl.u32 %v4262_v2, 16 }
 0x177   : > { %v733_v54 = vadd.f32 %v732_v55, %v4035_v32  ;;  %v1750_v32 = vrot.slane %v1748_v36, 2  ;;  %v2112_v55 = vrot.slane %v4193_v21, 2 }
 0x178   : > { %v1355_v40 = vadd.f32 %v4189_v52, %v994_v14  ;;  %v1662_v41 = vpop.f32.mrf.mxu0  ;;  %v2713_v52 = vunpack.c.l.b16 %v2709_v1  ;;  %v4256_v13 = vpop.f32.mrf.mxu3  ;;  %v2376_v1 = vrot.slane %v2374_v5, 2 }
 0x179   : > { %3300 = vmatmul.msk.bf16.gmra.mxu1 %vm481_vm2, %v4201_v56  ;;  %v2113_v58 = vsel %vm1749_vm6, %v2111_v63, %v2112_v55  ;;  %v2114_v63 = vrot.slane %v4232_v24, 2 }
 0x17a   : > { %3319 = vmatmul.msk.bf16.gmra.mxu2 %vm481_vm2, %v820_v33  ;;  %v4252_v46 = vadd.f32 %v1659_v4, %v1355_v40  ;;  %v2714_v27 = vpack.c.b16 %v4874_v20, %v2713_v52  ;;  %v2377_v33 = vshll.u32 %v4262_v2, 16 }
 0x17b   : > { %3425 = vmatmul.msk.bf16.gmra.mxu0 %vm481_vm2, %v1550_v51  ;;  %v1752_v51 = vsel %vm1749_vm6, %v1750_v32, %v1751_v29  ;;  %v3649_v32 = vld [vmem:[%s3730_s28 + $0x18] sm:$0xff] }
 0x17c   : > { %3534 = vmatmul.msk.bf16.gmra.mxu3 %vm481_vm2, %v2372_v43  ;;  %v2716_v49 = vrot.slane %v2714_v27, 3  ;;  %v2379_v7 = vrot.slane %v2377_v33, 3  ;;  %v1753_v61 = vrot.slane %v3649_v32, 2 }
 0x17d   : > { %v932_v62 = vpop.f32.mrf.mxu2 }
 0x17e   : > { %v995_v8 = vadd.f32 %v932_v62, %v733_v54  ;;  %v734_v56 = vpop.f32.mrf.mxu1  ;;  %v2380_v62 = vor.u32 %v2379_v7, %v2376_v1 }
 0x180   : > { %v1356_v4 = vadd.f32 %v4212_v48, %v995_v8  ;;  %v1664_v23 = vpop.f32.mrf.mxu0  ;;  %v735_v48 = vadd.f32 %v734_v56, %v4048_v47  ;;  %v1303_v45 = vpop.f32.mrf.mxu3  ;;  %v2718_v47 = vsel %vm2715_vm7, %v2716_v49, %v2717_v6 }
 0x182   : > { %v4269_v14 = vadd.f32 %v1662_v41, %v1356_v4  ;;  %v4289_v4 = vld [vmem:[%s3730_s28 + $0x30] sm:$0xff] }
 0x183   : > { %v2386_v5 = vshll.u32 %v4289_v4, 16 }
 0x185   : > { %v934_v42 = vpop.f32.mrf.mxu2 }
 0x186   : > { %v996_v40 = vadd.f32 %v934_v42, %v735_v48  ;;  %v737_v41 = vpop.f32.mrf.mxu1 }
 0x187   : > { %v738_v8 = vadd.f32 %v737_v41, %v3946_v53  ;;  %v2383_v53 = vshrl.u32 %v4289_v4, 16  ;;  %v2115_v41 = vsel %vm1749_vm6, %v2112_v55, %v2114_v63 }
 0x188   : > { %v1357_v54 = vadd.f32 %v4228_v28, %v996_v40  ;;  %v1667_v52 = vpop.f32.mrf.mxu0  ;;  %v1305_v36 = vpop.f32.mrf.mxu3  ;;  %v2381_v28 = vsel %vm2346_vm5, %v2371_v19, %v2380_v62  ;;  %v2719_v19 = vrot.slane %v4232_v24, 3  ;;  %v1754_v40 = vsel %vm1749_vm6, %v1751_v29, %v1753_v61 }
 0x189   : > { %3427 = vmatmul.msk.bf16.vlgmr.msra.gmra.mxu1 %vm481_vm2, %v1752_v51  ;;  %v2385_v51 = vrot.slane %v2383_v53, 2 }
 0x18a   : > { %3514 = vmatmul.msk.bf16.vlgmr.msra.gmra.mxu2 %vm481_vm2, %v2113_v58  ;;  %v4283_v21 = vadd.f32 %v1664_v23, %v1357_v54  ;;  %v2388_v58 = vrot.slane %v2386_v5, 3  ;;  %v2720_v54 = vsel %vm2715_vm7, %v2717_v6, %v2719_v19 }
 0x18b   : > { %3552 = vmatmul.msk.bf16.vlgmr.msra.gmra.mxu0 %vm481_vm2, %v2718_v47 }
 0x18c   : > { %3535 = vmatmul.msk.bf16.gmra.mxu3 %vm481_vm2, %v2381_v28  ;;  %v2389_v24 = vor.u32 %v2388_v58, %v2385_v51  ;;  %v3650_v28 = vld [vmem:[%s3730_s28 + $0x20] sm:$0xff] }
 0x18d   : > { %v937_v57 = vpop.f32.mrf.mxu2 }
 0x18e   : > { %v997_v56 = vadd.f32 %v937_v57, %v738_v8  ;;  %v739_v43 = vpop.f32.mrf.mxu1  ;;  %v4313_v57 = vld [vmem:[%s3730_s28 + $0x38] sm:$0xff] }
 0x18f   : > { %v740_v33 = vadd.f32 %v739_v43, %v3955_v59  ;;  %v2395_v32 = vshll.u32 %v4313_v57, 16 }
 0x190   : > { %v1358_v20 = vadd.f32 %v4242_v22, %v997_v56  ;;  %v1669_v27 = vpop.f32.mrf.mxu0  ;;  %v1308_v49 = vpop.f32.mrf.mxu3 }
 0x192   : > { %v4293_v23 = vadd.f32 %v1667_v52, %v1358_v20  ;;  %v1755_v20 = vrot.slane %v3650_v28, 2 }
 0x195   : > { %v939_v48 = vpop.f32.mrf.mxu2 }
 0x196   : > { %v998_v22 = vadd.f32 %v939_v48, %v740_v33  ;;  %v742_v42 = vpop.f32.mrf.mxu1 }
 0x197   : > { %v743_v29 = vadd.f32 %v742_v42, %v3970_v16  ;;  %v2392_v16 = vshrl.u32 %v4313_v57, 16 }
 0x198   : > { %v1359_v1 = vadd.f32 %v4256_v13, %v998_v22  ;;  %v1672_v7 = vpop.f32.mrf.mxu0  ;;  %v1310_v52 = vpop.f32.mrf.mxu3  ;;  %v2390_v13 = vsel %vm2346_vm5, %v2380_v62, %v2389_v24  ;;  %v2721_v62 = vrot.slane %v4262_v2, 3  ;;  %v1756_v22 = vsel %vm1749_vm6, %v1753_v61, %v1755_v20 }
 0x199   : > { %3428 = vmatmul.msk.bf16.gmra.mxu1 %vm481_vm2, %v1754_v40  ;;  %v2394_v40 = vrot.slane %v2392_v16, 2 }
 0x19a   : > { %3515 = vmatmul.msk.bf16.gmra.mxu2 %vm481_vm2, %v2115_v41  ;;  %v4307_v59 = vadd.f32 %v1669_v27, %v1359_v1  ;;  %v2116_v27 = vrot.slane %v4262_v2, 2  ;;  %v2397_v41 = vrot.slane %v2395_v32, 3  ;;  %v2722_v1 = vsel %vm2715_vm7, %v2719_v19, %v2721_v62 }
 0x19b   : > { %3553 = vmatmul.msk.bf16.gmra.mxu0 %vm481_vm2, %v2720_v54 }
 0x19c   : > { %3536 = vmatmul.msk.bf16.gmra.mxu3 %vm481_vm2, %v2390_v13  ;;  %v2117_v42 = vsel %vm1749_vm6, %v2114_v63, %v2116_v27  ;;  %v2398_v2 = vor.u32 %v2397_v41, %v2394_v40  ;;  %v3651_v13 = vld [vmem:[%s3730_s28 + $0x28] sm:$0xff] }
 0x19d   : > { %v942_v55 = vpop.f32.mrf.mxu2 }
 0x19e   : > { %v999_v47 = vadd.f32 %v942_v55, %v743_v29  ;;  %v744_v8 = vpop.f32.mrf.mxu1  ;;  %v4335_v55 = vld [vmem:[%s3730_s28 + $0x40] sm:$0xff] }
 0x19f   : > { %v745_v53 = vadd.f32 %v744_v8, %v3981_v25  ;;  %v2404_v28 = vshll.u32 %v4335_v55, 16 }
 0x1a0   : > { %v1360_v6 = vadd.f32 %v1303_v45, %v999_v47  ;;  %v1674_v56 = vpop.f32.mrf.mxu0  ;;  %v1313_v33 = vpop.f32.mrf.mxu3 }
 0x1a2   : > { %v4316_v43 = vadd.f32 %v1672_v7, %v1360_v6  ;;  %v1757_v6 = vrot.slane %v3651_v13, 2 }
 0x1a5   : > { %v944_v5 = vpop.f32.mrf.mxu2 }
 0x1a6   : > { %v1000_v45 = vadd.f32 %v944_v5, %v745_v53  ;;  %v747_v48 = vpop.f32.mrf.mxu1 }
 0x1a7   : > { %v748_v61 = vadd.f32 %v747_v48, %v3996_v39  ;;  %v2401_v39 = vshrl.u32 %v4335_v55, 16 }
 0x1a8   : > { %v1361_v51 = vadd.f32 %v1305_v36, %v1000_v45  ;;  %v1677_v58 = vpop.f32.mrf.mxu0  ;;  %v1315_v7 = vpop.f32.mrf.mxu3  ;;  %v2399_v36 = vsel %vm2346_vm5, %v2389_v24, %v2398_v2  ;;  %v2723_v24 = vrot.slane %v4289_v4, 3  ;;  %v1758_v45 = vsel %vm1749_vm6, %v1755_v20, %v1757_v6 }
 0x1a9   : > { %3429 = vmatmul.msk.bf16.gmra.mxu1 %vm481_vm2, %v1756_v22  ;;  %v2403_v22 = vrot.slane %v2401_v39, 2 }
 0x1aa   : > { %3516 = vmatmul.msk.bf16.gmra.mxu2 %vm481_vm2, %v2117_v42  ;;  %v4329_v25 = vadd.f32 %v1674_v56, %v1361_v51  ;;  %v2118_v56 = vrot.slane %v4289_v4, 2  ;;  %v2406_v42 = vrot.slane %v2404_v28, 3  ;;  %v2724_v51 = vsel %vm2715_vm7, %v2721_v62, %v2723_v24 }
 0x1ab   : > { %3554 = vmatmul.msk.bf16.gmra.mxu0 %vm481_vm2, %v2722_v1 }
 0x1ac   : > { %3537 = vmatmul.msk.bf16.gmra.mxu3 %vm481_vm2, %v2399_v36  ;;  %v2119_v48 = vsel %vm1749_vm6, %v2116_v27, %v2118_v56  ;;  %v2407_v4 = vor.u32 %v2406_v42, %v2403_v22  ;;  %v3652_v36 = vld [vmem:[%s3730_s28 + $0x30] sm:$0xff] }
 0x1ad   : > { %v947_v63 = vpop.f32.mrf.mxu2 }
 0x1ae   : > { %v1001_v54 = vadd.f32 %v947_v63, %v748_v61  ;;  %v749_v29 = vpop.f32.mrf.mxu1  ;;  %v4357_v63 = vld [vmem:[%s3730_s28 + $0x48] sm:$0xff] }
 0x1af   : > { %v750_v16 = vadd.f32 %v749_v29, %v4007_v50  ;;  %v2413_v13 = vshll.u32 %v4357_v63, 16 }
 0x1b0   : > { %v1362_v19 = vadd.f32 %v1308_v49, %v1001_v54  ;;  %v1679_v47 = vpop.f32.mrf.mxu0  ;;  %v1318_v53 = vpop.f32.mrf.mxu3 }
 0x1b2   : > { %v4338_v8 = vadd.f32 %v1677_v58, %v1362_v19  ;;  %v1759_v19 = vrot.slane %v3652_v36, 2  ;;  %v2122_v36 = vrot.slane %v4335_v55, 2 }
 0x1b5   : > { %v949_v32 = vpop.f32.mrf.mxu2 }
 0x1b6   : > { %v1002_v49 = vadd.f32 %v949_v32, %v750_v16  ;;  %v752_v5 = vpop.f32.mrf.mxu1 }
 0x1b7   : > { %v753_v20 = vadd.f32 %v752_v5, %v4022_v3  ;;  %v2410_v3 = vshrl.u32 %v4357_v63, 16 }
 0x1b8   : > { %v1363_v40 = vadd.f32 %v1310_v52, %v1002_v49  ;;  %v1682_v41 = vpop.f32.mrf.mxu0  ;;  %v1320_v58 = vpop.f32.mrf.mxu3  ;;  %v2408_v52 = vsel %vm2346_vm5, %v2398_v2, %v2407_v4  ;;  %v2725_v2 = vrot.slane %v4313_v57, 3  ;;  %v1760_v49 = vsel %vm1749_vm6, %v1757_v6, %v1759_v19  ;;  %v4875_v6 = vld [vmem:[#allocation8_spill] sm:$0xff] }
 0x1b9   : > { %3430 = vmatmul.msk.bf16.gmra.mxu1 %vm481_vm2, %v1758_v45  ;;  %v2412_v45 = vrot.slane %v2410_v3, 2 }
 0x1ba   : > { %3517 = vmatmul.msk.bf16.gmra.mxu2 %vm481_vm2, %v2119_v48  ;;  %v4351_v50 = vadd.f32 %v1679_v47, %v1363_v40  ;;  %v2120_v47 = vrot.slane %v4313_v57, 2  ;;  %v2415_v48 = vrot.slane %v2413_v13, 3  ;;  %v2726_v40 = vsel %vm2715_vm7, %v2723_v24, %v2725_v2 }
 0x1bb   : > { %3555 = vmatmul.msk.bf16.gmra.mxu0 %vm481_vm2, %v2724_v51 }
 0x1bc   : > { %3538 = vmatmul.msk.bf16.gmra.mxu3 %vm481_vm2, %v2408_v52  ;;  %v2121_v5 = vsel %vm1749_vm6, %v2118_v56, %v2120_v47  ;;  %v2416_v57 = vor.u32 %v2415_v48, %v2412_v45  ;;  %v2123_v45 = vsel %vm1749_vm6, %v2120_v47, %v2122_v36 }
 0x1bd   : > { %v952_v27 = vpop.f32.mrf.mxu2 }
 0x1be   : > { %v1003_v1 = vadd.f32 %v952_v27, %v753_v20  ;;  %v754_v61 = vpop.f32.mrf.mxu1 }
 0x1bf   : > { %v755_v39 = vadd.f32 %v754_v61, %v4033_v15 }
 0x1c0   : > { %v1364_v62 = vadd.f32 %v1313_v33, %v1003_v1  ;;  %v1684_v54 = vpop.f32.mrf.mxu0  ;;  %v1323_v16 = vpop.f32.mrf.mxu3  ;;  %v4379_v1 = vld [vmem:[%s3730_s28 + $0x50] sm:$0xff] }
 0x1c1   : > { %v2419_v3 = vshrl.u32 %v4379_v1, 16  ;;  %v2422_v13 = vshll.u32 %v4379_v1, 16 }
 0x1c2   : > { %v4360_v29 = vadd.f32 %v1682_v41, %v1364_v62  ;;  %v3653_v62 = vld [vmem:[%s3730_s28 + $0x38] sm:$0xff] }
 0x1c3   : > { %v2421_v48 = vrot.slane %v2419_v3, 2 }
 0x1c5   : > { %v954_v28 = vpop.f32.mrf.mxu2 }
 0x1c6   : > { %v1004_v33 = vadd.f32 %v954_v28, %v755_v39  ;;  %v757_v32 = vpop.f32.mrf.mxu1  ;;  %v4876_v39 = vld [vmem:[#allocation9_spill] sm:$0xff] }
 0x1c7   : > { %v758_v41 = vadd.f32 %v757_v32, %v4875_v6 }
 0x1c8   : > { %v1365_v22 = vadd.f32 %v1315_v7, %v1004_v33  ;;  %v1687_v42 = vpop.f32.mrf.mxu0  ;;  %v1325_v51 = vpop.f32.mrf.mxu3  ;;  %v2417_v7 = vsel %vm2346_vm5, %v2407_v4, %v2416_v57  ;;  %v2727_v4 = vrot.slane %v4335_v55, 3 }
 0x1c9   : > { %3431 = vmatmul.msk.bf16.gmra.mxu1 %vm481_vm2, %v1760_v49 }
 0x1ca   : > { %3518 = vmatmul.msk.bf16.gmra.mxu2 %vm481_vm2, %v2121_v5  ;;  %v4373_v15 = vadd.f32 %v1684_v54, %v1365_v22  ;;  %v1761_v54 = vrot.slane %v3653_v62, 2  ;;  %v2424_v22 = vrot.slane %v2422_v13, 3  ;;  %v2728_v6 = vsel %vm2715_vm7, %v2725_v2, %v2727_v4 }
 0x1cb   : > { %3556 = vmatmul.msk.bf16.gmra.mxu0 %vm481_vm2, %v2726_v40 }
 0x1cc   : > { %3539 = vmatmul.msk.bf16.gmra.mxu3 %vm481_vm2, %v2417_v7  ;;  %v1762_v5 = vsel %vm1749_vm6, %v1759_v19, %v1761_v54  ;;  %v4877_v19 = vld [vmem:[#allocation2_spill] sm:$0xff] }
 0x1cd   : > { %v957_v56 = vpop.f32.mrf.mxu2 }
 0x1ce   : > { %v1005_v20 = vadd.f32 %v957_v56, %v758_v41  ;;  %v759_v27 = vpop.f32.mrf.mxu1  ;;  %v2425_v41 = vor.u32 %v2424_v22, %v2421_v48 }
 0x1cf   : > { %v760_v28 = vadd.f32 %v759_v27, %v4876_v39  ;;  %v2124_v39 = vrot.slane %v4357_v63, 2 }
 0x1d0   : > { %v1366_v24 = vadd.f32 %v1318_v53, %v1005_v20  ;;  %v1689_v61 = vpop.f32.mrf.mxu0  ;;  %v1328_v32 = vpop.f32.mrf.mxu3 }
 0x1d2   : > { %v4382_v52 = vadd.f32 %v1687_v42, %v1366_v24  ;;  %v4401_v24 = vld [vmem:[%s3730_s28 + $0x58] sm:$0xff] }
 0x1d5   : > { %v959_v33 = vpop.f32.mrf.mxu2 }
 0x1d6   : > { %v1006_v53 = vadd.f32 %v959_v33, %v760_v28  ;;  %v762_v49 = vpop.f32.mrf.mxu1  ;;  %v2428_v28 = vshrl.u32 %v4401_v24, 16  ;;  %v2431_v33 = vshll.u32 %v4401_v24, 16 }
 0x1d7   : > { %v763_v56 = vadd.f32 %v762_v49, %v4877_v19 }
 0x1d8   : > { %v1367_v42 = vadd.f32 %v1320_v58, %v1006_v53  ;;  %v1692_v40 = vpop.f32.mrf.mxu0  ;;  %v1330_v20 = vpop.f32.mrf.mxu3  ;;  %v2426_v58 = vsel %vm2346_vm5, %v2416_v57, %v2425_v41  ;;  %v4878_v53 = vld [vmem:[#allocation3_spill] sm:$0xff]  ;;  %v2729_v57 = vrot.slane %v4357_v63, 3 }
 0x1d9   : > { %3432 = vmatmul.msk.bf16.gmra.mxu1 %vm481_vm2, %v1762_v5 }
 0x1da   : > { %3519 = vmatmul.msk.bf16.gmra.mxu2 %vm481_vm2, %v2123_v45  ;;  %v4395_v55 = vadd.f32 %v1689_v61, %v1367_v42  ;;  %v3654_v61 = vld [vmem:[%s3730_s28 + $0x40] sm:$0xff]  ;;  %v2125_v42 = vsel %vm1749_vm6, %v2122_v36, %v2124_v39 }
 0x1db   : > { %3557 = vmatmul.msk.bf16.gmra.mxu0 %vm481_vm2, %v2728_v6  ;;  %v1763_v13 = vrot.slane %v3654_v61, 2  ;;  %v2433_v6 = vrot.slane %v2431_v33, 3 }
 0x1dc   : > { %3540 = vmatmul.msk.bf16.gmra.mxu3 %vm481_vm2, %v2426_v58 }
 0x1dd   : > { %v962_v47 = vpop.f32.mrf.mxu2  ;;  %v1764_v22 = vsel %vm1749_vm6, %v1761_v54, %v1763_v13  ;;  %v4879_v54 = vld [vmem:[#allocation4_spill] sm:$0xff] }
 0x1de   : > { %v1007_v27 = vadd.f32 %v962_v47, %v763_v56  ;;  %v764_v7 = vpop.f32.mrf.mxu1  ;;  %v2730_v47 = vsel %vm2715_vm7, %v2727_v4, %v2729_v57 }
 0x1df   : > { %v765_v49 = vadd.f32 %v764_v7, %v4878_v53 }
 0x1e0   : > { %v1368_v2 = vadd.f32 %v1323_v16, %v1007_v27  ;;  %v1694_v62 = vpop.f32.mrf.mxu0  ;;  %v1333_v45 = vpop.f32.mrf.mxu3 }
 0x1e2   : > { %v4404_v3 = vadd.f32 %v1692_v40, %v1368_v2  ;;  %v2430_v40 = vrot.slane %v2428_v28, 2  ;;  %v4423_v28 = vld [vmem:[%s3730_s28 + $0x60] sm:$0xff] }
 0x1e4   : > { %v2434_v27 = vor.u32 %v2433_v6, %v2430_v40 }
 0x1e5   : > { %v964_v5 = vpop.f32.mrf.mxu2 }
 0x1e6   : > { %v1008_v16 = vadd.f32 %v964_v5, %v765_v49  ;;  %v767_v48 = vpop.f32.mrf.mxu1  ;;  %v2126_v5 = vrot.slane %v4379_v1, 2 }
 0x1e7   : > { %v768_v7 = vadd.f32 %v767_v48, %v4879_v54  ;;  %v2440_v48 = vshll.u32 %v4423_v28, 16 }
 0x1e8   : > { %v1369_v19 = vadd.f32 %v1325_v51, %v1008_v16  ;;  %v1697_v56 = vpop.f32.mrf.mxu0  ;;  %v1335_v58 = vpop.f32.mrf.mxu3  ;;  %v2435_v51 = vsel %vm2346_vm5, %v2425_v41, %v2434_v27  ;;  %v2437_v16 = vshrl.u32 %v4423_v28, 16  ;;  %v2731_v41 = vrot.slane %v4379_v1, 3 }
 0x1e9   : > { %3433 = vmatmul.msk.bf16.gmra.mxu1 %vm481_vm2, %v1764_v22  ;;  %v4880_v22 = vld [vmem:[#allocation5_spill] sm:$0xff] }
 0x1ea   : > { %3520 = vmatmul.msk.bf16.gmra.mxu2 %vm481_vm2, %v2125_v42  ;;  %v4417_v63 = vadd.f32 %v1694_v62, %v1369_v19  ;;  %v3655_v62 = vld [vmem:[%s3730_s28 + $0x48] sm:$0xff]  ;;  %v2439_v54 = vrot.slane %v2437_v16, 2 }
 0x1eb   : > { %3558 = vmatmul.msk.bf16.gmra.mxu0 %vm481_vm2, %v2730_v47  ;;  %v1765_v49 = vrot.slane %v3655_v62, 2 }
 0x1ec   : > { %3541 = vmatmul.msk.bf16.gmra.mxu3 %vm481_vm2, %v2435_v51  ;;  %v2732_v51 = vsel %vm2715_vm7, %v2729_v57, %v2731_v41  ;;  %v4447_v57 = vld [vmem:[%s3730_s28 + $0x68] sm:$0xff] }
 0x1ed   : > { %v967_v36 = vpop.f32.mrf.mxu2  ;;  %v1766_v47 = vsel %vm1749_vm6, %v1763_v13, %v1765_v49  ;;  %v4881_v13 = vld [vmem:[#allocation6_spill] sm:$0xff] }
 0x1ee   : > { %v1009_v2 = vadd.f32 %v967_v36, %v768_v7  ;;  %v769_v61 = vpop.f32.mrf.mxu1  ;;  %v2442_v7 = vrot.slane %v2440_v48, 3 }
 0x1ef   : > { %v770_v42 = vadd.f32 %v769_v61, %v4880_v22 }
 0x1f0   : > { %v1370_v4 = vadd.f32 %v1328_v32, %v1009_v2  ;;  %v1699_v33 = vpop.f32.mrf.mxu0  ;;  %v2583_v6 = vpop.f32.mrf.mxu3  ;;  %v2443_v61 = vor.u32 %v2442_v7, %v2439_v54  ;;  %v4883_v54 = vld [vmem:[#allocation7_spill] sm:$0xff] }
 0x1f2   : > { %v4426_v53 = vadd.f32 %v1697_v56, %v1370_v4  ;;  %v2127_v56 = vsel %vm1749_vm6, %v2124_v39, %v2126_v5  ;;  %v2444_v48 = vsel %vm2346_vm5, %v2434_v27, %v2443_v61  ;;  %v2733_v27 = vrot.slane %v4401_v24, 3 }
 0x1f5   : > { %v969_v40 = vpop.f32.mrf.mxu2 }
 0x1f6   : > { %v1010_v32 = vadd.f32 %v969_v40, %v770_v42  ;;  %v772_v19 = vpop.f32.mrf.mxu1  ;;  %v3656_v40 = vld [vmem:[%s3730_s28 + $0x50] sm:$0xff] }
 0x1f7   : > { %v773_v4 = vadd.f32 %v772_v19, %v4881_v13  ;;  %v2446_v19 = vshrl.u32 %v4447_v57, 16 }
 0x1f8   : > { %v1371_v36 = vadd.f32 %v1330_v20, %v1010_v32  ;;  %v1702_v2 = vpop.f32.mrf.mxu0  ;;  %v4443_v62 = vpop.f32.mrf.mxu3  ;;  %v1767_v32 = vrot.slane %v3656_v40, 2  ;;  %v2734_v40 = vsel %vm2715_vm7, %v2731_v41, %v2733_v27  ;;  %v4473_v41 = vld [vmem:[%s3730_s28 + $0x70] sm:$0xff] }
 0x1f9   : > { %3434 = vmatmul.msk.bf16.gmra.mxu1 %vm481_vm2, %v1766_v47  ;;  %v2128_v47 = vrot.slane %v4401_v24, 2 }
 0x1fa   : > { %3521 = vmatmul.msk.bf16.gmra.mxu2 %vm481_vm2, %v2127_v56  ;;  %v4439_v1 = vadd.f32 %v1699_v33, %v1371_v36  ;;  %v2449_v56 = vshll.u32 %v4447_v57, 16 }
 0x1fb   : > { %3559 = vmatmul.msk.bf16.gmra.mxu0 %vm481_vm2, %v2732_v51 }
 0x1fc   : > { %3542 = vmatmul.msk.bf16.gmra.mxu3 %vm481_vm2, %v2444_v48 }
 0x1fd   : > { %v972_v39 = vpop.f32.mrf.mxu2 }
 0x1fe   : > { %v1011_v16 = vadd.f32 %v972_v39, %v773_v4  ;;  %v774_v20 = vpop.f32.mrf.mxu1  ;;  %v2129_v4 = vsel %vm1749_vm6, %v2126_v5, %v2128_v47  ;;  %v2448_v39 = vrot.slane %v2446_v19, 2 }
 0x1ff   : > { %v775_v7 = vadd.f32 %v774_v20, %v4883_v54 }
 0x200   : > { %v1372_v22 = vadd.f32 %v1333_v45, %v1011_v16  ;;  %v1704_v42 = vpop.f32.mrf.mxu0  ;;  %v4458_v51 = vpop.f32.mrf.mxu3  ;;  %v2451_v16 = vrot.slane %v2449_v56, 3 }
 0x202   : > { %v4450_v33 = vadd.f32 %v1702_v2, %v1372_v22  ;;  %v1768_v2 = vsel %vm1749_vm6, %v1765_v49, %v1767_v32  ;;  %v2452_v20 = vor.u32 %v2451_v16, %v2448_v39 }
 0x204   : > { %4882 = vst [vmem:[#allocation8_spill] sm:$0xff] %v4450_v33  ;;  %v2453_v54 = vsel %vm2346_vm5, %v2443_v61, %v2452_v20 }
 0x205   : > { %v974_v36 = vpop.f32.mrf.mxu2 }
 0x206   : > { %v1012_v45 = vadd.f32 %v974_v36, %v775_v7  ;;  %v1853_v13 = vpop.f32.mrf.mxu1 }
 0x207   : > { %v1943_v49 = vadd.f32 %v1853_v13, %v4067_v34  ;;  %v4483_v34 = vld [vmem:[%s4859_s3] ss:$0 sm:$0xff]  ;;  %v3657_v13 = vld [vmem:[%s3730_s28 + $0x58] sm:$0xff] }
 0x208   : > { %v1373_v48 = vadd.f32 %v1335_v58, %v1012_v45  ;;  %v2819_v22 = vpop.f32.mrf.mxu0  ;;  %v4469_v19 = vpop.f32.mrf.mxu3  ;;  %v1769_v61 = vrot.slane %v3657_v13, 2 }
 0x209   : > { %3435 = vmatmul.msk.bf16.gmra.mxu1 %vm481_vm2, %v1768_v2  ;;  %v2130_v2 = vrot.slane %v4423_v28, 2 }
 0x20a   : > { %3522 = vmatmul.msk.bf16.gmra.mxu2 %vm481_vm2, %v2129_v4  ;;  %v4465_v24 = vadd.f32 %v1704_v42, %v1373_v48  ;;  %v4478_v42 = vld [vmem:[%s4858_s2] ss:$0 sm:$0xff]  ;;  %v2458_v4 = vshll.u32 %v4473_v41, 16  ;;  %v2735_v48 = vrot.slane %v4423_v28, 3 }
 0x20b   : > { %3560 = vmatmul.msk.bf16.gmra.mxu0 %vm481_vm2, %v2734_v40 }
 0x20c   : > { %4884 = vst [vmem:[#allocation9_spill] sm:$0xff] %v4465_v24  ;;  %3543 = vmatmul.msk.bf16.gmra.mxu3 %vm481_vm2, %v2453_v54  ;;  %v1770_v54 = vsel %vm1749_vm6, %v1767_v32, %v1769_v61  ;;  %v2460_v24 = vrot.slane %v2458_v4, 3  ;;  %v2736_v28 = vsel %vm2715_vm7, %v2733_v27, %v2735_v48 }
 0x20d   : > { %v2214_v5 = vpop.f32.mrf.mxu2 }
 0x20e   : > { %v2304_v56 = vadd.f32 %v2214_v5, %v1943_v49  ;;  %v1855_v58 = vpop.f32.mrf.mxu1 }
 0x20f   : > { %v1944_v16 = vadd.f32 %v1855_v58, %v4077_v26 }
 0x210   : > { %v2673_v7 = vadd.f32 %v2583_v6, %v2304_v56  ;;  %v2821_v36 = vpop.f32.mrf.mxu0  ;;  %v2455_v6 = vshrl.u32 %v4473_v41, 16  ;;  %v4494_v40 = vpop.f32.mrf.mxu3 }
 0x212   : > { %v2909_v45 = vadd.f32 %v2819_v22, %v2673_v7  ;;  %v2131_v7 = vsel %vm1749_vm6, %v2128_v47, %v2130_v2  ;;  %v2457_v13 = vrot.slane %v2455_v6, 2 }
 0x214   : > { %v2949_v39 = vmul.f32 %v4478_v42, %v2909_v45 }
 0x215   : > { %v2216_v22 = vpop.f32.mrf.mxu2 }
 0x216   : > { %v2989_v49 = vadd.f32 %v4483_v34, %v2949_v39  ;;  %v2305_v5 = vadd.f32 %v2216_v22, %v1944_v16  ;;  %v1858_v56 = vpop.f32.mrf.mxu1  ;;  %v4518_v22 = vld [vmem:[%s3730_s28 + $0x78] sm:$0xff] }
 0x217   : > { %v1945_v27 = vadd.f32 %v1858_v56, %v4083_v18  ;;  %v3658_v18 = vld [vmem:[%s3730_s28 + $0x60] sm:$0xff] }
 0x218   : > { %v3025_v33 = vmax.f32 %v2989_v49, 0.0  ;;  %v2674_v45 = vadd.f32 %v4443_v62, %v2305_v5  ;;  %v2824_v26 = vpop.f32.mrf.mxu0  ;;  %v2461_v62 = vor.u32 %v2460_v24, %v2457_v13  ;;  %v4513_v4 = vpop.f32.mrf.mxu3  ;;  %v1771_v56 = vrot.slane %v3658_v18, 2 }
 0x219   : > { %3436 = vmatmul.msk.bf16.gmra.mxu1 %vm481_vm2, %v1770_v54  ;;  %v2132_v13 = vrot.slane %v4447_v57, 2 }
 0x21a   : > { %v3061_v58 = vpack.c.bf16 %v3025_v33, %v3025_v33  ;;  %v2910_v32 = vadd.f32 %v2821_v36, %v2674_v45  ;;  %3523 = vmatmul.msk.bf16.gmra.mxu2 %vm481_vm2, %v2131_v7  ;;  %v2462_v16 = vsel %vm2346_vm5, %v2452_v20, %v2461_v62  ;;  %v2464_v45 = vshrl.u32 %v4518_v22, 16 }
 0x21b   : > { %3561 = vmatmul.msk.bf16.gmra.mxu0 %vm481_vm2, %v2736_v28  ;;  %v2467_v28 = vshll.u32 %v4518_v22, 16 }
 0x21c   : > { %3098 = vst.msk [vmem:[%s4504_s21] sm:$0xf] %vm3097_vm8, %v3061_v58  ;;  %v2950_v47 = vmul.f32 %v4478_v42, %v2910_v32  ;;  %3544 = vmatmul.msk.bf16.gmra.mxu3 %vm481_vm2, %v2462_v16  ;;  %v2466_v16 = vrot.slane %v2464_v45, 2 }
 0x21d   : > { %v2219_v6 = vpop.f32.mrf.mxu2 }
 0x21e   : > { %v2990_v33 = vadd.f32 %v4483_v34, %v2950_v47  ;;  %v2306_v36 = vadd.f32 %v2219_v6, %v1945_v27  ;;  %v1860_v39 = vpop.f32.mrf.mxu1 }
 0x21f   : > { %v1946_v58 = vadd.f32 %v1860_v39, %v4093_v30 }
 0x220   : > { %v3026_v24 = vmax.f32 %v2990_v33, 0.0  ;;  %v2675_v49 = vadd.f32 %v4458_v51, %v2306_v36  ;;  %v2826_v5 = vpop.f32.mrf.mxu0  ;;  %v2737_v51 = vrot.slane %v4447_v57, 3  ;;  %v1772_v33 = vsel %vm1749_vm6, %v1769_v61, %v1771_v56 }
 0x221   : > { %v2133_v36 = vsel %vm1749_vm6, %v2130_v2, %v2132_v13 }
 0x222   : > { %v3062_v54 = vpack.c.bf16 %v3026_v24, %v3026_v24  ;;  %v2911_v7 = vadd.f32 %v2824_v26, %v2675_v49  ;;  %v4531_v26 = vpop.f32.mrf.mxu3  ;;  %v2469_v24 = vrot.slane %v2467_v28, 3  ;;  %v2738_v57 = vsel %vm2715_vm7, %v2735_v48, %v2737_v51 }
 0x224   : > { %3099 = vst.msk [vmem:[%s4504_s21 + $0x4] sm:$0xf] %vm3097_vm8, %v3062_v54  ;;  %v2951_v20 = vmul.f32 %v4478_v42, %v2911_v7  ;;  %v2470_v61 = vor.u32 %v2469_v24, %v2466_v16  ;;  %v2134_v16 = vrot.slane %v4473_v41, 2 }
 0x225   : > { %v2221_v32 = vpop.f32.mrf.mxu2 }
 0x226   : > { %v2991_v47 = vadd.f32 %v4483_v34, %v2951_v20  ;;  %v2307_v27 = vadd.f32 %v2221_v32, %v1946_v58  ;;  %v1863_v6 = vpop.f32.mrf.mxu1  ;;  %v2471_v20 = vsel %vm2346_vm5, %v2461_v62, %v2470_v61  ;;  %v4550_v58 = vld [vmem:[%s3730_s28 + $0x80] sm:$0xff] }
 0x227   : > { %v2473_v24 = vshrl.u32 %v4550_v58, 16 }
 0x228   : > { %v3027_v49 = vmax.f32 %v2991_v47, 0.0  ;;  %v2676_v54 = vadd.f32 %v4469_v19, %v2307_v27  ;;  %v2829_v30 = vpop.f32.mrf.mxu0  ;;  %v1947_v19 = vadd.f32 %v1863_v6, %v4099_v60  ;;  %v3659_v60 = vld [vmem:[%s3730_s28 + $0x68] sm:$0xff] }
 0x229   : > { %3437 = vmatmul.msk.bf16.gmra.mxu1 %vm481_vm2, %v1772_v33  ;;  %v1773_v6 = vrot.slane %v3659_v60, 2 }
 0x22a   : > { %v3063_v39 = vpack.c.bf16 %v3027_v49, %v3027_v49  ;;  %v2912_v7 = vadd.f32 %v2826_v5, %v2676_v54  ;;  %3524 = vmatmul.msk.bf16.gmra.mxu2 %vm481_vm2, %v2133_v36  ;;  %v4545_v45 = vpop.f32.mrf.mxu3  ;;  %v2476_v49 = vshll.u32 %v4550_v58, 16 }
 0x22b   : > { %3562 = vmatmul.msk.bf16.gmra.mxu0 %vm481_vm2, %v2738_v57 }
 0x22c   : > { %3100 = vst.msk [vmem:[%s4504_s21 + $0x8] sm:$0xf] %vm3097_vm8, %v3063_v39  ;;  %v2952_v2 = vmul.f32 %v4478_v42, %v2912_v7  ;;  %3545 = vmatmul.msk.bf16.gmra.mxu3 %vm481_vm2, %v2471_v20 }
 0x22d   : > { %v2224_v18 = vpop.f32.mrf.mxu2 }
 0x22e   : > { %v2992_v48 = vadd.f32 %v4483_v34, %v2952_v2  ;;  %v2308_v5 = vadd.f32 %v2224_v18, %v1947_v19  ;;  %v1865_v28 = vpop.f32.mrf.mxu1  ;;  %v1774_v19 = vsel %vm1749_vm6, %v1771_v56, %v1773_v6  ;;  %v2135_v18 = vsel %vm1749_vm6, %v2132_v13, %v2134_v16 }
 0x22f   : > { %v1948_v54 = vadd.f32 %v1865_v28, %v4109_v37 }
 0x230   : > { %v3028_v32 = vmax.f32 %v2992_v48, 0.0  ;;  %v2677_v47 = vadd.f32 %v4494_v40, %v2308_v5  ;;  %v2831_v27 = vpop.f32.mrf.mxu0  ;;  %v2739_v40 = vrot.slane %v4473_v41, 3  ;;  %v2475_v48 = vrot.slane %v2473_v24, 2 }
 0x231   : > { %v2478_v5 = vrot.slane %v2476_v49, 3  ;;  %v4582_v49 = vld [vmem:[%s3730_s28 + $0x88] sm:$0xff] }
 0x232   : > { %v3064_v33 = vpack.c.bf16 %v3028_v32, %v3028_v32  ;;  %v2913_v36 = vadd.f32 %v2829_v30, %v2677_v47  ;;  %v4563_v30 = vpop.f32.mrf.mxu3  ;;  %v2740_v41 = vsel %vm2715_vm7, %v2737_v51, %v2739_v40 }
 0x233   : > { %v2479_v56 = vor.u32 %v2478_v5, %v2475_v48  ;;  %v2485_v48 = vshll.u32 %v4582_v49, 16 }
 0x234   : > { %3101 = vst.msk [vmem:[%s4504_s21 + $0xc] sm:$0xf] %vm3097_vm8, %v3064_v33  ;;  %v2953_v62 = vmul.f32 %v4478_v42, %v2913_v36 }
 0x235   : > { %v2226_v57 = vpop.f32.mrf.mxu2  ;;  %v2480_v24 = vsel %vm2346_vm5, %v2470_v61, %v2479_v56 }
 0x236   : > { %v2993_v39 = vadd.f32 %v4483_v34, %v2953_v62  ;;  %v2309_v7 = vadd.f32 %v2226_v57, %v1948_v54  ;;  %v1868_v2 = vpop.f32.mrf.mxu1 }
 0x238   : > { %v3029_v20 = vmax.f32 %v2993_v39, 0.0  ;;  %v2678_v32 = vadd.f32 %v4513_v4, %v2309_v7  ;;  %v2834_v37 = vpop.f32.mrf.mxu0  ;;  %v1949_v4 = vadd.f32 %v1868_v2, %v4115_v10  ;;  %v3660_v10 = vld [vmem:[%s3730_s28 + $0x70] sm:$0xff] }
 0x239   : > { %3438 = vmatmul.msk.bf16.gmra.mxu1 %vm481_vm2, %v1774_v19  ;;  %v1775_v2 = vrot.slane %v3660_v10, 2  ;;  %v2136_v19 = vrot.slane %v4518_v22, 2  ;;  %v4614_v10 = vld [vmem:[%s3730_s28 + $0x90] sm:$0xff] }
 0x23a   : > { %v3065_v28 = vpack.c.bf16 %v3029_v20, %v3029_v20  ;;  %v2914_v47 = vadd.f32 %v2831_v27, %v2678_v32  ;;  %3525 = vmatmul.msk.bf16.gmra.mxu2 %vm481_vm2, %v2135_v18  ;;  %v4577_v36 = vpop.f32.mrf.mxu3  ;;  %v2482_v18 = vshrl.u32 %v4582_v49, 16 }
 0x23b   : > { %3563 = vmatmul.msk.bf16.gmra.mxu0 %vm481_vm2, %v2740_v41 }
 0x23c   : > { %3102 = vst.msk [vmem:[%s4504_s21 + $0x10] sm:$0xf] %vm3097_vm8, %v3065_v28  ;;  %v2954_v13 = vmul.f32 %v4478_v42, %v2914_v47  ;;  %3546 = vmatmul.msk.bf16.gmra.mxu3 %vm481_vm2, %v2480_v24  ;;  %v1776_v47 = vsel %vm1749_vm6, %v1773_v6, %v1775_v2 }
 0x23d   : > { %v2229_v33 = vpop.f32.mrf.mxu2 }
 0x23e   : > { %v2994_v51 = vadd.f32 %v4483_v34, %v2954_v13  ;;  %v2310_v27 = vadd.f32 %v2229_v33, %v1949_v4  ;;  %v1870_v60 = vpop.f32.mrf.mxu1  ;;  %v2137_v13 = vsel %vm1749_vm6, %v2134_v16, %v2136_v19  ;;  %v2484_v4 = vrot.slane %v2482_v18, 2 }
 0x23f   : > { %v1950_v5 = vadd.f32 %v1870_v60, %v4125_v0  ;;  %v2487_v33 = vrot.slane %v2485_v48, 3 }
 0x240   : > { %v3030_v62 = vmax.f32 %v2994_v51, 0.0  ;;  %v2679_v54 = vadd.f32 %v4531_v26, %v2310_v27  ;;  %v2836_v57 = vpop.f32.mrf.mxu0  ;;  %v2741_v26 = vrot.slane %v4518_v22, 3 }
 0x241   : > { %v2488_v6 = vor.u32 %v2487_v33, %v2484_v4 }
 0x242   : > { %v3066_v39 = vpack.c.bf16 %v3030_v62, %v3030_v62  ;;  %v2915_v7 = vadd.f32 %v2834_v37, %v2679_v54  ;;  %v4595_v32 = vpop.f32.mrf.mxu3  ;;  %v2742_v22 = vsel %vm2715_vm7, %v2739_v40, %v2741_v26 }
 0x244   : > { %3103 = vst.msk [vmem:[%s4504_s21 + $0x14] sm:$0xf] %vm3097_vm8, %v3066_v39  ;;  %v2955_v61 = vmul.f32 %v4478_v42, %v2915_v7  ;;  %v2489_v7 = vsel %vm2346_vm5, %v2479_v56, %v2488_v6 }
 0x245   : > { %v2231_v20 = vpop.f32.mrf.mxu2 }
 0x246   : > { %v2995_v37 = vadd.f32 %v4483_v34, %v2955_v61  ;;  %v2311_v41 = vadd.f32 %v2231_v20, %v1950_v5  ;;  %v1873_v28 = vpop.f32.mrf.mxu1 }
 0x248   : > { %v3031_v51 = vmax.f32 %v2995_v37, 0.0  ;;  %v2680_v27 = vadd.f32 %v4545_v45, %v2311_v41  ;;  %v2839_v0 = vpop.f32.mrf.mxu0  ;;  %v1951_v45 = vadd.f32 %v1873_v28, %v4131_v11  ;;  %v3661_v11 = vld [vmem:[%s3730_s28 + $0x78] sm:$0xff]  ;;  %v2138_v41 = vrot.slane %v4550_v58, 2 }
 0x249   : > { %3439 = vmatmul.msk.bf16.gmra.mxu1 %vm481_vm2, %v1776_v47  ;;  %v1777_v37 = vrot.slane %v3661_v11, 2  ;;  %v2491_v28 = vshrl.u32 %v4614_v10, 16  ;;  %v2494_v47 = vshll.u32 %v4614_v10, 16 }
 0x24a   : > { %v3067_v60 = vpack.c.bf16 %v3031_v51, %v3031_v51  ;;  %v2916_v24 = vadd.f32 %v2836_v57, %v2680_v27  ;;  %3526 = vmatmul.msk.bf16.gmra.mxu2 %vm481_vm2, %v2137_v13  ;;  %v4609_v54 = vpop.f32.mrf.mxu3 }
 0x24b   : > { %3564 = vmatmul.msk.bf16.gmra.mxu0 %vm481_vm2, %v2742_v22  ;;  %v1778_v22 = vsel %vm1749_vm6, %v1775_v2, %v1777_v37 }
 0x24c   : > { %3104 = vst.msk [vmem:[%s4504_s21 + $0x18] sm:$0xf] %vm3097_vm8, %v3067_v60  ;;  %v2956_v16 = vmul.f32 %v4478_v42, %v2916_v24  ;;  %3547 = vmatmul.msk.bf16.gmra.mxu3 %vm481_vm2, %v2489_v7  ;;  %v2139_v60 = vsel %vm1749_vm6, %v2136_v19, %v2138_v41  ;;  %v2493_v24 = vrot.slane %v2491_v28, 2 }
 0x24d   : > { %v2234_v62 = vpop.f32.mrf.mxu2 }
 0x24e   : > { %v2996_v40 = vadd.f32 %v4483_v34, %v2956_v16  ;;  %v2312_v57 = vadd.f32 %v2234_v62, %v1951_v45  ;;  %v1875_v39 = vpop.f32.mrf.mxu1  ;;  %v2496_v16 = vrot.slane %v2494_v47, 3 }
 0x24f   : > { %v1952_v13 = vadd.f32 %v1875_v39, %v4141_v17 }
 0x250   : > { %v3032_v18 = vmax.f32 %v2996_v40, 0.0  ;;  %v2681_v48 = vadd.f32 %v4563_v30, %v2312_v57  ;;  %v2841_v61 = vpop.f32.mrf.mxu0  ;;  %v2743_v30 = vrot.slane %v4550_v58, 3  ;;  %v2497_v2 = vor.u32 %v2496_v16, %v2493_v24 }
 0x252   : > { %v3068_v5 = vpack.c.bf16 %v3032_v18, %v3032_v18  ;;  %v2917_v20 = vadd.f32 %v2839_v0, %v2681_v48  ;;  %v4627_v33 = vpop.f32.mrf.mxu3  ;;  %v2744_v58 = vsel %vm2715_vm7, %v2741_v26, %v2743_v30 }
 0x254   : > { %3105 = vst.msk [vmem:[%s4504_s21 + $0x1c] sm:$0xf] %vm3097_vm8, %v3068_v5  ;;  %v2957_v56 = vmul.f32 %v4478_v42, %v2917_v20  ;;  %v4646_v5 = vld [vmem:[%s3730_s28 + $0x98] sm:$0xff] }
 0x255   : > { %v2236_v4 = vpop.f32.mrf.mxu2 }
 0x256   : > { %v2997_v51 = vadd.f32 %v4483_v34, %v2957_v56  ;;  %v2313_v27 = vadd.f32 %v2236_v4, %v1952_v13  ;;  %v1878_v0 = vpop.f32.mrf.mxu1  ;;  %v2140_v4 = vrot.slane %v4582_v49, 2 }
 0x258   : > { %v3033_v45 = vmax.f32 %v2997_v51, 0.0  ;;  %v2682_v62 = vadd.f32 %v4577_v36, %v2313_v27  ;;  %v2844_v17 = vpop.f32.mrf.mxu0  ;;  %v1953_v36 = vadd.f32 %v1878_v0, %v4147_v38  ;;  %v3662_v38 = vld [vmem:[%s3730_s28 + $0x80] sm:$0xff]  ;;  %v2500_v51 = vshrl.u32 %v4646_v5, 16 }
 0x259   : > { %3440 = vmatmul.msk.bf16.gmra.mxu1 %vm481_vm2, %v1778_v22  ;;  %v1779_v13 = vrot.slane %v3662_v38, 2  ;;  %v2503_v27 = vshll.u32 %v4646_v5, 16  ;;  %v2745_v0 = vrot.slane %v4582_v49, 3 }
 0x25a   : > { %v3069_v40 = vpack.c.bf16 %v3033_v45, %v3033_v45  ;;  %v2918_v57 = vadd.f32 %v2841_v61, %v2682_v62  ;;  %3527 = vmatmul.msk.bf16.gmra.mxu2 %vm481_vm2, %v2139_v60  ;;  %v4641_v7 = vpop.f32.mrf.mxu3  ;;  %v2498_v61 = vsel %vm2346_vm5, %v2488_v6, %v2497_v2 }
 0x25b   : > { %3565 = vmatmul.msk.bf16.gmra.mxu0 %vm481_vm2, %v2744_v58  ;;  %v1780_v62 = vsel %vm1749_vm6, %v1777_v37, %v1779_v13  ;;  %v2502_v58 = vrot.slane %v2500_v51, 2  ;;  %v2746_v49 = vsel %vm2715_vm7, %v2743_v30, %v2745_v0 }
 0x25c   : > { %3106 = vst.msk [vmem:[%s4504_s21 + $0x20] sm:$0xf] %vm3097_vm8, %v3069_v40  ;;  %v2958_v19 = vmul.f32 %v4478_v42, %v2918_v57  ;;  %3548 = vmatmul.msk.bf16.gmra.mxu3 %vm481_vm2, %v2498_v61  ;;  %v2505_v40 = vrot.slane %v2503_v27, 3 }
 0x25d   : > { %v2239_v39 = vpop.f32.mrf.mxu2 }
 0x25e   : > { %v2998_v26 = vadd.f32 %v4483_v34, %v2958_v19  ;;  %v2314_v18 = vadd.f32 %v2239_v39, %v1953_v36  ;;  %v1880_v48 = vpop.f32.mrf.mxu1  ;;  %v2340_v36 = vld [vmem:[%s3730_s28 + $0xa0] sm:$0x7]  ;;  %v2506_v37 = vor.u32 %v2505_v40, %v2502_v58 }
 0x260   : > { %v3034_v20 = vmax.f32 %v2998_v26, 0.0  ;;  %v2683_v11 = vadd.f32 %v4595_v32, %v2314_v18  ;;  %v2846_v28 = vpop.f32.mrf.mxu0  ;;  %v1954_v32 = vadd.f32 %v1880_v48, %v4157_v31  ;;  %v2344_v18 = vunpack.c.l.b16 %v2340_v36 }
 0x262   : > { %v3070_v47 = vpack.c.bf16 %v3034_v20, %v3034_v20  ;;  %v2919_v56 = vadd.f32 %v2844_v17, %v2683_v11  ;;  %v4659_v60 = vpop.f32.mrf.mxu3  ;;  %v2141_v17 = vsel %vm1749_vm6, %v2138_v41, %v2140_v4 }
 0x264   : > { %3107 = vst.msk [vmem:[%s4504_s21 + $0x24] sm:$0xf] %vm3097_vm8, %v3070_v47  ;;  %v2959_v6 = vmul.f32 %v4478_v42, %v2919_v56  ;;  %v4678_v47 = vpack.c.b16 %v2344_v18, %v2344_v18 }
 0x265   : > { %v2241_v22 = vpop.f32.mrf.mxu2 }
 0x266   : > { %v2999_v24 = vadd.f32 %v4483_v34, %v2959_v6  ;;  %v2315_v16 = vadd.f32 %v2241_v22, %v1954_v32  ;;  %v1883_v45 = vpop.f32.mrf.mxu1  ;;  %v2142_v22 = vrot.slane %v4614_v10, 2 }
 0x268   : > { %v3035_v57 = vmax.f32 %v2999_v24, 0.0  ;;  %v2684_v19 = vadd.f32 %v4609_v54, %v2315_v16  ;;  %v2849_v31 = vpop.f32.mrf.mxu0  ;;  %v1955_v54 = vadd.f32 %v1883_v45, %v4166_v35  ;;  %v3663_v35 = vld [vmem:[%s3730_s28 + $0x88] sm:$0xff]  ;;  %v2509_v24 = vshrl.u32 %v4678_v47, 16  ;;  %v4885_v45 = vld [vmem:[#allocation10_spill] sm:$0xff] }
 0x269   : > { %3441 = vmatmul.msk.bf16.gmra.mxu1 %vm481_vm2, %v1780_v62  ;;  %v1781_v32 = vrot.slane %v3663_v35, 2  ;;  %v2512_v16 = vshll.u32 %v4678_v47, 16 }
 0x26a   : > { %v3071_v39 = vpack.c.bf16 %v3035_v57, %v3035_v57  ;;  %v2920_v26 = vadd.f32 %v2846_v28, %v2684_v19  ;;  %3528 = vmatmul.msk.bf16.gmra.mxu2 %vm481_vm2, %v2141_v17  ;;  %v4674_v30 = vpop.f32.mrf.mxu3  ;;  %v2507_v28 = vsel %vm2346_vm5, %v2497_v2, %v2506_v37  ;;  %v2511_v36 = vrot.slane %v2509_v24, 2 }
 0x26b   : > { %3566 = vmatmul.msk.bf16.gmra.mxu0 %vm481_vm2, %v2746_v49  ;;  %v2143_v49 = vsel %vm1749_vm6, %v2140_v4, %v2142_v22  ;;  %v4886_v4 = vld [vmem:[#allocation11_spill] sm:$0xff] }
 0x26c   : > { %3108 = vst.msk [vmem:[%s4504_s21 + $0x28] sm:$0xf] %vm3097_vm8, %v3071_v39  ;;  %v2960_v41 = vmul.f32 %v4478_v42, %v2920_v26  ;;  %3549 = vmatmul.msk.bf16.gmra.mxu3 %vm481_vm2, %v2507_v28  ;;  %v2514_v39 = vrot.slane %v2512_v16, 3  ;;  %v3664_v16 = vld [vmem:[%s3730_s28 + $0x90] sm:$0xff] }
 0x26d   : > { %v2244_v48 = vpop.f32.mrf.mxu2 }
 0x26e   : > { %v3000_v61 = vadd.f32 %v4483_v34, %v2960_v41  ;;  %v2316_v20 = vadd.f32 %v2244_v48, %v1955_v54  ;;  %v1885_v11 = vpop.f32.mrf.mxu1 }
 0x26f   : > { %v1956_v62 = vadd.f32 %v1885_v11, %v4885_v45  ;;  %v2144_v45 = vrot.slane %v4646_v5, 2 }
 0x270   : > { %v3036_v56 = vmax.f32 %v3000_v61, 0.0  ;;  %v2685_v38 = vadd.f32 %v4627_v33, %v2316_v20  ;;  %v2851_v51 = vpop.f32.mrf.mxu0  ;;  %v2747_v33 = vrot.slane %v4614_v10, 3  ;;  %v2515_v61 = vor.u32 %v2514_v39, %v2511_v36 }
 0x271   : > { %v2145_v36 = vsel %vm1749_vm6, %v2142_v22, %v2144_v45 }
 0x272   : > { %v3072_v27 = vpack.c.bf16 %v3036_v56, %v3036_v56  ;;  %v2921_v6 = vadd.f32 %v2849_v31, %v2685_v38  ;;  %v4691_v58 = vpop.f32.mrf.mxu3  ;;  %v1782_v31 = vsel %vm1749_vm6, %v1779_v13, %v1781_v32  ;;  %v2748_v10 = vsel %vm2715_vm7, %v2745_v0, %v2747_v33 }
 0x273   : > { %v2516_v38 = vsel %vm2346_vm5, %v2506_v37, %v2515_v61  ;;  %v2749_v37 = vrot.slane %v4646_v5, 3 }
 0x274   : > { %3109 = vst.msk [vmem:[%s4504_s21 + $0x2c] sm:$0xf] %vm3097_vm8, %v3072_v27  ;;  %v2961_v2 = vmul.f32 %v4478_v42, %v2921_v6 }
 0x275   : > { %v2246_v17 = vpop.f32.mrf.mxu2 }
 0x276   : > { %v3001_v40 = vadd.f32 %v4483_v34, %v2961_v2  ;;  %v2317_v57 = vadd.f32 %v2246_v17, %v1956_v62  ;;  %v1888_v19 = vpop.f32.mrf.mxu1  ;;  %v1783_v2 = vrot.slane %v3664_v16, 2 }
 0x277   : > { %v1957_v20 = vadd.f32 %v1888_v19, %v4886_v4 }
 0x278   : > { %v3037_v26 = vmax.f32 %v3001_v40, 0.0  ;;  %v2686_v18 = vadd.f32 %v4641_v7, %v2317_v57  ;;  %v2854_v41 = vpop.f32.mrf.mxu0 }
 0x279   : > { %3442 = vmatmul.msk.bf16.gmra.mxu1 %vm481_vm2, %v1782_v31 }
 0x27a   : > { %v3073_v54 = vpack.c.bf16 %v3037_v26, %v3037_v26  ;;  %v2922_v48 = vadd.f32 %v2851_v51, %v2686_v18  ;;  %3529 = vmatmul.msk.bf16.gmra.mxu2 %vm481_vm2, %v2143_v49  ;;  %v4705_v11 = vpop.f32.mrf.mxu3  ;;  %v1784_v49 = vsel %vm1749_vm6, %v1781_v32, %v1783_v2 }
 0x27b   : > { %3567 = vmatmul.msk.bf16.gmra.mxu0 %vm481_vm2, %v2748_v10 }
 0x27c   : > { %3110 = vst.msk [vmem:[%s4504_s21 + $0x30] sm:$0xf] %vm3097_vm8, %v3073_v54  ;;  %v2962_v13 = vmul.f32 %v4478_v42, %v2922_v48  ;;  %3550 = vmatmul.msk.bf16.gmra.mxu3 %vm481_vm2, %v2516_v38  ;;  %v1785_v38 = vrot.slane %v4217_v12, 2 }
 0x27d   : > { %v2249_v7 = vpop.f32.mrf.mxu2 }
 0x27e   : > { %v3002_v0 = vadd.f32 %v4483_v34, %v2962_v13  ;;  %v2318_v28 = vadd.f32 %v2249_v7, %v1957_v20  ;;  %v1890_v56 = vpop.f32.mrf.mxu1 }
 0x27f   : > { %v1958_v17 = vadd.f32 %v1890_v56, %v4222_v44  ;;  %v2015_v44 = vld [vmem:[%s3730_s28 + $0xa0] sm:$0x3] }
 0x280   : > { %v3038_v51 = vmax.f32 %v3002_v0, 0.0  ;;  %v2687_v27 = vadd.f32 %v4659_v60, %v2318_v28  ;;  %v2856_v6 = vpop.f32.mrf.mxu0  ;;  %v2091_v54 = vunpack.c.l.b16 %v2015_v44 }
 0x282   : > { %v3074_v35 = vpack.c.bf16 %v3038_v51, %v3038_v51  ;;  %v2923_v24 = vadd.f32 %v2854_v41, %v2687_v27  ;;  %v2628_v60 = vpop.f32.mrf.mxu3  ;;  %v2750_v41 = vsel %vm2715_vm7, %v2747_v33, %v2749_v37  ;;  %v2110_v4 = vpack.c.b16 %v2091_v54, %v2091_v54 }
 0x284   : > { %3111 = vst.msk [vmem:[%s4504_s21 + $0x34] sm:$0xf] %vm3097_vm8, %v3074_v35  ;;  %v2963_v62 = vmul.f32 %v4478_v42, %v2923_v24  ;;  %v2146_v51 = vrot.slane %v2110_v4, 2 }
 0x285   : > { %v2251_v40 = vpop.f32.mrf.mxu2 }
 0x286   : > { %v3003_v57 = vadd.f32 %v4483_v34, %v2963_v62  ;;  %v2319_v19 = vadd.f32 %v2251_v40, %v1958_v17  ;;  %v1893_v31 = vpop.f32.mrf.mxu1  ;;  %v1786_v17 = vsel %vm1749_vm6, %v1783_v2, %v1785_v38  ;;  %v2147_v12 = vsel %vm1749_vm6, %v2144_v45, %v2146_v51 }
 0x288   : > { %v3039_v39 = vmax.f32 %v3003_v57, 0.0  ;;  %v2688_v26 = vadd.f32 %v4674_v30, %v2319_v19  ;;  %v2859_v18 = vpop.f32.mrf.mxu0  ;;  %v1959_v30 = vadd.f32 %v1893_v31, %v4236_v9 }
 0x289   : > { %3443 = vmatmul.msk.bf16.gmra.mxu1 %vm481_vm2, %v1784_v49 }
 0x28a   : > { %v3075_v10 = vpack.c.bf16 %v3039_v39, %v3039_v39  ;;  %v2924_v5 = vadd.f32 %v2856_v6, %v2688_v26  ;;  %3530 = vmatmul.msk.bf16.gmra.mxu2 %vm481_vm2, %v2145_v36  ;;  %v2630_v48 = vpop.f32.mrf.mxu3  ;;  %v2751_v6 = vrot.slane %v4678_v47, 3 }
 0x28b   : > { %3568 = vmatmul.msk.bf16.gmra.mxu0 %vm481_vm2, %v2750_v41 }
 0x28c   : > { %3112 = vst.msk [vmem:[%s4504_s21 + $0x38] sm:$0xf] %vm3097_vm8, %v3075_v10  ;;  %v2964_v32 = vmul.f32 %v4478_v42, %v2924_v5  ;;  %v2752_v31 = vsel %vm2715_vm7, %v2749_v37, %v2751_v6 }
 0x28d   : > { %v2254_v22 = vpop.f32.mrf.mxu2 }
 0x28e   : > { %v3004_v33 = vadd.f32 %v4483_v34, %v2964_v32  ;;  %v2320_v61 = vadd.f32 %v2254_v22, %v1959_v30  ;;  %v1895_v13 = vpop.f32.mrf.mxu1 }
 0x28f   : > { %v1960_v27 = vadd.f32 %v1895_v13, %v4252_v46 }
 0x290   : > { %v3040_v20 = vmax.f32 %v3004_v33, 0.0  ;;  %v2689_v7 = vadd.f32 %v4691_v58, %v2320_v61  ;;  %v2861_v0 = vpop.f32.mrf.mxu0 }
 0x292   : > { %v3076_v28 = vpack.c.bf16 %v3040_v20, %v3040_v20  ;;  %v2925_v56 = vadd.f32 %v2859_v18, %v2689_v7  ;;  %v2633_v24 = vpop.f32.mrf.mxu3 }
 0x294   : > { %3113 = vst.msk [vmem:[%s4504_s21 + $0x3c] sm:$0xf] %vm3097_vm8, %v3076_v28  ;;  %v2965_v9 = vmul.f32 %v4478_v42, %v2925_v56 }
 0x295   : > { %v2256_v35 = vpop.f32.mrf.mxu2 }
 0x296   : > { %v3005_v16 = vadd.f32 %v4483_v34, %v2965_v9  ;;  %v2321_v58 = vadd.f32 %v2256_v35, %v1960_v27  ;;  %v1898_v62 = vpop.f32.mrf.mxu1 }
 0x297   : > { %v1961_v2 = vadd.f32 %v1898_v62, %v4269_v14 }
 0x298   : > { %v3041_v40 = vmax.f32 %v3005_v16, 0.0  ;;  %v2690_v57 = vadd.f32 %v4705_v11, %v2321_v58  ;;  %v2864_v19 = vpop.f32.mrf.mxu0 }
 0x299   : > { %3444 = vmatmul.msk.bf16.gmra.mxu1 %vm481_vm2, %v1786_v17 }
 0x29a   : > { %v3077_v46 = vpack.c.bf16 %v3041_v40, %v3041_v40  ;;  %v2926_v49 = vadd.f32 %v2861_v0, %v2690_v57  ;;  %3531 = vmatmul.msk.bf16.gmra.mxu2 %vm481_vm2, %v2147_v12  ;;  %v2635_v11 = vpop.f32.mrf.mxu3 }
 0x29b   : > { %3569 = vmatmul.msk.bf16.gmra.mxu0 %vm481_vm2, %v2752_v31 }
 0x29c   : > { %3114 = vst.msk [vmem:[%s4504_s21 + $0x40] sm:$0xf] %vm3097_vm8, %v3077_v46  ;;  %v2966_v47 = vmul.f32 %v4478_v42, %v2926_v49 }
 0x29d   : > { %v2259_v45 = vpop.f32.mrf.mxu2 }
 0x29e   : > { %v3006_v36 = vadd.f32 %v4483_v34, %v2966_v47  ;;  %v2322_v37 = vadd.f32 %v2259_v45, %v1961_v2  ;;  %v1900_v39 = vpop.f32.mrf.mxu1 }
 0x29f   : > { %v1962_v54 = vadd.f32 %v1900_v39, %v4283_v21 }
 0x2a0   : > { %v3042_v26 = vmax.f32 %v3006_v36, 0.0  ;;  %v2691_v18 = vadd.f32 %v2628_v60, %v2322_v37  ;;  %v2866_v41 = vpop.f32.mrf.mxu0 }
 0x2a2   : > { %v3078_v44 = vpack.c.bf16 %v3042_v26, %v3042_v26  ;;  %v2927_v10 = vadd.f32 %v2864_v19, %v2691_v18  ;;  %v2638_v14 = vpop.f32.mrf.mxu3 }
 0x2a4   : > { %3115 = vst.msk [vmem:[%s4504_s21 + $0x44] sm:$0xf] %vm3097_vm8, %v3078_v44  ;;  %v2967_v5 = vmul.f32 %v4478_v42, %v2927_v10 }
 0x2a5   : > { %v2261_v32 = vpop.f32.mrf.mxu2 }
 0x2a6   : > { %v3007_v30 = vadd.f32 %v4483_v34, %v2967_v5  ;;  %v2323_v22 = vadd.f32 %v2261_v32, %v1962_v54  ;;  %v1903_v33 = vpop.f32.mrf.mxu1 }
 0x2a7   : > { %v1963_v0 = vadd.f32 %v1903_v33, %v4293_v23 }
 0x2a8   : > { %v3043_v61 = vmax.f32 %v3007_v30, 0.0  ;;  %v2692_v13 = vadd.f32 %v2630_v48, %v2323_v22  ;;  %v2869_v4 = vpop.f32.mrf.mxu0 }
 0x2aa   : > { %v3079_v60 = vpack.c.bf16 %v3043_v61, %v3043_v61  ;;  %v2928_v20 = vadd.f32 %v2866_v41, %v2692_v13  ;;  %v2640_v51 = vpop.f32.mrf.mxu3 }
 0x2ac   : > { %3116 = vst.msk [vmem:[%s4504_s21 + $0x48] sm:$0xf] %vm3097_vm8, %v3079_v60  ;;  %v2968_v7 = vmul.f32 %v4478_v42, %v2928_v20 }
 0x2ad   : > { %v2264_v28 = vpop.f32.mrf.mxu2 }
 0x2ae   : > { %v3008_v21 = vadd.f32 %v4483_v34, %v2968_v7  ;;  %v2324_v56 = vadd.f32 %v2264_v28, %v1963_v0  ;;  %v1905_v38 = vpop.f32.mrf.mxu1 }
 0x2af   : > { %v1964_v58 = vadd.f32 %v1905_v38, %v4307_v59 }
 0x2b0   : > { %v3044_v9 = vmax.f32 %v3008_v21, 0.0  ;;  %v2693_v27 = vadd.f32 %v2633_v24, %v2324_v56  ;;  %v2871_v6 = vpop.f32.mrf.mxu0 }
 0x2b2   : > { %v3080_v48 = vpack.c.bf16 %v3044_v9, %v3044_v9  ;;  %v2929_v35 = vadd.f32 %v2869_v4, %v2693_v27  ;;  %v2643_v31 = vpop.f32.mrf.mxu3 }
 0x2b4   : > { %3117 = vst.msk [vmem:[%s4504_s21 + $0x4c] sm:$0xf] %vm3097_vm8, %v3080_v48  ;;  %v2969_v16 = vmul.f32 %v4478_v42, %v2929_v35 }
 0x2b5   : > { %v2266_v62 = vpop.f32.mrf.mxu2 }
 0x2b6   : > { %v3009_v23 = vadd.f32 %v4483_v34, %v2969_v16  ;;  %v2325_v17 = vadd.f32 %v2266_v62, %v1964_v58  ;;  %v1908_v12 = vpop.f32.mrf.mxu1 }
 0x2b7   : > { %v1965_v47 = vadd.f32 %v1908_v12, %v4316_v43 }
 0x2b8   : > { %v3045_v40 = vmax.f32 %v3009_v23, 0.0  ;;  %v2694_v57 = vadd.f32 %v2635_v11, %v2325_v17  ;;  %v2874_v19 = vpop.f32.mrf.mxu0 }
 0x2ba   : > { %v3081_v24 = vpack.c.bf16 %v3045_v40, %v3045_v40  ;;  %v2930_v46 = vadd.f32 %v2871_v6, %v2694_v57  ;;  %v2645_v41 = vpop.f32.mrf.mxu3 }
 0x2bc   : > { %3118 = vst.msk [vmem:[%s4504_s21 + $0x50] sm:$0xf] %vm3097_vm8, %v3081_v24  ;;  %v2970_v49 = vmul.f32 %v4478_v42, %v2930_v46 }
 0x2bd   : > { %v2269_v2 = vpop.f32.mrf.mxu2 }
 0x2be   : > { %v3010_v59 = vadd.f32 %v4483_v34, %v2970_v49  ;;  %v2326_v45 = vadd.f32 %v2269_v2, %v1965_v47  ;;  %v1910_v36 = vpop.f32.mrf.mxu1 }
 0x2bf   : > { %v1966_v10 = vadd.f32 %v1910_v36, %v4329_v25 }
 0x2c0   : > { %v3046_v37 = vmax.f32 %v3010_v59, 0.0  ;;  %v2695_v39 = vadd.f32 %v2638_v14, %v2326_v45  ;;  %v2876_v26 = vpop.f32.mrf.mxu0 }
 0x2c2   : > { %v3082_v11 = vpack.c.bf16 %v3046_v37, %v3046_v37  ;;  %v2931_v18 = vadd.f32 %v2874_v19, %v2695_v39  ;;  %v2648_v20 = vpop.f32.mrf.mxu3 }
 0x2c4   : > { %3119 = vst.msk [vmem:[%s4504_s21 + $0x54] sm:$0xf] %vm3097_vm8, %v3082_v11  ;;  %v2971_v44 = vmul.f32 %v4478_v42, %v2931_v18 }
 0x2c5   : > { %v2271_v5 = vpop.f32.mrf.mxu2 }
 0x2c6   : > { %v3011_v43 = vadd.f32 %v4483_v34, %v2971_v44  ;;  %v2327_v54 = vadd.f32 %v2271_v5, %v1966_v10  ;;  %v1913_v32 = vpop.f32.mrf.mxu1 }
 0x2c7   : > { %v1967_v4 = vadd.f32 %v1913_v32, %v4338_v8 }
 0x2c8   : > { %v3047_v30 = vmax.f32 %v3011_v43, 0.0  ;;  %v2696_v22 = vadd.f32 %v2640_v51, %v2327_v54  ;;  %v2879_v33 = vpop.f32.mrf.mxu0 }
 0x2ca   : > { %v3083_v14 = vpack.c.bf16 %v3047_v30, %v3047_v30  ;;  %v2932_v61 = vadd.f32 %v2876_v26, %v2696_v22  ;;  %v2650_v16 = vpop.f32.mrf.mxu3 }
 0x2cc   : > { %3120 = vst.msk [vmem:[%s4504_s21 + $0x58] sm:$0xf] %vm3097_vm8, %v3083_v14  ;;  %v2972_v13 = vmul.f32 %v4478_v42, %v2932_v61 }
 0x2cd   : > { %v2274_v60 = vpop.f32.mrf.mxu2 }
 0x2ce   : > { %v3012_v25 = vadd.f32 %v4483_v34, %v2972_v13  ;;  %v2328_v7 = vadd.f32 %v2274_v60, %v1967_v4  ;;  %v1915_v0 = vpop.f32.mrf.mxu1 }
 0x2cf   : > { %v1968_v27 = vadd.f32 %v1915_v0, %v4351_v50 }
 0x2d0   : > { %v3048_v28 = vmax.f32 %v3012_v25, 0.0  ;;  %v2697_v21 = vadd.f32 %v2643_v31, %v2328_v7  ;;  %v2881_v56 = vpop.f32.mrf.mxu0 }
 0x2d2   : > { %v3084_v38 = vpack.c.bf16 %v3048_v28, %v3048_v28  ;;  %v2933_v51 = vadd.f32 %v2879_v33, %v2697_v21  ;;  %v2653_v2 = vpop.f32.mrf.mxu3 }
 0x2d4   : > { %3121 = vst.msk [vmem:[%s4504_s21 + $0x5c] sm:$0xf] %vm3097_vm8, %v3084_v38  ;;  %v2973_v9 = vmul.f32 %v4478_v42, %v2933_v51 }
 0x2d5   : > { %v2276_v6 = vpop.f32.mrf.mxu2 }
 0x2d6   : > { %v3013_v8 = vadd.f32 %v4483_v34, %v2973_v9  ;;  %v2329_v48 = vadd.f32 %v2276_v6, %v1968_v27  ;;  %v1918_v35 = vpop.f32.mrf.mxu1 }
 0x2d7   : > { %v1969_v57 = vadd.f32 %v1918_v35, %v4360_v29 }
 0x2d8   : > { %v3049_v58 = vmax.f32 %v3013_v8, 0.0  ;;  %v2698_v62 = vadd.f32 %v2645_v41, %v2329_v48  ;;  %v2884_v23 = vpop.f32.mrf.mxu0 }
 0x2da   : > { %v3085_v17 = vpack.c.bf16 %v3049_v58, %v3049_v58  ;;  %v2934_v12 = vadd.f32 %v2881_v56, %v2698_v62  ;;  %v2655_v43 = vpop.f32.mrf.mxu3 }
 0x2dc   : > { %3122 = vst.msk [vmem:[%s4504_s21 + $0x60] sm:$0xf] %vm3097_vm8, %v3085_v17  ;;  %v2974_v40 = vmul.f32 %v4478_v42, %v2934_v12 }
 0x2dd   : > { %v2279_v19 = vpop.f32.mrf.mxu2 }
 0x2de   : > { %v3014_v50 = vadd.f32 %v4483_v34, %v2974_v40  ;;  %v2330_v31 = vadd.f32 %v2279_v19, %v1969_v57  ;;  %v1920_v24 = vpop.f32.mrf.mxu1 }
 0x2df   : > { %v1970_v37 = vadd.f32 %v1920_v24, %v4373_v15 }
 0x2e0   : > { %v3050_v46 = vmax.f32 %v3014_v50, 0.0  ;;  %v2699_v49 = vadd.f32 %v2648_v20, %v2330_v31  ;;  %v2886_v47 = vpop.f32.mrf.mxu0 }
 0x2e2   : > { %v3086_v59 = vpack.c.bf16 %v3050_v46, %v3050_v46  ;;  %v2935_v45 = vadd.f32 %v2884_v23, %v2699_v49  ;;  %v2658_v0 = vpop.f32.mrf.mxu3 }
 0x2e4   : > { %3123 = vst.msk [vmem:[%s4504_s21 + $0x64] sm:$0xf] %vm3097_vm8, %v3086_v59  ;;  %v2975_v36 = vmul.f32 %v4478_v42, %v2935_v45 }
 0x2e5   : > { %v2281_v39 = vpop.f32.mrf.mxu2 }
 0x2e6   : > { %v3015_v29 = vadd.f32 %v4483_v34, %v2975_v36  ;;  %v2331_v26 = vadd.f32 %v2281_v39, %v1970_v37  ;;  %v1923_v11 = vpop.f32.mrf.mxu1 }
 0x2e7   : > { %v1971_v32 = vadd.f32 %v1923_v11, %v4382_v52  ;;  %v4809_v52 = vld [vmem:[%s4859_s3] ss:$0 sm:$0xff] }
 0x2e8   : > { %v3051_v18 = vmax.f32 %v3015_v29, 0.0  ;;  %v2700_v41 = vadd.f32 %v2650_v16, %v2331_v26  ;;  %v2889_v44 = vpop.f32.mrf.mxu0 }
 0x2ea   : > { %v3087_v10 = vpack.c.bf16 %v3051_v18, %v3051_v18  ;;  %v2936_v5 = vadd.f32 %v2886_v47, %v2700_v41  ;;  %v2660_v58 = vpop.f32.mrf.mxu3 }
 0x2ec   : > { %3124 = vst.msk [vmem:[%s4504_s21 + $0x68] sm:$0xf] %vm3097_vm8, %v3087_v10  ;;  %v2976_v54 = vmul.f32 %v4478_v42, %v2936_v5 }
 0x2ed   : > { %v2284_v30 = vpop.f32.mrf.mxu2 }
 0x2ee   : > { %v3016_v15 = vadd.f32 %v4483_v34, %v2976_v54  ;;  %v2332_v22 = vadd.f32 %v2284_v30, %v1971_v32  ;;  %v1925_v33 = vpop.f32.mrf.mxu1 }
 0x2ef   : > { %v1972_v25 = vadd.f32 %v1925_v33, %v4395_v55  ;;  %v4817_v55 = vld [vmem:[%s4858_s2] ss:$0 sm:$0xff] }
 0x2f0   : > { %v3052_v14 = vmax.f32 %v3016_v15, 0.0  ;;  %v2701_v61 = vadd.f32 %v2653_v2, %v2332_v22  ;;  %v2891_v13 = vpop.f32.mrf.mxu0 }
 0x2f2   : > { %v3088_v4 = vpack.c.bf16 %v3052_v14, %v3052_v14  ;;  %v2937_v60 = vadd.f32 %v2889_v44, %v2701_v61  ;;  %v2663_v47 = vpop.f32.mrf.mxu3 }
 0x2f4   : > { %3125 = vst.msk [vmem:[%s4504_s21 + $0x6c] sm:$0xf] %vm3097_vm8, %v3088_v4  ;;  %v2977_v20 = vmul.f32 %v4478_v42, %v2937_v60  ;;  %v4887_v4 = vld [vmem:[#allocation8_spill] sm:$0xff] }
 0x2f5   : > { %v2286_v7 = vpop.f32.mrf.mxu2 }
 0x2f6   : > { %v3017_v34 = vadd.f32 %v4809_v52, %v2977_v20  ;;  %v2333_v28 = vadd.f32 %v2286_v7, %v1972_v25  ;;  %v1928_v21 = vpop.f32.mrf.mxu1 }
 0x2f7   : > { %v1973_v6 = vadd.f32 %v1928_v21, %v4404_v3 }
 0x2f8   : > { %v3053_v56 = vmax.f32 %v3017_v34, 0.0  ;;  %v2702_v38 = vadd.f32 %v2655_v43, %v2333_v28  ;;  %v2894_v51 = vpop.f32.mrf.mxu0 }
 0x2fa   : > { %v3089_v9 = vpack.c.bf16 %v3053_v56, %v3053_v56  ;;  %v2938_v27 = vadd.f32 %v2891_v13, %v2702_v38  ;;  %v2665_v10 = vpop.f32.mrf.mxu3 }
 0x2fc   : > { %3126 = vst.msk [vmem:[%s4504_s21 + $0x70] sm:$0xf] %vm3097_vm8, %v3089_v9  ;;  %v2978_v42 = vmul.f32 %v4817_v55, %v2938_v27  ;;  %v4888_v9 = vld [vmem:[#allocation9_spill] sm:$0xff] }
 0x2fd   : > { %v2289_v8 = vpop.f32.mrf.mxu2 }
 0x2fe   : > { %v3018_v48 = vadd.f32 %v4809_v52, %v2978_v42  ;;  %v2334_v35 = vadd.f32 %v2289_v8, %v1973_v6  ;;  %v1930_v16 = vpop.f32.mrf.mxu1 }
 0x2ff   : > { %v1974_v19 = vadd.f32 %v1930_v16, %v4417_v63 }
 0x300   : > { %v3054_v62 = vmax.f32 %v3018_v48, 0.0  ;;  %v2703_v23 = vadd.f32 %v2658_v0, %v2334_v35  ;;  %v2896_v17 = vpop.f32.mrf.mxu0 }
 0x302   : > { %v3090_v12 = vpack.c.bf16 %v3054_v62, %v3054_v62  ;;  %v2939_v40 = vadd.f32 %v2894_v51, %v2703_v23  ;;  %v2668_v20 = vpop.f32.mrf.mxu3 }
 0x304   : > { %3127 = vst.msk [vmem:[%s4504_s21 + $0x74] sm:$0xf] %vm3097_vm8, %v3090_v12  ;;  %v2979_v57 = vmul.f32 %v4817_v55, %v2939_v40 }
 0x305   : > { %v2291_v50 = vpop.f32.mrf.mxu2 }
 0x306   : > { %v3019_v3 = vadd.f32 %v4809_v52, %v2979_v57  ;;  %v2335_v31 = vadd.f32 %v2291_v50, %v1974_v19  ;;  %v1933_v24 = vpop.f32.mrf.mxu1 }
 0x307   : > { %v1975_v37 = vadd.f32 %v1933_v24, %v4426_v53 }
 0x308   : > { %v3055_v46 = vmax.f32 %v3019_v3, 0.0  ;;  %v2704_v49 = vadd.f32 %v2660_v58, %v2335_v31  ;;  %v2899_v45 = vpop.f32.mrf.mxu0 }
 0x30a   : > { %v3091_v2 = vpack.c.bf16 %v3055_v46, %v3055_v46  ;;  %v2940_v59 = vadd.f32 %v2896_v17, %v2704_v49  ;;  %v2670_v48 = vpop.f32.mrf.mxu3 }
 0x30c   : > { %3128 = vst.msk [vmem:[%s4504_s21 + $0x78] sm:$0xf] %vm3097_vm8, %v3091_v2  ;;  %v2980_v36 = vmul.f32 %v4817_v55, %v2940_v59 }
 0x30d   : > { %v2294_v39 = vpop.f32.mrf.mxu2 }
 0x30e   : > { %v3020_v63 = vadd.f32 %v4809_v52, %v2980_v36  ;;  %v2336_v29 = vadd.f32 %v2294_v39, %v1975_v37  ;;  %v1935_v26 = vpop.f32.mrf.mxu1 }
 0x30f   : > { %v1976_v43 = vadd.f32 %v1935_v26, %v4439_v1 }
 0x310   : > { %v3056_v11 = vmax.f32 %v3020_v63, 0.0  ;;  %v2705_v18 = vadd.f32 %v2663_v47, %v2336_v29  ;;  %v2901_v54 = vpop.f32.mrf.mxu0 }
 0x312   : > { %v3092_v41 = vpack.c.bf16 %v3056_v11, %v3056_v11  ;;  %v2941_v44 = vadd.f32 %v2899_v45, %v2705_v18 }
 0x314   : > { %3129 = vst.msk [vmem:[%s4504_s21 + $0x7c] sm:$0xf] %vm3097_vm8, %v3092_v41  ;;  %v2981_v5 = vmul.f32 %v4817_v55, %v2941_v44 }
 0x315   : > { %v2296_v32 = vpop.f32.mrf.mxu2 }
 0x316   : > { %v3021_v53 = vadd.f32 %v4809_v52, %v2981_v5  ;;  %v2337_v30 = vadd.f32 %v2296_v32, %v1976_v43  ;;  %v1938_v15 = vpop.f32.mrf.mxu1 }
 0x317   : > { %v1977_v60 = vadd.f32 %v1938_v15, %v4887_v4 }
 0x318   : > { %v3057_v22 = vmax.f32 %v3021_v53, 0.0  ;;  %v2706_v33 = vadd.f32 %v2665_v10, %v2337_v30  ;;  %v2904_v0 = vpop.f32.mrf.mxu0 }
 0x31a   : > { %v3093_v14 = vpack.c.bf16 %v3057_v22, %v3057_v22  ;;  %v2942_v61 = vadd.f32 %v2901_v54, %v2706_v33 }
 0x31c   : > { %3130 = vst.msk [vmem:[%s4504_s21 + $0x80] sm:$0xf] %vm3097_vm8, %v3093_v14  ;;  %v2982_v13 = vmul.f32 %v4817_v55, %v2942_v61 }
 0x31d   : > { %v2299_v25 = vpop.f32.mrf.mxu2 }
 0x31e   : > { %v3022_v1 = vadd.f32 %v4809_v52, %v2982_v13  ;;  %v2338_v7 = vadd.f32 %v2299_v25, %v1977_v60  ;;  %v1940_v21 = vpop.f32.mrf.mxu1 }
 0x31f   : > { %v1978_v27 = vadd.f32 %v1940_v21, %v4888_v9 }
 0x320   : > { %v3058_v34 = vmax.f32 %v3022_v1, 0.0  ;;  %v2707_v28 = vadd.f32 %v2668_v20, %v2338_v7  ;;  %v2906_v58 = vpop.f32.mrf.mxu0 }
 0x322   : > { %v3094_v56 = vpack.c.bf16 %v3058_v34, %v3058_v34  ;;  %v2943_v38 = vadd.f32 %v2904_v0, %v2707_v28 }
 0x324   : > { %3131 = vst.msk [vmem:[%s4504_s21 + $0x84] sm:$0xf] %vm3097_vm8, %v3094_v56  ;;  %v2983_v51 = vmul.f32 %v4817_v55, %v2943_v38 }
 0x325   : > { %v2301_v42 = vpop.f32.mrf.mxu2 }
 0x326   : > { %v3023_v6 = vadd.f32 %v4809_v52, %v2983_v51  ;;  %v2339_v8 = vadd.f32 %v2301_v42, %v1978_v27 }
 0x328   : > { %v3059_v35 = vmax.f32 %v3023_v6, 0.0  ;;  %v2708_v16 = vadd.f32 %v2670_v48, %v2339_v8 }
 0x32a   : > { %v3095_v62 = vpack.c.bf16 %v3059_v35, %v3059_v35  ;;  %v2944_v23 = vadd.f32 %v2906_v58, %v2708_v16 }
 0x32c   : > { %3132 = vst.msk [vmem:[%s4504_s21 + $0x88] sm:$0xf] %vm3097_vm8, %v3095_v62  ;;  %v2984_v17 = vmul.f32 %v4817_v55, %v2944_v23 }
 0x32e   : > { %v3024_v12 = vadd.f32 %v4809_v52, %v2984_v17 }
 0x330   : > { %v3060_v40 = vmax.f32 %v3024_v12, 0.0 }
 0x332   : > { %v3096_v57 = vpack.c.bf16 %v3060_v40, %v3060_v40 }
 0x334   : > { %3133 = vst.msk [vmem:[%s4504_s21 + $0x8c] sm:$0xf] %vm3097_vm8, %v3096_v57 }
 0x335 PF: > { %s14_s15 = sadd.s32 1, %s3673_s15  }
 0x336   : > { %p11_p4 = scmp.ge.s32.totalorder %s14_s15, 4  }
 0x338   :  { %13 = sbr.rel (!%p11_p4) target bundleno = 1 (0x1), region = 74 }

</bundles_post_ra>
